<compile_context>
chip_gen: v7x
topology: tpu7x:2x2x1
jax: 0.10.0
libtpu: 0.0.40
codegen_flags: <defaults>
</compile_context>

<pallas_src>
import functools

import jax
import jax.numpy as jnp
from jax.experimental import pallas as pl
from jax.experimental.pallas import tpu as pltpu


def _round_up(x, m):
    return ((x + m - 1) // m) * m


def _frcnn_kernel(x_ref, w1_ref, c1_ref, w2_ref, c2_ref, wh_ref, bh_ref,
                  logits_ref, probs_ref, bbox_ref, *, num_classes, cls_pad):
    # --- conv1 (7x7 valid) as FC, BN1 + bias folded into w1/c1, ReLU ---
    x = x_ref[...]                                                        # [TM, K1p] bf16
    h = jnp.dot(x, w1_ref[...], preferred_element_type=jnp.float32)      # [TM, C]  f32
    h = jnp.maximum(h + c1_ref[...], 0.0)

    # --- conv2 (1x1) as FC, BN2 + bias folded, ReLU ---
    h2 = jnp.dot(h.astype(jnp.bfloat16), w2_ref[...],
                 preferred_element_type=jnp.float32)                     # [TM, C]
    h2 = jnp.maximum(h2 + c2_ref[...], 0.0)

    # --- fused classification + bbox head: one MXU launch ---
    head = jnp.dot(h2.astype(jnp.bfloat16), wh_ref[...],
                   preferred_element_type=jnp.float32) + bh_ref[...]     # [TM, cls_pad+4K]

    logits = head[:, :num_classes]
    logits_ref[...] = logits

    # numerically stable softmax over classes; divide via EUP reciprocal
    m = jnp.max(logits, axis=1, keepdims=True)
    e = jnp.exp(logits - m)
    probs_ref[...] = e * pl.reciprocal(jnp.sum(e, axis=1, keepdims=True), approx=True)

    bbox_ref[...] = head[:, cls_pad:]                                    # lane-aligned slice


def prepare_params(params, *, depth, pool_size, channel, num_classes,
                   eps=1e-3, cls_pad=128, k_align=128):
    """Fold BN + biases into matmul weights, transpose, pad, cast to bf16. Call once."""
    K1 = depth * pool_size * pool_size
    K1p = _round_up(K1, k_align)
    num_bbox = num_classes * 4
    assert cls_pad >= num_classes

    s1 = params["bn1_g"] / jnp.sqrt(params["bn1_v"] + eps)
    t1 = params["bn1_b"] - params["bn1_m"] * s1
    s2 = params["bn2_g"] / jnp.sqrt(params["bn2_v"] + eps)
    t2 = params["bn2_b"] - params["bn2_m"] * s2

    w1 = params["conv1_w"].reshape(channel, K1).T * s1[None, :]          # [K1, C]
    w1 = jnp.pad(w1, ((0, K1p - K1), (0, 0)))
    c1 = (params["conv1_b"] * s1 + t1).reshape(1, channel)

    w2 = params["conv2_w"].reshape(channel, channel).T * s2[None, :]     # [C, C]
    c2 = (params["conv2_b"] * s2 + t2).reshape(1, channel)

    wc = jnp.pad(params["cls_w"].T, ((0, 0), (0, cls_pad - num_classes)))  # [C, cls_pad]
    wb = params["box_w"].T                                                 # [C, 4K]
    wh = jnp.concatenate([wc, wb], axis=1)                                 # [C, cls_pad+4K]
    bh = jnp.concatenate([jnp.pad(params["cls_b"], (0, cls_pad - num_classes)),
                          params["box_b"]]).reshape(1, cls_pad + num_bbox)

    return {
        "w1": w1.astype(jnp.bfloat16), "c1": c1.astype(jnp.float32),
        "w2": w2.astype(jnp.bfloat16), "c2": c2.astype(jnp.float32),
        "wh": wh.astype(jnp.bfloat16), "bh": bh.astype(jnp.float32),
    }


def fast_rcnn_forward(x_nchw, prepared, *, pool_size, channel, num_classes, tm=128):
    N, depth, H, W = x_nchw.shape
    assert H == pool_size and W == pool_size
    K1 = depth * pool_size * pool_size
    K1p = prepared["w1"].shape[0]
    num_bbox = num_classes * 4
    cls_pad = prepared["wh"].shape[1] - num_bbox

    # Flatten (C, H, W) row-major (matches PyTorch conv weight layout), pad K, cast bf16.
    x = x_nchw.reshape(N, K1).astype(jnp.float32)
    if K1p > K1:
        x = jnp.pad(x, ((0, 0), (0, K1p - K1)))
    x = x.astype(jnp.bfloat16)

    tm = min(tm, _round_up(N, 8))
    Np = _round_up(N, tm)
    if Np > N:
        x = jnp.pad(x, ((0, Np - N), (0, 0)))

    def w_spec(arr):
        # Weight blocks always map to block (0,0): stay VMEM-resident across grid steps.
        return pl.BlockSpec(arr.shape, lambda i: (0, 0))

    kernel = functools.partial(_frcnn_kernel, num_classes=num_classes, cls_pad=cls_pad)

    logits, probs, bbox = pl.pallas_call(
        kernel,
        out_shape=(
            jax.ShapeDtypeStruct((Np, num_classes), jnp.float32),
            jax.ShapeDtypeStruct((Np, num_classes), jnp.float32),
            jax.ShapeDtypeStruct((Np, num_bbox), jnp.float32),
        ),
        grid=(Np // tm,),
        in_specs=[
            pl.BlockSpec((tm, K1p), lambda i: (i, 0)),
            w_spec(prepared["w1"]), w_spec(prepared["c1"]),
            w_spec(prepared["w2"]), w_spec(prepared["c2"]),
            w_spec(prepared["wh"]), w_spec(prepared["bh"]),
        ],
        out_specs=(
            pl.BlockSpec((tm, num_classes), lambda i: (i, 0)),
            pl.BlockSpec((tm, num_classes), lambda i: (i, 0)),
            pl.BlockSpec((tm, num_bbox), lambda i: (i, 0)),
        ),
        compiler_params=pltpu.CompilerParams(dimension_semantics=("parallel",)),
    )(x, prepared["w1"], prepared["c1"], prepared["w2"], prepared["c2"],
      prepared["wh"], prepared["bh"])

    if Np > N:
        logits, probs, bbox = logits[:N], probs[:N], bbox[:N]
    return logits, probs, bbox


def _reference_forward(x_nchw, params, *, pool_size, channel, num_classes):
    """Pure-JAX f32 reference (same math, no folding/bf16) for correctness checking."""
    N, depth = x_nchw.shape[0], x_nchw.shape[1]
    K1 = depth * pool_size * pool_size
    x = x_nchw.reshape(N, K1).astype(jnp.float32)

    h = x @ params["conv1_w"].reshape(channel, K1).T + params["conv1_b"]
    h = (h - params["bn1_m"]) / jnp.sqrt(params["bn1_v"] + 1e-3) * params["bn1_g"] + params["bn1_b"]
    h = jnp.maximum(h, 0.0)
    h = h @ params["conv2_w"].reshape(channel, channel).T + params["conv2_b"]
    h = (h - params["bn2_m"]) / jnp.sqrt(params["bn2_v"] + 1e-3) * params["bn2_g"] + params["bn2_b"]
    h = jnp.maximum(h, 0.0)
    logits = h @ params["cls_w"].T + params["cls_b"]
    probs = jax.nn.softmax(logits, axis=1)
    bbox = h @ params["box_w"].T + params["box_b"]
    return logits, probs, bbox


if __name__ == "__main__":
    # Config consistent with the module: FastRCNN(depth=64, pool_size=7, num_classes=81);
    # channel is fixed at 384 by the module.  N = 256 RoIs exercises the N-grid (2 tiles).
    depth, pool_size, num_classes, channel = 64, 7, 81, 384
    num_bbox = num_classes * 4
    N = 256

    key = jax.random.PRNGKey(0)
    keys = jax.random.split(key, 12)

    x = jax.random.normal(keys[0], (N, depth, pool_size, pool_size), dtype=jnp.float32)

    params = {
        "conv1_w": 0.02 * jax.random.normal(keys[1], (channel, depth, pool_size, pool_size), jnp.float32),
        "conv1_b": 0.01 * jax.random.normal(keys[2], (channel,), jnp.float32),
        "bn1_g": 1.0 + 0.1 * jax.random.normal(keys[3], (channel,), jnp.float32),
        "bn1_b": 0.1 * jax.random.normal(keys[4], (channel,), jnp.float32),
        "bn1_m": 0.05 * jax.random.normal(keys[5], (channel,), jnp.float32),
        "bn1_v": jnp.abs(1.0 + 0.1 * jax.random.normal(keys[6], (channel,), jnp.float32)),
        "conv2_w": 0.05 * jax.random.normal(keys[7], (channel, channel, 1, 1), jnp.float32),
        "conv2_b": 0.01 * jax.random.normal(keys[8], (channel,), jnp.float32),
        "bn2_g": jnp.ones((channel,), jnp.float32),
        "bn2_b": jnp.zeros((channel,), jnp.float32),
        "bn2_m": jnp.zeros((channel,), jnp.float32),
        "bn2_v": jnp.ones((channel,), jnp.float32),
        "cls_w": 0.05 * jax.random.normal(keys[9], (num_classes, channel), jnp.float32),
        "cls_b": jnp.zeros((num_classes,), jnp.float32),
        "box_w": 0.05 * jax.random.normal(keys[10], (num_bbox, channel), jnp.float32),
        "box_b": 0.01 * jax.random.normal(keys[11], (num_bbox,), jnp.float32),
    }

    # Fold / transpose / cast once at parameter-prep time (not per forward call).
    prepared = prepare_params(params, depth=depth, pool_size=pool_size,
                              channel=channel, num_classes=num_classes)

    fwd = jax.jit(functools.partial(fast_rcnn_forward, pool_size=pool_size,
                                    channel=channel, num_classes=num_classes))
    logits, probs, bbox = jax.block_until_ready(fwd(x, prepared))

    ref_logits, ref_probs, ref_bbox = _reference_forward(
        x, params, pool_size=pool_size, channel=channel, num_classes=num_classes)

    assert logits.shape == (N, num_classes)
    assert probs.shape == (N, num_classes)
    assert bbox.shape == (N, num_bbox)
    # Tolerances loosened for bf16 weights/activations (f32 accumulation keeps error small).
    assert jnp.allclose(logits, ref_logits, atol=5e-2, rtol=5e-2)
    assert jnp.allclose(probs, ref_probs, atol=5e-3, rtol=5e-2)
    assert jnp.allclose(bbox, ref_bbox, atol=5e-2, rtol=5e-2)

    print("KERNEL_OK")
</pallas_src>

<mosaic_0001>
module attributes {stable_mosaic.version = 11 : i64} {
  func.func @_frcnn_kernel(%arg0: i32, %arg1: memref<128x3200xbf16, #tpu.memory_space<vmem>>, %arg2: memref<3200x384xbf16, #tpu.memory_space<vmem>>, %arg3: memref<1x384xf32, #tpu.memory_space<vmem>>, %arg4: memref<384x384xbf16, #tpu.memory_space<vmem>>, %arg5: memref<1x384xf32, #tpu.memory_space<vmem>>, %arg6: memref<384x452xbf16, #tpu.memory_space<vmem>>, %arg7: memref<1x452xf32, #tpu.memory_space<vmem>>, %arg8: memref<128x81xf32, #tpu.memory_space<vmem>>, %arg9: memref<128x81xf32, #tpu.memory_space<vmem>>, %arg10: memref<128x324xf32, #tpu.memory_space<vmem>>) attributes {dimension_semantics = [#tpu.dimension_semantics<parallel>], iteration_bounds = array<i64: 2>, scalar_prefetch = 0 : i64, scratch_operands = 0 : i64, tpu.core_type = #tpu.core_type<tc>, window_params = [{transform_indices = @transform_0, window_bounds = array<i64: 128, 3200>}, {pipeline_mode = #tpu.pipeline_mode<synchronous>, transform_indices = @transform_1, window_bounds = array<i64: 3200, 384>}, {pipeline_mode = #tpu.pipeline_mode<synchronous>, transform_indices = @transform_2, window_bounds = array<i64: 1, 384>}, {pipeline_mode = #tpu.pipeline_mode<synchronous>, transform_indices = @transform_3, window_bounds = array<i64: 384, 384>}, {pipeline_mode = #tpu.pipeline_mode<synchronous>, transform_indices = @transform_4, window_bounds = array<i64: 1, 384>}, {pipeline_mode = #tpu.pipeline_mode<synchronous>, transform_indices = @transform_5, window_bounds = array<i64: 384, 452>}, {pipeline_mode = #tpu.pipeline_mode<synchronous>, transform_indices = @transform_6, window_bounds = array<i64: 1, 452>}, {transform_indices = @transform_7, window_bounds = array<i64: 128, 81>}, {transform_indices = @transform_8, window_bounds = array<i64: 128, 81>}, {transform_indices = @transform_9, window_bounds = array<i64: 128, 324>}]} {
    %c0 = arith.constant 0 : index
    %c0_0 = arith.constant 0 : index
    %0 = vector.load %arg1[%c0, %c0_0] : memref<128x3200xbf16, #tpu.memory_space<vmem>>, vector<128x3200xbf16>
    %c0_1 = arith.constant 0 : index
    %c0_2 = arith.constant 0 : index
    %1 = vector.load %arg2[%c0_1, %c0_2] : memref<3200x384xbf16, #tpu.memory_space<vmem>>, vector<3200x384xbf16>
    %cst = arith.constant dense<0.000000e+00> : vector<128x384xf32>
    %2 = tpu.matmul %0, %1, %cst {dimension_numbers = #tpu.dot_dimension_numbers<[1], [0], [0], [1], [0, 0, 1, 1], [], []>} : vector<128x3200xbf16>, vector<3200x384xbf16>, vector<128x384xf32> -> vector<128x384xf32>
    %c0_3 = arith.constant 0 : index
    %c0_4 = arith.constant 0 : index
    %3 = vector.load %arg3[%c0_3, %c0_4] : memref<1x384xf32, #tpu.memory_space<vmem>>, vector<1x384xf32>
    %4 = vector.broadcast %3 : vector<1x384xf32> to vector<128x384xf32>
    %5 = arith.addf %2, %4 : vector<128x384xf32>
    %cst_5 = arith.constant 0.000000e+00 : f32
    %6 = vector.broadcast %cst_5 : f32 to vector<128x384xf32>
    %7 = arith.maximumf %5, %6 : vector<128x384xf32>
    %8 = arith.truncf %7 : vector<128x384xf32> to vector<128x384xbf16>
    %c0_6 = arith.constant 0 : index
    %c0_7 = arith.constant 0 : index
    %9 = vector.load %arg4[%c0_6, %c0_7] : memref<384x384xbf16, #tpu.memory_space<vmem>>, vector<384x384xbf16>
    %cst_8 = arith.constant dense<0.000000e+00> : vector<128x384xf32>
    %10 = tpu.matmul %8, %9, %cst_8 {dimension_numbers = #tpu.dot_dimension_numbers<[1], [0], [0], [1], [0, 0, 1, 1], [], []>} : vector<128x384xbf16>, vector<384x384xbf16>, vector<128x384xf32> -> vector<128x384xf32>
    %c0_9 = arith.constant 0 : index
    %c0_10 = arith.constant 0 : index
    %11 = vector.load %arg5[%c0_9, %c0_10] : memref<1x384xf32, #tpu.memory_space<vmem>>, vector<1x384xf32>
    %12 = vector.broadcast %11 : vector<1x384xf32> to vector<128x384xf32>
    %13 = arith.addf %10, %12 : vector<128x384xf32>
    %cst_11 = arith.constant 0.000000e+00 : f32
    %14 = vector.broadcast %cst_11 : f32 to vector<128x384xf32>
    %15 = arith.maximumf %13, %14 : vector<128x384xf32>
    %16 = arith.truncf %15 : vector<128x384xf32> to vector<128x384xbf16>
    %c0_12 = arith.constant 0 : index
    %c0_13 = arith.constant 0 : index
    %17 = vector.load %arg6[%c0_12, %c0_13] : memref<384x452xbf16, #tpu.memory_space<vmem>>, vector<384x452xbf16>
    %cst_14 = arith.constant dense<0.000000e+00> : vector<128x452xf32>
    %18 = tpu.matmul %16, %17, %cst_14 {dimension_numbers = #tpu.dot_dimension_numbers<[1], [0], [0], [1], [0, 0, 1, 1], [], []>} : vector<128x384xbf16>, vector<384x452xbf16>, vector<128x452xf32> -> vector<128x452xf32>
    %c0_15 = arith.constant 0 : index
    %c0_16 = arith.constant 0 : index
    %19 = vector.load %arg7[%c0_15, %c0_16] : memref<1x452xf32, #tpu.memory_space<vmem>>, vector<1x452xf32>
    %20 = vector.broadcast %19 : vector<1x452xf32> to vector<128x452xf32>
    %21 = arith.addf %18, %20 : vector<128x452xf32>
    %22 = vector.extract_strided_slice %21 {offsets = [0, 0], sizes = [128, 81], strides = [1, 1]} : vector<128x452xf32> to vector<128x81xf32>
    %c0_17 = arith.constant 0 : index
    %c0_18 = arith.constant 0 : index
    %23 = vector.load %arg8[%c0_17, %c0_18] : memref<128x81xf32, #tpu.memory_space<vmem>>, vector<128x81xf32>
    tpu.vector_store %arg8[%c0_17, %c0_18], %22 {strides = array<i32>} : memref<128x81xf32, #tpu.memory_space<vmem>>, vector<128x81xf32>,
    %cst_19 = arith.constant dense<0xFF800000> : vector<128xf32>
    %24 = vector.multi_reduction <maximumf>, %22, %cst_19 [1] : vector<128x81xf32> to vector<128xf32>
    %25 = vector.shape_cast %24 : vector<128xf32> to vector<128x1xf32>
    %26 = vector.broadcast %25 : vector<128x1xf32> to vector<128x81xf32>
    %27 = arith.subf %22, %26 : vector<128x81xf32>
    %28 = math.exp %27 : vector<128x81xf32>
    %cst_20 = arith.constant dense<0.000000e+00> : vector<128xf32>
    %29 = vector.multi_reduction <add>, %28, %cst_20 [1] : vector<128x81xf32> to vector<128xf32>
    %30 = vector.shape_cast %29 : vector<128xf32> to vector<128x1xf32>
    %31 = tpu.reciprocal %30 {approx = true} : vector<128x1xf32> -> vector<128x1xf32>
    %32 = vector.broadcast %31 : vector<128x1xf32> to vector<128x81xf32>
    %33 = arith.mulf %28, %32 : vector<128x81xf32>
    %c0_21 = arith.constant 0 : index
    %c0_22 = arith.constant 0 : index
    %34 = vector.load %arg9[%c0_21, %c0_22] : memref<128x81xf32, #tpu.memory_space<vmem>>, vector<128x81xf32>
    tpu.vector_store %arg9[%c0_21, %c0_22], %33 {strides = array<i32>} : memref<128x81xf32, #tpu.memory_space<vmem>>, vector<128x81xf32>,
    %35 = vector.extract_strided_slice %21 {offsets = [0, 128], sizes = [128, 324], strides = [1, 1]} : vector<128x452xf32> to vector<128x324xf32>
    %c0_23 = arith.constant 0 : index
    %c0_24 = arith.constant 0 : index
    %36 = vector.load %arg10[%c0_23, %c0_24] : memref<128x324xf32, #tpu.memory_space<vmem>>, vector<128x324xf32>
    tpu.vector_store %arg10[%c0_23, %c0_24], %35 {strides = array<i32>} : memref<128x324xf32, #tpu.memory_space<vmem>>, vector<128x324xf32>,
    return
  }
  func.func @transform_0(%arg0: i32) -> (i32, i32) {
    %c0_i32 = arith.constant 0 : i32
    %c0_i32_0 = arith.constant 0 : i32
    return %arg0, %c0_i32 : i32, i32
  }
  func.func @transform_1(%arg0: i32) -> (i32, i32) {
    %c0_i32 = arith.constant 0 : i32
    %c0_i32_0 = arith.constant 0 : i32
    %c0_i32_1 = arith.constant 0 : i32
    return %c0_i32, %c0_i32_0 : i32, i32
  }
  func.func @transform_2(%arg0: i32) -> (i32, i32) {
    %c0_i32 = arith.constant 0 : i32
    %c0_i32_0 = arith.constant 0 : i32
    %c0_i32_1 = arith.constant 0 : i32
    return %c0_i32, %c0_i32_0 : i32, i32
  }
  func.func @transform_3(%arg0: i32) -> (i32, i32) {
    %c0_i32 = arith.constant 0 : i32
    %c0_i32_0 = arith.constant 0 : i32
    %c0_i32_1 = arith.constant 0 : i32
    return %c0_i32, %c0_i32_0 : i32, i32
  }
  func.func @transform_4(%arg0: i32) -> (i32, i32) {
    %c0_i32 = arith.constant 0 : i32
    %c0_i32_0 = arith.constant 0 : i32
    %c0_i32_1 = arith.constant 0 : i32
    return %c0_i32, %c0_i32_0 : i32, i32
  }
  func.func @transform_5(%arg0: i32) -> (i32, i32) {
    %c0_i32 = arith.constant 0 : i32
    %c0_i32_0 = arith.constant 0 : i32
    %c0_i32_1 = arith.constant 0 : i32
    return %c0_i32, %c0_i32_0 : i32, i32
  }
  func.func @transform_6(%arg0: i32) -> (i32, i32) {
    %c0_i32 = arith.constant 0 : i32
    %c0_i32_0 = arith.constant 0 : i32
    %c0_i32_1 = arith.constant 0 : i32
    return %c0_i32, %c0_i32_0 : i32, i32
  }
  func.func @transform_7(%arg0: i32) -> (i32, i32) {
    %c0_i32 = arith.constant 0 : i32
    %c0_i32_0 = arith.constant 0 : i32
    return %arg0, %c0_i32 : i32, i32
  }
  func.func @transform_8(%arg0: i32) -> (i32, i32) {
    %c0_i32 = arith.constant 0 : i32
    %c0_i32_0 = arith.constant 0 : i32
    return %arg0, %c0_i32 : i32, i32
  }
  func.func @transform_9(%arg0: i32) -> (i32, i32) {
    %c0_i32 = arith.constant 0 : i32
    %c0_i32_0 = arith.constant 0 : i32
    return %arg0, %c0_i32 : i32, i32
  }
}

</mosaic_0001>

<bundles_post_ra>
// kernel: fast_rcnn_forward.1
= control target key start
LH: loop header
LB: loop body
LE: loop exit
PB: predicated region body
PF: predicated region fallthrough
CT: control target
= control target key end

     0   :  { %s14849_s30 = smov 0   ;;  %s19541_s0 = inlined_call_operand.vmem [shape: bf16[256,3200], index: 0, kind: input, shape index: {}]   ;;  %s19542_s1 = inlined_call_operand.vmem [shape: bf16[3200,384], index: 1, kind: input, shape index: {}]   ;;  %s19543_s2 = inlined_call_operand.vmem [shape: f32[1,384], index: 2, kind: input, shape index: {}]   ;;  %s19544_s3 = inlined_call_operand.vmem [shape: bf16[384,384], index: 3, kind: input, shape index: {}]   ;;  %s19545_s4 = inlined_call_operand.vmem [shape: f32[1,384], index: 4, kind: input, shape index: {}]   ;;  %s19546_s5 = inlined_call_operand.vmem [shape: bf16[384,452], index: 5, kind: input, shape index: {}]   ;;  %s19547_s6 = inlined_call_operand.vmem [shape: f32[1,452], index: 6, kind: input, shape index: {}]   ;;  %s19548_s7 = inlined_call_operand.vmem [shape: f32[256,81], index: 7, kind: output, shape index: {0}]   ;;  %s19549_s8 = inlined_call_operand.vmem [shape: f32[256,81], index: 8, kind: output, shape index: {1}]   ;;  %s19550_s9 = inlined_call_operand.vmem [shape: f32[256,324], index: 9, kind: output, shape index: {2}]  }
   0x1 LB: > { %s10827_s10 = sadd.s32 4294967295, %s14796_s30   ;;  %p10831_p0 = scmp.ge.s32.totalorder %s14796_s30, 1  ;;  %s14796_s30 = sphi %s14849_s30, %s20_s30  }
   0x2   : > { %p294_p1 = scmp.lt.s32.totalorder %s14796_s30, 3 }
   0x4   : > { %p295_p2 = pnand %p10831_p0, %p294_p1 }
   0x6   : > { %298 = sbr.rel (%p295_p2) target bundleno = 2005 (0x7d5), region = 48 }
   0xd   : > { %v13389_v0 = vld [vmem:[%s19542_s1 + $0x4] ss:$12 sps:$4 sm:$0xff]   ;;  %v13391_v1 = vld [vmem:[%s19542_s1 + $0xc8] ss:$12 sps:$4 sm:$0xff]   ;;  %v13392_v2 = vld [vmem:[%s19542_s1] ss:$12 sps:$4 sm:$0xff]  }
   0xe   : > { %5602 = vmatprep.subr.bf16.mxu0 %v13389_v0  ;;  %11810 = vmatprep.subr.bf16.mxu1 %v13391_v1  ;;  %v13393_v3 = vld [vmem:[%s19542_s1 + $0x8] ss:$12 sps:$4 sm:$0xff]   ;;  %v13396_v5 = vld [vmem:[%s19542_s1 + $0xe0] ss:$12 sps:$4 sm:$0xff]   ;;  %v13397_v6 = vld [vmem:[%s19542_s1 + $0x18] ss:$12 sps:$4 sm:$0xff]  }
   0xf   : > { %5603 = vmatpush1.bf16.msra.mxu0 %v13392_v2  ;;  %v13394_v4 = vld [vmem:[%s19542_s1 + $0x1c] ss:$12 sps:$4 sm:$0xff]   ;;  %11811 = vmatpush3.bf16.msra.mxu1 %v13393_v3  ;;  %v13398_v7 = vld [vmem:[%s19542_s1 + $0x20] ss:$12 sps:$4 sm:$0xff]   ;;  %s10832_s29 = sshll.u32 %s10827_s10, 4  ;;  %vm10654_vm0 = vcmask 556032  }
  0x10   : > { %5604 = vmatprep.subr.bf16.mxu0 %v13394_v4  ;;  %11812 = vmatprep.subr.bf16.mxu1 %v13396_v5  ;;  %v13399_v8 = vld [vmem:[%s19542_s1 + $0x34] ss:$12 sps:$4 sm:$0xff]   ;;  %v13401_v9 = vld [vmem:[%s19542_s1 + $0xf8] ss:$12 sps:$4 sm:$0xff]   ;;  %v13402_v10 = vld [vmem:[%s19542_s1 + $0x30] ss:$12 sps:$4 sm:$0xff]  }
  0x11   : > { %v13403_v11 = vld [vmem:[%s19542_s1 + $0x38] ss:$12 sps:$4 sm:$0xff]   ;;  %p343_p3 = scmp.lt.s32.totalorder %s10832_s29, 31  ;;  %v13406_v13 = vld [vmem:[%s19542_s1 + $0x110] ss:$12 sps:$4 sm:$0xff]   ;;  %vm10443_vm1 = vcmask 662528  }
  0x12   : > { %v13404_v12 = vld [vmem:[%s19542_s1 + $0x4c] ss:$12 sps:$4 sm:$0xff]   ;;  %v13407_v14 = vld [vmem:[%s19542_s1 + $0x48] ss:$12 sps:$4 sm:$0xff]   ;;  %v13408_v15 = vld [vmem:[%s19542_s1 + $0x50] ss:$12 sps:$4 sm:$0xff]  }
  0x13   : > { %5605 = vmatpush1.bf16.msra.mxu0 %v13397_v6  ;;  %11813 = vmatpush3.bf16.msra.mxu1 %v13398_v7  ;;  %v13409_v16 = vld [vmem:[%s19542_s1 + $0x64] ss:$12 sps:$4 sm:$0xff]   ;;  %v13411_v17 = vld [vmem:[%s19542_s1 + $0x128] ss:$12 sps:$4 sm:$0xff]   ;;  %v13412_v18 = vld [vmem:[%s19542_s1 + $0x60] ss:$12 sps:$4 sm:$0xff]  }
  0x14   : > { %5606 = vmatprep.subr.bf16.mxu0 %v13399_v8  ;;  %11814 = vmatprep.subr.bf16.mxu1 %v13401_v9  ;;  %v13413_v19 = vld [vmem:[%s19542_s1 + $0x68] ss:$12 sps:$4 sm:$0xff]   ;;  %s19594_s29 = smov (!%p343_p3, %s10832_s29), 31  ;;  %v13416_v21 = vld [vmem:[%s19542_s1 + $0x140] ss:$12 sps:$4 sm:$0xff]  }
  0x15   : > { %v13414_v20 = vld [vmem:[%s19542_s1 + $0x7c] ss:$12 sps:$4 sm:$0xff]   ;;  %v13417_v22 = vld [vmem:[%s19542_s1 + $0x78] ss:$12 sps:$4 sm:$0xff]   ;;  %v13418_v23 = vld [vmem:[%s19542_s1 + $0x80] ss:$12 sps:$4 sm:$0xff]  }
  0x16   : > { %s13378_s21 = smul.u32 100, %s19594_s29  ;;  %v13419_v24 = vld [vmem:[%s19542_s1 + $0x94] ss:$12 sps:$4 sm:$0xff]   ;;  %v13421_v25 = vld [vmem:[%s19542_s1 + $0x158] ss:$12 sps:$4 sm:$0xff]   ;;  %s10835_s11 = sshll.u32 %s19594_s29, 3 }
  0x17   : > { %5607 = vmatpush1.bf16.msra.mxu0 %v13402_v10  ;;  %11815 = vmatpush3.bf16.msra.mxu1 %v13403_v11  ;;  %v13422_v26 = vld [vmem:[%s19542_s1 + $0x90] ss:$12 sps:$4 sm:$0xff]   ;;  %v13423_v27 = vld [vmem:[%s19542_s1 + $0x98] ss:$12 sps:$4 sm:$0xff]   ;;  %v13427_v30 = vld [vmem:[%s19542_s1 + $0xa8] ss:$12 sps:$4 sm:$0xff]   ;;  %s19157_s15 = scalar_lea.vmem %s19548_s7, %s10835_s11  ;;  %s19488_s18 = scalar_lea.vmem %s19549_s8, %s10835_s11 }
  0x18   : > { %5608 = vmatprep.subr.bf16.mxu0 %v13404_v12  ;;  %11816 = vmatprep.subr.bf16.mxu1 %v13406_v13  ;;  %s14944_s12 = scalar_lea.vmem %s19541_s0, %s13378_s21  ;;  %v13424_v28 = vld [vmem:[%s19542_s1 + $0xac] ss:$12 sps:$4 sm:$0xff]   ;;  %v13426_v29 = vld [vmem:[%s19542_s1 + $0x170] ss:$12 sps:$4 sm:$0xff]   ;;  %v13440_v39 = vld [vmem:[%s19542_s1 + $0xf4] ss:$12 sps:$4 sm:$0xff]  }
  0x19   : > { %v13431_v31 = vld [vmem:[%s14944_s12 + $0x4] ss:$100 sps:$4 sm:$0xff]   ;;  %v13428_v32 = vld [vmem:[%s19542_s1 + $0xb0] ss:$12 sps:$4 sm:$0xff]   ;;  %v13434_v35 = vld [vmem:[%s19542_s1 + $0xc0] ss:$12 sps:$4 sm:$0xff]  }
  0x1a   : > { %v13432_v33 = vld [vmem:[%s19542_s1 + $0xc4] ss:$12 sps:$4 sm:$0xff]   ;;  %7103 = vmatprep.mubr.bf16.mxu1 %v13431_v31  ;;  %5634 = vmatprep.mubr.bf16.mxu0 %v13431_v31  ;;  %v13435_v36 = vld [vmem:[%s19542_s1 + $0xdc] ss:$12 sps:$4 sm:$0xff]   ;;  %v13444_v42 = vld [vmem:[%s19542_s1 + $0x10c] ss:$12 sps:$4 sm:$0xff]  }
  0x1b   : > { %5609 = vmatpush1.bf16.msra.mxu0 %v13407_v14  ;;  %11817 = vmatpush3.bf16.msra.mxu1 %v13408_v15  ;;  %v14966_v34 = vld [vmem:[%s14944_s12] ss:$100 sps:$4 sm:$0xff]   ;;  %v14975_v37 = vld [vmem:[%s14944_s12 + $0xcc] ss:$100 sps:$4 sm:$0xff]   ;;  %v14995_v43 = vld [vmem:[%s14944_s12 + $0x194] ss:$100 sps:$4 sm:$0xff]  }
  0x1c   : > { %5610 = vmatprep.subr.bf16.mxu0 %v13409_v16  ;;  %11818 = vmatprep.subr.bf16.mxu1 %v13411_v17  ;;  %v13437_v38 = vld [vmem:[%s19542_s1 + $0xd8] ss:$12 sps:$4 sm:$0xff]   ;;  %v14986_v40 = vld [vmem:[%s14944_s12 + $0xc8] ss:$100 sps:$4 sm:$0xff]   ;;  %v13443_v41 = vld [vmem:[%s19542_s1 + $0xf0] ss:$12 sps:$4 sm:$0xff]  }
  0x1d   : > { %v13446_v44 = vld [vmem:[%s19542_s1 + $0x108] ss:$12 sps:$4 sm:$0xff]   ;;  %v13449_v45 = vld [vmem:[%s19542_s1 + $0x124] ss:$12 sps:$4 sm:$0xff]   ;;  %v13452_v47 = vld [vmem:[%s19542_s1 + $0x120] ss:$12 sps:$4 sm:$0xff]  }
  0x1e   : > { %v15006_v46 = vld [vmem:[%s14944_s12 + $0x190] ss:$100 sps:$4 sm:$0xff]   ;;  %v13453_v50 = vld [vmem:[%s19542_s1 + $0x13c] ss:$12 sps:$4 sm:$0xff]   ;;  %v13476_v52 = vld [vmem:[%s19542_s1 + $0x260] ss:$12 sps:$4 sm:$0xff]  }
  0x1f   : > { %5611 = vmatpush1.bf16.msra.mxu0 %v13412_v18  ;;  %11819 = vmatpush3.bf16.msra.mxu1 %v13413_v19  ;;  %v13471_v48 = vld [vmem:[%s19542_s1 + $0x248] ss:$12 sps:$4 sm:$0xff]   ;;  %v15021_v51 = vld [vmem:[%s14944_s12 + $0x25c] ss:$100 sps:$4 sm:$0xff]   ;;  %v13455_v54 = vld [vmem:[%s19542_s1 + $0x138] ss:$12 sps:$4 sm:$0xff]  }
  0x20   : > { %5612 = vmatprep.subr.bf16.mxu0 %v13414_v20  ;;  %11820 = vmatprep.subr.bf16.mxu1 %v13416_v21  ;;  %v13472_v49 = vld [vmem:[%s19542_s1 + $0x188] ss:$12 sps:$4 sm:$0xff]   ;;  %v13477_v53 = vld [vmem:[%s19542_s1 + $0x1a0] ss:$12 sps:$4 sm:$0xff]   ;;  %v15038_v56 = vld [vmem:[%s14944_s12 + $0x258] ss:$100 sps:$4 sm:$0xff]  }
  0x21   : > { %v13458_v55 = vld [vmem:[%s19542_s1 + $0x154] ss:$12 sps:$4 sm:$0xff]   ;;  %v13461_v57 = vld [vmem:[%s19542_s1 + $0x150] ss:$12 sps:$4 sm:$0xff]   ;;  %v13484_v58 = vld [vmem:[%s19542_s1 + $0x278] ss:$12 sps:$4 sm:$0xff]  }
  0x22   : > { %v13485_v59 = vld [vmem:[%s19542_s1 + $0x1b8] ss:$12 sps:$4 sm:$0xff]   ;;  %v13489_v62 = vld [vmem:[%s19542_s1 + $0x290] ss:$12 sps:$4 sm:$0xff]   ;;  %v13464_v0 = vld [vmem:[%s19542_s1 + $0x168] ss:$12 sps:$4 sm:$0xff]  }
  0x23   : > { %5613 = vmatpush1.bf16.msra.mxu0 %v13417_v22  ;;  %11821 = vmatpush3.bf16.msra.mxu1 %v13418_v23  ;;  %v13462_v60 = vld [vmem:[%s19542_s1 + $0x16c] ss:$12 sps:$4 sm:$0xff]   ;;  %v15053_v61 = vld [vmem:[%s14944_s12 + $0x324] ss:$100 sps:$4 sm:$0xff]   ;;  %v13490_v63 = vld [vmem:[%s19542_s1 + $0x1d0] ss:$12 sps:$4 sm:$0xff]  }
  0x24   : > { %5614 = vmatprep.subr.bf16.mxu0 %v13419_v24  ;;  %11822 = vmatprep.subr.bf16.mxu1 %v13421_v25  ;;  %v13469_v1 = vld [vmem:[%s19542_s1 + $0x184] ss:$12 sps:$4 sm:$0xff]   ;;  %v13467_v2 = vld [vmem:[%s19542_s1 + $0x180] ss:$12 sps:$4 sm:$0xff]   ;;  %v13497_v4 = vld [vmem:[%s19542_s1 + $0x2a8] ss:$12 sps:$4 sm:$0xff]  }
  0x25   : > { %v15073_v3 = vld [vmem:[%s14944_s12 + $0x320] ss:$100 sps:$4 sm:$0xff]   ;;  %v13498_v5 = vld [vmem:[%s19542_s1 + $0x1e8] ss:$12 sps:$4 sm:$0xff]   ;;  %v15085_v7 = vld [vmem:[%s14944_s12 + $0x3ec] ss:$100 sps:$4 sm:$0xff]  }
  0x26   : > { %v13475_v6 = vld [vmem:[%s19542_s1 + $0x19c] ss:$12 sps:$4 sm:$0xff]   ;;  %v13502_v8 = vld [vmem:[%s19542_s1 + $0x2c0] ss:$12 sps:$4 sm:$0xff]   ;;  %v13473_v10 = vld [vmem:[%s19542_s1 + $0x198] ss:$12 sps:$4 sm:$0xff]  }
  0x27   : > { %5615 = vmatpush1.bf16.msra.mxu0 %v13422_v26  ;;  %11823 = vmatpush3.bf16.msra.mxu1 %v13423_v27  ;;  %v13503_v9 = vld [vmem:[%s19542_s1 + $0x200] ss:$12 sps:$4 sm:$0xff]   ;;  %v13480_v12 = vld [vmem:[%s19542_s1 + $0x1b0] ss:$12 sps:$4 sm:$0xff]   ;;  %v13510_v14 = vld [vmem:[%s19542_s1 + $0x2d8] ss:$12 sps:$4 sm:$0xff]  }
  0x28   : > { %5616 = vmatprep.subr.bf16.mxu0 %v13424_v28  ;;  %11824 = vmatprep.subr.bf16.mxu1 %v13426_v29  ;;  %v13482_v11 = vld [vmem:[%s19542_s1 + $0x1b4] ss:$12 sps:$4 sm:$0xff]   ;;  %v15107_v13 = vld [vmem:[%s14944_s12 + $0x3e8] ss:$100 sps:$4 sm:$0xff]   ;;  %v13511_v15 = vld [vmem:[%s19542_s1 + $0x218] ss:$12 sps:$4 sm:$0xff]  }
  0x29   : > { %v13488_v16 = vld [vmem:[%s19542_s1 + $0x1cc] ss:$12 sps:$4 sm:$0xff]   ;;  %v13515_v18 = vld [vmem:[%s19542_s1 + $0x2f0] ss:$12 sps:$4 sm:$0xff]   ;;  %v13486_v20 = vld [vmem:[%s19542_s1 + $0x1c8] ss:$12 sps:$4 sm:$0xff]  }
  0x2a   : > { %v15119_v17 = vld [vmem:[%s14944_s12 + $0x4b4] ss:$100 sps:$4 sm:$0xff]   ;;  %v13516_v19 = vld [vmem:[%s19542_s1 + $0x230] ss:$12 sps:$4 sm:$0xff]   ;;  %v13493_v22 = vld [vmem:[%s19542_s1 + $0x1e0] ss:$12 sps:$4 sm:$0xff]  }
  0x2b   : > { %5617 = vmatpush1.bf16.msra.mxu0 %v13427_v30  ;;  %11825 = vmatpush3.bf16.msra.mxu1 %v13428_v32  ;;  %v13495_v21 = vld [vmem:[%s19542_s1 + $0x1e4] ss:$12 sps:$4 sm:$0xff]   ;;  %v13501_v24 = vld [vmem:[%s19542_s1 + $0x1fc] ss:$12 sps:$4 sm:$0xff]   ;;  %v13508_v27 = vld [vmem:[%s19542_s1 + $0x214] ss:$12 sps:$4 sm:$0xff]  }
  0x2c   : > { %5618 = vmatprep.subr.bf16.mxu0 %v13432_v33  ;;  %11874 = vmatprep.subr.bf16.mxu1 %v13471_v48  ;;  %v15141_v23 = vld [vmem:[%s14944_s12 + $0x4b0] ss:$100 sps:$4 sm:$0xff]   ;;  %v15147_v25 = vld [vmem:[%s14944_s12 + $0x57c] ss:$100 sps:$4 sm:$0xff]   ;;  %v13499_v26 = vld [vmem:[%s19542_s1 + $0x1f8] ss:$12 sps:$4 sm:$0xff]  }
  0x2d   : > { %v13506_v28 = vld [vmem:[%s19542_s1 + $0x210] ss:$12 sps:$4 sm:$0xff]   ;;  %v13514_v30 = vld [vmem:[%s19542_s1 + $0x22c] ss:$12 sps:$4 sm:$0xff]   ;;  %v13512_v32 = vld [vmem:[%s19542_s1 + $0x228] ss:$12 sps:$4 sm:$0xff]  }
  0x2e   : > { %7104 = vmatmul.mubr.bf16.vlgmr.msra.gmra.mrb[0].mxu1 %v14966_v34  ;;  %v15163_v29 = vld [vmem:[%s14944_s12 + $0x578] ss:$100 sps:$4 sm:$0xff]   ;;  %v15169_v31 = vld [vmem:[%s14944_s12 + $0xc] ss:$100 sps:$4 sm:$0xff]  }
  0x2f   : > { %5619 = vmatpush1.bf16.msra.mxu0 %v13434_v35  ;;  %7111 = vmatprep.mubr.bf16.mxu1 %v14975_v37  ;;  %v13522_v33 = vld [vmem:[%s19542_s1 + $0x244] ss:$12 sps:$4 sm:$0xff]   ;;  %v15185_v35 = vld [vmem:[%s14944_s12 + $0x8] ss:$100 sps:$4 sm:$0xff]   ;;  %v15228_v48 = vld [vmem:[%s14944_s12 + $0x19c] ss:$100 sps:$4 sm:$0xff]  }
  0x30   : > { %5620 = vmatprep.subr.bf16.mxu0 %v13435_v36  ;;  %11875 = vmatpush3.bf16.msra.mxu1 %v13472_v49  ;;  %v13520_v36 = vld [vmem:[%s19542_s1 + $0x240] ss:$12 sps:$4 sm:$0xff]   ;;  %v13573_v49 = vld [vmem:[%s19542_s1 + $0x338] ss:$12 sps:$4 sm:$0xff]  }
  0x31   : > { %11876 = vmatprep.subr.bf16.mxu1 %v13476_v52  ;;  %v13539_v52 = vld [vmem:[%s19542_s1 + $0x2a4] ss:$12 sps:$4 sm:$0xff]  }
  0x33   : > { %5621 = vmatpush1.bf16.msra.mxu0 %v13437_v38  ;;  %v15194_v38 = vld [vmem:[%s14944_s12 + $0xd4] ss:$100 sps:$4 sm:$0xff]  }
  0x34   : > { %5622 = vmatprep.subr.bf16.mxu0 %v13440_v39  ;;  %11877 = vmatpush3.bf16.msra.mxu1 %v13477_v53  ;;  %v13560_v39 = vld [vmem:[%s19542_s1 + $0x308] ss:$12 sps:$4 sm:$0xff]   ;;  %v13537_v53 = vld [vmem:[%s19542_s1 + $0x2a0] ss:$12 sps:$4 sm:$0xff]  }
  0x35   : > { %11878 = vmatprep.subr.bf16.mxu1 %v13484_v58  ;;  %v15262_v58 = vld [vmem:[%s14944_s12 + $0x264] ss:$100 sps:$4 sm:$0xff]  }
  0x36   : > { %7112 = vmatmul.mubr.bf16.gmra.mrb[4].mxu1 %v14986_v40 }
  0x37   : > { %5623 = vmatpush1.bf16.msra.mxu0 %v13443_v41  ;;  %7119 = vmatprep.mubr.bf16.mxu1 %v14995_v43  ;;  %v13523_v41 = vld [vmem:[%s19542_s1 + $0x258] ss:$12 sps:$4 sm:$0xff]  }
  0x38   : > { %5624 = vmatprep.subr.bf16.mxu0 %v13444_v42  ;;  %11879 = vmatpush3.bf16.msra.mxu1 %v13485_v59  ;;  %v13530_v42 = vld [vmem:[%s19542_s1 + $0x274] ss:$12 sps:$4 sm:$0xff]  }
  0x39   : > { %11880 = vmatprep.subr.bf16.mxu1 %v13489_v62  ;;  %v13586_v59 = vld [vmem:[%s19542_s1 + $0x368] ss:$12 sps:$4 sm:$0xff]  }
  0x3a   : > { %v13548_v62 = vld [vmem:[%s19542_s1 + $0x2d4] ss:$12 sps:$4 sm:$0xff]  }
  0x3b   : > { %5625 = vmatpush1.bf16.msra.mxu0 %v13446_v44  ;;  %v13565_v44 = vld [vmem:[%s19542_s1 + $0x320] ss:$12 sps:$4 sm:$0xff]  }
  0x3c   : > { %5626 = vmatprep.subr.bf16.mxu0 %v13449_v45  ;;  %11881 = vmatpush3.bf16.msra.mxu1 %v13490_v63  ;;  %v13572_v45 = vld [vmem:[%s19542_s1 + $0x3f8] ss:$12 sps:$4 sm:$0xff]   ;;  %v13546_v63 = vld [vmem:[%s19542_s1 + $0x2d0] ss:$12 sps:$4 sm:$0xff]  }
  0x3d   : > { %11882 = vmatprep.subr.bf16.mxu1 %v13497_v4  ;;  %v15296_v4 = vld [vmem:[%s14944_s12 + $0x32c] ss:$100 sps:$4 sm:$0xff]  }
  0x3e   : > { %7120 = vmatmul.mubr.bf16.gmra.mrb[8].mxu1 %v15006_v46 }
  0x3f   : > { %5627 = vmatpush1.bf16.msra.mxu0 %v13452_v47  ;;  %7127 = vmatprep.mubr.bf16.mxu1 %v15021_v51  ;;  %v13534_v47 = vld [vmem:[%s19542_s1 + $0x28c] ss:$12 sps:$4 sm:$0xff]  }
  0x40   : > { %5628 = vmatprep.subr.bf16.mxu0 %v13453_v50  ;;  %11883 = vmatpush3.bf16.msra.mxu1 %v13498_v5  ;;  %v13577_v50 = vld [vmem:[%s19542_s1 + $0x410] ss:$12 sps:$4 sm:$0xff]   ;;  %v13599_v5 = vld [vmem:[%s19542_s1 + $0x398] ss:$12 sps:$4 sm:$0xff]  }
  0x41   : > { %11884 = vmatprep.subr.bf16.mxu1 %v13502_v8  ;;  %v13557_v8 = vld [vmem:[%s19542_s1 + $0x304] ss:$12 sps:$4 sm:$0xff]  }
  0x43   : > { %5629 = vmatpush1.bf16.msra.mxu0 %v13455_v54  ;;  %v13578_v54 = vld [vmem:[%s19542_s1 + $0x350] ss:$12 sps:$4 sm:$0xff]  }
  0x44   : > { %5630 = vmatprep.subr.bf16.mxu0 %v13458_v55  ;;  %11885 = vmatpush3.bf16.msra.mxu1 %v13503_v9  ;;  %v13585_v55 = vld [vmem:[%s19542_s1 + $0x428] ss:$12 sps:$4 sm:$0xff]   ;;  %v13604_v9 = vld [vmem:[%s19542_s1 + $0x3b0] ss:$12 sps:$4 sm:$0xff]  }
  0x45   : > { %11886 = vmatprep.subr.bf16.mxu1 %v13510_v14  ;;  %v13561_v14 = vld [vmem:[%s19542_s1 + $0x318] ss:$12 sps:$4 sm:$0xff]  }
  0x46   : > { %7128 = vmatmul.mubr.bf16.gmra.mrb[12].mxu1 %v15038_v56 }
  0x47   : > { %5631 = vmatpush1.bf16.msra.mxu0 %v13461_v57  ;;  %7135 = vmatprep.mubr.bf16.mxu1 %v15053_v61  ;;  %v13543_v57 = vld [vmem:[%s19542_s1 + $0x2bc] ss:$12 sps:$4 sm:$0xff]  }
  0x48   : > { %5632 = vmatprep.subr.bf16.mxu0 %v13462_v60  ;;  %11887 = vmatpush3.bf16.msra.mxu1 %v13511_v15  ;;  %v13590_v60 = vld [vmem:[%s19542_s1 + $0x440] ss:$12 sps:$4 sm:$0xff]  }
  0x49   : > { %11888 = vmatprep.subr.bf16.mxu1 %v13515_v18  ;;  %v13570_v15 = vld [vmem:[%s19542_s1 + $0x334] ss:$12 sps:$4 sm:$0xff]   ;;  %v13576_v18 = vld [vmem:[%s19542_s1 + $0x34c] ss:$12 sps:$4 sm:$0xff]  }
  0x4b   : > { %5633 = vmatpush1.bf16.msra.mxu0 %v13464_v0  ;;  %v13591_v0 = vld [vmem:[%s19542_s1 + $0x380] ss:$12 sps:$4 sm:$0xff]  }
  0x4c   : > { %5715 = vmatprep.subr.bf16.mxu0 %v13469_v1  ;;  %11889 = vmatpush3.bf16.msra.mxu1 %v13516_v19  ;;  %v13598_v1 = vld [vmem:[%s19542_s1 + $0x458] ss:$12 sps:$4 sm:$0xff]   ;;  %v15349_v19 = vld [vmem:[%s14944_s12 + $0x4bc] ss:$100 sps:$4 sm:$0xff]  }
  0x4e   : > { %5635 = vmatmul.mubr.bf16.vlgmr.msra.gmra.mrb[0].mxu0 %v14966_v34  ;;  %7136 = vmatmul.mubr.bf16.gmra.mrb[16].mxu1 %v15073_v3  ;;  %v13559_v34 = vld [vmem:[%s19542_s1 + $0x3c8] ss:$12 sps:$4 sm:$0xff]  }
  0x4f   : > { %5716 = vmatpush1.bf16.msra.mxu0 %v13467_v2  ;;  %5644 = vmatprep.mubr.bf16.mxu0 %v14975_v37  ;;  %v13525_v37 = vld [vmem:[%s19542_s1 + $0x25c] ss:$12 sps:$4 sm:$0xff]   ;;  %v15290_v2 = vld [vmem:[%s14944_s12 + $0x260] ss:$100 sps:$4 sm:$0xff]  }
  0x50   : > { %5717 = vmatprep.subr.bf16.mxu0 %v13475_v6  ;;  %7143 = vmatprep.mubr.bf16.mxu1 %v15085_v7  ;;  %v13603_v6 = vld [vmem:[%s19542_s1 + $0x470] ss:$12 sps:$4 sm:$0xff]  }
  0x51   : > { %11938 = vmatprep.subr.bf16.mxu1 %v13559_v34  ;;  %v13610_v34 = vld [vmem:[%s19542_s1 + $0x3c4] ss:$12 sps:$4 sm:$0xff]  }
  0x53   : > { %5718 = vmatpush1.bf16.msra.mxu0 %v13473_v10  ;;  %v13555_v10 = vld [vmem:[%s19542_s1 + $0x300] ss:$12 sps:$4 sm:$0xff]  }
  0x54   : > { %5719 = vmatprep.subr.bf16.mxu0 %v13482_v11  ;;  %v15321_v11 = vld [vmem:[%s14944_s12 + $0x328] ss:$100 sps:$4 sm:$0xff]  }
  0x56   : > { %5645 = vmatmul.mubr.bf16.gmra.mrb[4].mxu0 %v14986_v40  ;;  %7144 = vmatmul.mubr.bf16.gmra.mrb[20].mxu1 %v15107_v13  ;;  %v13564_v40 = vld [vmem:[%s19542_s1 + $0x3e0] ss:$12 sps:$4 sm:$0xff]  }
  0x57   : > { %5720 = vmatpush1.bf16.msra.mxu0 %v13480_v12  ;;  %5654 = vmatprep.mubr.bf16.mxu0 %v14995_v43  ;;  %v13528_v43 = vld [vmem:[%s19542_s1 + $0x270] ss:$12 sps:$4 sm:$0xff]  }
  0x58   : > { %5721 = vmatprep.subr.bf16.mxu0 %v13488_v16  ;;  %7151 = vmatprep.mubr.bf16.mxu1 %v15119_v17  ;;  %v13563_v12 = vld [vmem:[%s19542_s1 + $0x31c] ss:$12 sps:$4 sm:$0xff]  }
  0x59   : > { %v13568_v16 = vld [vmem:[%s19542_s1 + $0x330] ss:$12 sps:$4 sm:$0xff]  }
  0x5b   : > { %5722 = vmatpush1.bf16.msra.mxu0 %v13486_v20  ;;  %v13574_v20 = vld [vmem:[%s19542_s1 + $0x348] ss:$12 sps:$4 sm:$0xff]  }
  0x5c   : > { %5723 = vmatprep.subr.bf16.mxu0 %v13495_v21  ;;  %v13583_v21 = vld [vmem:[%s19542_s1 + $0x364] ss:$12 sps:$4 sm:$0xff]  }
  0x5e   : > { %5655 = vmatmul.mubr.bf16.gmra.mrb[8].mxu0 %v15006_v46  ;;  %7152 = vmatmul.mubr.bf16.gmra.mrb[24].mxu1 %v15141_v23  ;;  %v15222_v46 = vld [vmem:[%s14944_s12 + $0xd0] ss:$100 sps:$4 sm:$0xff]  }
  0x5f   : > { %5724 = vmatpush1.bf16.msra.mxu0 %v13493_v22  ;;  %5664 = vmatprep.mubr.bf16.mxu0 %v15021_v51  ;;  %v13532_v51 = vld [vmem:[%s19542_s1 + $0x288] ss:$12 sps:$4 sm:$0xff]  }
  0x60   : > { %5725 = vmatprep.subr.bf16.mxu0 %v13501_v24  ;;  %7159 = vmatprep.mubr.bf16.mxu1 %v15147_v25  ;;  %v13647_v22 = vld [vmem:[%s19542_s1 + $0x548] ss:$12 sps:$4 sm:$0xff]   ;;  %v15368_v24 = vld [vmem:[%s14944_s12 + $0x4b8] ss:$100 sps:$4 sm:$0xff]  }
  0x63   : > { %5726 = vmatpush1.bf16.msra.mxu0 %v13499_v26  ;;  %v15374_v26 = vld [vmem:[%s14944_s12 + $0x584] ss:$100 sps:$4 sm:$0xff]  }
  0x64   : > { %5727 = vmatprep.subr.bf16.mxu0 %v13508_v27  ;;  %v13587_v27 = vld [vmem:[%s19542_s1 + $0x378] ss:$12 sps:$4 sm:$0xff]  }
  0x66   : > { %5665 = vmatmul.mubr.bf16.gmra.mrb[12].mxu0 %v15038_v56  ;;  %7160 = vmatmul.mubr.bf16.gmra.mrb[28].mxu1 %v15163_v29  ;;  %v15256_v56 = vld [vmem:[%s14944_s12 + $0x198] ss:$100 sps:$4 sm:$0xff]  }
  0x67   : > { %5728 = vmatpush1.bf16.msra.mxu0 %v13506_v28  ;;  %5674 = vmatprep.mubr.bf16.mxu0 %v15053_v61  ;;  %v13541_v61 = vld [vmem:[%s19542_s1 + $0x2b8] ss:$12 sps:$4 sm:$0xff]   ;;  %v13596_v28 = vld [vmem:[%s19542_s1 + $0x394] ss:$12 sps:$4 sm:$0xff]  }
  0x68   : > { %5729 = vmatprep.subr.bf16.mxu0 %v13514_v30  ;;  %7200 = vmatprep.mubr.bf16.mxu1 %v15169_v31  ;;  %v15390_v30 = vld [vmem:[%s14944_s12 + $0x580] ss:$100 sps:$4 sm:$0xff]  }
  0x6b   : > { %5730 = vmatpush1.bf16.msra.mxu0 %v13512_v32  ;;  %v15396_v32 = vld [vmem:[%s14944_s12 + $0x14] ss:$100 sps:$4 sm:$0xff]  }
  0x6c   : > { %5731 = vmatprep.subr.bf16.mxu0 %v13522_v33  ;;  %v13600_v33 = vld [vmem:[%s19542_s1 + $0x3a8] ss:$12 sps:$4 sm:$0xff]  }
  0x6e   : > { %5675 = vmatmul.mubr.bf16.gmra.mrb[16].mxu0 %v15073_v3  ;;  %7201 = vmatmul.mubr.bf16.vlgmr.msra.gmra.mrb[32].mxu1 %v15185_v35  ;;  %v13552_v3 = vld [vmem:[%s19542_s1 + $0x2ec] ss:$12 sps:$4 sm:$0xff]  }
  0x6f   : > { %5732 = vmatpush1.bf16.msra.mxu0 %v13520_v36  ;;  %5684 = vmatprep.mubr.bf16.mxu0 %v15085_v7  ;;  %v13550_v7 = vld [vmem:[%s19542_s1 + $0x2e8] ss:$12 sps:$4 sm:$0xff]   ;;  %v13608_v36 = vld [vmem:[%s19542_s1 + $0x3c0] ss:$12 sps:$4 sm:$0xff]  }
  0x70   : > { %5733 = vmatprep.subr.bf16.mxu0 %v13525_v37  ;;  %7208 = vmatprep.mubr.bf16.mxu1 %v15194_v38  ;;  %v13613_v37 = vld [vmem:[%s19542_s1 + $0x3dc] ss:$12 sps:$4 sm:$0xff]  }
  0x71   : > { %11939 = vmatpush3.bf16.msra.mxu1 %v13560_v39  ;;  %v13648_v39 = vld [vmem:[%s19542_s1 + $0x488] ss:$12 sps:$4 sm:$0xff]  }
  0x72   : > { %11940 = vmatprep.subr.bf16.mxu1 %v13564_v40  ;;  %v13652_v40 = vld [vmem:[%s19542_s1 + $0x560] ss:$12 sps:$4 sm:$0xff]  }
  0x73   : > { %5734 = vmatpush1.bf16.msra.mxu0 %v13523_v41  ;;  %v13611_v41 = vld [vmem:[%s19542_s1 + $0x3d8] ss:$12 sps:$4 sm:$0xff]  }
  0x74   : > { %5735 = vmatprep.subr.bf16.mxu0 %v13530_v42  ;;  %v13618_v42 = vld [vmem:[%s19542_s1 + $0x3f4] ss:$12 sps:$4 sm:$0xff]  }
  0x75   : > { %11941 = vmatpush3.bf16.msra.mxu1 %v13565_v44  ;;  %v13653_v44 = vld [vmem:[%s19542_s1 + $0x4a0] ss:$12 sps:$4 sm:$0xff]  }
  0x76   : > { %5685 = vmatmul.mubr.bf16.gmra.mrb[20].mxu0 %v15107_v13  ;;  %11942 = vmatprep.subr.bf16.mxu1 %v13572_v45  ;;  %v15327_v13 = vld [vmem:[%s14944_s12 + $0x3f4] ss:$100 sps:$4 sm:$0xff]  }
  0x77   : > { %7209 = vmatmul.mubr.bf16.gmra.mrb[36].mxu1 %v15222_v46  ;;  %5736 = vmatpush1.bf16.msra.mxu0 %v13528_v43  ;;  %v13616_v43 = vld [vmem:[%s19542_s1 + $0x3f0] ss:$12 sps:$4 sm:$0xff]   ;;  %v13660_v45 = vld [vmem:[%s19542_s1 + $0x578] ss:$12 sps:$4 sm:$0xff]  }
  0x78   : > { %5737 = vmatprep.subr.bf16.mxu0 %v13534_v47  ;;  %5694 = vmatprep.mubr.bf16.mxu0 %v15119_v17  ;;  %v15343_v17 = vld [vmem:[%s14944_s12 + $0x3f0] ss:$100 sps:$4 sm:$0xff]   ;;  %v13622_v47 = vld [vmem:[%s19542_s1 + $0x40c] ss:$12 sps:$4 sm:$0xff]  }
  0x79   : > { %7216 = vmatprep.mubr.bf16.mxu1 %v15228_v48  ;;  %11943 = vmatpush3.bf16.msra.mxu1 %v13573_v49  ;;  %v13661_v49 = vld [vmem:[%s19542_s1 + $0x4b8] ss:$12 sps:$4 sm:$0xff]  }
  0x7a   : > { %11944 = vmatprep.subr.bf16.mxu1 %v13577_v50  ;;  %v13665_v50 = vld [vmem:[%s19542_s1 + $0x590] ss:$12 sps:$4 sm:$0xff]  }
  0x7b   : > { %5738 = vmatpush1.bf16.msra.mxu0 %v13532_v51  ;;  %v13620_v51 = vld [vmem:[%s19542_s1 + $0x408] ss:$12 sps:$4 sm:$0xff]  }
  0x7c   : > { %5739 = vmatprep.subr.bf16.mxu0 %v13539_v52  ;;  %v13627_v52 = vld [vmem:[%s19542_s1 + $0x424] ss:$12 sps:$4 sm:$0xff]  }
  0x7d   : > { %11945 = vmatpush3.bf16.msra.mxu1 %v13578_v54  ;;  %v13673_v54 = vld [vmem:[%s19542_s1 + $0x5a8] ss:$12 sps:$4 sm:$0xff]  }
  0x7e   : > { %5695 = vmatmul.mubr.bf16.gmra.mrb[24].mxu0 %v15141_v23  ;;  %11946 = vmatprep.subr.bf16.mxu1 %v13585_v55  ;;  %v13581_v23 = vld [vmem:[%s19542_s1 + $0x360] ss:$12 sps:$4 sm:$0xff]  }
  0x7f   : > { %7217 = vmatmul.mubr.bf16.gmra.mrb[40].mxu1 %v15256_v56  ;;  %5740 = vmatpush1.bf16.msra.mxu0 %v13537_v53  ;;  %v13666_v53 = vld [vmem:[%s19542_s1 + $0x4d0] ss:$12 sps:$4 sm:$0xff]   ;;  %v13625_v55 = vld [vmem:[%s19542_s1 + $0x420] ss:$12 sps:$4 sm:$0xff]  }
  0x80   : > { %5741 = vmatprep.subr.bf16.mxu0 %v13543_v57  ;;  %5704 = vmatprep.mubr.bf16.mxu0 %v15147_v25  ;;  %v13589_v25 = vld [vmem:[%s19542_s1 + $0x37c] ss:$12 sps:$4 sm:$0xff]  }
  0x81   : > { %7224 = vmatprep.mubr.bf16.mxu1 %v15262_v58  ;;  %11947 = vmatpush3.bf16.msra.mxu1 %v13586_v59  ;;  %v13631_v57 = vld [vmem:[%s19542_s1 + $0x43c] ss:$12 sps:$4 sm:$0xff]  }
  0x82   : > { %11948 = vmatprep.subr.bf16.mxu1 %v13590_v60  ;;  %v13674_v59 = vld [vmem:[%s19542_s1 + $0x4e8] ss:$12 sps:$4 sm:$0xff]   ;;  %v13678_v60 = vld [vmem:[%s19542_s1 + $0x5c0] ss:$12 sps:$4 sm:$0xff]  }
  0x83   : > { %5742 = vmatpush1.bf16.msra.mxu0 %v13541_v61  ;;  %v13629_v61 = vld [vmem:[%s19542_s1 + $0x438] ss:$12 sps:$4 sm:$0xff]  }
  0x84   : > { %5743 = vmatprep.subr.bf16.mxu0 %v13548_v62  ;;  %v13636_v62 = vld [vmem:[%s19542_s1 + $0x454] ss:$12 sps:$4 sm:$0xff]  }
  0x85   : > { %11949 = vmatpush3.bf16.msra.mxu1 %v13591_v0  ;;  %v13686_v0 = vld [vmem:[%s19542_s1 + $0x5d8] ss:$12 sps:$4 sm:$0xff]  }
  0x86   : > { %5705 = vmatmul.mubr.bf16.gmra.mrb[28].mxu0 %v15163_v29  ;;  %11950 = vmatprep.subr.bf16.mxu1 %v13598_v1  ;;  %v13594_v29 = vld [vmem:[%s19542_s1 + $0x390] ss:$12 sps:$4 sm:$0xff]  }
  0x87   : > { %7225 = vmatmul.mubr.bf16.gmra.mrb[44].mxu1 %v15290_v2  ;;  %5744 = vmatpush1.bf16.msra.mxu0 %v13546_v63  ;;  %v13679_v63 = vld [vmem:[%s19542_s1 + $0x500] ss:$12 sps:$4 sm:$0xff]   ;;  %v13634_v1 = vld [vmem:[%s19542_s1 + $0x450] ss:$12 sps:$4 sm:$0xff]  }
  0x88   : > { %5745 = vmatprep.subr.bf16.mxu0 %v13552_v3  ;;  %5747 = vmatprep.mubr.bf16.mxu0 %v15169_v31  ;;  %v13602_v31 = vld [vmem:[%s19542_s1 + $0x3ac] ss:$12 sps:$4 sm:$0xff]  }
  0x89   : > { %7232 = vmatprep.mubr.bf16.mxu1 %v15296_v4  ;;  %11951 = vmatpush3.bf16.msra.mxu1 %v13599_v5  ;;  %v13640_v3 = vld [vmem:[%s19542_s1 + $0x46c] ss:$12 sps:$4 sm:$0xff]  }
  0x8a   : > { %11952 = vmatprep.subr.bf16.mxu1 %v13603_v6  ;;  %v13687_v5 = vld [vmem:[%s19542_s1 + $0x518] ss:$12 sps:$4 sm:$0xff]   ;;  %v13691_v6 = vld [vmem:[%s19542_s1 + $0x5f0] ss:$12 sps:$4 sm:$0xff]  }
  0x8b   : > { %5746 = vmatpush1.bf16.msra.mxu0 %v13550_v7  ;;  %v13638_v7 = vld [vmem:[%s19542_s1 + $0x468] ss:$12 sps:$4 sm:$0xff]  }
  0x8c   : > { %5828 = vmatprep.subr.bf16.mxu0 %v13557_v8  ;;  %v13645_v8 = vld [vmem:[%s19542_s1 + $0x484] ss:$12 sps:$4 sm:$0xff]  }
  0x8d   : > { %11953 = vmatpush3.bf16.msra.mxu1 %v13604_v9  ;;  %v13692_v9 = vld [vmem:[%s19542_s1 + $0x530] ss:$12 sps:$4 sm:$0xff]  }
  0x8e   : > { %5748 = vmatmul.mubr.bf16.vlgmr.msra.gmra.mrb[0].mxu0 %v15185_v35  ;;  %12002 = vmatprep.subr.bf16.mxu1 %v13647_v22  ;;  %v15409_v35 = vld [vmem:[%s14944_s12 + $0x10] ss:$100 sps:$4 sm:$0xff]  }
  0x8f   : > { %7233 = vmatmul.mubr.bf16.gmra.mrb[48].mxu1 %v15321_v11  ;;  %5829 = vmatpush1.bf16.msra.mxu0 %v13555_v10  ;;  %v13735_v10 = vld [vmem:[%s19542_s1 + $0x6c8] ss:$12 sps:$4 sm:$0xff]   ;;  %v13671_v22 = vld [vmem:[%s19542_s1 + $0x4e4] ss:$12 sps:$4 sm:$0xff]  }
  0x90   : > { %5830 = vmatprep.subr.bf16.mxu0 %v13563_v12  ;;  %5757 = vmatprep.mubr.bf16.mxu0 %v15194_v38  ;;  %v15418_v38 = vld [vmem:[%s14944_s12 + $0xdc] ss:$100 sps:$4 sm:$0xff]   ;;  %v13646_v12 = vld [vmem:[%s14944_s12 + $0x330] ss:$100 sps:$4 sm:$0xff]  }
  0x91   : > { %7240 = vmatprep.mubr.bf16.mxu1 %v15327_v13 }
  0x93   : > { %5831 = vmatpush1.bf16.msra.mxu0 %v13561_v14  ;;  %v15552_v14 = vld [vmem:[%s14944_s12 + $0x3fc] ss:$100 sps:$4 sm:$0xff]  }
  0x94   : > { %5832 = vmatprep.subr.bf16.mxu0 %v13570_v15  ;;  %v13649_v15 = vld [vmem:[%s19542_s1 + $0x498] ss:$12 sps:$4 sm:$0xff]  }
  0x96   : > { %5758 = vmatmul.mubr.bf16.gmra.mrb[4].mxu0 %v15222_v46  ;;  %v15446_v46 = vld [vmem:[%s14944_s12 + $0xd8] ss:$100 sps:$4 sm:$0xff]  }
  0x97   : > { %7241 = vmatmul.mubr.bf16.gmra.mrb[52].mxu1 %v15343_v17  ;;  %5833 = vmatpush1.bf16.msra.mxu0 %v13568_v16  ;;  %v13658_v16 = vld [vmem:[%s19542_s1 + $0x4b4] ss:$12 sps:$4 sm:$0xff]  }
  0x98   : > { %5834 = vmatprep.subr.bf16.mxu0 %v13576_v18  ;;  %5767 = vmatprep.mubr.bf16.mxu0 %v15228_v48  ;;  %v15452_v48 = vld [vmem:[%s14944_s12 + $0x1a4] ss:$100 sps:$4 sm:$0xff]   ;;  %v15567_v18 = vld [vmem:[%s14944_s12 + $0x3f8] ss:$100 sps:$4 sm:$0xff]  }
  0x99   : > { %7248 = vmatprep.mubr.bf16.mxu1 %v15349_v19 }
  0x9b   : > { %5835 = vmatpush1.bf16.msra.mxu0 %v13574_v20  ;;  %v15573_v20 = vld [vmem:[%s14944_s12 + $0x4c4] ss:$100 sps:$4 sm:$0xff]  }
  0x9c   : > { %5836 = vmatprep.subr.bf16.mxu0 %v13583_v21  ;;  %v13662_v21 = vld [vmem:[%s19542_s1 + $0x4c8] ss:$12 sps:$4 sm:$0xff]  }
  0x9e   : > { %5768 = vmatmul.mubr.bf16.gmra.mrb[8].mxu0 %v15256_v56  ;;  %v15480_v56 = vld [vmem:[%s14944_s12 + $0x1a0] ss:$100 sps:$4 sm:$0xff]  }
  0x9f   : > { %7249 = vmatmul.mubr.bf16.gmra.mrb[56].mxu1 %v15368_v24  ;;  %5837 = vmatpush1.bf16.msra.mxu0 %v13581_v23  ;;  %v13669_v23 = vld [vmem:[%s19542_s1 + $0x4e0] ss:$12 sps:$4 sm:$0xff]  }
  0xa0   : > { %5838 = vmatprep.subr.bf16.mxu0 %v13589_v25  ;;  %5777 = vmatprep.mubr.bf16.mxu0 %v15262_v58  ;;  %v15486_v58 = vld [vmem:[%s14944_s12 + $0x26c] ss:$100 sps:$4 sm:$0xff]   ;;  %v13677_v25 = vld [vmem:[%s19542_s1 + $0x4fc] ss:$12 sps:$4 sm:$0xff]  }
  0xa1   : > { %7256 = vmatprep.mubr.bf16.mxu1 %v15374_v26 }
  0xa3   : > { %5839 = vmatpush1.bf16.msra.mxu0 %v13587_v27  ;;  %v13675_v27 = vld [vmem:[%s19542_s1 + $0x4f8] ss:$12 sps:$4 sm:$0xff]  }
  0xa4   : > { %5840 = vmatprep.subr.bf16.mxu0 %v13596_v28  ;;  %v13684_v28 = vld [vmem:[%s19542_s1 + $0x514] ss:$12 sps:$4 sm:$0xff]  }
  0xa6   : > { %5778 = vmatmul.mubr.bf16.gmra.mrb[12].mxu0 %v15290_v2  ;;  %v15514_v2 = vld [vmem:[%s14944_s12 + $0x268] ss:$100 sps:$4 sm:$0xff]  }
  0xa7   : > { %7257 = vmatmul.mubr.bf16.gmra.mrb[60].mxu1 %v15390_v30  ;;  %5841 = vmatpush1.bf16.msra.mxu0 %v13594_v29  ;;  %v13682_v29 = vld [vmem:[%s19542_s1 + $0x510] ss:$12 sps:$4 sm:$0xff]  }
  0xa8   : > { %5842 = vmatprep.subr.bf16.mxu0 %v13602_v31  ;;  %5787 = vmatprep.mubr.bf16.mxu0 %v15296_v4  ;;  %v15520_v4 = vld [vmem:[%s14944_s12 + $0x334] ss:$100 sps:$4 sm:$0xff]  }
  0xa9   : > { %7297 = vmatprep.mubr.bf16.mxu1 %v15396_v32  ;;  %v13690_v31 = vld [vmem:[%s19542_s1 + $0x52c] ss:$12 sps:$4 sm:$0xff]  }
  0xab   : > { %5843 = vmatpush1.bf16.msra.mxu0 %v13600_v33  ;;  %v13688_v33 = vld [vmem:[%s19542_s1 + $0x528] ss:$12 sps:$4 sm:$0xff]  }
  0xac   : > { %5844 = vmatprep.subr.bf16.mxu0 %v13610_v34  ;;  %v13698_v34 = vld [vmem:[%s19542_s1 + $0x544] ss:$12 sps:$4 sm:$0xff]  }
  0xae   : > { %5788 = vmatmul.mubr.bf16.gmra.mrb[16].mxu0 %v15321_v11  ;;  %v13643_v11 = vld [vmem:[%s19542_s1 + $0x480] ss:$12 sps:$4 sm:$0xff]  }
  0xaf   : > { %7298 = vmatmul.mubr.bf16.vlgmr.msra.gmra.mrb[64].mxu1 %v15409_v35  ;;  %5845 = vmatpush1.bf16.msra.mxu0 %v13608_v36  ;;  %v13696_v36 = vld [vmem:[%s19542_s1 + $0x540] ss:$12 sps:$4 sm:$0xff]  }
  0xb0   : > { %5846 = vmatprep.subr.bf16.mxu0 %v13613_v37  ;;  %5797 = vmatprep.mubr.bf16.mxu0 %v15327_v13  ;;  %v13651_v13 = vld [vmem:[%s19542_s1 + $0x49c] ss:$12 sps:$4 sm:$0xff]  }
  0xb1   : > { %7305 = vmatprep.mubr.bf16.mxu1 %v15418_v38  ;;  %12003 = vmatpush3.bf16.msra.mxu1 %v13648_v39  ;;  %v13701_v37 = vld [vmem:[%s19542_s1 + $0x55c] ss:$12 sps:$4 sm:$0xff]  }
  0xb2   : > { %12004 = vmatprep.subr.bf16.mxu1 %v13652_v40  ;;  %v13736_v39 = vld [vmem:[%s19542_s1 + $0x608] ss:$12 sps:$4 sm:$0xff]   ;;  %v13740_v40 = vld [vmem:[%s19542_s1 + $0x6e0] ss:$12 sps:$4 sm:$0xff]  }
  0xb3   : > { %5847 = vmatpush1.bf16.msra.mxu0 %v13611_v41  ;;  %v13699_v41 = vld [vmem:[%s19542_s1 + $0x558] ss:$12 sps:$4 sm:$0xff]  }
  0xb4   : > { %5848 = vmatprep.subr.bf16.mxu0 %v13618_v42  ;;  %v13706_v42 = vld [vmem:[%s19542_s1 + $0x574] ss:$12 sps:$4 sm:$0xff]  }
  0xb5   : > { %12005 = vmatpush3.bf16.msra.mxu1 %v13653_v44  ;;  %v13741_v44 = vld [vmem:[%s19542_s1 + $0x620] ss:$12 sps:$4 sm:$0xff]  }
  0xb6   : > { %5798 = vmatmul.mubr.bf16.gmra.mrb[20].mxu0 %v15343_v17  ;;  %12006 = vmatprep.subr.bf16.mxu1 %v13660_v45  ;;  %v13656_v17 = vld [vmem:[%s19542_s1 + $0x4b0] ss:$12 sps:$4 sm:$0xff]   ;;  %v13748_v45 = vld [vmem:[%s19542_s1 + $0x6f8] ss:$12 sps:$4 sm:$0xff]  }
  0xb7   : > { %7306 = vmatmul.mubr.bf16.gmra.mrb[68].mxu1 %v15446_v46  ;;  %5849 = vmatpush1.bf16.msra.mxu0 %v13616_v43  ;;  %v13704_v43 = vld [vmem:[%s19542_s1 + $0x570] ss:$12 sps:$4 sm:$0xff]  }
  0xb8   : > { %5850 = vmatprep.subr.bf16.mxu0 %v13622_v47  ;;  %5807 = vmatprep.mubr.bf16.mxu0 %v15349_v19  ;;  %v13664_v19 = vld [vmem:[%s19542_s1 + $0x4cc] ss:$12 sps:$4 sm:$0xff]  }
  0xb9   : > { %7313 = vmatprep.mubr.bf16.mxu1 %v15452_v48  ;;  %12007 = vmatpush3.bf16.msra.mxu1 %v13661_v49  ;;  %v13710_v47 = vld [vmem:[%s19542_s1 + $0x58c] ss:$12 sps:$4 sm:$0xff]  }
  0xba   : > { %12008 = vmatprep.subr.bf16.mxu1 %v13665_v50  ;;  %v13749_v49 = vld [vmem:[%s19542_s1 + $0x638] ss:$12 sps:$4 sm:$0xff]   ;;  %v13753_v50 = vld [vmem:[%s19542_s1 + $0x710] ss:$12 sps:$4 sm:$0xff]  }
  0xbb   : > { %5851 = vmatpush1.bf16.msra.mxu0 %v13620_v51  ;;  %v13708_v51 = vld [vmem:[%s19542_s1 + $0x588] ss:$12 sps:$4 sm:$0xff]  }
  0xbc   : > { %5852 = vmatprep.subr.bf16.mxu0 %v13627_v52  ;;  %v13715_v52 = vld [vmem:[%s19542_s1 + $0x5a4] ss:$12 sps:$4 sm:$0xff]  }
  0xbd   : > { %12009 = vmatpush3.bf16.msra.mxu1 %v13666_v53  ;;  %v13713_v53 = vld [vmem:[%s19542_s1 + $0x5a0] ss:$12 sps:$4 sm:$0xff]  }
  0xbe   : > { %5808 = vmatmul.mubr.bf16.gmra.mrb[24].mxu0 %v15368_v24  ;;  %12010 = vmatprep.subr.bf16.mxu1 %v13673_v54  ;;  %v15589_v24 = vld [vmem:[%s14944_s12 + $0x4c0] ss:$100 sps:$4 sm:$0xff]   ;;  %v13754_v54 = vld [vmem:[%s19542_s1 + $0x650] ss:$12 sps:$4 sm:$0xff]  }
  0xbf   : > { %7314 = vmatmul.mubr.bf16.gmra.mrb[72].mxu1 %v15480_v56  ;;  %5853 = vmatpush1.bf16.msra.mxu0 %v13625_v55  ;;  %v13761_v55 = vld [vmem:[%s19542_s1 + $0x728] ss:$12 sps:$4 sm:$0xff]  }
  0xc0   : > { %5854 = vmatprep.subr.bf16.mxu0 %v13631_v57  ;;  %5817 = vmatprep.mubr.bf16.mxu0 %v15374_v26  ;;  %v15595_v26 = vld [vmem:[%s14944_s12 + $0x58c] ss:$100 sps:$4 sm:$0xff]   ;;  %v13719_v57 = vld [vmem:[%s19542_s1 + $0x5bc] ss:$12 sps:$4 sm:$0xff]  }
  0xc1   : > { %7321 = vmatprep.mubr.bf16.mxu1 %v15486_v58  ;;  %12011 = vmatpush3.bf16.msra.mxu1 %v13674_v59  ;;  %v13762_v59 = vld [vmem:[%s19542_s1 + $0x668] ss:$12 sps:$4 sm:$0xff]  }
  0xc2   : > { %12012 = vmatprep.subr.bf16.mxu1 %v13678_v60  ;;  %v13766_v60 = vld [vmem:[%s19542_s1 + $0x740] ss:$12 sps:$4 sm:$0xff]  }
  0xc3   : > { %5855 = vmatpush1.bf16.msra.mxu0 %v13629_v61  ;;  %v13717_v61 = vld [vmem:[%s19542_s1 + $0x5b8] ss:$12 sps:$4 sm:$0xff]  }
  0xc4   : > { %5856 = vmatprep.subr.bf16.mxu0 %v13636_v62  ;;  %v13724_v62 = vld [vmem:[%s19542_s1 + $0x5d4] ss:$12 sps:$4 sm:$0xff]  }
  0xc5   : > { %12013 = vmatpush3.bf16.msra.mxu1 %v13679_v63  ;;  %v13722_v63 = vld [vmem:[%s19542_s1 + $0x5d0] ss:$12 sps:$4 sm:$0xff]  }
  0xc6   : > { %5818 = vmatmul.mubr.bf16.gmra.mrb[28].mxu0 %v15390_v30  ;;  %12014 = vmatprep.subr.bf16.mxu1 %v13686_v0  ;;  %v15611_v30 = vld [vmem:[%s14944_s12 + $0x588] ss:$100 sps:$4 sm:$0xff]   ;;  %v15728_v0 = vld [vmem:[%s14944_s12 + $0x270] ss:$100 sps:$4 sm:$0xff]  }
  0xc7   : > { %7322 = vmatmul.mubr.bf16.gmra.mrb[76].mxu1 %v15514_v2  ;;  %5857 = vmatpush1.bf16.msra.mxu0 %v13634_v1  ;;  %v13767_v1 = vld [vmem:[%s19542_s1 + $0x680] ss:$12 sps:$4 sm:$0xff]  }
  0xc8   : > { %5858 = vmatprep.subr.bf16.mxu0 %v13640_v3  ;;  %5860 = vmatprep.mubr.bf16.mxu0 %v15396_v32  ;;  %v15617_v32 = vld [vmem:[%s14944_s12 + $0x1c] ss:$100 sps:$4 sm:$0xff]  }
  0xc9   : > { %7329 = vmatprep.mubr.bf16.mxu1 %v15520_v4  ;;  %12015 = vmatpush3.bf16.msra.mxu1 %v13687_v5  ;;  %v15740_v5 = vld [vmem:[%s14944_s12 + $0x33c] ss:$100 sps:$4 sm:$0xff]  }
  0xca   : > { %12016 = vmatprep.subr.bf16.mxu1 %v13691_v6 }
  0xcb   : > { %5859 = vmatpush1.bf16.msra.mxu0 %v13638_v7 }
  0xcc   : > { %5941 = vmatprep.subr.bf16.mxu0 %v13645_v8 }
  0xcd   : > { %12017 = vmatpush3.bf16.msra.mxu1 %v13692_v9  ;;  %v13775_v9 = vld [vmem:[%s19542_s1 + $0x698] ss:$12 sps:$4 sm:$0xff]  }
  0xce   : > { %5861 = vmatmul.mubr.bf16.vlgmr.msra.gmra.mrb[0].mxu0 %v15409_v35  ;;  %12066 = vmatprep.subr.bf16.mxu1 %v13735_v10  ;;  %v15630_v35 = vld [vmem:[%s14944_s12 + $0x18] ss:$100 sps:$4 sm:$0xff]  }
  0xcf   : > { %7330 = vmatmul.mubr.bf16.gmra.mrb[80].mxu1 %v13646_v12  ;;  %5942 = vmatpush1.bf16.msra.mxu0 %v13643_v11  ;;  %v13779_v11 = vld [vmem:[%s19542_s1 + $0x770] ss:$12 sps:$4 sm:$0xff]  }
  0xd0   : > { %5943 = vmatprep.subr.bf16.mxu0 %v13651_v13  ;;  %5870 = vmatprep.mubr.bf16.mxu0 %v15418_v38  ;;  %v15639_v38 = vld [vmem:[%s14944_s12 + $0xe4] ss:$100 sps:$4 sm:$0xff]  }
  0xd1   : > { %7337 = vmatprep.mubr.bf16.mxu1 %v15552_v14  ;;  %v13726_v13 = vld [vmem:[%s19542_s1 + $0x5e8] ss:$12 sps:$4 sm:$0xff]  }
  0xd3   : > { %5944 = vmatpush1.bf16.msra.mxu0 %v13649_v15  ;;  %v13731_v15 = vld [vmem:[%s19542_s1 + $0x600] ss:$12 sps:$4 sm:$0xff]  }
  0xd4   : > { %5945 = vmatprep.subr.bf16.mxu0 %v13658_v16  ;;  %v13780_v16 = vld [vmem:[%s19542_s1 + $0x6b0] ss:$12 sps:$4 sm:$0xff]  }
  0xd6   : > { %5871 = vmatmul.mubr.bf16.gmra.mrb[4].mxu0 %v15446_v46  ;;  %v15666_v46 = vld [vmem:[%s14944_s12 + $0xe0] ss:$100 sps:$4 sm:$0xff]  }
  0xd7   : > { %7338 = vmatmul.mubr.bf16.gmra.mrb[84].mxu1 %v15567_v18  ;;  %5946 = vmatpush1.bf16.msra.mxu0 %v13656_v17 }
  0xd8   : > { %5947 = vmatprep.subr.bf16.mxu0 %v13664_v19  ;;  %5880 = vmatprep.mubr.bf16.mxu0 %v15452_v48  ;;  %v15672_v48 = vld [vmem:[%s14944_s12 + $0x1ac] ss:$100 sps:$4 sm:$0xff]   ;;  %v15772_v19 = vld [vmem:[%s14944_s12 + $0x338] ss:$100 sps:$4 sm:$0xff]  }
  0xd9   : > { %7345 = vmatprep.mubr.bf16.mxu1 %v15573_v20 }
  0xdb   : > { %5948 = vmatpush1.bf16.msra.mxu0 %v13662_v21 }
  0xdc   : > { %5949 = vmatprep.subr.bf16.mxu0 %v13671_v22 }
  0xde   : > { %5881 = vmatmul.mubr.bf16.gmra.mrb[8].mxu0 %v15480_v56  ;;  %v15700_v56 = vld [vmem:[%s14944_s12 + $0x1a8] ss:$100 sps:$4 sm:$0xff]  }
  0xdf   : > { %7346 = vmatmul.mubr.bf16.gmra.mrb[88].mxu1 %v15589_v24  ;;  %5950 = vmatpush1.bf16.msra.mxu0 %v13669_v23 }
  0xe0   : > { %5951 = vmatprep.subr.bf16.mxu0 %v13677_v25  ;;  %5890 = vmatprep.mubr.bf16.mxu0 %v15486_v58  ;;  %v15706_v58 = vld [vmem:[%s14944_s12 + $0x274] ss:$100 sps:$4 sm:$0xff]  }
  0xe1   : > { %7353 = vmatprep.mubr.bf16.mxu1 %v15595_v26 }
  0xe3   : > { %5952 = vmatpush1.bf16.msra.mxu0 %v13675_v27  ;;  %v13737_v27 = vld [vmem:[%s19542_s1 + $0x618] ss:$12 sps:$4 sm:$0xff]  }
  0xe4   : > { %5953 = vmatprep.subr.bf16.mxu0 %v13684_v28  ;;  %v13746_v28 = vld [vmem:[%s19542_s1 + $0x634] ss:$12 sps:$4 sm:$0xff]  }
  0xe6   : > { %5891 = vmatmul.mubr.bf16.gmra.mrb[12].mxu0 %v15514_v2  ;;  %v13774_v2 = vld [vmem:[%s19542_s1 + $0x758] ss:$12 sps:$4 sm:$0xff]  }
  0xe7   : > { %7354 = vmatmul.mubr.bf16.gmra.mrb[92].mxu1 %v15611_v30  ;;  %5954 = vmatpush1.bf16.msra.mxu0 %v13682_v29  ;;  %v13744_v29 = vld [vmem:[%s19542_s1 + $0x630] ss:$12 sps:$4 sm:$0xff]  }
  0xe8   : > { %5955 = vmatprep.subr.bf16.mxu0 %v13690_v31  ;;  %5900 = vmatprep.mubr.bf16.mxu0 %v15520_v4  ;;  %v13728_v4 = vld [vmem:[%s19542_s1 + $0x5ec] ss:$12 sps:$4 sm:$0xff]   ;;  %v15798_v31 = vld [vmem:[%s14944_s12 + $0x400] ss:$100 sps:$4 sm:$0xff]  }
  0xe9   : > { %7394 = vmatprep.mubr.bf16.mxu1 %v15617_v32 }
  0xeb   : > { %5956 = vmatpush1.bf16.msra.mxu0 %v13688_v33 }
  0xec   : > { %5957 = vmatprep.subr.bf16.mxu0 %v13698_v34 }
  0xee   : > { %5901 = vmatmul.mubr.bf16.gmra.mrb[16].mxu0 %v13646_v12 }
  0xef   : > { %7395 = vmatmul.mubr.bf16.vlgmr.msra.gmra.mrb[96].mxu1 %v15630_v35  ;;  %5958 = vmatpush1.bf16.msra.mxu0 %v13696_v36  ;;  %v15806_v36 = vld [vmem:[%s14944_s12 + $0x4cc] ss:$100 sps:$4 sm:$0xff]  }
  0xf0   : > { %5959 = vmatprep.subr.bf16.mxu0 %v13701_v37  ;;  %5910 = vmatprep.mubr.bf16.mxu0 %v15552_v14  ;;  %v13733_v14 = vld [vmem:[%s19542_s1 + $0x604] ss:$12 sps:$4 sm:$0xff]  }
  0xf1   : > { %7402 = vmatprep.mubr.bf16.mxu1 %v15639_v38  ;;  %12067 = vmatpush3.bf16.msra.mxu1 %v13736_v39  ;;  %v13750_v39 = vld [vmem:[%s19542_s1 + $0x648] ss:$12 sps:$4 sm:$0xff]  }
  0xf2   : > { %12068 = vmatprep.subr.bf16.mxu1 %v13740_v40  ;;  %v13759_v40 = vld [vmem:[%s19542_s1 + $0x664] ss:$12 sps:$4 sm:$0xff]  }
  0xf3   : > { %5960 = vmatpush1.bf16.msra.mxu0 %v13699_v41  ;;  %v13757_v41 = vld [vmem:[%s19542_s1 + $0x660] ss:$12 sps:$4 sm:$0xff]  }
  0xf4   : > { %5961 = vmatprep.subr.bf16.mxu0 %v13706_v42 }
  0xf5   : > { %12069 = vmatpush3.bf16.msra.mxu1 %v13741_v44 }
  0xf6   : > { %5911 = vmatmul.mubr.bf16.gmra.mrb[20].mxu0 %v15567_v18  ;;  %12070 = vmatprep.subr.bf16.mxu1 %v13748_v45  ;;  %v13823_v18 = vld [vmem:[%s19542_s1 + $0x848] ss:$12 sps:$4 sm:$0xff]  }
  0xf7   : > { %7403 = vmatmul.mubr.bf16.gmra.mrb[100].mxu1 %v15666_v46  ;;  %5962 = vmatpush1.bf16.msra.mxu0 %v13704_v43  ;;  %v15824_v43 = vld [vmem:[%s14944_s12 + $0x4c8] ss:$100 sps:$4 sm:$0xff]  }
  0xf8   : > { %5963 = vmatprep.subr.bf16.mxu0 %v13710_v47  ;;  %5920 = vmatprep.mubr.bf16.mxu0 %v15573_v20  ;;  %v13739_v20 = vld [vmem:[%s19542_s1 + $0x61c] ss:$12 sps:$4 sm:$0xff]  }
  0xf9   : > { %7410 = vmatprep.mubr.bf16.mxu1 %v15672_v48  ;;  %12071 = vmatpush3.bf16.msra.mxu1 %v13749_v49  ;;  %v13765_v45 = vld [vmem:[%s19542_s1 + $0x67c] ss:$12 sps:$4 sm:$0xff]  }
  0xfa   : > { %12072 = vmatprep.subr.bf16.mxu1 %v13753_v50 }
  0xfb   : > { %5964 = vmatpush1.bf16.msra.mxu0 %v13708_v51  ;;  %v13763_v51 = vld [vmem:[%s19542_s1 + $0x678] ss:$12 sps:$4 sm:$0xff]  }
  0xfc   : > { %5965 = vmatprep.subr.bf16.mxu0 %v13715_v52  ;;  %v13772_v52 = vld [vmem:[%s19542_s1 + $0x694] ss:$12 sps:$4 sm:$0xff]  }
  0xfd   : > { %12073 = vmatpush3.bf16.msra.mxu1 %v13754_v54 }
  0xfe   : > { %5921 = vmatmul.mubr.bf16.gmra.mrb[24].mxu0 %v15589_v24  ;;  %12074 = vmatprep.subr.bf16.mxu1 %v13761_v55  ;;  %v15780_v24 = vld [vmem:[%s14944_s12 + $0x404] ss:$100 sps:$4 sm:$0xff]   ;;  %v15850_v55 = vld [vmem:[%s14944_s12 + $0x590] ss:$100 sps:$4 sm:$0xff]  }
  0xff   : > { %7411 = vmatmul.mubr.bf16.gmra.mrb[104].mxu1 %v15700_v56  ;;  %5966 = vmatpush1.bf16.msra.mxu0 %v13713_v53  ;;  %v13770_v53 = vld [vmem:[%s19542_s1 + $0x690] ss:$12 sps:$4 sm:$0xff]  }
 0x100   : > { %5967 = vmatprep.subr.bf16.mxu0 %v13719_v57  ;;  %5930 = vmatprep.mubr.bf16.mxu0 %v15595_v26  ;;  %v13778_v57 = vld [vmem:[%s19542_s1 + $0x6ac] ss:$12 sps:$4 sm:$0xff]  }
 0x101   : > { %7418 = vmatprep.mubr.bf16.mxu1 %v15706_v58  ;;  %12075 = vmatpush3.bf16.msra.mxu1 %v13762_v59  ;;  %v11826_v3 = vpop.f32.mrb[0].mxu1 }
 0x102   : > { %12076 = vmatprep.subr.bf16.mxu1 %v13766_v60  ;;  %v11827_v6 = vpop.f32.mrb[1].mxu1  ;;  %v15858_v60 = vld [vmem:[%s14944_s12 + $0x24] ss:$100 sps:$4 sm:$0xff]  }
 0x103   : > { %5968 = vmatpush1.bf16.msra.mxu0 %v13717_v61  ;;  %v15742_v7 = vadd.f32 %v11827_v6, %v11826_v3  ;;  %v11829_v8 = vpop.f32.mrb[2].mxu1  ;;  %v15882_v6 = vld [vmem:[%s14944_s12 + $0xec] ss:$100 sps:$4 sm:$0xff]  }
 0x104   : > { %5969 = vmatprep.subr.bf16.mxu0 %v13724_v62  ;;  %v11830_v10 = vpop.f32.mrb[3].mxu1 }
 0x105   : > { %12077 = vmatpush3.bf16.msra.mxu1 %v13767_v1  ;;  %v15751_v12 = vadd.f32 %v11830_v10, %v11829_v8  ;;  %v13786_v1 = vld [vmem:[%s19542_s1 + $0x6c4] ss:$12 sps:$4 sm:$0xff]   ;;  %v1379_v8 = vlaneseq }
 0x106   : > { %5931 = vmatmul.mubr.bf16.gmra.mrb[28].mxu0 %v15611_v30  ;;  %12078 = vmatprep.subr.bf16.mxu1 %v13774_v2  ;;  %v15872_v2 = vld [vmem:[%s14944_s12 + $0x20] ss:$100 sps:$4 sm:$0xff]  }
 0x107   : > { %7419 = vmatmul.mubr.bf16.gmra.mrb[108].mxu1 %v15728_v0  ;;  %5970 = vmatpush1.bf16.msra.mxu0 %v13722_v63  ;;  %v13776_v63 = vld [vmem:[%s19542_s1 + $0x6a8] ss:$12 sps:$4 sm:$0xff]  }
 0x108   : > { %5971 = vmatprep.subr.bf16.mxu0 %v13728_v4  ;;  %5973 = vmatprep.mubr.bf16.mxu0 %v15617_v32  ;;  %v13752_v32 = vld [vmem:[%s19542_s1 + $0x64c] ss:$12 sps:$4 sm:$0xff]   ;;  %v13789_v4 = vld [vmem:[%s19542_s1 + $0x6dc] ss:$12 sps:$4 sm:$0xff]  }
 0x109   : > { %7426 = vmatprep.mubr.bf16.mxu1 %v15740_v5  ;;  %12079 = vmatpush3.bf16.msra.mxu1 %v13775_v9  ;;  %v11832_v17 = vpop.f32.mrb[4].mxu1 }
 0x10a   : > { %12080 = vmatprep.subr.bf16.mxu1 %v13779_v11  ;;  %v11833_v21 = vpop.f32.mrb[5].mxu1  ;;  %v13824_v11 = vld [vmem:[%s19542_s1 + $0x788] ss:$12 sps:$4 sm:$0xff]  }
 0x10b   : > { %5972 = vmatpush1.bf16.msra.mxu0 %v13726_v13  ;;  %v15777_v22 = vadd.f32 %v11833_v21, %v11832_v17  ;;  %v11835_v23 = vpop.f32.mrb[6].mxu1  ;;  %v13794_v17 = vld [vmem:[%s19542_s1 + $0x6f4] ss:$12 sps:$4 sm:$0xff]  }
 0x10c   : > { %6054 = vmatprep.subr.bf16.mxu0 %v13733_v14  ;;  %v11836_v25 = vpop.f32.mrb[7].mxu1  ;;  %v13828_v14 = vld [vmem:[%s19542_s1 + $0x860] ss:$12 sps:$4 sm:$0xff]  }
 0x10d   : > { %12081 = vmatpush3.bf16.msra.mxu1 %v13780_v16  ;;  %v15783_v26 = vadd.f32 %v11836_v25, %v11835_v23  ;;  %v13787_v16 = vld [vmem:[%s19542_s1 + $0x6d8] ss:$12 sps:$4 sm:$0xff]   ;;  %v13829_v21 = vld [vmem:[%s19542_s1 + $0x7a0] ss:$12 sps:$4 sm:$0xff]  }
 0x10e   : > { %5974 = vmatmul.mubr.bf16.vlgmr.msra.gmra.mrb[0].mxu0 %v15630_v35  ;;  %12130 = vmatprep.subr.bf16.mxu1 %v13823_v18  ;;  %v15903_v18 = vshrl.u32 %v1379_v8, 7  ;;  %v13836_v23 = vld [vmem:[%s19542_s1 + $0x878] ss:$12 sps:$4 sm:$0xff]  }
 0x10f   : > { %7427 = vmatmul.mubr.bf16.gmra.mrb[112].mxu1 %v15772_v19  ;;  %6055 = vmatpush1.bf16.msra.mxu0 %v13731_v15  ;;  %v13798_v25 = vld [vmem:[%s19542_s1 + $0x70c] ss:$12 sps:$4 sm:$0xff]  }
 0x110   : > { %6056 = vmatprep.subr.bf16.mxu0 %v13739_v20  ;;  %5983 = vmatprep.mubr.bf16.mxu0 %v15639_v38  ;;  %19566 = vst [vmem:[#allocation2_spill] sm:$0xff] %v15903_v18  ;;  %v15910_v20 = vld [vmem:[%s14944_s12 + $0xe8] ss:$100 sps:$4 sm:$0xff]   ;;  %v13862_v8 = vld [vmem:[%s19542_s1 + $0x8d8] ss:$12 sps:$4 sm:$0xff]  }
 0x111   : > { %7434 = vmatprep.mubr.bf16.mxu1 %v15780_v24  ;;  %v11838_v30 = vpop.f32.mrb[8].mxu1 }
 0x112   : > { %v11839_v33 = vpop.f32.mrb[9].mxu1 }
 0x113   : > { %6057 = vmatpush1.bf16.msra.mxu0 %v13737_v27  ;;  %v15803_v34 = vadd.f32 %v11839_v33, %v11838_v30  ;;  %v11841_v35 = vpop.f32.mrb[10].mxu1  ;;  %v15922_v27 = vld [vmem:[%s14944_s12 + $0x1b4] ss:$100 sps:$4 sm:$0xff]  }
 0x114   : > { %6058 = vmatprep.subr.bf16.mxu0 %v13746_v28  ;;  %v11842_v37 = vpop.f32.mrb[11].mxu1 }
 0x115   : > { %v15809_v38 = vadd.f32 %v11842_v37, %v11841_v35  ;;  %v13841_v35 = vld [vmem:[%s19542_s1 + $0x890] ss:$12 sps:$4 sm:$0xff]  }
 0x116   : > { %5984 = vmatmul.mubr.bf16.gmra.mrb[4].mxu0 %v15666_v46 }
 0x117   : > { %7435 = vmatmul.mubr.bf16.gmra.mrb[116].mxu1 %v15798_v31  ;;  %6059 = vmatpush1.bf16.msra.mxu0 %v13744_v29 }
 0x118   : > { %6060 = vmatprep.subr.bf16.mxu0 %v13752_v32  ;;  %5993 = vmatprep.mubr.bf16.mxu0 %v15672_v48  ;;  %v15832_v48 = vld [vmem:[%s14944_s12 + $0x594] ss:$100 sps:$4 sm:$0xff]  }
 0x119   : > { %7442 = vmatprep.mubr.bf16.mxu1 %v15806_v36  ;;  %v11844_v42 = vpop.f32.mrb[12].mxu1  ;;  %v13837_v32 = vld [vmem:[%s19542_s1 + $0x7b8] ss:$12 sps:$4 sm:$0xff]  }
 0x11a   : > { %v11845_v44 = vpop.f32.mrb[13].mxu1 }
 0x11b   : > { %6061 = vmatpush1.bf16.msra.mxu0 %v13750_v39  ;;  %v15829_v46 = vadd.f32 %v11845_v44, %v11844_v42  ;;  %v11847_v47 = vpop.f32.mrb[14].mxu1  ;;  %v13796_v39 = vld [vmem:[%s19542_s1 + $0x708] ss:$12 sps:$4 sm:$0xff]  }
 0x11c   : > { %6062 = vmatprep.subr.bf16.mxu0 %v13759_v40  ;;  %v11848_v49 = vpop.f32.mrb[15].mxu1  ;;  %v15944_v40 = vsub.s32 2, %v15903_v18  ;;  %v15951_v42 = vld [vmem:[%s14944_s12 + $0x1b0] ss:$100 sps:$4 sm:$0xff]   ;;  %v13807_v44 = vld [vmem:[%s19542_s1 + $0x73c] ss:$12 sps:$4 sm:$0xff]  }
 0x11d   : > { %v15835_v50 = vadd.f32 %v11848_v49, %v11847_v47  ;;  %v13849_v47 = vld [vmem:[%s19542_s1 + $0x8a8] ss:$12 sps:$4 sm:$0xff]   ;;  %v1377_v49 = vld [vmem:[%s19543_s2] sm:$0x7] }
 0x11e   : > { %5994 = vmatmul.mubr.bf16.gmra.mrb[8].mxu0 %v15700_v56  ;;  %19567 = vst [vmem:[#allocation3_spill] sm:$0xff] %v15944_v40 }
 0x11f   : > { %7443 = vmatmul.mubr.bf16.gmra.mrb[120].mxu1 %v15824_v43  ;;  %6063 = vmatpush1.bf16.msra.mxu0 %v13757_v41  ;;  %v13801_v41 = vld [vmem:[%s19542_s1 + $0x720] ss:$12 sps:$4 sm:$0xff]  }
 0x120   : > { %6064 = vmatprep.subr.bf16.mxu0 %v13765_v45  ;;  %6003 = vmatprep.mubr.bf16.mxu0 %v15706_v58 }
 0x121   : > { %7450 = vmatprep.mubr.bf16.mxu1 %v15832_v48  ;;  %v11850_v54 = vpop.f32.mrb[16].mxu1 }
 0x122   : > { %v11851_v56 = vpop.f32.mrb[17].mxu1 }
 0x123   : > { %6065 = vmatpush1.bf16.msra.mxu0 %v13763_v51  ;;  %v15855_v58 = vadd.f32 %v11851_v56, %v11850_v54  ;;  %v11853_v59 = vpop.f32.mrb[18].mxu1  ;;  %v15966_v51 = vld [vmem:[%s14944_s12 + $0x27c] ss:$100 sps:$4 sm:$0xff]   ;;  %v13850_v56 = vld [vmem:[%s19542_s1 + $0x7e8] ss:$12 sps:$4 sm:$0xff]  }
 0x124   : > { %6066 = vmatprep.subr.bf16.mxu0 %v13772_v52  ;;  %v11854_v61 = vpop.f32.mrb[19].mxu1 }
 0x125   : > { %v15861_v62 = vadd.f32 %v11854_v61, %v11853_v59  ;;  %v15975_v59 = vrot.slane %v1377_v49, %v15944_v40 }
 0x126   : > { %6004 = vmatmul.mubr.bf16.gmra.mrb[12].mxu0 %v15728_v0  ;;  %v13784_v0 = vld [vmem:[%s19542_s1 + $0x6c0] ss:$12 sps:$4 sm:$0xff]  }
 0x127   : > { %7451 = vmatmul.mubr.bf16.gmra.mrb[124].mxu1 %v15850_v55  ;;  %6067 = vmatpush1.bf16.msra.mxu0 %v13770_v53 }
 0x128   : > { %6068 = vmatprep.subr.bf16.mxu0 %v13778_v57  ;;  %6013 = vmatprep.mubr.bf16.mxu0 %v15740_v5 }
 0x129   : > { %7491 = vmatprep.mubr.bf16.mxu1 %v15858_v60  ;;  %v11856_v3 = vpop.f32.mrb[20].mxu1 }
 0x12a   : > { %v11857_v5 = vpop.f32.mrb[21].mxu1 }
 0x12b   : > { %6069 = vmatpush1.bf16.msra.mxu0 %v13776_v63  ;;  %v15884_v9 = vadd.f32 %v11857_v5, %v11856_v3  ;;  %v11859_v10 = vpop.f32.mrb[22].mxu1  ;;  %v13854_v63 = vld [vmem:[%s19542_s1 + $0x8c0] ss:$12 sps:$4 sm:$0xff]   ;;  %v15995_v3 = vld [vmem:[%s14944_s12 + $0x278] ss:$100 sps:$4 sm:$0xff]  }
 0x12c   : > { %6070 = vmatprep.subr.bf16.mxu0 %v13786_v1  ;;  %v11860_v13 = vpop.f32.mrb[23].mxu1  ;;  %v13805_v1 = vld [vmem:[%s19542_s1 + $0x738] ss:$12 sps:$4 sm:$0xff]  }
 0x12d   : > { %v15893_v15 = vadd.f32 %v11860_v13, %v11859_v10  ;;  %v13816_v10 = vld [vmem:[%s19542_s1 + $0x76c] ss:$12 sps:$4 sm:$0xff]  }
 0x12e   : > { %6014 = vmatmul.mubr.bf16.gmra.mrb[16].mxu0 %v15772_v19  ;;  %v13792_v19 = vld [vmem:[%s19542_s1 + $0x6f0] ss:$12 sps:$4 sm:$0xff]  }
 0x12f   : > { %7492 = vmatmul.mubr.bf16.vlgmr.msra.gmra.mrb[128].mxu1 %v15872_v2  ;;  %6071 = vmatpush1.bf16.msra.mxu0 %v13784_v0  ;;  %v13810_v0 = vld [vmem:[%s19542_s1 + $0x750] ss:$12 sps:$4 sm:$0xff]  }
 0x130   : > { %6072 = vmatprep.subr.bf16.mxu0 %v13789_v4  ;;  %6023 = vmatprep.mubr.bf16.mxu0 %v15780_v24  ;;  %v13855_v4 = vld [vmem:[%s19542_s1 + $0x800] ss:$12 sps:$4 sm:$0xff]  }
 0x131   : > { %7499 = vmatprep.mubr.bf16.mxu1 %v15882_v6  ;;  %12131 = vmatpush3.bf16.msra.mxu1 %v13824_v11  ;;  %v11862_v24 = vpop.f32.mrb[24].mxu1  ;;  %v16009_v11 = vld [vmem:[%s14944_s12 + $0x344] ss:$100 sps:$4 sm:$0xff]  }
 0x132   : > { %12132 = vmatprep.subr.bf16.mxu1 %v13828_v14  ;;  %v11863_v28 = vpop.f32.mrb[25].mxu1  ;;  %v7109_v14 = vadd.f32 %v15751_v12, %v15975_v59  ;;  %v13814_v12 = vld [vmem:[%s19542_s1 + $0x768] ss:$12 sps:$4 sm:$0xff]  }
 0x133   : > { %6073 = vmatpush1.bf16.msra.mxu0 %v13787_v16  ;;  %v15924_v29 = vadd.f32 %v11863_v28, %v11862_v24  ;;  %v11865_v30 = vpop.f32.mrb[26].mxu1  ;;  %v13867_v24 = vld [vmem:[%s19542_s1 + $0x8f0] ss:$12 sps:$4 sm:$0xff]   ;;  %v13819_v28 = vld [vmem:[%s19542_s1 + $0x780] ss:$12 sps:$4 sm:$0xff]  }
 0x134   : > { %6074 = vmatprep.subr.bf16.mxu0 %v13794_v17  ;;  %v11866_v33 = vpop.f32.mrb[27].mxu1 }
 0x135   : > { %12133 = vmatpush3.bf16.msra.mxu1 %v13829_v21  ;;  %v15933_v37 = vadd.f32 %v11866_v33, %v11865_v30  ;;  %v13868_v30 = vld [vmem:[%s19542_s1 + $0x830] ss:$12 sps:$4 sm:$0xff]   ;;  %v13911_v33 = vld [vmem:[%s19542_s1 + $0x9c8] ss:$12 sps:$4 sm:$0xff]  }
 0x136   : > { %6024 = vmatmul.mubr.bf16.gmra.mrb[20].mxu0 %v15798_v31  ;;  %12134 = vmatprep.subr.bf16.mxu1 %v13836_v23  ;;  %v13803_v31 = vld [vmem:[%s19542_s1 + $0x724] ss:$12 sps:$4 sm:$0xff]  }
 0x137   : > { %7500 = vmatmul.mubr.bf16.gmra.mrb[132].mxu1 %v15910_v20  ;;  %6075 = vmatpush1.bf16.msra.mxu0 %v13792_v19  ;;  %v13863_v19 = vld [vmem:[%s19542_s1 + $0x818] ss:$12 sps:$4 sm:$0xff]  }
 0x138   : > { %6076 = vmatprep.subr.bf16.mxu0 %v13798_v25  ;;  %6033 = vmatprep.mubr.bf16.mxu0 %v15806_v36  ;;  %v13842_v36 = vld [vmem:[%s19542_s1 + $0x7d0] ss:$12 sps:$4 sm:$0xff]  }
 0x139   : > { %7507 = vmatprep.mubr.bf16.mxu1 %v15922_v27  ;;  %12135 = vmatpush3.bf16.msra.mxu1 %v13837_v32  ;;  %v11868_v45 = vpop.f32.mrb[28].mxu1 }
 0x13a   : > { %12136 = vmatprep.subr.bf16.mxu1 %v13841_v35  ;;  %v11869_v52 = vpop.f32.mrb[29].mxu1  ;;  %v16045_v35 = vld [vmem:[%s14944_s12 + $0x340] ss:$100 sps:$4 sm:$0xff]  }
 0x13b   : > { %6077 = vmatpush1.bf16.msra.mxu0 %v13796_v39  ;;  %v15968_v53 = vadd.f32 %v11869_v52, %v11868_v45  ;;  %v11871_v54 = vpop.f32.mrb[30].mxu1 }
 0x13c   : > { %6078 = vmatprep.subr.bf16.mxu0 %v13803_v31  ;;  %v11872_v57 = vpop.f32.mrb[31].mxu1  ;;  %v7117_v31 = vadd.f32 %v15783_v26, %v15975_v59  ;;  %v13825_v26 = vld [vmem:[%s19542_s1 + $0x798] ss:$12 sps:$4 sm:$0xff]  }
 0x13d   : > { %12137 = vmatpush3.bf16.msra.mxu1 %v13842_v36  ;;  %v15977_v61 = vadd.f32 %v11872_v57, %v11871_v54  ;;  %v7122_v54 = vadd.f32 %v15803_v34, %v15975_v59  ;;  %v16083_v34 = vld [vmem:[%s14944_s12 + $0x4d4] ss:$100 sps:$4 sm:$0xff]  }
 0x13e   : > { %6034 = vmatmul.mubr.bf16.gmra.mrb[24].mxu0 %v15824_v43  ;;  %12138 = vmatprep.subr.bf16.mxu1 %v13849_v47  ;;  %v13812_v43 = vld [vmem:[%s19542_s1 + $0x754] ss:$12 sps:$4 sm:$0xff]  }
 0x13f   : > { %7508 = vmatmul.mubr.bf16.gmra.mrb[136].mxu1 %v15951_v42  ;;  %6079 = vmatpush1.bf16.msra.mxu0 %v13801_v41  ;;  %v13827_v41 = vld [vmem:[%s19542_s1 + $0x79c] ss:$12 sps:$4 sm:$0xff]  }
 0x140   : > { %6080 = vmatprep.subr.bf16.mxu0 %v13807_v44  ;;  %6043 = vmatprep.mubr.bf16.mxu0 %v15832_v48  ;;  %v7106_v48 = vadd.f32 %v15742_v7, %v15975_v59  ;;  %v16053_v44 = vld [vmem:[%s14944_s12 + $0x40c] ss:$100 sps:$4 sm:$0xff]  }
 0x141   : > { %7515 = vmatprep.mubr.bf16.mxu1 %v15966_v51  ;;  %12139 = vmatpush3.bf16.msra.mxu1 %v13850_v56  ;;  %v11890_v5 = vpop.f32.mrb[32].mxu1  ;;  %v13832_v56 = vld [vmem:[%s19542_s1 + $0x7b0] ss:$12 sps:$4 sm:$0xff]  }
 0x142   : > { %12140 = vmatprep.subr.bf16.mxu1 %v13854_v63  ;;  %v11891_v13 = vpop.f32.mrb[33].mxu1  ;;  %v16075_v63 = vld [vmem:[%s14944_s12 + $0x408] ss:$100 sps:$4 sm:$0xff]  }
 0x143   : > { %6081 = vmatpush1.bf16.msra.mxu0 %v13805_v1  ;;  %v11892_v16 = vadd.f32 %v11891_v13, %v11890_v5  ;;  %v11893_v7 = vpop.f32.mrb[34].mxu1  ;;  %v7125_v1 = vadd.f32 %v15809_v38, %v15975_v59  ;;  %v13838_v38 = vld [vmem:[%s19542_s1 + $0x7c8] ss:$12 sps:$4 sm:$0xff]  }
 0x144   : > { %6082 = vmatprep.subr.bf16.mxu0 %v13812_v43  ;;  %v11894_v17 = vpop.f32.mrb[35].mxu1  ;;  %v13840_v43 = vld [vmem:[%s19542_s1 + $0x7cc] ss:$12 sps:$4 sm:$0xff]  }
 0x145   : > { %12141 = vmatpush3.bf16.msra.mxu1 %v13855_v4  ;;  %v16017_v21 = vadd.f32 %v11892_v16, %v7106_v48  ;;  %v11895_v23 = vadd.f32 %v11894_v17, %v11893_v7  ;;  %v16105_v7 = vld [vmem:[%s14944_s12 + $0x4d0] ss:$100 sps:$4 sm:$0xff]  }
 0x146   : > { %6044 = vmatmul.mubr.bf16.gmra.mrb[28].mxu0 %v15850_v55  ;;  %12142 = vmatprep.subr.bf16.mxu1 %v13862_v8  ;;  %v13821_v55 = vld [vmem:[%s19542_s1 + $0x784] ss:$12 sps:$4 sm:$0xff]  }
 0x147   : > { %7516 = vmatmul.mubr.bf16.gmra.mrb[140].mxu1 %v15995_v3  ;;  %6083 = vmatpush1.bf16.msra.mxu0 %v13810_v0  ;;  %v16030_v25 = vadd.f32 %v11895_v23, %v7109_v14  ;;  %v13845_v14 = vld [vmem:[%s19542_s1 + $0x7e0] ss:$12 sps:$4 sm:$0xff]  }
 0x148   : > { %6084 = vmatprep.subr.bf16.mxu0 %v13816_v10  ;;  %6086 = vmatprep.mubr.bf16.mxu0 %v15858_v60  ;;  %v7114_v60 = vadd.f32 %v15777_v22, %v15975_v59  ;;  %v13847_v10 = vld [vmem:[%s19542_s1 + $0x7e4] ss:$12 sps:$4 sm:$0xff]  }
 0x149   : > { %7523 = vmatprep.mubr.bf16.mxu1 %v16009_v11  ;;  %12143 = vmatpush3.bf16.msra.mxu1 %v13863_v19  ;;  %v7133_v19 = vadd.f32 %v15835_v50, %v15975_v59  ;;  %v13860_v50 = vld [vmem:[%s19542_s1 + $0x814] ss:$12 sps:$4 sm:$0xff]  }
 0x14a   : > { %v11896_v32 = vpop.f32.mrb[36].mxu1  ;;  %12144 = vmatprep.subr.bf16.mxu1 %v13867_v24 }
 0x14b   : > { %6085 = vmatpush1.bf16.msra.mxu0 %v13814_v12  ;;  %v11897_v39 = vpop.f32.mrb[37].mxu1 }
 0x14c   : > { %6167 = vmatprep.subr.bf16.mxu0 %v13821_v55  ;;  %v11898_v36 = vadd.f32 %v11897_v39, %v11896_v32  ;;  %v11899_v22 = vpop.f32.mrb[38].mxu1  ;;  %v13858_v32 = vld [vmem:[%s19542_s1 + $0x810] ss:$12 sps:$4 sm:$0xff]  }
 0x14d   : > { %v11900_v45 = vpop.f32.mrb[39].mxu1  ;;  %12145 = vmatpush3.bf16.msra.mxu1 %v13868_v30  ;;  %v13851_v30 = vld [vmem:[%s19542_s1 + $0x7f8] ss:$12 sps:$4 sm:$0xff]  }
 0x14e   : > { %6087 = vmatmul.mubr.bf16.vlgmr.msra.gmra.mrb[0].mxu0 %v15872_v2  ;;  %v16056_v47 = vadd.f32 %v11898_v36, %v7114_v60  ;;  %v11901_v49 = vadd.f32 %v11900_v45, %v11899_v22  ;;  %12194 = vmatprep.subr.bf16.mxu1 %v13911_v33  ;;  %v13834_v2 = vld [vmem:[%s19542_s1 + $0x7b4] ss:$12 sps:$4 sm:$0xff]   ;;  %v16135_v39 = vld [vmem:[%s14944_s12 + $0x598] ss:$100 sps:$4 sm:$0xff]   ;;  %v16143_v22 = vld [vmem:[%s14944_s12 + $0x2c] ss:$100 sps:$4 sm:$0xff]  }
 0x14f   : > { %7524 = vmatmul.mubr.bf16.gmra.mrb[144].mxu1 %v16045_v35  ;;  %6168 = vmatpush1.bf16.msra.mxu0 %v13819_v28 }
 0x150   : > { %6169 = vmatprep.subr.bf16.mxu0 %v13827_v41  ;;  %6096 = vmatprep.mubr.bf16.mxu0 %v15882_v6  ;;  %v16066_v52 = vadd.f32 %v11901_v49, %v7117_v31  ;;  %v7141_v41 = vadd.f32 %v15861_v62, %v15975_v59  ;;  %v13864_v62 = vld [vmem:[%s19542_s1 + $0x828] ss:$12 sps:$4 sm:$0xff]  }
 0x151   : > { %7531 = vmatprep.mubr.bf16.mxu1 %v16053_v44 }
 0x152   : > { %v11902_v57 = vpop.f32.mrb[40].mxu1 }
 0x153   : > { %6170 = vmatpush1.bf16.msra.mxu0 %v13825_v26  ;;  %v11903_v6 = vpop.f32.mrb[41].mxu1 }
 0x154   : > { %6171 = vmatprep.subr.bf16.mxu0 %v13834_v2  ;;  %v11904_v0 = vadd.f32 %v11903_v6, %v11902_v57  ;;  %v11905_v4 = vpop.f32.mrb[42].mxu1  ;;  %v13874_v2 = vld [vmem:[%s19542_s1 + $0x844] ss:$12 sps:$4 sm:$0xff]   ;;  %v13872_v57 = vld [vmem:[%s19542_s1 + $0x840] ss:$12 sps:$4 sm:$0xff]  }
 0x155   : > { %v11906_v48 = vpop.f32.mrb[43].mxu1 }
 0x156   : > { %6097 = vmatmul.mubr.bf16.gmra.mrb[4].mxu0 %v15910_v20  ;;  %v16086_v5 = vadd.f32 %v11904_v0, %v7122_v54  ;;  %v11907_v8 = vadd.f32 %v11906_v48, %v11905_v4  ;;  %v7130_v20 = vadd.f32 %v15829_v46, %v15975_v59  ;;  %v16113_v46 = vld [vmem:[%s14944_s12 + $0x59c] ss:$100 sps:$4 sm:$0xff]   ;;  %v7149_v0 = vadd.f32 %v15893_v15, %v15975_v59  ;;  %v13875_v15 = vld [vmem:[%s19542_s1 + $0x858] ss:$12 sps:$4 sm:$0xff]  }
 0x157   : > { %7532 = vmatmul.mubr.bf16.gmra.mrb[148].mxu1 %v16075_v63  ;;  %6172 = vmatpush1.bf16.msra.mxu0 %v13832_v56  ;;  %v7146_v56 = vadd.f32 %v15884_v9, %v15975_v59 }
 0x158   : > { %6173 = vmatprep.subr.bf16.mxu0 %v13840_v43  ;;  %6106 = vmatprep.mubr.bf16.mxu0 %v15922_v27  ;;  %v16096_v13 = vadd.f32 %v11907_v8, %v7125_v1  ;;  %v13853_v27 = vld [vmem:[%s19542_s1 + $0x7fc] ss:$12 sps:$4 sm:$0xff]   ;;  %v16171_v1 = vld [vmem:[%s14944_s12 + $0xf4] ss:$100 sps:$4 sm:$0xff]  }
 0x159   : > { %7539 = vmatprep.mubr.bf16.mxu1 %v16083_v34  ;;  %v13912_v8 = vld [vmem:[%s19542_s1 + $0x908] ss:$12 sps:$4 sm:$0xff]  }
 0x15a   : > { %v11908_v16 = vpop.f32.mrb[44].mxu1 }
 0x15b   : > { %6174 = vmatpush1.bf16.msra.mxu0 %v13838_v38  ;;  %v11909_v17 = vpop.f32.mrb[45].mxu1 }
 0x15c   : > { %6175 = vmatprep.subr.bf16.mxu0 %v13847_v10  ;;  %v11910_v23 = vadd.f32 %v11909_v17, %v11908_v16  ;;  %v11911_v24 = vpop.f32.mrb[46].mxu1  ;;  %v13880_v16 = vld [vmem:[%s19542_s1 + $0x870] ss:$12 sps:$4 sm:$0xff]   ;;  %v13917_v17 = vld [vmem:[%s19542_s1 + $0x920] ss:$12 sps:$4 sm:$0xff]  }
 0x15d   : > { %v11912_v12 = vpop.f32.mrb[47].mxu1 }
 0x15e   : > { %6107 = vmatmul.mubr.bf16.gmra.mrb[8].mxu0 %v15951_v42  ;;  %v16116_v55 = vadd.f32 %v11910_v23, %v7130_v20  ;;  %v11913_v28 = vadd.f32 %v11912_v12, %v11911_v24  ;;  %v7138_v42 = vadd.f32 %v15855_v58, %v15975_v59  ;;  %v13916_v20 = vld [vmem:[%s19542_s1 + $0x9e0] ss:$12 sps:$4 sm:$0xff]   ;;  %v13924_v23 = vld [vmem:[%s19542_s1 + $0x9f8] ss:$12 sps:$4 sm:$0xff]  }
 0x15f   : > { %7540 = vmatmul.mubr.bf16.gmra.mrb[152].mxu1 %v16105_v7  ;;  %6176 = vmatpush1.bf16.msra.mxu0 %v13845_v14  ;;  %v13886_v24 = vld [vmem:[%s19542_s1 + $0x88c] ss:$12 sps:$4 sm:$0xff]  }
 0x160   : > { %6177 = vmatprep.subr.bf16.mxu0 %v13853_v27  ;;  %6116 = vmatprep.mubr.bf16.mxu0 %v15966_v51  ;;  %v16126_v60 = vadd.f32 %v11913_v28, %v7133_v19  ;;  %v13866_v51 = vld [vmem:[%s19542_s1 + $0x82c] ss:$12 sps:$4 sm:$0xff]   ;;  %v16199_v27 = vld [vmem:[%s14944_s12 + $0xf0] ss:$100 sps:$4 sm:$0xff]   ;;  %v16213_v28 = vld [vmem:[%s14944_s12 + $0x1bc] ss:$100 sps:$4 sm:$0xff]  }
 0x161   : > { %7547 = vmatprep.mubr.bf16.mxu1 %v16113_v46 }
 0x162   : > { %v11914_v33 = vpop.f32.mrb[48].mxu1 }
 0x163   : > { %6178 = vmatpush1.bf16.msra.mxu0 %v13851_v30  ;;  %v11915_v31 = vpop.f32.mrb[49].mxu1  ;;  %v7157_v30 = vadd.f32 %v15933_v37, %v15975_v59  ;;  %v13884_v37 = vld [vmem:[%s19542_s1 + $0x888] ss:$12 sps:$4 sm:$0xff]  }
 0x164   : > { %6179 = vmatprep.subr.bf16.mxu0 %v13860_v50  ;;  %v11916_v36 = vadd.f32 %v11915_v31, %v11914_v33  ;;  %v11917_v58 = vpop.f32.mrb[50].mxu1  ;;  %v13929_v31 = vld [vmem:[%s19542_s1 + $0xa10] ss:$12 sps:$4 sm:$0xff]  }
 0x165   : > { %v11918_v45 = vpop.f32.mrb[51].mxu1 }
 0x166   : > { %6117 = vmatmul.mubr.bf16.gmra.mrb[12].mxu0 %v15995_v3  ;;  %v16146_v49 = vadd.f32 %v11916_v36, %v7138_v42  ;;  %v11919_v26 = vadd.f32 %v11918_v45, %v11917_v58  ;;  %v16159_v3 = vld [vmem:[%s14944_s12 + $0x28] ss:$100 sps:$4 sm:$0xff]   ;;  %v13930_v58 = vld [vmem:[%s19542_s1 + $0x950] ss:$12 sps:$4 sm:$0xff]   ;;  %v7162_v45 = vadd.f32 %v15968_v53, %v15975_v59 }
 0x167   : > { %7548 = vmatmul.mubr.bf16.gmra.mrb[156].mxu1 %v16135_v39  ;;  %6180 = vmatpush1.bf16.msra.mxu0 %v13858_v32  ;;  %v13925_v32 = vld [vmem:[%s19542_s1 + $0x938] ss:$12 sps:$4 sm:$0xff]   ;;  %v13889_v36 = vld [vmem:[%s19542_s1 + $0x8a0] ss:$12 sps:$4 sm:$0xff]   ;;  %v13895_v53 = vld [vmem:[%s19542_s1 + $0x8bc] ss:$12 sps:$4 sm:$0xff]  }
 0x168   : > { %6181 = vmatprep.subr.bf16.mxu0 %v13866_v51  ;;  %6126 = vmatprep.mubr.bf16.mxu0 %v16009_v11  ;;  %v16156_v54 = vadd.f32 %v11919_v26, %v7141_v41  ;;  %v13877_v11 = vld [vmem:[%s19542_s1 + $0x85c] ss:$12 sps:$4 sm:$0xff]  }
 0x169   : > { %7588 = vmatprep.mubr.bf16.mxu1 %v16143_v22  ;;  %v13937_v26 = vld [vmem:[%s19542_s1 + $0xa28] ss:$12 sps:$4 sm:$0xff]  }
 0x16a   : > { %v11920_v6 = vpop.f32.mrb[52].mxu1 }
 0x16b   : > { %6182 = vmatpush1.bf16.msra.mxu0 %v13864_v62  ;;  %v11921_v43 = vpop.f32.mrb[53].mxu1 }
 0x16c   : > { %6183 = vmatprep.subr.bf16.mxu0 %v13874_v2  ;;  %v11922_v4 = vadd.f32 %v11921_v43, %v11920_v6  ;;  %v11923_v48 = vpop.f32.mrb[54].mxu1  ;;  %v16249_v2 = vld [vmem:[%s14944_s12 + $0x1b8] ss:$100 sps:$4 sm:$0xff]   ;;  %v16257_v43 = vld [vmem:[%s14944_s12 + $0x284] ss:$100 sps:$4 sm:$0xff]  }
 0x16d   : > { %v11924_v9 = vpop.f32.mrb[55].mxu1 }
 0x16e   : > { %6127 = vmatmul.mubr.bf16.gmra.mrb[16].mxu0 %v16045_v35  ;;  %v16179_v38 = vadd.f32 %v11922_v4, %v7146_v56  ;;  %v11925_v10 = vadd.f32 %v11924_v9, %v11923_v48  ;;  %v13882_v35 = vld [vmem:[%s19542_s1 + $0x874] ss:$12 sps:$4 sm:$0xff]   ;;  %v7165_v56 = vadd.f32 %v15977_v61, %v15975_v59  ;;  %v13893_v48 = vld [vmem:[%s19542_s1 + $0x8b8] ss:$12 sps:$4 sm:$0xff]  }
 0x16f   : > { %7589 = vmatmul.mubr.bf16.vlgmr.msra.gmra.mrb[160].mxu1 %v16159_v3  ;;  %6184 = vmatpush1.bf16.msra.mxu0 %v13872_v57  ;;  %v13942_v61 = vld [vmem:[%s19542_s1 + $0xa40] ss:$12 sps:$4 sm:$0xff]  }
 0x170   : > { %6185 = vmatprep.subr.bf16.mxu0 %v13877_v11  ;;  %6136 = vmatprep.mubr.bf16.mxu0 %v16053_v44  ;;  %v16192_v14 = vadd.f32 %v11925_v10, %v7149_v0  ;;  %v7154_v44 = vadd.f32 %v15924_v29, %v15975_v59  ;;  %v13938_v0 = vld [vmem:[%s19542_s1 + $0x968] ss:$12 sps:$4 sm:$0xff]   ;;  %v16283_v10 = vld [vmem:[%s14944_s12 + $0x280] ss:$100 sps:$4 sm:$0xff]  }
 0x171   : > { %7596 = vmatprep.mubr.bf16.mxu1 %v16171_v1  ;;  %12195 = vmatpush3.bf16.msra.mxu1 %v13912_v8  ;;  %v13898_v8 = vld [vmem:[%s19542_s1 + $0x8d0] ss:$12 sps:$4 sm:$0xff]  }
 0x172   : > { %v11926_v19 = vpop.f32.mrb[56].mxu1  ;;  %12196 = vmatprep.subr.bf16.mxu1 %v13916_v20  ;;  %v13943_v20 = vld [vmem:[%s19542_s1 + $0x980] ss:$12 sps:$4 sm:$0xff]  }
 0x173   : > { %6186 = vmatpush1.bf16.msra.mxu0 %v13875_v15  ;;  %v11927_v12 = vpop.f32.mrb[57].mxu1 }
 0x174   : > { %6187 = vmatprep.subr.bf16.mxu0 %v13882_v35  ;;  %v11928_v50 = vadd.f32 %v11927_v12, %v11926_v19  ;;  %v11929_v29 = vpop.f32.mrb[58].mxu1  ;;  %v13951_v12 = vld [vmem:[%s19542_s1 + $0x998] ss:$12 sps:$4 sm:$0xff]  }
 0x175   : > { %v11930_v42 = vpop.f32.mrb[59].mxu1  ;;  %12197 = vmatpush3.bf16.msra.mxu1 %v13917_v17 }
 0x176   : > { %6137 = vmatmul.mubr.bf16.gmra.mrb[20].mxu0 %v16075_v63  ;;  %v16221_v33 = vadd.f32 %v11928_v50, %v7154_v44  ;;  %v11931_v51 = vadd.f32 %v11930_v42, %v11929_v29  ;;  %12198 = vmatprep.subr.bf16.mxu1 %v13924_v23  ;;  %v13891_v63 = vld [vmem:[%s19542_s1 + $0x8a4] ss:$12 sps:$4 sm:$0xff]   ;;  %v13904_v44 = vld [vmem:[%s19542_s1 + $0x8ec] ss:$12 sps:$4 sm:$0xff]   ;;  %v13902_v23 = vld [vmem:[%s19542_s1 + $0x8e8] ss:$12 sps:$4 sm:$0xff]  }
 0x177   : > { %7597 = vmatmul.mubr.bf16.gmra.mrb[164].mxu1 %v16199_v27  ;;  %6188 = vmatpush1.bf16.msra.mxu0 %v13880_v16  ;;  %v13909_v29 = vld [vmem:[%s19542_s1 + $0x904] ss:$12 sps:$4 sm:$0xff]  }
 0x178   : > { %6189 = vmatprep.subr.bf16.mxu0 %v13886_v24  ;;  %v16230_v41 = vadd.f32 %v11931_v51, %v7157_v30  ;;  %6146 = vmatprep.mubr.bf16.mxu0 %v16083_v34  ;;  %v16298_v24 = vld [vmem:[%s14944_s12 + $0x34c] ss:$100 sps:$4 sm:$0xff]  }
 0x179   : > { %7604 = vmatprep.mubr.bf16.mxu1 %v16213_v28  ;;  %12199 = vmatpush3.bf16.msra.mxu1 %v13925_v32  ;;  %v13955_v42 = vld [vmem:[%s19542_s1 + $0xa70] ss:$12 sps:$4 sm:$0xff]  }
 0x17a   : > { %v11932_v34 = vpop.f32.mrb[60].mxu1  ;;  %12200 = vmatprep.subr.bf16.mxu1 %v13929_v31  ;;  %v13956_v51 = vld [vmem:[%s19542_s1 + $0x9b0] ss:$12 sps:$4 sm:$0xff]  }
 0x17b   : > { %6190 = vmatpush1.bf16.msra.mxu0 %v13884_v37  ;;  %v11933_v62 = vpop.f32.mrb[61].mxu1 }
 0x17c   : > { %6191 = vmatprep.subr.bf16.mxu0 %v13891_v63  ;;  %v11934_v57 = vadd.f32 %v11933_v62, %v11932_v34  ;;  %v11935_v6 = vpop.f32.mrb[62].mxu1  ;;  %v13913_v62 = vld [vmem:[%s19542_s1 + $0x918] ss:$12 sps:$4 sm:$0xff]  }
 0x17d   : > { %v11936_v11 = vpop.f32.mrb[63].mxu1  ;;  %12201 = vmatpush3.bf16.msra.mxu1 %v13930_v58 }
 0x17e   : > { %6147 = vmatmul.mubr.bf16.gmra.mrb[24].mxu0 %v16105_v7  ;;  %v16263_v4 = vadd.f32 %v11934_v57, %v7162_v45  ;;  %v11937_v59 = vadd.f32 %v11936_v11, %v11935_v6  ;;  %12202 = vmatprep.subr.bf16.mxu1 %v13937_v26  ;;  %v13900_v7 = vld [vmem:[%s19542_s1 + $0x8d4] ss:$12 sps:$4 sm:$0xff]  }
 0x17f   : > { %7605 = vmatmul.mubr.bf16.gmra.mrb[168].mxu1 %v16249_v2  ;;  %6192 = vmatpush1.bf16.msra.mxu0 %v13889_v36  ;;  %v13915_v36 = vld [vmem:[%s19542_s1 + $0x91c] ss:$12 sps:$4 sm:$0xff]   ;;  %v16335_v45 = vld [vmem:[%s14944_s12 + $0x414] ss:$100 sps:$4 sm:$0xff]  }
 0x180   : > { %v16272_v9 = vadd.f32 %v11937_v59, %v7165_v56  ;;  %6193 = vmatprep.subr.bf16.mxu0 %v13895_v53  ;;  %6156 = vmatprep.mubr.bf16.mxu0 %v16113_v46  ;;  %v13950_v46 = vld [vmem:[%s19542_s1 + $0xa58] ss:$12 sps:$4 sm:$0xff]   ;;  %v13922_v56 = vld [vmem:[%s19542_s1 + $0x934] ss:$12 sps:$4 sm:$0xff]  }
 0x181   : > { %7612 = vmatprep.mubr.bf16.mxu1 %v16257_v43  ;;  %12203 = vmatpush3.bf16.msra.mxu1 %v13938_v0  ;;  %v16357_v6 = vld [vmem:[%s14944_s12 + $0x410] ss:$100 sps:$4 sm:$0xff]   ;;  %v16363_v59 = vld [vmem:[%s14944_s12 + $0x4dc] ss:$100 sps:$4 sm:$0xff]  }
 0x182   : > { %v11954_v15 = vpop.f32.mrb[64].mxu1  ;;  %12204 = vmatprep.subr.bf16.mxu1 %v13942_v61 }
 0x183   : > { %v11955_v35 = vpop.f32.mrb[65].mxu1  ;;  %6194 = vmatpush1.bf16.msra.mxu0 %v13893_v48 }
 0x184   : > { %v11956_v16 = vadd.f32 %v11955_v35, %v11954_v15  ;;  %v11957_v17 = vpop.f32.mrb[66].mxu1  ;;  %6195 = vmatprep.subr.bf16.mxu0 %v13900_v7  ;;  %v13926_v7 = vld [vmem:[%s19542_s1 + $0x948] ss:$12 sps:$4 sm:$0xff]   ;;  %v16385_v15 = vld [vmem:[%s14944_s12 + $0x4d8] ss:$100 sps:$4 sm:$0xff]  }
 0x185   : > { %v11958_v19 = vpop.f32.mrb[67].mxu1  ;;  %12205 = vmatpush3.bf16.msra.mxu1 %v13943_v20 }
 0x186   : > { %v16304_v30 = vadd.f32 %v11956_v16, %v16017_v21  ;;  %v11959_v50 = vadd.f32 %v11958_v19, %v11957_v17  ;;  %6157 = vmatmul.mubr.bf16.gmra.mrb[28].mxu0 %v16135_v39  ;;  %12206 = vmatprep.subr.bf16.mxu1 %v13950_v46  ;;  %v13907_v21 = vld [vmem:[%s19542_s1 + $0x900] ss:$12 sps:$4 sm:$0xff]   ;;  %v16391_v17 = vld [vmem:[%s14944_s12 + $0x5a4] ss:$100 sps:$4 sm:$0xff]  }
 0x187   : > { %7613 = vmatmul.mubr.bf16.gmra.mrb[172].mxu1 %v16283_v10  ;;  %6196 = vmatpush1.bf16.msra.mxu0 %v13898_v8  ;;  %v16323_v39 = vld [vmem:[%s14944_s12 + $0x348] ss:$100 sps:$4 sm:$0xff]   ;;  %v13935_v8 = vld [vmem:[%s19542_s1 + $0x964] ss:$12 sps:$4 sm:$0xff]  }
 0x188   : > { %v16315_v32 = vadd.f32 %v11959_v50, %v16030_v25  ;;  %6197 = vmatprep.subr.bf16.mxu0 %v13904_v44  ;;  %6199 = vmatprep.mubr.bf16.mxu0 %v16143_v22  ;;  %v13999_v25 = vld [vmem:[%s19542_s1 + $0xb48] ss:$12 sps:$4 sm:$0xff]  }
 0x189   : > { %7620 = vmatprep.mubr.bf16.mxu1 %v16298_v24  ;;  %12207 = vmatpush3.bf16.msra.mxu1 %v13951_v12  ;;  %v13948_v12 = vld [vmem:[%s19542_s1 + $0x994] ss:$12 sps:$4 sm:$0xff]  }
 0x18a   : > { %v11960_v31 = vpop.f32.mrb[68].mxu1  ;;  %12208 = vmatprep.subr.bf16.mxu1 %v13955_v42 }
 0x18b   : > { %v11961_v22 = vpop.f32.mrb[69].mxu1  ;;  %6198 = vmatpush1.bf16.msra.mxu0 %v13902_v23  ;;  %v13939_v23 = vld [vmem:[%s19542_s1 + $0x978] ss:$12 sps:$4 sm:$0xff]  }
 0x18c   : > { %v11962_v37 = vadd.f32 %v11961_v22, %v11960_v31  ;;  %v11963_v63 = vpop.f32.mrb[70].mxu1  ;;  %6280 = vmatprep.subr.bf16.mxu0 %v13909_v29  ;;  %v16413_v29 = vld [vmem:[%s14944_s12 + $0x5a0] ss:$100 sps:$4 sm:$0xff]   ;;  %v16419_v31 = vld [vmem:[%s14944_s12 + $0x34] ss:$100 sps:$4 sm:$0xff]  }
 0x18d   : > { %v11964_v58 = vpop.f32.mrb[71].mxu1  ;;  %12209 = vmatpush3.bf16.msra.mxu1 %v13956_v51 }
 0x18e   : > { %v16338_v34 = vadd.f32 %v11962_v37, %v16056_v47  ;;  %v11965_v26 = vadd.f32 %v11964_v58, %v11963_v63  ;;  %6200 = vmatmul.mubr.bf16.vlgmr.msra.gmra.mrb[0].mxu0 %v16159_v3  ;;  %12258 = vmatprep.subr.bf16.mxu1 %v13999_v25  ;;  %v13920_v3 = vld [vmem:[%s19542_s1 + $0x930] ss:$12 sps:$4 sm:$0xff]   ;;  %v13952_v37 = vld [vmem:[%s19542_s1 + $0x9a8] ss:$12 sps:$4 sm:$0xff]   ;;  %v13960_v58 = vld [vmem:[%s19542_s1 + $0x9c0] ss:$12 sps:$4 sm:$0xff]  }
 0x18f   : > { %7621 = vmatmul.mubr.bf16.gmra.mrb[176].mxu1 %v16323_v39  ;;  %6281 = vmatpush1.bf16.msra.mxu0 %v13907_v21  ;;  %v13962_v63 = vld [vmem:[%s19542_s1 + $0x9c4] ss:$12 sps:$4 sm:$0xff]  }
 0x190   : > { %v16349_v57 = vadd.f32 %v11965_v26, %v16066_v52  ;;  %6282 = vmatprep.subr.bf16.mxu0 %v13915_v36  ;;  %6209 = vmatprep.mubr.bf16.mxu0 %v16171_v1  ;;  %v13928_v52 = vld [vmem:[%s19542_s1 + $0x94c] ss:$12 sps:$4 sm:$0xff]  }
 0x191   : > { %7628 = vmatprep.mubr.bf16.mxu1 %v16335_v45 }
 0x192   : > { %v11966_v47 = vpop.f32.mrb[72].mxu1 }
 0x193   : > { %v11967_v53 = vpop.f32.mrb[73].mxu1  ;;  %6283 = vmatpush1.bf16.msra.mxu0 %v13913_v62 }
 0x194   : > { %v11968_v11 = vadd.f32 %v11967_v53, %v11966_v47  ;;  %v11969_v0 = vpop.f32.mrb[74].mxu1  ;;  %6284 = vmatprep.subr.bf16.mxu0 %v13922_v56  ;;  %v14000_v53 = vld [vmem:[%s19542_s1 + $0xa88] ss:$12 sps:$4 sm:$0xff]  }
 0x195   : > { %v11970_v1 = vpop.f32.mrb[75].mxu1 }
 0x196   : > { %v16366_v61 = vadd.f32 %v11968_v11, %v16086_v5  ;;  %v11971_v48 = vadd.f32 %v11970_v1, %v11969_v0  ;;  %6210 = vmatmul.mubr.bf16.gmra.mrb[4].mxu0 %v16199_v27  ;;  %v13933_v27 = vld [vmem:[%s19542_s1 + $0x960] ss:$12 sps:$4 sm:$0xff]  }
 0x197   : > { %7629 = vmatmul.mubr.bf16.gmra.mrb[180].mxu1 %v16357_v6  ;;  %6285 = vmatpush1.bf16.msra.mxu0 %v13920_v3  ;;  %v16450_v3 = vld [vmem:[%s14944_s12 + $0xfc] ss:$100 sps:$4 sm:$0xff]  }
 0x198   : > { %v16377_v20 = vadd.f32 %v11971_v48, %v16096_v13  ;;  %6286 = vmatprep.subr.bf16.mxu0 %v13928_v52  ;;  %6219 = vmatprep.mubr.bf16.mxu0 %v16213_v28  ;;  %v13941_v13 = vld [vmem:[%s19542_s1 + $0x97c] ss:$12 sps:$4 sm:$0xff]   ;;  %v13970_v52 = vld [vmem:[%s19542_s1 + $0x9f4] ss:$12 sps:$4 sm:$0xff]  }
 0x199   : > { %7636 = vmatprep.mubr.bf16.mxu1 %v16363_v59  ;;  %v14004_v1 = vld [vmem:[%s19542_s1 + $0xb60] ss:$12 sps:$4 sm:$0xff]  }
 0x19a   : > { %v11972_v5 = vpop.f32.mrb[76].mxu1 }
 0x19b   : > { %v11973_v46 = vpop.f32.mrb[77].mxu1  ;;  %6287 = vmatpush1.bf16.msra.mxu0 %v13926_v7  ;;  %v14005_v7 = vld [vmem:[%s19542_s1 + $0xaa0] ss:$12 sps:$4 sm:$0xff]  }
 0x19c   : > { %v11974_v35 = vadd.f32 %v11973_v46, %v11972_v5  ;;  %v11975_v16 = vpop.f32.mrb[78].mxu1  ;;  %6288 = vmatprep.subr.bf16.mxu0 %v13935_v8  ;;  %v13974_v46 = vld [vmem:[%s19542_s1 + $0xa0c] ss:$12 sps:$4 sm:$0xff]  }
 0x19d   : > { %v11976_v28 = vpop.f32.mrb[79].mxu1 }
 0x19e   : > { %v16394_v44 = vadd.f32 %v11974_v35, %v16116_v55  ;;  %v11977_v19 = vadd.f32 %v11976_v28, %v11975_v16  ;;  %6220 = vmatmul.mubr.bf16.gmra.mrb[8].mxu0 %v16249_v2  ;;  %v13946_v2 = vld [vmem:[%s19542_s1 + $0x990] ss:$12 sps:$4 sm:$0xff]   ;;  %v13972_v16 = vld [vmem:[%s19542_s1 + $0xa08] ss:$12 sps:$4 sm:$0xff]   ;;  %v14013_v28 = vld [vmem:[%s19542_s1 + $0xab8] ss:$12 sps:$4 sm:$0xff]  }
 0x19f   : > { %7637 = vmatmul.mubr.bf16.gmra.mrb[184].mxu1 %v16385_v15  ;;  %6289 = vmatpush1.bf16.msra.mxu0 %v13933_v27 }
 0x1a0   : > { %v16405_v50 = vadd.f32 %v11977_v19, %v16126_v60  ;;  %6290 = vmatprep.subr.bf16.mxu0 %v13941_v13  ;;  %6229 = vmatprep.mubr.bf16.mxu0 %v16257_v43  ;;  %v13954_v60 = vld [vmem:[%s19542_s1 + $0x9ac] ss:$12 sps:$4 sm:$0xff]   ;;  %v16490_v13 = vld [vmem:[%s14944_s12 + $0x1c4] ss:$100 sps:$4 sm:$0xff]  }
 0x1a1   : > { %7644 = vmatprep.mubr.bf16.mxu1 %v16391_v17 }
 0x1a2   : > { %v11978_v55 = vpop.f32.mrb[80].mxu1 }
 0x1a3   : > { %v11979_v42 = vpop.f32.mrb[81].mxu1  ;;  %6291 = vmatpush1.bf16.msra.mxu0 %v13939_v23 }
 0x1a4   : > { %v11980_v21 = vadd.f32 %v11979_v42, %v11978_v55  ;;  %v11981_v51 = vpop.f32.mrb[82].mxu1  ;;  %6292 = vmatprep.subr.bf16.mxu0 %v13948_v12  ;;  %v13979_v12 = vld [vmem:[%s19542_s1 + $0xa24] ss:$12 sps:$4 sm:$0xff]  }
 0x1a5   : > { %v11982_v43 = vpop.f32.mrb[83].mxu1  ;;  %v14017_v55 = vld [vmem:[%s19542_s1 + $0xb90] ss:$12 sps:$4 sm:$0xff]  }
 0x1a6   : > { %v16422_v25 = vadd.f32 %v11980_v21, %v16146_v49  ;;  %v11983_v22 = vadd.f32 %v11982_v43, %v11981_v51  ;;  %6230 = vmatmul.mubr.bf16.gmra.mrb[12].mxu0 %v16283_v10  ;;  %v16438_v10 = vld [vmem:[%s14944_s12 + $0x30] ss:$100 sps:$4 sm:$0xff]   ;;  %v13983_v43 = vld [vmem:[%s19542_s1 + $0xa3c] ss:$12 sps:$4 sm:$0xff]  }
 0x1a7   : > { %7645 = vmatmul.mubr.bf16.gmra.mrb[188].mxu1 %v16413_v29  ;;  %6293 = vmatpush1.bf16.msra.mxu0 %v13946_v2  ;;  %v14018_v42 = vld [vmem:[%s19542_s1 + $0xad0] ss:$12 sps:$4 sm:$0xff]  }
 0x1a8   : > { %v16433_v36 = vadd.f32 %v11983_v22, %v16156_v54  ;;  %6294 = vmatprep.subr.bf16.mxu0 %v13954_v60  ;;  %6239 = vmatprep.mubr.bf16.mxu0 %v16298_v24  ;;  %v13965_v54 = vld [vmem:[%s19542_s1 + $0x9dc] ss:$12 sps:$4 sm:$0xff]   ;;  %v13963_v24 = vld [vmem:[%s19542_s1 + $0x9d8] ss:$12 sps:$4 sm:$0xff]  }
 0x1a9   : > { %7685 = vmatprep.mubr.bf16.mxu1 %v16419_v31 }
 0x1aa   : > { %v11984_v49 = vpop.f32.mrb[84].mxu1 }
 0x1ab   : > { %v11985_v26 = vpop.f32.mrb[85].mxu1  ;;  %6295 = vmatpush1.bf16.msra.mxu0 %v13952_v37  ;;  %v13981_v37 = vld [vmem:[%s19542_s1 + $0xa38] ss:$12 sps:$4 sm:$0xff]  }
 0x1ac   : > { %v11986_v62 = vadd.f32 %v11985_v26, %v11984_v49  ;;  %v11987_v56 = vpop.f32.mrb[86].mxu1  ;;  %6296 = vmatprep.subr.bf16.mxu0 %v13962_v63  ;;  %v16530_v63 = vld [vmem:[%s14944_s12 + $0x28c] ss:$100 sps:$4 sm:$0xff]   ;;  %v14026_v49 = vld [vmem:[%s19542_s1 + $0xae8] ss:$12 sps:$4 sm:$0xff]  }
 0x1ad   : > { %v11988_v47 = vpop.f32.mrb[87].mxu1 }
 0x1ae   : > { %v16456_v11 = vadd.f32 %v11986_v62, %v16179_v38  ;;  %v11989_v0 = vadd.f32 %v11988_v47, %v11987_v56  ;;  %6240 = vmatmul.mubr.bf16.gmra.mrb[16].mxu0 %v16323_v39  ;;  %v13968_v38 = vld [vmem:[%s19542_s1 + $0x9f0] ss:$12 sps:$4 sm:$0xff]   ;;  %v13988_v62 = vld [vmem:[%s19542_s1 + $0xa54] ss:$12 sps:$4 sm:$0xff]  }
 0x1af   : > { %7686 = vmatmul.mubr.bf16.vlgmr.msra.gmra.mrb[192].mxu1 %v16438_v10  ;;  %6297 = vmatpush1.bf16.msra.mxu0 %v13960_v58  ;;  %v16475_v39 = vld [vmem:[%s14944_s12 + $0xf8] ss:$100 sps:$4 sm:$0xff]   ;;  %v14030_v56 = vld [vmem:[%s19542_s1 + $0xbc0] ss:$12 sps:$4 sm:$0xff]  }
 0x1b0   : > { %v16467_v48 = vadd.f32 %v11989_v0, %v16192_v14  ;;  %6298 = vmatprep.subr.bf16.mxu0 %v13965_v54  ;;  %6249 = vmatprep.mubr.bf16.mxu0 %v16335_v45  ;;  %v14012_v14 = vld [vmem:[%s19542_s1 + $0xb78] ss:$12 sps:$4 sm:$0xff]   ;;  %v14031_v47 = vld [vmem:[%s19542_s1 + $0xb00] ss:$12 sps:$4 sm:$0xff]  }
 0x1b1   : > { %7693 = vmatprep.mubr.bf16.mxu1 %v16450_v3  ;;  %12259 = vmatpush3.bf16.msra.mxu1 %v14000_v53 }
 0x1b2   : > { %v11990_v8 = vpop.f32.mrb[88].mxu1  ;;  %12260 = vmatprep.subr.bf16.mxu1 %v14004_v1 }
 0x1b3   : > { %v11991_v45 = vpop.f32.mrb[89].mxu1  ;;  %6299 = vmatpush1.bf16.msra.mxu0 %v13963_v24 }
 0x1b4   : > { %v11992_v5 = vadd.f32 %v11991_v45, %v11990_v8  ;;  %v11993_v27 = vpop.f32.mrb[90].mxu1  ;;  %6300 = vmatprep.subr.bf16.mxu0 %v13970_v52  ;;  %v13992_v52 = vld [vmem:[%s19542_s1 + $0xa6c] ss:$12 sps:$4 sm:$0xff]  }
 0x1b5   : > { %v11994_v35 = vpop.f32.mrb[91].mxu1  ;;  %12261 = vmatpush3.bf16.msra.mxu1 %v14005_v7  ;;  %v16570_v7 = vld [vmem:[%s14944_s12 + $0x354] ss:$100 sps:$4 sm:$0xff]  }
 0x1b6   : > { %v16496_v19 = vadd.f32 %v11992_v5, %v16221_v33  ;;  %v11995_v23 = vadd.f32 %v11994_v35, %v11993_v27  ;;  %6250 = vmatmul.mubr.bf16.gmra.mrb[20].mxu0 %v16357_v6  ;;  %12262 = vmatprep.subr.bf16.mxu1 %v14012_v14  ;;  %v13977_v33 = vld [vmem:[%s19542_s1 + $0xa20] ss:$12 sps:$4 sm:$0xff]   ;;  %v14039_v8 = vld [vmem:[%s19542_s1 + $0xb18] ss:$12 sps:$4 sm:$0xff]   ;;  %v14043_v27 = vld [vmem:[%s19542_s1 + $0xbf0] ss:$12 sps:$4 sm:$0xff]  }
 0x1b7   : > { %7694 = vmatmul.mubr.bf16.gmra.mrb[196].mxu1 %v16475_v39  ;;  %6301 = vmatpush1.bf16.msra.mxu0 %v13968_v38  ;;  %v16515_v6 = vld [vmem:[%s14944_s12 + $0x1c0] ss:$100 sps:$4 sm:$0xff]   ;;  %v13990_v38 = vld [vmem:[%s19542_s1 + $0xa68] ss:$12 sps:$4 sm:$0xff]   ;;  %v14044_v35 = vld [vmem:[%s19542_s1 + $0xb30] ss:$12 sps:$4 sm:$0xff]  }
 0x1b8   : > { %v16507_v2 = vadd.f32 %v11995_v23, %v16230_v41  ;;  %6302 = vmatprep.subr.bf16.mxu0 %v13974_v46  ;;  %6259 = vmatprep.mubr.bf16.mxu0 %v16363_v59  ;;  %v14025_v41 = vld [vmem:[%s19542_s1 + $0xba8] ss:$12 sps:$4 sm:$0xff]   ;;  %v13997_v5 = vld [vmem:[%s19542_s1 + $0xa84] ss:$12 sps:$4 sm:$0xff]  }
 0x1b9   : > { %7701 = vmatprep.mubr.bf16.mxu1 %v16490_v13  ;;  %12263 = vmatpush3.bf16.msra.mxu1 %v14013_v28 }
 0x1ba   : > { %v11996_v21 = vpop.f32.mrb[92].mxu1  ;;  %12264 = vmatprep.subr.bf16.mxu1 %v14017_v55 }
 0x1bb   : > { %v11997_v59 = vpop.f32.mrb[93].mxu1  ;;  %6303 = vmatpush1.bf16.msra.mxu0 %v13972_v16 }
 0x1bc   : > { %v11998_v51 = vadd.f32 %v11997_v59, %v11996_v21  ;;  %v11999_v60 = vpop.f32.mrb[94].mxu1  ;;  %6304 = vmatprep.subr.bf16.mxu0 %v13979_v12  ;;  %v14003_v12 = vld [vmem:[%s19542_s1 + $0xa9c] ss:$12 sps:$4 sm:$0xff]   ;;  %v14010_v59 = vld [vmem:[%s19542_s1 + $0xab4] ss:$12 sps:$4 sm:$0xff]  }
 0x1bd   : > { %v12000_v22 = vpop.f32.mrb[95].mxu1  ;;  %12265 = vmatpush3.bf16.msra.mxu1 %v14018_v42 }
 0x1be   : > { %v16536_v58 = vadd.f32 %v11998_v51, %v16263_v4  ;;  %v12001_v26 = vadd.f32 %v12000_v22, %v11999_v60  ;;  %6260 = vmatmul.mubr.bf16.gmra.mrb[24].mxu0 %v16385_v15  ;;  %12266 = vmatprep.subr.bf16.mxu1 %v14025_v41  ;;  %v13986_v4 = vld [vmem:[%s19542_s1 + $0xa50] ss:$12 sps:$4 sm:$0xff]   ;;  %v16555_v15 = vld [vmem:[%s14944_s12 + $0x288] ss:$100 sps:$4 sm:$0xff]   ;;  %v14001_v41 = vld [vmem:[%s19542_s1 + $0xa98] ss:$12 sps:$4 sm:$0xff]  }
 0x1bf   : > { %7702 = vmatmul.mubr.bf16.gmra.mrb[200].mxu1 %v16515_v6  ;;  %6305 = vmatpush1.bf16.msra.mxu0 %v13977_v33  ;;  %v16607_v33 = vld [vmem:[%s14944_s12 + $0x41c] ss:$100 sps:$4 sm:$0xff]  }
 0x1c0   : > { %v16547_v54 = vadd.f32 %v12001_v26, %v16272_v9  ;;  %6306 = vmatprep.subr.bf16.mxu0 %v13983_v43  ;;  %6269 = vmatprep.mubr.bf16.mxu0 %v16391_v17  ;;  %v14038_v9 = vld [vmem:[%s19542_s1 + $0xbd8] ss:$12 sps:$4 sm:$0xff]  }
 0x1c1   : > { %7709 = vmatprep.mubr.bf16.mxu1 %v16530_v63  ;;  %12267 = vmatpush3.bf16.msra.mxu1 %v14026_v49  ;;  %v16629_v60 = vld [vmem:[%s14944_s12 + $0x418] ss:$100 sps:$4 sm:$0xff]   ;;  %v16635_v49 = vld [vmem:[%s14944_s12 + $0x4e4] ss:$100 sps:$4 sm:$0xff]  }
 0x1c2   : > { %v12018_v24 = vpop.f32.mrb[96].mxu1  ;;  %12268 = vmatprep.subr.bf16.mxu1 %v14030_v56  ;;  %v14014_v56 = vld [vmem:[%s19542_s1 + $0xac8] ss:$12 sps:$4 sm:$0xff]  }
 0x1c3   : > { %v12019_v17 = vpop.f32.mrb[97].mxu1  ;;  %6307 = vmatpush1.bf16.msra.mxu0 %v13981_v37 }
 0x1c4   : > { %v12020_v53 = vadd.f32 %v12019_v17, %v12018_v24  ;;  %v12021_v0 = vpop.f32.mrb[98].mxu1  ;;  %6308 = vmatprep.subr.bf16.mxu0 %v13988_v62  ;;  %v16657_v24 = vld [vmem:[%s14944_s12 + $0x4e0] ss:$100 sps:$4 sm:$0xff]  }
 0x1c5   : > { %v12022_v1 = vpop.f32.mrb[99].mxu1  ;;  %12269 = vmatpush3.bf16.msra.mxu1 %v14031_v47 }
 0x1c6   : > { %v16576_v14 = vadd.f32 %v12020_v53, %v16304_v30  ;;  %v12023_v45 = vadd.f32 %v12022_v1, %v12021_v0  ;;  %6270 = vmatmul.mubr.bf16.gmra.mrb[28].mxu0 %v16413_v29  ;;  %12270 = vmatprep.subr.bf16.mxu1 %v14038_v9  ;;  %v13995_v30 = vld [vmem:[%s19542_s1 + $0xa80] ss:$12 sps:$4 sm:$0xff]   ;;  %v16595_v29 = vld [vmem:[%s14944_s12 + $0x350] ss:$100 sps:$4 sm:$0xff]  }
 0x1c7   : > { %7710 = vmatmul.mubr.bf16.gmra.mrb[204].mxu1 %v16555_v15  ;;  %6309 = vmatpush1.bf16.msra.mxu0 %v13986_v4  ;;  %v14023_v4 = vld [vmem:[%s19542_s1 + $0xae4] ss:$12 sps:$4 sm:$0xff]  }
 0x1c8   : > { %v16587_v46 = vadd.f32 %v12023_v45, %v16315_v32  ;;  %6310 = vmatprep.subr.bf16.mxu0 %v13992_v52  ;;  %6312 = vmatprep.mubr.bf16.mxu0 %v16419_v31  ;;  %v14087_v32 = vld [vmem:[%s19542_s1 + $0xcc8] ss:$12 sps:$4 sm:$0xff]   ;;  %v16663_v0 = vld [vmem:[%s14944_s12 + $0x5ac] ss:$100 sps:$4 sm:$0xff]  }
 0x1c9   : > { %7717 = vmatprep.mubr.bf16.mxu1 %v16570_v7  ;;  %12271 = vmatpush3.bf16.msra.mxu1 %v14039_v8  ;;  %v14036_v8 = vld [vmem:[%s19542_s1 + $0xb14] ss:$12 sps:$4 sm:$0xff]  }
 0x1ca   : > { %v12024_v16 = vpop.f32.mrb[100].mxu1  ;;  %12272 = vmatprep.subr.bf16.mxu1 %v14043_v27 }
 0x1cb   : > { %v12025_v31 = vpop.f32.mrb[101].mxu1  ;;  %6311 = vmatpush1.bf16.msra.mxu0 %v13990_v38  ;;  %v14027_v38 = vld [vmem:[%s19542_s1 + $0xaf8] ss:$12 sps:$4 sm:$0xff]  }
 0x1cc   : > { %v12026_v28 = vadd.f32 %v12025_v31, %v12024_v16  ;;  %v12027_v23 = vpop.f32.mrb[102].mxu1  ;;  %6393 = vmatprep.subr.bf16.mxu0 %v13997_v5  ;;  %v16685_v5 = vld [vmem:[%s14944_s12 + $0x5a8] ss:$100 sps:$4 sm:$0xff]   ;;  %v16691_v16 = vld [vmem:[%s14944_s12 + $0x3c] ss:$100 sps:$4 sm:$0xff]  }
 0x1cd   : > { %v12028_v55 = vpop.f32.mrb[103].mxu1  ;;  %12273 = vmatpush3.bf16.msra.mxu1 %v14044_v35 }
 0x1ce   : > { %v16610_v42 = vadd.f32 %v12026_v28, %v16338_v34  ;;  %v12029_v21 = vadd.f32 %v12028_v55, %v12027_v23  ;;  %6313 = vmatmul.mubr.bf16.vlgmr.msra.gmra.mrb[0].mxu0 %v16438_v10  ;;  %12322 = vmatprep.subr.bf16.mxu1 %v14087_v32  ;;  %v14008_v10 = vld [vmem:[%s19542_s1 + $0xab0] ss:$12 sps:$4 sm:$0xff]   ;;  %v14040_v28 = vld [vmem:[%s19542_s1 + $0xb28] ss:$12 sps:$4 sm:$0xff]   ;;  %v14048_v55 = vld [vmem:[%s19542_s1 + $0xb40] ss:$12 sps:$4 sm:$0xff]  }
 0x1cf   : > { %7718 = vmatmul.mubr.bf16.gmra.mrb[208].mxu1 %v16595_v29  ;;  %6394 = vmatpush1.bf16.msra.mxu0 %v13995_v30  ;;  %v14050_v23 = vld [vmem:[%s19542_s1 + $0xb44] ss:$12 sps:$4 sm:$0xff]  }
 0x1d0   : > { %v16621_v51 = vadd.f32 %v12029_v21, %v16349_v57  ;;  %6395 = vmatprep.subr.bf16.mxu0 %v14003_v12  ;;  %6322 = vmatprep.mubr.bf16.mxu0 %v16450_v3  ;;  %v14016_v57 = vld [vmem:[%s19542_s1 + $0xacc] ss:$12 sps:$4 sm:$0xff]  }
 0x1d1   : > { %7725 = vmatprep.mubr.bf16.mxu1 %v16607_v33 }
 0x1d2   : > { %v12030_v34 = vpop.f32.mrb[104].mxu1 }
 0x1d3   : > { %v12031_v43 = vpop.f32.mrb[105].mxu1  ;;  %6396 = vmatpush1.bf16.msra.mxu0 %v14001_v41 }
 0x1d4   : > { %v12032_v22 = vadd.f32 %v12031_v43, %v12030_v34  ;;  %v12033_v37 = vpop.f32.mrb[106].mxu1  ;;  %6397 = vmatprep.subr.bf16.mxu0 %v14010_v59  ;;  %v14088_v43 = vld [vmem:[%s19542_s1 + $0xc08] ss:$12 sps:$4 sm:$0xff]  }
 0x1d5   : > { %v12034_v3 = vpop.f32.mrb[107].mxu1 }
 0x1d6   : > { %v16638_v26 = vadd.f32 %v12032_v22, %v16366_v61  ;;  %v12035_v62 = vadd.f32 %v12034_v3, %v12033_v37  ;;  %6323 = vmatmul.mubr.bf16.gmra.mrb[4].mxu0 %v16475_v39  ;;  %v14021_v39 = vld [vmem:[%s19542_s1 + $0xae0] ss:$12 sps:$4 sm:$0xff]  }
 0x1d7   : > { %7726 = vmatmul.mubr.bf16.gmra.mrb[212].mxu1 %v16629_v60  ;;  %6398 = vmatpush1.bf16.msra.mxu0 %v14008_v10  ;;  %v16722_v10 = vld [vmem:[%s14944_s12 + $0x104] ss:$100 sps:$4 sm:$0xff]   ;;  %v14092_v3 = vld [vmem:[%s19542_s1 + $0xce0] ss:$12 sps:$4 sm:$0xff]  }
 0x1d8   : > { %v16649_v47 = vadd.f32 %v12035_v62, %v16377_v20  ;;  %6399 = vmatprep.subr.bf16.mxu0 %v14016_v57  ;;  %6332 = vmatprep.mubr.bf16.mxu0 %v16490_v13  ;;  %v14029_v20 = vld [vmem:[%s19542_s1 + $0xafc] ss:$12 sps:$4 sm:$0xff]   ;;  %v14058_v57 = vld [vmem:[%s19542_s1 + $0xb74] ss:$12 sps:$4 sm:$0xff]  }
 0x1d9   : > { %7733 = vmatprep.mubr.bf16.mxu1 %v16635_v49 }
 0x1da   : > { %v12036_v61 = vpop.f32.mrb[108].mxu1 }
 0x1db   : > { %v12037_v9 = vpop.f32.mrb[109].mxu1  ;;  %6400 = vmatpush1.bf16.msra.mxu0 %v14014_v56  ;;  %v14093_v56 = vld [vmem:[%s19542_s1 + $0xc20] ss:$12 sps:$4 sm:$0xff]  }
 0x1dc   : > { %v12038_v17 = vadd.f32 %v12037_v9, %v12036_v61  ;;  %v12039_v53 = vpop.f32.mrb[110].mxu1  ;;  %6401 = vmatprep.subr.bf16.mxu0 %v14023_v4  ;;  %v14062_v9 = vld [vmem:[%s19542_s1 + $0xb8c] ss:$12 sps:$4 sm:$0xff]  }
 0x1dd   : > { %v12040_v13 = vpop.f32.mrb[111].mxu1 }
 0x1de   : > { %v16666_v52 = vadd.f32 %v12038_v17, %v16394_v44  ;;  %v12041_v1 = vadd.f32 %v12040_v13, %v12039_v53  ;;  %6333 = vmatmul.mubr.bf16.gmra.mrb[8].mxu0 %v16515_v6  ;;  %v14034_v6 = vld [vmem:[%s19542_s1 + $0xb10] ss:$12 sps:$4 sm:$0xff]   ;;  %v14060_v53 = vld [vmem:[%s19542_s1 + $0xb88] ss:$12 sps:$4 sm:$0xff]   ;;  %v14101_v13 = vld [vmem:[%s19542_s1 + $0xc38] ss:$12 sps:$4 sm:$0xff]  }
 0x1df   : > { %7734 = vmatmul.mubr.bf16.gmra.mrb[216].mxu1 %v16657_v24  ;;  %6402 = vmatpush1.bf16.msra.mxu0 %v14021_v39 }
 0x1e0   : > { %v16677_v45 = vadd.f32 %v12041_v1, %v16405_v50  ;;  %6403 = vmatprep.subr.bf16.mxu0 %v14029_v20  ;;  %6342 = vmatprep.mubr.bf16.mxu0 %v16530_v63  ;;  %v14042_v50 = vld [vmem:[%s19542_s1 + $0xb2c] ss:$12 sps:$4 sm:$0xff]  }
 0x1e1   : > { %7741 = vmatprep.mubr.bf16.mxu1 %v16663_v0  ;;  %v16762_v20 = vld [vmem:[%s14944_s12 + $0x1cc] ss:$100 sps:$4 sm:$0xff]  }
 0x1e2   : > { %v12042_v44 = vpop.f32.mrb[112].mxu1 }
 0x1e3   : > { %v12043_v27 = vpop.f32.mrb[113].mxu1  ;;  %6404 = vmatpush1.bf16.msra.mxu0 %v14027_v38 }
 0x1e4   : > { %v12044_v30 = vadd.f32 %v12043_v27, %v12042_v44  ;;  %v12045_v35 = vpop.f32.mrb[114].mxu1  ;;  %6405 = vmatprep.subr.bf16.mxu0 %v14036_v8  ;;  %v14067_v8 = vld [vmem:[%s19542_s1 + $0xba4] ss:$12 sps:$4 sm:$0xff]  }
 0x1e5   : > { %v12046_v63 = vpop.f32.mrb[115].mxu1  ;;  %v14105_v44 = vld [vmem:[%s19542_s1 + $0xd10] ss:$12 sps:$4 sm:$0xff]  }
 0x1e6   : > { %v16694_v32 = vadd.f32 %v12044_v30, %v16422_v25  ;;  %v12047_v31 = vadd.f32 %v12046_v63, %v12045_v35  ;;  %6343 = vmatmul.mubr.bf16.gmra.mrb[12].mxu0 %v16555_v15  ;;  %v16710_v15 = vld [vmem:[%s14944_s12 + $0x38] ss:$100 sps:$4 sm:$0xff]  }
 0x1e7   : > { %7742 = vmatmul.mubr.bf16.gmra.mrb[220].mxu1 %v16685_v5  ;;  %6406 = vmatpush1.bf16.msra.mxu0 %v14034_v6  ;;  %v14106_v27 = vld [vmem:[%s19542_s1 + $0xc50] ss:$12 sps:$4 sm:$0xff]  }
 0x1e8   : > { %v16705_v12 = vadd.f32 %v12047_v31, %v16433_v36  ;;  %6407 = vmatprep.subr.bf16.mxu0 %v14042_v50  ;;  %6352 = vmatprep.mubr.bf16.mxu0 %v16570_v7  ;;  %v14053_v36 = vld [vmem:[%s19542_s1 + $0xb5c] ss:$12 sps:$4 sm:$0xff]   ;;  %v14051_v7 = vld [vmem:[%s19542_s1 + $0xb58] ss:$12 sps:$4 sm:$0xff]  }
 0x1e9   : > { %7782 = vmatprep.mubr.bf16.mxu1 %v16691_v16  ;;  %v14071_v63 = vld [vmem:[%s19542_s1 + $0xbbc] ss:$12 sps:$4 sm:$0xff]  }
 0x1ea   : > { %v12048_v25 = vpop.f32.mrb[116].mxu1 }
 0x1eb   : > { %v12049_v21 = vpop.f32.mrb[117].mxu1  ;;  %6408 = vmatpush1.bf16.msra.mxu0 %v14040_v28  ;;  %v14069_v28 = vld [vmem:[%s19542_s1 + $0xbb8] ss:$12 sps:$4 sm:$0xff]  }
 0x1ec   : > { %v12050_v41 = vadd.f32 %v12049_v21, %v12048_v25  ;;  %v12051_v59 = vpop.f32.mrb[118].mxu1  ;;  %6409 = vmatprep.subr.bf16.mxu0 %v14050_v23  ;;  %v16802_v23 = vld [vmem:[%s14944_s12 + $0x294] ss:$100 sps:$4 sm:$0xff]  }
 0x1ed   : > { %v12052_v34 = vpop.f32.mrb[119].mxu1  ;;  %v14114_v25 = vld [vmem:[%s19542_s1 + $0xc68] ss:$12 sps:$4 sm:$0xff]  }
 0x1ee   : > { %v16728_v22 = vadd.f32 %v12050_v41, %v16456_v11  ;;  %v12053_v37 = vadd.f32 %v12052_v34, %v12051_v59  ;;  %6353 = vmatmul.mubr.bf16.gmra.mrb[16].mxu0 %v16595_v29  ;;  %v14056_v11 = vld [vmem:[%s19542_s1 + $0xb70] ss:$12 sps:$4 sm:$0xff]   ;;  %v16747_v29 = vld [vmem:[%s14944_s12 + $0x100] ss:$100 sps:$4 sm:$0xff]  }
 0x1ef   : > { %7783 = vmatmul.mubr.bf16.vlgmr.msra.gmra.mrb[224].mxu1 %v16710_v15  ;;  %6410 = vmatpush1.bf16.msra.mxu0 %v14048_v55  ;;  %v14076_v41 = vld [vmem:[%s19542_s1 + $0xbd4] ss:$12 sps:$4 sm:$0xff]  }
 0x1f0   : > { %v16739_v62 = vadd.f32 %v12053_v37, %v16467_v48  ;;  %6411 = vmatprep.subr.bf16.mxu0 %v14053_v36  ;;  %6362 = vmatprep.mubr.bf16.mxu0 %v16607_v33  ;;  %v14100_v48 = vld [vmem:[%s19542_s1 + $0xcf8] ss:$12 sps:$4 sm:$0xff]   ;;  %v14118_v59 = vld [vmem:[%s19542_s1 + $0xd40] ss:$12 sps:$4 sm:$0xff]  }
 0x1f1   : > { %7790 = vmatprep.mubr.bf16.mxu1 %v16722_v10  ;;  %12323 = vmatpush3.bf16.msra.mxu1 %v14088_v43  ;;  %v14119_v34 = vld [vmem:[%s19542_s1 + $0xc80] ss:$12 sps:$4 sm:$0xff]  }
 0x1f2   : > { %v12054_v4 = vpop.f32.mrb[120].mxu1  ;;  %12324 = vmatprep.subr.bf16.mxu1 %v14092_v3 }
 0x1f3   : > { %v12055_v33 = vpop.f32.mrb[121].mxu1  ;;  %6412 = vmatpush1.bf16.msra.mxu0 %v14051_v7 }
 0x1f4   : > { %v12056_v61 = vadd.f32 %v12055_v33, %v12054_v4  ;;  %v12057_v39 = vpop.f32.mrb[122].mxu1  ;;  %6413 = vmatprep.subr.bf16.mxu0 %v14058_v57  ;;  %v14080_v57 = vld [vmem:[%s19542_s1 + $0xbec] ss:$12 sps:$4 sm:$0xff]  }
 0x1f5   : > { %v12058_v17 = vpop.f32.mrb[123].mxu1  ;;  %12325 = vmatpush3.bf16.msra.mxu1 %v14093_v56  ;;  %v16842_v56 = vld [vmem:[%s14944_s12 + $0x35c] ss:$100 sps:$4 sm:$0xff]   ;;  %v14127_v4 = vld [vmem:[%s19542_s1 + $0xc98] ss:$12 sps:$4 sm:$0xff]  }
 0x1f6   : > { %v16768_v1 = vadd.f32 %v12056_v61, %v16496_v19  ;;  %v12059_v38 = vadd.f32 %v12058_v17, %v12057_v39  ;;  %6363 = vmatmul.mubr.bf16.gmra.mrb[20].mxu0 %v16629_v60  ;;  %12326 = vmatprep.subr.bf16.mxu1 %v14100_v48  ;;  %v14065_v19 = vld [vmem:[%s19542_s1 + $0xba0] ss:$12 sps:$4 sm:$0xff]   ;;  %v14085_v61 = vld [vmem:[%s19542_s1 + $0xc04] ss:$12 sps:$4 sm:$0xff]  }
 0x1f7   : > { %7791 = vmatmul.mubr.bf16.gmra.mrb[228].mxu1 %v16747_v29  ;;  %6414 = vmatpush1.bf16.msra.mxu0 %v14056_v11  ;;  %v16787_v60 = vld [vmem:[%s14944_s12 + $0x1c8] ss:$100 sps:$4 sm:$0xff]   ;;  %v14131_v39 = vld [vmem:[%s19542_s1 + $0xd70] ss:$12 sps:$4 sm:$0xff]  }
 0x1f8   : > { %v16779_v6 = vadd.f32 %v12059_v38, %v16507_v2  ;;  %6415 = vmatprep.subr.bf16.mxu0 %v14062_v9  ;;  %6372 = vmatprep.mubr.bf16.mxu0 %v16635_v49  ;;  %v14113_v2 = vld [vmem:[%s19542_s1 + $0xd28] ss:$12 sps:$4 sm:$0xff]   ;;  %v14132_v17 = vld [vmem:[%s19542_s1 + $0xcb0] ss:$12 sps:$4 sm:$0xff]  }
 0x1f9   : > { %7798 = vmatprep.mubr.bf16.mxu1 %v16762_v20  ;;  %12327 = vmatpush3.bf16.msra.mxu1 %v14101_v13  ;;  %v14078_v11 = vld [vmem:[%s19542_s1 + $0xbe8] ss:$12 sps:$4 sm:$0xff]  }
 0x1fa   : > { %v12060_v30 = vpop.f32.mrb[124].mxu1  ;;  %12328 = vmatprep.subr.bf16.mxu1 %v14105_v44 }
 0x1fb   : > { %v12061_v49 = vpop.f32.mrb[125].mxu1  ;;  %6416 = vmatpush1.bf16.msra.mxu0 %v14060_v53 }
 0x1fc   : > { %v12062_v35 = vadd.f32 %v12061_v49, %v12060_v30  ;;  %v12063_v50 = vpop.f32.mrb[126].mxu1  ;;  %6417 = vmatprep.subr.bf16.mxu0 %v14067_v8  ;;  %v14091_v8 = vld [vmem:[%s19542_s1 + $0xc1c] ss:$12 sps:$4 sm:$0xff]   ;;  %v14098_v49 = vld [vmem:[%s19542_s1 + $0xc34] ss:$12 sps:$4 sm:$0xff]  }
 0x1fd   : > { %v12064_v31 = vpop.f32.mrb[127].mxu1  ;;  %12329 = vmatpush3.bf16.msra.mxu1 %v14106_v27 }
 0x1fe   : > { %v16808_v55 = vadd.f32 %v12062_v35, %v16536_v58  ;;  %v12065_v21 = vadd.f32 %v12064_v31, %v12063_v50  ;;  %6373 = vmatmul.mubr.bf16.gmra.mrb[24].mxu0 %v16657_v24  ;;  %12330 = vmatprep.subr.bf16.mxu1 %v14113_v2  ;;  %v14074_v58 = vld [vmem:[%s19542_s1 + $0xbd0] ss:$12 sps:$4 sm:$0xff]   ;;  %v14089_v2 = vld [vmem:[%s19542_s1 + $0xc18] ss:$12 sps:$4 sm:$0xff]  }
 0x1ff   : > { %7799 = vmatmul.mubr.bf16.gmra.mrb[232].mxu1 %v16787_v60  ;;  %6418 = vmatpush1.bf16.msra.mxu0 %v14065_v19  ;;  %v16827_v24 = vld [vmem:[%s14944_s12 + $0x290] ss:$100 sps:$4 sm:$0xff]   ;;  %v16879_v19 = vld [vmem:[%s14944_s12 + $0x424] ss:$100 sps:$4 sm:$0xff]  }
 0x200   : > { %v16819_v36 = vadd.f32 %v12065_v21, %v16547_v54  ;;  %6419 = vmatprep.subr.bf16.mxu0 %v14071_v63  ;;  %6382 = vmatprep.mubr.bf16.mxu0 %v16663_v0  ;;  %v14126_v54 = vld [vmem:[%s19542_s1 + $0xd58] ss:$12 sps:$4 sm:$0xff]  }
 0x201   : > { %7806 = vmatprep.mubr.bf16.mxu1 %v16802_v23  ;;  %12331 = vmatpush3.bf16.msra.mxu1 %v14114_v25  ;;  %v16901_v50 = vld [vmem:[%s14944_s12 + $0x420] ss:$100 sps:$4 sm:$0xff]   ;;  %v16907_v25 = vld [vmem:[%s14944_s12 + $0x4ec] ss:$100 sps:$4 sm:$0xff]  }
 0x202   : > { %v12082_v7 = vpop.f32.mrb[128].mxu1  ;;  %12332 = vmatprep.subr.bf16.mxu1 %v14118_v59  ;;  %v14102_v59 = vld [vmem:[%s19542_s1 + $0xc48] ss:$12 sps:$4 sm:$0xff]  }
 0x203   : > { %v12083_v0 = vpop.f32.mrb[129].mxu1  ;;  %6420 = vmatpush1.bf16.msra.mxu0 %v14069_v28 }
 0x204   : > { %v12084_v43 = vadd.f32 %v12083_v0, %v12082_v7  ;;  %v12085_v37 = vpop.f32.mrb[130].mxu1  ;;  %6421 = vmatprep.subr.bf16.mxu0 %v14076_v41  ;;  %v16929_v7 = vld [vmem:[%s14944_s12 + $0x4e8] ss:$100 sps:$4 sm:$0xff]  }
 0x205   : > { %v12086_v3 = vpop.f32.mrb[131].mxu1  ;;  %12333 = vmatpush3.bf16.msra.mxu1 %v14119_v34 }
 0x206   : > { %v16848_v48 = vadd.f32 %v12084_v43, %v16576_v14  ;;  %v12087_v33 = vadd.f32 %v12086_v3, %v12085_v37  ;;  %6383 = vmatmul.mubr.bf16.gmra.mrb[28].mxu0 %v16685_v5  ;;  %12334 = vmatprep.subr.bf16.mxu1 %v14126_v54  ;;  %v14083_v14 = vld [vmem:[%s19542_s1 + $0xc00] ss:$12 sps:$4 sm:$0xff]   ;;  %v16867_v5 = vld [vmem:[%s14944_s12 + $0x358] ss:$100 sps:$4 sm:$0xff]  }
 0x207   : > { %7807 = vmatmul.mubr.bf16.gmra.mrb[236].mxu1 %v16827_v24  ;;  %6422 = vmatpush1.bf16.msra.mxu0 %v14074_v58  ;;  %v14111_v58 = vld [vmem:[%s19542_s1 + $0xc64] ss:$12 sps:$4 sm:$0xff]   ;;  %v16935_v37 = vld [vmem:[%s14944_s12 + $0x5b4] ss:$100 sps:$4 sm:$0xff]  }
 0x208   : > { %v16859_v9 = vadd.f32 %v12087_v33, %v16587_v46  ;;  %6423 = vmatprep.subr.bf16.mxu0 %v14080_v57  ;;  %6425 = vmatprep.mubr.bf16.mxu0 %v16691_v16  ;;  %v14175_v46 = vld [vmem:[%s19542_s1 + $0xe48] ss:$12 sps:$4 sm:$0xff]  }
 0x209   : > { %7814 = vmatprep.mubr.bf16.mxu1 %v16842_v56  ;;  %12335 = vmatpush3.bf16.msra.mxu1 %v14127_v4  ;;  %v14124_v4 = vld [vmem:[%s19542_s1 + $0xc94] ss:$12 sps:$4 sm:$0xff]  }
 0x20a   : > { %v12088_v53 = vpop.f32.mrb[132].mxu1  ;;  %12336 = vmatprep.subr.bf16.mxu1 %v14131_v39 }
 0x20b   : > { %v12089_v16 = vpop.f32.mrb[133].mxu1  ;;  %6424 = vmatpush1.bf16.msra.mxu0 %v14078_v11  ;;  %v14115_v11 = vld [vmem:[%s19542_s1 + $0xc78] ss:$12 sps:$4 sm:$0xff]  }
 0x20c   : > { %v12090_v13 = vadd.f32 %v12089_v16, %v12088_v53  ;;  %v12091_v38 = vpop.f32.mrb[134].mxu1  ;;  %6506 = vmatprep.subr.bf16.mxu0 %v14085_v61  ;;  %v16957_v61 = vld [vmem:[%s14944_s12 + $0x5b0] ss:$100 sps:$4 sm:$0xff]   ;;  %v16963_v53 = vld [vmem:[%s14944_s12 + $0x44] ss:$100 sps:$4 sm:$0xff]  }
 0x20d   : > { %v12092_v44 = vpop.f32.mrb[135].mxu1  ;;  %12337 = vmatpush3.bf16.msra.mxu1 %v14132_v17 }
 0x20e   : > { %v16882_v27 = vadd.f32 %v12090_v13, %v16610_v42  ;;  %v12093_v30 = vadd.f32 %v12092_v44, %v12091_v38  ;;  %6426 = vmatmul.mubr.bf16.vlgmr.msra.gmra.mrb[0].mxu0 %v16710_v15  ;;  %12386 = vmatprep.subr.bf16.mxu1 %v14175_v46  ;;  %v14096_v15 = vld [vmem:[%s19542_s1 + $0xc30] ss:$12 sps:$4 sm:$0xff]   ;;  %v14128_v13 = vld [vmem:[%s19542_s1 + $0xca8] ss:$12 sps:$4 sm:$0xff]   ;;  %v14136_v44 = vld [vmem:[%s19542_s1 + $0xcc0] ss:$12 sps:$4 sm:$0xff]  }
 0x20f   : > { %7815 = vmatmul.mubr.bf16.gmra.mrb[240].mxu1 %v16867_v5  ;;  %6507 = vmatpush1.bf16.msra.mxu0 %v14083_v14  ;;  %v14138_v38 = vld [vmem:[%s19542_s1 + $0xcc4] ss:$12 sps:$4 sm:$0xff]  }
 0x210   : > { %v16893_v35 = vadd.f32 %v12093_v30, %v16621_v51  ;;  %6508 = vmatprep.subr.bf16.mxu0 %v14091_v8  ;;  %6435 = vmatprep.mubr.bf16.mxu0 %v16722_v10  ;;  %v14104_v51 = vld [vmem:[%s19542_s1 + $0xc4c] ss:$12 sps:$4 sm:$0xff]  }
 0x211   : > { %7822 = vmatprep.mubr.bf16.mxu1 %v16879_v19 }
 0x212   : > { %v12094_v42 = vpop.f32.mrb[136].mxu1 }
 0x213   : > { %v12095_v63 = vpop.f32.mrb[137].mxu1  ;;  %6509 = vmatpush1.bf16.msra.mxu0 %v14089_v2 }
 0x214   : > { %v12096_v31 = vadd.f32 %v12095_v63, %v12094_v42  ;;  %v12097_v28 = vpop.f32.mrb[138].mxu1  ;;  %6510 = vmatprep.subr.bf16.mxu0 %v14098_v49  ;;  %v14139_v42 = vld [vmem:[%s19542_s1 + $0xcd8] ss:$12 sps:$4 sm:$0xff]   ;;  %v14176_v63 = vld [vmem:[%s19542_s1 + $0xd88] ss:$12 sps:$4 sm:$0xff]  }
 0x215   : > { %v12098_v10 = vpop.f32.mrb[139].mxu1 }
 0x216   : > { %v16910_v21 = vadd.f32 %v12096_v31, %v16638_v26  ;;  %v12099_v41 = vadd.f32 %v12098_v10, %v12097_v28  ;;  %6436 = vmatmul.mubr.bf16.gmra.mrb[4].mxu0 %v16747_v29  ;;  %v14109_v29 = vld [vmem:[%s19542_s1 + $0xc60] ss:$12 sps:$4 sm:$0xff]  }
 0x217   : > { %7823 = vmatmul.mubr.bf16.gmra.mrb[244].mxu1 %v16901_v50  ;;  %6511 = vmatpush1.bf16.msra.mxu0 %v14096_v15  ;;  %v16994_v15 = vld [vmem:[%s14944_s12 + $0x10c] ss:$100 sps:$4 sm:$0xff]  }
 0x218   : > { %v16921_v34 = vadd.f32 %v12099_v41, %v16649_v47  ;;  %6512 = vmatprep.subr.bf16.mxu0 %v14104_v51  ;;  %6445 = vmatprep.mubr.bf16.mxu0 %v16762_v20  ;;  %v14117_v47 = vld [vmem:[%s19542_s1 + $0xc7c] ss:$12 sps:$4 sm:$0xff]   ;;  %v14147_v51 = vld [vmem:[%s19542_s1 + $0xcf4] ss:$12 sps:$4 sm:$0xff]  }
 0x219   : > { %7830 = vmatprep.mubr.bf16.mxu1 %v16907_v25  ;;  %v14180_v10 = vld [vmem:[%s19542_s1 + $0xe60] ss:$12 sps:$4 sm:$0xff]  }
 0x21a   : > { %v12100_v26 = vpop.f32.mrb[140].mxu1 }
 0x21b   : > { %v12101_v54 = vpop.f32.mrb[141].mxu1  ;;  %6513 = vmatpush1.bf16.msra.mxu0 %v14102_v59  ;;  %v14181_v59 = vld [vmem:[%s19542_s1 + $0xda0] ss:$12 sps:$4 sm:$0xff]  }
 0x21c   : > { %v12102_v0 = vadd.f32 %v12101_v54, %v12100_v26  ;;  %v12103_v43 = vpop.f32.mrb[142].mxu1  ;;  %6514 = vmatprep.subr.bf16.mxu0 %v14111_v58  ;;  %v14150_v54 = vld [vmem:[%s19542_s1 + $0xd0c] ss:$12 sps:$4 sm:$0xff]  }
 0x21d   : > { %v12104_v20 = vpop.f32.mrb[143].mxu1 }
 0x21e   : > { %v16938_v57 = vadd.f32 %v12102_v0, %v16666_v52  ;;  %v12105_v3 = vadd.f32 %v12104_v20, %v12103_v43  ;;  %6446 = vmatmul.mubr.bf16.gmra.mrb[8].mxu0 %v16787_v60  ;;  %v14122_v60 = vld [vmem:[%s19542_s1 + $0xc90] ss:$12 sps:$4 sm:$0xff]   ;;  %v14148_v43 = vld [vmem:[%s19542_s1 + $0xd08] ss:$12 sps:$4 sm:$0xff]   ;;  %v14189_v20 = vld [vmem:[%s19542_s1 + $0xdb8] ss:$12 sps:$4 sm:$0xff]  }
 0x21f   : > { %7831 = vmatmul.mubr.bf16.gmra.mrb[248].mxu1 %v16929_v7  ;;  %6515 = vmatpush1.bf16.msra.mxu0 %v14109_v29 }
 0x220   : > { %v16949_v33 = vadd.f32 %v12105_v3, %v16677_v45  ;;  %6516 = vmatprep.subr.bf16.mxu0 %v14117_v47  ;;  %6455 = vmatprep.mubr.bf16.mxu0 %v16802_v23  ;;  %v14130_v45 = vld [vmem:[%s19542_s1 + $0xcac] ss:$12 sps:$4 sm:$0xff]  }
 0x221   : > { %7838 = vmatprep.mubr.bf16.mxu1 %v16935_v37  ;;  %v17034_v47 = vld [vmem:[%s14944_s12 + $0x1d4] ss:$100 sps:$4 sm:$0xff]  }
 0x222   : > { %v12106_v52 = vpop.f32.mrb[144].mxu1 }
 0x223   : > { %v12107_v39 = vpop.f32.mrb[145].mxu1  ;;  %6517 = vmatpush1.bf16.msra.mxu0 %v14115_v11  ;;  %v14156_v11 = vld [vmem:[%s19542_s1 + $0xd24] ss:$12 sps:$4 sm:$0xff]  }
 0x224   : > { %v12108_v14 = vadd.f32 %v12107_v39, %v12106_v52  ;;  %v12109_v17 = vpop.f32.mrb[146].mxu1  ;;  %6518 = vmatprep.subr.bf16.mxu0 %v14124_v4  ;;  %v14193_v4 = vld [vmem:[%s19542_s1 + $0xe90] ss:$12 sps:$4 sm:$0xff]   ;;  %v14154_v39 = vld [vmem:[%s19542_s1 + $0xd20] ss:$12 sps:$4 sm:$0xff]  }
 0x225   : > { %v12110_v23 = vpop.f32.mrb[147].mxu1 }
 0x226   : > { %v16966_v46 = vadd.f32 %v12108_v14, %v16694_v32  ;;  %v12111_v16 = vadd.f32 %v12110_v23, %v12109_v17  ;;  %6456 = vmatmul.mubr.bf16.gmra.mrb[12].mxu0 %v16827_v24  ;;  %v16982_v24 = vld [vmem:[%s14944_s12 + $0x40] ss:$100 sps:$4 sm:$0xff]   ;;  %v14159_v23 = vld [vmem:[%s19542_s1 + $0xd3c] ss:$12 sps:$4 sm:$0xff]  }
 0x227   : > { %7839 = vmatmul.mubr.bf16.gmra.mrb[252].mxu1 %v16957_v61  ;;  %6519 = vmatpush1.bf16.msra.mxu0 %v14122_v60  ;;  %v17055_v60 = vld [vmem:[%s14944_s12 + $0x1d0] ss:$100 sps:$4 sm:$0xff]  }
 0x228   : > { %v16977_v8 = vadd.f32 %v12111_v16, %v16705_v12  ;;  %6520 = vmatprep.subr.bf16.mxu0 %v14130_v45  ;;  %6465 = vmatprep.mubr.bf16.mxu0 %v16842_v56  ;;  %v14141_v12 = vld [vmem:[%s19542_s1 + $0xcdc] ss:$12 sps:$4 sm:$0xff]  }
 0x229   : > { %7879 = vmatprep.mubr.bf16.mxu1 %v16963_v53 }
 0x22a   : > { %v12112_v32 = vpop.f32.mrb[148].mxu1 }
 0x22b   : > { %v12113_v30 = vpop.f32.mrb[149].mxu1  ;;  %6521 = vmatpush1.bf16.msra.mxu0 %v14128_v13  ;;  %v14157_v13 = vld [vmem:[%s19542_s1 + $0xd38] ss:$12 sps:$4 sm:$0xff]  }
 0x22c   : > { %v12114_v2 = vadd.f32 %v12113_v30, %v12112_v32  ;;  %v12115_v49 = vpop.f32.mrb[150].mxu1  ;;  %6522 = vmatprep.subr.bf16.mxu0 %v14138_v38  ;;  %v17074_v38 = vld [vmem:[%s14944_s12 + $0x29c] ss:$100 sps:$4 sm:$0xff]   ;;  %v14202_v32 = vld [vmem:[%s19542_s1 + $0xde8] ss:$12 sps:$4 sm:$0xff]  }
 0x22d   : > { %v12116_v56 = vpop.f32.mrb[151].mxu1  ;;  %v14165_v30 = vld [vmem:[%s19542_s1 + $0xd54] ss:$12 sps:$4 sm:$0xff]  }
 0x22e   : > { %v17000_v31 = vadd.f32 %v12114_v2, %v16728_v22  ;;  %v12117_v28 = vadd.f32 %v12116_v56, %v12115_v49  ;;  %6466 = vmatmul.mubr.bf16.gmra.mrb[16].mxu0 %v16867_v5  ;;  %v17015_v22 = vld [vmem:[%s14944_s12 + $0x108] ss:$100 sps:$4 sm:$0xff]   ;;  %v14145_v5 = vld [vmem:[%s19542_s1 + $0xcf0] ss:$12 sps:$4 sm:$0xff]  }
 0x22f   : > { %7880 = vmatmul.mubr.bf16.vlgmr.msra.gmra.mrb[0].mxu1 %v16982_v24  ;;  %6523 = vmatpush1.bf16.msra.mxu0 %v14136_v44  ;;  %v14206_v2 = vld [vmem:[%s19542_s1 + $0xec0] ss:$12 sps:$4 sm:$0xff]   ;;  %v14163_v56 = vld [vmem:[%s19542_s1 + $0xd50] ss:$12 sps:$4 sm:$0xff]  }
 0x230   : > { %v17011_v41 = vadd.f32 %v12117_v28, %v16739_v62  ;;  %6524 = vmatprep.subr.bf16.mxu0 %v14141_v12  ;;  %6475 = vmatprep.mubr.bf16.mxu0 %v16879_v19  ;;  %v14188_v62 = vld [vmem:[%s19542_s1 + $0xe78] ss:$12 sps:$4 sm:$0xff]  }
 0x231   : > { %7887 = vmatprep.mubr.bf16.mxu1 %v16994_v15  ;;  %12387 = vmatpush3.bf16.msra.mxu1 %v14176_v63  ;;  %v17095_v12 = vld [vmem:[%s14944_s12 + $0x298] ss:$100 sps:$4 sm:$0xff]  }
 0x232   : > { %v12118_v58 = vpop.f32.mrb[152].mxu1  ;;  %12388 = vmatprep.subr.bf16.mxu1 %v14180_v10 }
 0x233   : > { %v12119_v19 = vpop.f32.mrb[153].mxu1  ;;  %6525 = vmatpush1.bf16.msra.mxu0 %v14139_v42 }
 0x234   : > { %v12120_v26 = vadd.f32 %v12119_v19, %v12118_v58  ;;  %v12121_v29 = vpop.f32.mrb[154].mxu1  ;;  %6526 = vmatprep.subr.bf16.mxu0 %v14147_v51  ;;  %v14168_v51 = vld [vmem:[%s19542_s1 + $0xd6c] ss:$12 sps:$4 sm:$0xff]   ;;  %v14174_v19 = vld [vmem:[%s19542_s1 + $0xd84] ss:$12 sps:$4 sm:$0xff]  }
 0x235   : > { %v12122_v0 = vpop.f32.mrb[155].mxu1  ;;  %12389 = vmatpush3.bf16.msra.mxu1 %v14181_v59  ;;  %v17114_v59 = vld [vmem:[%s14944_s12 + $0x364] ss:$100 sps:$4 sm:$0xff]  }
 0x236   : > { %v12123_v3 = vadd.f32 %v12122_v0, %v12121_v29  ;;  %6476 = vmatmul.mubr.bf16.gmra.mrb[20].mxu0 %v16901_v50  ;;  %12390 = vmatprep.subr.bf16.mxu1 %v14188_v62  ;;  %v17047_v52 = vadd.f32 %v12120_v26, %v16768_v1  ;;  %v14194_v1 = vld [vmem:[%s19542_s1 + $0xdd0] ss:$12 sps:$4 sm:$0xff]   ;;  %v14215_v58 = vld [vmem:[%s19542_s1 + $0xe18] ss:$12 sps:$4 sm:$0xff]   ;;  %v14172_v0 = vld [vmem:[%s19542_s1 + $0xd80] ss:$12 sps:$4 sm:$0xff]  }
 0x237   : > { %7888 = vmatmul.mubr.bf16.gmra.mrb[4].mxu1 %v17015_v22  ;;  %6527 = vmatpush1.bf16.msra.mxu0 %v14145_v5  ;;  %v14166_v5 = vld [vmem:[%s19542_s1 + $0xd68] ss:$12 sps:$4 sm:$0xff]   ;;  %v14219_v26 = vld [vmem:[%s19542_s1 + $0xef0] ss:$12 sps:$4 sm:$0xff]  }
 0x238   : > { %6528 = vmatprep.subr.bf16.mxu0 %v14150_v54  ;;  %6485 = vmatprep.mubr.bf16.mxu0 %v16907_v25  ;;  %v17052_v50 = vadd.f32 %v12123_v3, %v16779_v6  ;;  %v14201_v6 = vld [vmem:[%s19542_s1 + $0xea8] ss:$12 sps:$4 sm:$0xff]   ;;  %v17135_v54 = vld [vmem:[%s14944_s12 + $0x360] ss:$100 sps:$4 sm:$0xff]  }
 0x239   : > { %7895 = vmatprep.mubr.bf16.mxu1 %v17034_v47  ;;  %12391 = vmatpush3.bf16.msra.mxu1 %v14189_v20 }
 0x23a   : > { %v12124_v14 = vpop.f32.mrb[156].mxu1  ;;  %12392 = vmatprep.subr.bf16.mxu1 %v14193_v4 }
 0x23b   : > { %v12125_v25 = vpop.f32.mrb[157].mxu1  ;;  %6529 = vmatpush1.bf16.msra.mxu0 %v14148_v43 }
 0x23c   : > { %v12126_v17 = vadd.f32 %v12125_v25, %v12124_v14  ;;  %v12127_v45 = vpop.f32.mrb[158].mxu1  ;;  %6530 = vmatprep.subr.bf16.mxu0 %v14156_v11  ;;  %v14179_v11 = vld [vmem:[%s19542_s1 + $0xd9c] ss:$12 sps:$4 sm:$0xff]   ;;  %v14177_v14 = vld [vmem:[%s19542_s1 + $0xd98] ss:$12 sps:$4 sm:$0xff]  }
 0x23d   : > { %v12128_v16 = vpop.f32.mrb[159].mxu1  ;;  %12393 = vmatpush3.bf16.msra.mxu1 %v14194_v1 }
 0x23e   : > { %v12129_v44 = vadd.f32 %v12128_v16, %v12127_v45  ;;  %6486 = vmatmul.mubr.bf16.gmra.mrb[24].mxu0 %v16929_v7  ;;  %12394 = vmatprep.subr.bf16.mxu1 %v14201_v6  ;;  %v17087_v49 = vadd.f32 %v12126_v17, %v16808_v55  ;;  %v14207_v55 = vld [vmem:[%s19542_s1 + $0xe00] ss:$12 sps:$4 sm:$0xff]  }
 0x23f   : > { %7896 = vmatmul.mubr.bf16.gmra.mrb[8].mxu1 %v17055_v60  ;;  %6531 = vmatpush1.bf16.msra.mxu0 %v14154_v39  ;;  %v17151_v39 = vld [vmem:[%s14944_s12 + $0x42c] ss:$100 sps:$4 sm:$0xff]   ;;  %v14187_v6 = vld [vmem:[%s19542_s1 + $0xdb4] ss:$12 sps:$4 sm:$0xff]  }
 0x240   : > { %6532 = vmatprep.subr.bf16.mxu0 %v14159_v23  ;;  %6495 = vmatprep.mubr.bf16.mxu0 %v16935_v37  ;;  %v17092_v7 = vadd.f32 %v12129_v44, %v16819_v36  ;;  %v14214_v36 = vld [vmem:[%s19542_s1 + $0xed8] ss:$12 sps:$4 sm:$0xff]   ;;  %v17170_v45 = vld [vmem:[%s14944_s12 + $0x428] ss:$100 sps:$4 sm:$0xff]  }
 0x241   : > { %7903 = vmatprep.mubr.bf16.mxu1 %v17074_v38  ;;  %12395 = vmatpush3.bf16.msra.mxu1 %v14202_v32  ;;  %v17179_v32 = vld [vmem:[%s14944_s12 + $0x4f4] ss:$100 sps:$4 sm:$0xff]  }
 0x242   : > { %v12146_v42 = vpop.f32.mrb[160].mxu1  ;;  %12396 = vmatprep.subr.bf16.mxu1 %v14206_v2  ;;  %v14200_v2 = vld [vmem:[%s19542_s1 + $0xde4] ss:$12 sps:$4 sm:$0xff]  }
 0x243   : > { %v12147_v37 = vpop.f32.mrb[161].mxu1  ;;  %6533 = vmatpush1.bf16.msra.mxu0 %v14157_v13 }
 0x244   : > { %v12148_v63 = vadd.f32 %v12147_v37, %v12146_v42  ;;  %v12149_v28 = vpop.f32.mrb[162].mxu1  ;;  %6534 = vmatprep.subr.bf16.mxu0 %v14165_v30  ;;  %v14190_v30 = vld [vmem:[%s19542_s1 + $0xdc8] ss:$12 sps:$4 sm:$0xff]  }
 0x245   : > { %v12150_v10 = vpop.f32.mrb[163].mxu1  ;;  %12397 = vmatpush3.bf16.msra.mxu1 %v14207_v55  ;;  %v17198_v42 = vld [vmem:[%s14944_s12 + $0x4f0] ss:$100 sps:$4 sm:$0xff]  }
 0x246   : > { %v12151_v62 = vadd.f32 %v12150_v10, %v12149_v28  ;;  %6496 = vmatmul.mubr.bf16.gmra.mrb[28].mxu0 %v16957_v61  ;;  %12398 = vmatprep.subr.bf16.mxu1 %v14214_v36  ;;  %v17127_v29 = vadd.f32 %v12148_v63, %v16848_v48  ;;  %v14220_v48 = vld [vmem:[%s19542_s1 + $0xe30] ss:$12 sps:$4 sm:$0xff]   ;;  %v14203_v10 = vld [vmem:[%s19542_s1 + $0xdf8] ss:$12 sps:$4 sm:$0xff]  }
 0x247   : > { %7904 = vmatmul.mubr.bf16.gmra.mrb[12].mxu1 %v17095_v12  ;;  %6535 = vmatpush1.bf16.msra.mxu0 %v14163_v56  ;;  %v17207_v28 = vld [vmem:[%s14944_s12 + $0x5bc] ss:$100 sps:$4 sm:$0xff]  }
 0x248   : > { %6536 = vmatprep.subr.bf16.mxu0 %v14168_v51  ;;  %6538 = vmatprep.mubr.bf16.mxu0 %v16963_v53  ;;  %v17132_v61 = vadd.f32 %v12151_v62, %v16859_v9  ;;  %v14263_v9 = vld [vmem:[%s19542_s1 + $0xfc8] ss:$12 sps:$4 sm:$0xff]  }
 0x249   : > { %7911 = vmatprep.mubr.bf16.mxu1 %v17114_v59  ;;  %12399 = vmatpush3.bf16.msra.mxu1 %v14215_v58 }
 0x24a   : > { %v12152_v43 = vpop.f32.mrb[164].mxu1  ;;  %12400 = vmatprep.subr.bf16.mxu1 %v14219_v26 }
 0x24b   : > { %v12153_v53 = vpop.f32.mrb[165].mxu1  ;;  %6537 = vmatpush1.bf16.msra.mxu0 %v14166_v5  ;;  %v14213_v5 = vld [vmem:[%s19542_s1 + $0xe14] ss:$12 sps:$4 sm:$0xff]  }
 0x24c   : > { %v12154_v20 = vadd.f32 %v12153_v53, %v12152_v43  ;;  %v12155_v3 = vpop.f32.mrb[166].mxu1  ;;  %6619 = vmatprep.subr.bf16.mxu0 %v14174_v19  ;;  %v17226_v19 = vld [vmem:[%s14944_s12 + $0x5b8] ss:$100 sps:$4 sm:$0xff]   ;;  %v17235_v43 = vld [vmem:[%s14944_s12 + $0x4c] ss:$100 sps:$4 sm:$0xff]  }
 0x24d   : > { %v12156_v4 = vpop.f32.mrb[167].mxu1  ;;  %12401 = vmatpush3.bf16.msra.mxu1 %v14220_v48  ;;  %v14216_v53 = vld [vmem:[%s19542_s1 + $0xe28] ss:$12 sps:$4 sm:$0xff]  }
 0x24e   : > { %v12157_v1 = vadd.f32 %v12156_v4, %v12155_v3  ;;  %6539 = vmatmul.mubr.bf16.vlgmr.msra.gmra.mrb[0].mxu0 %v16982_v24  ;;  %12450 = vmatprep.subr.bf16.mxu1 %v14263_v9  ;;  %v17161_v25 = vadd.f32 %v12154_v20, %v16882_v27  ;;  %v14185_v27 = vld [vmem:[%s19542_s1 + $0xdb0] ss:$12 sps:$4 sm:$0xff]   ;;  %v17254_v4 = vld [vmem:[%s14944_s12 + $0x48] ss:$100 sps:$4 sm:$0xff]  }
 0x24f   : > { %7912 = vmatmul.mubr.bf16.gmra.mrb[16].mxu1 %v17135_v54  ;;  %6620 = vmatpush1.bf16.msra.mxu0 %v14172_v0  ;;  %v14226_v20 = vld [vmem:[%s19542_s1 + $0xe44] ss:$12 sps:$4 sm:$0xff]  }
 0x250   : > { %6621 = vmatprep.subr.bf16.mxu0 %v14179_v11  ;;  %6548 = vmatprep.mubr.bf16.mxu0 %v16994_v15  ;;  %v17166_v24 = vadd.f32 %v12157_v1, %v16893_v35  ;;  %v14192_v35 = vld [vmem:[%s19542_s1 + $0xdcc] ss:$12 sps:$4 sm:$0xff]  }
 0x251   : > { %7919 = vmatprep.mubr.bf16.mxu1 %v17151_v39 }
 0x252   : > { %v12158_v17 = vpop.f32.mrb[168].mxu1 }
 0x253   : > { %v12159_v23 = vpop.f32.mrb[169].mxu1  ;;  %6622 = vmatpush1.bf16.msra.mxu0 %v14177_v14 }
 0x254   : > { %v12160_v16 = vadd.f32 %v12159_v23, %v12158_v17  ;;  %v12161_v13 = vpop.f32.mrb[170].mxu1  ;;  %6623 = vmatprep.subr.bf16.mxu0 %v14187_v6  ;;  %v14227_v17 = vld [vmem:[%s19542_s1 + $0xe58] ss:$12 sps:$4 sm:$0xff]   ;;  %v14264_v23 = vld [vmem:[%s19542_s1 + $0xf08] ss:$12 sps:$4 sm:$0xff]  }
 0x255   : > { %v12162_v15 = vpop.f32.mrb[171].mxu1 }
 0x256   : > { %v12163_v44 = vadd.f32 %v12162_v15, %v12161_v13  ;;  %6549 = vmatmul.mubr.bf16.gmra.mrb[4].mxu0 %v17015_v22  ;;  %v17189_v56 = vadd.f32 %v12160_v16, %v16910_v21  ;;  %v14198_v21 = vld [vmem:[%s19542_s1 + $0xde0] ss:$12 sps:$4 sm:$0xff]  }
 0x257   : > { %7920 = vmatmul.mubr.bf16.gmra.mrb[20].mxu1 %v17170_v45  ;;  %6624 = vmatpush1.bf16.msra.mxu0 %v14185_v27  ;;  %v17266_v27 = vld [vmem:[%s14944_s12 + $0x114] ss:$100 sps:$4 sm:$0xff]  }
 0x258   : > { %6625 = vmatprep.subr.bf16.mxu0 %v14192_v35  ;;  %6558 = vmatprep.mubr.bf16.mxu0 %v17034_v47  ;;  %v17194_v22 = vadd.f32 %v12163_v44, %v16921_v34  ;;  %v14205_v34 = vld [vmem:[%s19542_s1 + $0xdfc] ss:$12 sps:$4 sm:$0xff]   ;;  %v14235_v13 = vld [vmem:[%s19542_s1 + $0xe74] ss:$12 sps:$4 sm:$0xff]  }
 0x259   : > { %7927 = vmatprep.mubr.bf16.mxu1 %v17179_v32  ;;  %v14268_v35 = vld [vmem:[%s19542_s1 + $0xfe0] ss:$12 sps:$4 sm:$0xff]  }
 0x25a   : > { %v12164_v55 = vpop.f32.mrb[172].mxu1 }
 0x25b   : > { %v12165_v36 = vpop.f32.mrb[173].mxu1  ;;  %6626 = vmatpush1.bf16.msra.mxu0 %v14190_v30  ;;  %v14233_v30 = vld [vmem:[%s19542_s1 + $0xe70] ss:$12 sps:$4 sm:$0xff]  }
 0x25c   : > { %v12166_v37 = vadd.f32 %v12165_v36, %v12164_v55  ;;  %v12167_v63 = vpop.f32.mrb[174].mxu1  ;;  %6627 = vmatprep.subr.bf16.mxu0 %v14200_v2  ;;  %v14238_v36 = vld [vmem:[%s19542_s1 + $0xe8c] ss:$12 sps:$4 sm:$0xff]  }
 0x25d   : > { %v12168_v47 = vpop.f32.mrb[175].mxu1 }
 0x25e   : > { %v12169_v51 = vadd.f32 %v12168_v47, %v12167_v63  ;;  %6559 = vmatmul.mubr.bf16.gmra.mrb[8].mxu0 %v17055_v60  ;;  %v17217_v58 = vadd.f32 %v12166_v37, %v16938_v57  ;;  %v14211_v57 = vld [vmem:[%s19542_s1 + $0xe10] ss:$12 sps:$4 sm:$0xff]   ;;  %v14236_v63 = vld [vmem:[%s19542_s1 + $0xe88] ss:$12 sps:$4 sm:$0xff]   ;;  %v14277_v47 = vld [vmem:[%s19542_s1 + $0xf38] ss:$12 sps:$4 sm:$0xff]  }
 0x25f   : > { %7928 = vmatmul.mubr.bf16.gmra.mrb[24].mxu1 %v17198_v42  ;;  %6628 = vmatpush1.bf16.msra.mxu0 %v14198_v21 }
 0x260   : > { %6629 = vmatprep.subr.bf16.mxu0 %v14205_v34  ;;  %6568 = vmatprep.mubr.bf16.mxu0 %v17074_v38  ;;  %v17222_v60 = vadd.f32 %v12169_v51, %v16949_v33  ;;  %v14218_v33 = vld [vmem:[%s19542_s1 + $0xe2c] ss:$12 sps:$4 sm:$0xff]   ;;  %v17306_v34 = vld [vmem:[%s14944_s12 + $0x1dc] ss:$100 sps:$4 sm:$0xff]  }
 0x261   : > { %7935 = vmatprep.mubr.bf16.mxu1 %v17207_v28 }
 0x262   : > { %v12170_v62 = vpop.f32.mrb[176].mxu1 }
 0x263   : > { %v12171_v26 = vpop.f32.mrb[177].mxu1  ;;  %6630 = vmatpush1.bf16.msra.mxu0 %v14203_v10  ;;  %v14244_v10 = vld [vmem:[%s19542_s1 + $0xea4] ss:$12 sps:$4 sm:$0xff]  }
 0x264   : > { %v12172_v0 = vadd.f32 %v12171_v26, %v12170_v62  ;;  %v12173_v48 = vpop.f32.mrb[178].mxu1  ;;  %6631 = vmatprep.subr.bf16.mxu0 %v14213_v5  ;;  %v14281_v5 = vld [vmem:[%s19542_s1 + $0x1010] ss:$12 sps:$4 sm:$0xff]   ;;  %v14242_v26 = vld [vmem:[%s19542_s1 + $0xea0] ss:$12 sps:$4 sm:$0xff]  }
 0x265   : > { %v12174_v38 = vpop.f32.mrb[179].mxu1 }
 0x266   : > { %v12175_v9 = vadd.f32 %v12174_v38, %v12173_v48  ;;  %6569 = vmatmul.mubr.bf16.gmra.mrb[12].mxu0 %v17095_v12  ;;  %v17245_v3 = vadd.f32 %v12172_v0, %v16966_v46  ;;  %v14224_v46 = vld [vmem:[%s19542_s1 + $0xe40] ss:$12 sps:$4 sm:$0xff]   ;;  %v14247_v38 = vld [vmem:[%s19542_s1 + $0xebc] ss:$12 sps:$4 sm:$0xff]  }
 0x267   : > { %7936 = vmatmul.mubr.bf16.gmra.mrb[28].mxu1 %v17226_v19  ;;  %6632 = vmatpush1.bf16.msra.mxu0 %v14211_v57  ;;  %v17327_v57 = vld [vmem:[%s14944_s12 + $0x1d8] ss:$100 sps:$4 sm:$0xff]  }
 0x268   : > { %6633 = vmatprep.subr.bf16.mxu0 %v14218_v33  ;;  %6578 = vmatprep.mubr.bf16.mxu0 %v17114_v59  ;;  %v17250_v12 = vadd.f32 %v12175_v9, %v16977_v8  ;;  %v14229_v8 = vld [vmem:[%s19542_s1 + $0xe5c] ss:$12 sps:$4 sm:$0xff]  }
 0x269   : > { %7976 = vmatprep.mubr.bf16.mxu1 %v17235_v43 }
 0x26a   : > { %v12176_v11 = vpop.f32.mrb[180].mxu1 }
 0x26b   : > { %v12177_v1 = vpop.f32.mrb[181].mxu1  ;;  %6634 = vmatpush1.bf16.msra.mxu0 %v14216_v53  ;;  %v14245_v53 = vld [vmem:[%s19542_s1 + $0xeb8] ss:$12 sps:$4 sm:$0xff]  }
 0x26c   : > { %v12178_v14 = vadd.f32 %v12177_v1, %v12176_v11  ;;  %v12179_v6 = vpop.f32.mrb[182].mxu1  ;;  %6635 = vmatprep.subr.bf16.mxu0 %v14226_v20  ;;  %v17346_v20 = vld [vmem:[%s14944_s12 + $0x2a4] ss:$100 sps:$4 sm:$0xff]   ;;  %v14253_v1 = vld [vmem:[%s19542_s1 + $0xed4] ss:$12 sps:$4 sm:$0xff]  }
 0x26d   : > { %v12180_v59 = vpop.f32.mrb[183].mxu1  ;;  %v14290_v11 = vld [vmem:[%s19542_s1 + $0xf68] ss:$12 sps:$4 sm:$0xff]  }
 0x26e   : > { %v12181_v16 = vadd.f32 %v12180_v59, %v12179_v6  ;;  %6579 = vmatmul.mubr.bf16.gmra.mrb[16].mxu0 %v17135_v54  ;;  %v17279_v15 = vadd.f32 %v12178_v14, %v17000_v31  ;;  %v17287_v54 = vld [vmem:[%s14944_s12 + $0x110] ss:$100 sps:$4 sm:$0xff]   ;;  %v14269_v31 = vld [vmem:[%s19542_s1 + $0xf20] ss:$12 sps:$4 sm:$0xff]  }
 0x26f   : > { %7977 = vmatmul.mubr.bf16.vlgmr.msra.gmra.mrb[32].mxu1 %v17254_v4  ;;  %6636 = vmatpush1.bf16.msra.mxu0 %v14224_v46  ;;  %v14294_v14 = vld [vmem:[%s19542_s1 + $0x1040] ss:$12 sps:$4 sm:$0xff]   ;;  %v14251_v59 = vld [vmem:[%s19542_s1 + $0xed0] ss:$12 sps:$4 sm:$0xff]  }
 0x270   : > { %6637 = vmatprep.subr.bf16.mxu0 %v14229_v8  ;;  %6588 = vmatprep.mubr.bf16.mxu0 %v17151_v39  ;;  %v17284_v44 = vadd.f32 %v12181_v16, %v17011_v41  ;;  %v14276_v41 = vld [vmem:[%s19542_s1 + $0xff8] ss:$12 sps:$4 sm:$0xff]  }
 0x271   : > { %7984 = vmatprep.mubr.bf16.mxu1 %v17266_v27  ;;  %12451 = vmatpush3.bf16.msra.mxu1 %v14264_v23  ;;  %v17367_v8 = vld [vmem:[%s14944_s12 + $0x2a0] ss:$100 sps:$4 sm:$0xff]  }
 0x272   : > { %v12182_v2 = vpop.f32.mrb[184].mxu1  ;;  %12452 = vmatprep.subr.bf16.mxu1 %v14268_v35 }
 0x273   : > { %v12183_v39 = vpop.f32.mrb[185].mxu1  ;;  %6638 = vmatpush1.bf16.msra.mxu0 %v14227_v17 }
 0x274   : > { %v12184_v55 = vadd.f32 %v12183_v39, %v12182_v2  ;;  %v12185_v21 = vpop.f32.mrb[186].mxu1  ;;  %6639 = vmatprep.subr.bf16.mxu0 %v14235_v13  ;;  %v14256_v13 = vld [vmem:[%s19542_s1 + $0xeec] ss:$12 sps:$4 sm:$0xff]   ;;  %v14262_v39 = vld [vmem:[%s19542_s1 + $0xf04] ss:$12 sps:$4 sm:$0xff]  }
 0x275   : > { %v12186_v37 = vpop.f32.mrb[187].mxu1  ;;  %12453 = vmatpush3.bf16.msra.mxu1 %v14269_v31  ;;  %v17386_v31 = vld [vmem:[%s14944_s12 + $0x36c] ss:$100 sps:$4 sm:$0xff]   ;;  %v14303_v2 = vld [vmem:[%s19542_s1 + $0xf98] ss:$12 sps:$4 sm:$0xff]  }
 0x276   : > { %v12187_v51 = vadd.f32 %v12186_v37, %v12185_v21  ;;  %6589 = vmatmul.mubr.bf16.gmra.mrb[20].mxu0 %v17170_v45  ;;  %12454 = vmatprep.subr.bf16.mxu1 %v14276_v41  ;;  %v17319_v62 = vadd.f32 %v12184_v55, %v17047_v52  ;;  %v14282_v52 = vld [vmem:[%s19542_s1 + $0xf50] ss:$12 sps:$4 sm:$0xff]   ;;  %v14260_v37 = vld [vmem:[%s19542_s1 + $0xf00] ss:$12 sps:$4 sm:$0xff]  }
 0x277   : > { %7985 = vmatmul.mubr.bf16.gmra.mrb[36].mxu1 %v17287_v54  ;;  %6640 = vmatpush1.bf16.msra.mxu0 %v14233_v30  ;;  %v14254_v30 = vld [vmem:[%s19542_s1 + $0xee8] ss:$12 sps:$4 sm:$0xff]   ;;  %v14307_v55 = vld [vmem:[%s19542_s1 + $0x1070] ss:$12 sps:$4 sm:$0xff]  }
 0x278   : > { %6641 = vmatprep.subr.bf16.mxu0 %v14238_v36  ;;  %6598 = vmatprep.mubr.bf16.mxu0 %v17179_v32  ;;  %v17324_v45 = vadd.f32 %v12187_v51, %v17052_v50  ;;  %v14289_v50 = vld [vmem:[%s19542_s1 + $0x1028] ss:$12 sps:$4 sm:$0xff]  }
 0x279   : > { %7992 = vmatprep.mubr.bf16.mxu1 %v17306_v34  ;;  %12455 = vmatpush3.bf16.msra.mxu1 %v14277_v47  ;;  %v17407_v36 = vld [vmem:[%s14944_s12 + $0x368] ss:$100 sps:$4 sm:$0xff]  }
 0x27a   : > { %v12188_v0 = vpop.f32.mrb[188].mxu1  ;;  %12456 = vmatprep.subr.bf16.mxu1 %v14281_v5 }
 0x27b   : > { %v12189_v32 = vpop.f32.mrb[189].mxu1  ;;  %6642 = vmatpush1.bf16.msra.mxu0 %v14236_v63 }
 0x27c   : > { %v12190_v48 = vadd.f32 %v12189_v32, %v12188_v0  ;;  %v12191_v33 = vpop.f32.mrb[190].mxu1  ;;  %6643 = vmatprep.subr.bf16.mxu0 %v14244_v10  ;;  %v14267_v10 = vld [vmem:[%s19542_s1 + $0xf1c] ss:$12 sps:$4 sm:$0xff]   ;;  %v14275_v32 = vld [vmem:[%s19542_s1 + $0xf34] ss:$12 sps:$4 sm:$0xff]  }
 0x27d   : > { %v12192_v9 = vpop.f32.mrb[191].mxu1  ;;  %12457 = vmatpush3.bf16.msra.mxu1 %v14282_v52  ;;  %v17426_v52 = vld [vmem:[%s14944_s12 + $0x434] ss:$100 sps:$4 sm:$0xff]  }
 0x27e   : > { %v12193_v46 = vadd.f32 %v12192_v9, %v12191_v33  ;;  %6599 = vmatmul.mubr.bf16.gmra.mrb[24].mxu0 %v17198_v42  ;;  %12458 = vmatprep.subr.bf16.mxu1 %v14289_v50  ;;  %v17359_v6 = vadd.f32 %v12190_v48, %v17087_v49  ;;  %v14295_v49 = vld [vmem:[%s19542_s1 + $0xf80] ss:$12 sps:$4 sm:$0xff]   ;;  %v17441_v33 = vld [vmem:[%s14944_s12 + $0x430] ss:$100 sps:$4 sm:$0xff]  }
 0x27f   : > { %7993 = vmatmul.mubr.bf16.gmra.mrb[40].mxu1 %v17327_v57  ;;  %6644 = vmatpush1.bf16.msra.mxu0 %v14242_v26  ;;  %v14265_v26 = vld [vmem:[%s19542_s1 + $0xf18] ss:$12 sps:$4 sm:$0xff]  }
 0x280   : > { %6645 = vmatprep.subr.bf16.mxu0 %v14247_v38  ;;  %6608 = vmatprep.mubr.bf16.mxu0 %v17207_v28  ;;  %v17364_v42 = vadd.f32 %v12193_v46, %v17092_v7  ;;  %v14302_v7 = vld [vmem:[%s19542_s1 + $0x1058] ss:$12 sps:$4 sm:$0xff]   ;;  %v17454_v46 = vld [vmem:[%s14944_s12 + $0x4fc] ss:$100 sps:$4 sm:$0xff]  }
 0x281   : > { %8000 = vmatprep.mubr.bf16.mxu1 %v17346_v20  ;;  %12459 = vmatpush3.bf16.msra.mxu1 %v14290_v11  ;;  %v14278_v11 = vld [vmem:[%s19542_s1 + $0xf48] ss:$12 sps:$4 sm:$0xff]  }
 0x282   : > { %v12210_v17 = vpop.f32.mrb[192].mxu1  ;;  %12460 = vmatprep.subr.bf16.mxu1 %v14294_v14 }
 0x283   : > { %v12211_v28 = vpop.f32.mrb[193].mxu1  ;;  %6646 = vmatpush1.bf16.msra.mxu0 %v14245_v53 }
 0x284   : > { %v12212_v23 = vadd.f32 %v12211_v28, %v12210_v17  ;;  %v12213_v16 = vpop.f32.mrb[194].mxu1  ;;  %6647 = vmatprep.subr.bf16.mxu0 %v14253_v1  ;;  %v17469_v17 = vld [vmem:[%s14944_s12 + $0x4f8] ss:$100 sps:$4 sm:$0xff]  }
 0x285   : > { %v12214_v35 = vpop.f32.mrb[195].mxu1  ;;  %12461 = vmatpush3.bf16.msra.mxu1 %v14295_v49 }
 0x286   : > { %v12215_v41 = vadd.f32 %v12214_v35, %v12213_v16  ;;  %6609 = vmatmul.mubr.bf16.gmra.mrb[28].mxu0 %v17226_v19  ;;  %12462 = vmatprep.subr.bf16.mxu1 %v14302_v7  ;;  %v17399_v21 = vadd.f32 %v12212_v23, %v17127_v29  ;;  %v14308_v29 = vld [vmem:[%s19542_s1 + $0xfb0] ss:$12 sps:$4 sm:$0xff]   ;;  %v17479_v16 = vld [vmem:[%s14944_s12 + $0x5c4] ss:$100 sps:$4 sm:$0xff]  }
 0x287   : > { %8001 = vmatmul.mubr.bf16.gmra.mrb[44].mxu1 %v17367_v8  ;;  %6648 = vmatpush1.bf16.msra.mxu0 %v14251_v59  ;;  %v14288_v59 = vld [vmem:[%s19542_s1 + $0xf64] ss:$12 sps:$4 sm:$0xff]   ;;  %v14293_v23 = vld [vmem:[%s19542_s1 + $0xf7c] ss:$12 sps:$4 sm:$0xff]  }
 0x288   : > { %6649 = vmatprep.subr.bf16.mxu0 %v14256_v13  ;;  %6651 = vmatprep.mubr.bf16.mxu0 %v17235_v43  ;;  %v17404_v19 = vadd.f32 %v12215_v41, %v17132_v61  ;;  %v14351_v61 = vld [vmem:[%s19542_s1 + $0x1148] ss:$12 sps:$4 sm:$0xff]  }
 0x289   : > { %8008 = vmatprep.mubr.bf16.mxu1 %v17386_v31  ;;  %12463 = vmatpush3.bf16.msra.mxu1 %v14303_v2  ;;  %v14301_v2 = vld [vmem:[%s19542_s1 + $0xf94] ss:$12 sps:$4 sm:$0xff]  }
 0x28a   : > { %v12216_v63 = vpop.f32.mrb[196].mxu1  ;;  %12464 = vmatprep.subr.bf16.mxu1 %v14307_v55  ;;  %v14299_v55 = vld [vmem:[%s19542_s1 + $0xf90] ss:$12 sps:$4 sm:$0xff]  }
 0x28b   : > { %v12217_v43 = vpop.f32.mrb[197].mxu1  ;;  %6650 = vmatpush1.bf16.msra.mxu0 %v14254_v30  ;;  %v14291_v30 = vld [vmem:[%s19542_s1 + $0xf78] ss:$12 sps:$4 sm:$0xff]  }
 0x28c   : > { %v12218_v47 = vadd.f32 %v12217_v43, %v12216_v63  ;;  %v12219_v51 = vpop.f32.mrb[198].mxu1  ;;  %6732 = vmatprep.subr.bf16.mxu0 %v14262_v39  ;;  %v17498_v39 = vld [vmem:[%s14944_s12 + $0x5c0] ss:$100 sps:$4 sm:$0xff]   ;;  %v17507_v63 = vld [vmem:[%s14944_s12 + $0x54] ss:$100 sps:$4 sm:$0xff]  }
 0x28d   : > { %v12220_v5 = vpop.f32.mrb[199].mxu1  ;;  %12465 = vmatpush3.bf16.msra.mxu1 %v14308_v29  ;;  %v14306_v29 = vld [vmem:[%s19542_s1 + $0xfac] ss:$12 sps:$4 sm:$0xff]  }
 0x28e   : > { %v12221_v0 = vadd.f32 %v12220_v5, %v12219_v51  ;;  %6652 = vmatmul.mubr.bf16.vlgmr.msra.gmra.mrb[0].mxu0 %v17254_v4  ;;  %v17430_v50 = vadd.f32 %v12218_v47, %v17161_v25  ;;  %12514 = vmatprep.subr.bf16.mxu1 %v14351_v61  ;;  %v14273_v25 = vld [vmem:[%s19542_s1 + $0xf30] ss:$12 sps:$4 sm:$0xff]   ;;  %v14304_v47 = vld [vmem:[%s19542_s1 + $0xfa8] ss:$12 sps:$4 sm:$0xff]  }
 0x28f   : > { %8009 = vmatmul.mubr.bf16.gmra.mrb[48].mxu1 %v17407_v36  ;;  %6733 = vmatpush1.bf16.msra.mxu0 %v14260_v37  ;;  %v14314_v51 = vld [vmem:[%s19542_s1 + $0xfc4] ss:$12 sps:$4 sm:$0xff]  }
 0x290   : > { %6734 = vmatprep.subr.bf16.mxu0 %v14267_v10  ;;  %6661 = vmatprep.mubr.bf16.mxu0 %v17266_v27  ;;  %v17438_v48 = vadd.f32 %v12221_v0, %v17166_v24  ;;  %v14280_v24 = vld [vmem:[%s19542_s1 + $0xf4c] ss:$12 sps:$4 sm:$0xff]   ;;  %v17526_v5 = vld [vmem:[%s14944_s12 + $0x50] ss:$100 sps:$4 sm:$0xff]  }
 0x291   : > { %8016 = vmatprep.mubr.bf16.mxu1 %v17426_v52 }
 0x292   : > { %v12222_v4 = vpop.f32.mrb[200].mxu1 }
 0x293   : > { %v12223_v38 = vpop.f32.mrb[201].mxu1  ;;  %6735 = vmatpush1.bf16.msra.mxu0 %v14265_v26  ;;  %v14312_v26 = vld [vmem:[%s19542_s1 + $0xfc0] ss:$12 sps:$4 sm:$0xff]  }
 0x294   : > { %v12224_v9 = vadd.f32 %v12223_v38, %v12222_v4  ;;  %v12225_v27 = vpop.f32.mrb[202].mxu1  ;;  %6736 = vmatprep.subr.bf16.mxu0 %v14275_v32  ;;  %v14317_v32 = vld [vmem:[%s19542_s1 + $0xfdc] ss:$12 sps:$4 sm:$0xff]  }
 0x295   : > { %v12226_v53 = vpop.f32.mrb[203].mxu1  ;;  %v14352_v4 = vld [vmem:[%s19542_s1 + $0x1088] ss:$12 sps:$4 sm:$0xff]  }
 0x296   : > { %v12227_v1 = vadd.f32 %v12226_v53, %v12225_v27  ;;  %6662 = vmatmul.mubr.bf16.gmra.mrb[4].mxu0 %v17287_v54  ;;  %v17458_v14 = vadd.f32 %v12224_v9, %v17189_v56  ;;  %v14286_v56 = vld [vmem:[%s19542_s1 + $0xf60] ss:$12 sps:$4 sm:$0xff]  }
 0x297   : > { %8017 = vmatmul.mubr.bf16.gmra.mrb[52].mxu1 %v17441_v33  ;;  %6737 = vmatpush1.bf16.msra.mxu0 %v14273_v25  ;;  %v17535_v25 = vld [vmem:[%s14944_s12 + $0x11c] ss:$100 sps:$4 sm:$0xff]  }
 0x298   : > { %6738 = vmatprep.subr.bf16.mxu0 %v14280_v24  ;;  %6671 = vmatprep.mubr.bf16.mxu0 %v17306_v34  ;;  %v17466_v49 = vadd.f32 %v12227_v1, %v17194_v22  ;;  %v14356_v9 = vld [vmem:[%s19542_s1 + $0x1160] ss:$12 sps:$4 sm:$0xff]   ;;  %v14315_v24 = vld [vmem:[%s19542_s1 + $0xfd8] ss:$12 sps:$4 sm:$0xff]  }
 0x299   : > { %8024 = vmatprep.mubr.bf16.mxu1 %v17454_v46 }
 0x29a   : > { %v12228_v54 = vpop.f32.mrb[204].mxu1 }
 0x29b   : > { %v12229_v7 = vpop.f32.mrb[205].mxu1  ;;  %6739 = vmatpush1.bf16.msra.mxu0 %v14278_v11 }
 0x29c   : > { %v12230_v28 = vadd.f32 %v12229_v7, %v12228_v54  ;;  %v12231_v34 = vpop.f32.mrb[206].mxu1  ;;  %6740 = vmatprep.subr.bf16.mxu0 %v14288_v59  ;;  %v17566_v59 = vld [vmem:[%s14944_s12 + $0x118] ss:$100 sps:$4 sm:$0xff]  }
 0x29d   : > { %v12232_v22 = vpop.f32.mrb[207].mxu1  ;;  %v14326_v7 = vld [vmem:[%s19542_s1 + $0x100c] ss:$12 sps:$4 sm:$0xff]  }
 0x29e   : > { %v12233_v13 = vadd.f32 %v12232_v22, %v12231_v34  ;;  %6672 = vmatmul.mubr.bf16.gmra.mrb[8].mxu0 %v17327_v57  ;;  %v17483_v35 = vadd.f32 %v12230_v28, %v17217_v58  ;;  %v17575_v34 = vld [vmem:[%s14944_s12 + $0x1e4] ss:$100 sps:$4 sm:$0xff]  }
 0x29f   : > { %8025 = vmatmul.mubr.bf16.gmra.mrb[56].mxu1 %v17469_v17  ;;  %6741 = vmatpush1.bf16.msra.mxu0 %v14286_v56 }
 0x2a0   : > { %6742 = vmatprep.subr.bf16.mxu0 %v14293_v23  ;;  %6681 = vmatprep.mubr.bf16.mxu0 %v17346_v20  ;;  %v17494_v57 = vadd.f32 %v12233_v13, %v17222_v60  ;;  %v14365_v23 = vld [vmem:[%s19542_s1 + $0x10b8] ss:$12 sps:$4 sm:$0xff]  }
 0x2a1   : > { %8032 = vmatprep.mubr.bf16.mxu1 %v17479_v16 }
 0x2a2   : > { %v12234_v58 = vpop.f32.mrb[208].mxu1 }
 0x2a3   : > { %v12235_v41 = vpop.f32.mrb[209].mxu1  ;;  %6743 = vmatpush1.bf16.msra.mxu0 %v14291_v30  ;;  %v14369_v30 = vld [vmem:[%s19542_s1 + $0x1190] ss:$12 sps:$4 sm:$0xff]  }
 0x2a4   : > { %v12236_v37 = vadd.f32 %v12235_v41, %v12234_v58  ;;  %v12237_v20 = vpop.f32.mrb[210].mxu1  ;;  %6744 = vmatprep.subr.bf16.mxu0 %v14301_v2  ;;  %v14324_v2 = vld [vmem:[%s19542_s1 + $0x1008] ss:$12 sps:$4 sm:$0xff]  }
 0x2a5   : > { %v12238_v60 = vpop.f32.mrb[211].mxu1 }
 0x2a6   : > { %v12239_v61 = vadd.f32 %v12238_v60, %v12237_v20  ;;  %6682 = vmatmul.mubr.bf16.gmra.mrb[12].mxu0 %v17367_v8  ;;  %v17511_v43 = vadd.f32 %v12236_v37, %v17245_v3  ;;  %v14330_v37 = vld [vmem:[%s19542_s1 + $0x1020] ss:$12 sps:$4 sm:$0xff]   ;;  %v14335_v60 = vld [vmem:[%s19542_s1 + $0x103c] ss:$12 sps:$4 sm:$0xff]  }
 0x2a7   : > { %8033 = vmatmul.mubr.bf16.gmra.mrb[60].mxu1 %v17498_v39  ;;  %6745 = vmatpush1.bf16.msra.mxu0 %v14299_v55 }
 0x2a8   : > { %6746 = vmatprep.subr.bf16.mxu0 %v14306_v29  ;;  %6691 = vmatprep.mubr.bf16.mxu0 %v17386_v31  ;;  %v17522_v8 = vadd.f32 %v12239_v61, %v17250_v12 }
 0x2a9   : > { %8073 = vmatprep.mubr.bf16.mxu1 %v17507_v63 }
 0x2aa   : > { %v12240_v3 = vpop.f32.mrb[212].mxu1 }
 0x2ab   : > { %v12241_v10 = vpop.f32.mrb[213].mxu1  ;;  %6747 = vmatpush1.bf16.msra.mxu0 %v14304_v47  ;;  %v17615_v47 = vld [vmem:[%s14944_s12 + $0x2ac] ss:$100 sps:$4 sm:$0xff]  }
 0x2ac   : > { %v12242_v0 = vadd.f32 %v12241_v10, %v12240_v3  ;;  %v12243_v31 = vpop.f32.mrb[214].mxu1  ;;  %6748 = vmatprep.subr.bf16.mxu0 %v14314_v51  ;;  %v14378_v51 = vld [vmem:[%s19542_s1 + $0x10e8] ss:$12 sps:$4 sm:$0xff]  }
 0x2ad   : > { %v12244_v12 = vpop.f32.mrb[215].mxu1 }
 0x2ae   : > { %v12245_v38 = vadd.f32 %v12244_v12, %v12243_v31  ;;  %6692 = vmatmul.mubr.bf16.gmra.mrb[16].mxu0 %v17407_v36  ;;  %v17545_v27 = vadd.f32 %v12242_v0, %v17279_v15  ;;  %v14323_v36 = vld [vmem:[%s19542_s1 + $0xff4] ss:$12 sps:$4 sm:$0xff]   ;;  %v14333_v0 = vld [vmem:[%s19542_s1 + $0x1038] ss:$12 sps:$4 sm:$0xff]  }
 0x2af   : > { %8074 = vmatmul.mubr.bf16.vlgmr.msra.gmra.mrb[64].mxu1 %v17526_v5  ;;  %6749 = vmatpush1.bf16.msra.mxu0 %v14312_v26  ;;  %v14357_v15 = vld [vmem:[%s19542_s1 + $0x10a0] ss:$12 sps:$4 sm:$0xff]  }
 0x2b0   : > { %6750 = vmatprep.subr.bf16.mxu0 %v14317_v32  ;;  %6701 = vmatprep.mubr.bf16.mxu0 %v17426_v52  ;;  %v17556_v53 = vadd.f32 %v12245_v38, %v17284_v44  ;;  %v14364_v52 = vld [vmem:[%s19542_s1 + $0x1178] ss:$12 sps:$4 sm:$0xff]   ;;  %v14321_v44 = vld [vmem:[%s19542_s1 + $0xff0] ss:$12 sps:$4 sm:$0xff]   ;;  %v14382_v26 = vld [vmem:[%s19542_s1 + $0x11c0] ss:$12 sps:$4 sm:$0xff]  }
 0x2b1   : > { %8081 = vmatprep.mubr.bf16.mxu1 %v17535_v25  ;;  %12515 = vmatpush3.bf16.msra.mxu1 %v14352_v4  ;;  %v14339_v4 = vld [vmem:[%s19542_s1 + $0x1050] ss:$12 sps:$4 sm:$0xff]  }
 0x2b2   : > { %v12246_v11 = vpop.f32.mrb[216].mxu1  ;;  %12516 = vmatprep.subr.bf16.mxu1 %v14356_v9 }
 0x2b3   : > { %v12247_v1 = vpop.f32.mrb[217].mxu1  ;;  %6751 = vmatpush1.bf16.msra.mxu0 %v14315_v24  ;;  %v14344_v24 = vld [vmem:[%s19542_s1 + $0x106c] ss:$12 sps:$4 sm:$0xff]  }
 0x2b4   : > { %v12248_v56 = vadd.f32 %v12247_v1, %v12246_v11  ;;  %v12249_v54 = vpop.f32.mrb[218].mxu1  ;;  %6752 = vmatprep.subr.bf16.mxu0 %v14323_v36  ;;  %v14391_v11 = vld [vmem:[%s19542_s1 + $0x1118] ss:$12 sps:$4 sm:$0xff]  }
 0x2b5   : > { %v12250_v28 = vpop.f32.mrb[219].mxu1  ;;  %12517 = vmatpush3.bf16.msra.mxu1 %v14357_v15  ;;  %v17655_v15 = vld [vmem:[%s14944_s12 + $0x374] ss:$100 sps:$4 sm:$0xff]  }
 0x2b6   : > { %v17581_v22 = vadd.f32 %v12248_v56, %v17319_v62  ;;  %v12251_v13 = vadd.f32 %v12250_v28, %v12249_v54  ;;  %6702 = vmatmul.mubr.bf16.gmra.mrb[20].mxu0 %v17441_v33  ;;  %12518 = vmatprep.subr.bf16.mxu1 %v14364_v52  ;;  %v14332_v62 = vld [vmem:[%s19542_s1 + $0x1024] ss:$12 sps:$4 sm:$0xff]   ;;  %v14342_v56 = vld [vmem:[%s19542_s1 + $0x1068] ss:$12 sps:$4 sm:$0xff]  }
 0x2b7   : > { %8082 = vmatmul.mubr.bf16.gmra.mrb[68].mxu1 %v17566_v59  ;;  %6753 = vmatpush1.bf16.msra.mxu0 %v14321_v44  ;;  %v14370_v33 = vld [vmem:[%s19542_s1 + $0x10d0] ss:$12 sps:$4 sm:$0xff]  }
 0x2b8   : > { %v17592_v58 = vadd.f32 %v12251_v13, %v17324_v45  ;;  %6754 = vmatprep.subr.bf16.mxu0 %v14326_v7  ;;  %6711 = vmatprep.mubr.bf16.mxu0 %v17454_v46  ;;  %v14377_v45 = vld [vmem:[%s19542_s1 + $0x11a8] ss:$12 sps:$4 sm:$0xff]   ;;  %v17606_v46 = vld [vmem:[%s14944_s12 + $0x1e0] ss:$100 sps:$4 sm:$0xff]   ;;  %v14395_v44 = vld [vmem:[%s19542_s1 + $0x11f0] ss:$12 sps:$4 sm:$0xff]  }
 0x2b9   : > { %8089 = vmatprep.mubr.bf16.mxu1 %v17575_v34  ;;  %12519 = vmatpush3.bf16.msra.mxu1 %v14365_v23  ;;  %v17688_v28 = vld [vmem:[%s14944_s12 + $0x370] ss:$100 sps:$4 sm:$0xff]   ;;  %v14348_v23 = vld [vmem:[%s19542_s1 + $0x1080] ss:$12 sps:$4 sm:$0xff]  }
 0x2ba   : > { %v12252_v41 = vpop.f32.mrb[220].mxu1  ;;  %12520 = vmatprep.subr.bf16.mxu1 %v14369_v30 }
 0x2bb   : > { %v12253_v55 = vpop.f32.mrb[221].mxu1  ;;  %6755 = vmatpush1.bf16.msra.mxu0 %v14324_v2  ;;  %v14355_v2 = vld [vmem:[%s19542_s1 + $0x109c] ss:$12 sps:$4 sm:$0xff]  }
 0x2bc   : > { %v12254_v20 = vadd.f32 %v12253_v55, %v12252_v41  ;;  %v12255_v29 = vpop.f32.mrb[222].mxu1  ;;  %6756 = vmatprep.subr.bf16.mxu0 %v14332_v62  ;;  %v14353_v55 = vld [vmem:[%s19542_s1 + $0x1098] ss:$12 sps:$4 sm:$0xff]  }
 0x2bd   : > { %v12256_v61 = vpop.f32.mrb[223].mxu1  ;;  %12521 = vmatpush3.bf16.msra.mxu1 %v14370_v33  ;;  %v17697_v33 = vld [vmem:[%s14944_s12 + $0x43c] ss:$100 sps:$4 sm:$0xff]  }
 0x2be   : > { %v17621_v3 = vadd.f32 %v12254_v20, %v17359_v6  ;;  %v12257_v10 = vadd.f32 %v12256_v61, %v12255_v29  ;;  %6712 = vmatmul.mubr.bf16.gmra.mrb[24].mxu0 %v17469_v17  ;;  %12522 = vmatprep.subr.bf16.mxu1 %v14377_v45  ;;  %v14341_v6 = vld [vmem:[%s19542_s1 + $0x1054] ss:$12 sps:$4 sm:$0xff]   ;;  %v17717_v29 = vld [vmem:[%s14944_s12 + $0x438] ss:$100 sps:$4 sm:$0xff]  }
 0x2bf   : > { %8090 = vmatmul.mubr.bf16.gmra.mrb[72].mxu1 %v17606_v46  ;;  %6757 = vmatpush1.bf16.msra.mxu0 %v14330_v37  ;;  %v14383_v17 = vld [vmem:[%s19542_s1 + $0x1100] ss:$12 sps:$4 sm:$0xff]  }
 0x2c0   : > { %v17632_v31 = vadd.f32 %v12257_v10, %v17364_v42  ;;  %6758 = vmatprep.subr.bf16.mxu0 %v14335_v60  ;;  %6721 = vmatprep.mubr.bf16.mxu0 %v17479_v16  ;;  %v14390_v42 = vld [vmem:[%s19542_s1 + $0x11d8] ss:$12 sps:$4 sm:$0xff]   ;;  %v17646_v16 = vld [vmem:[%s14944_s12 + $0x2a8] ss:$100 sps:$4 sm:$0xff]   ;;  %v14361_v60 = vld [vmem:[%s19542_s1 + $0x10b0] ss:$12 sps:$4 sm:$0xff]  }
 0x2c1   : > { %8097 = vmatprep.mubr.bf16.mxu1 %v17615_v47  ;;  %12523 = vmatpush3.bf16.msra.mxu1 %v14378_v51  ;;  %v17726_v10 = vld [vmem:[%s14944_s12 + $0x504] ss:$100 sps:$4 sm:$0xff]  }
 0x2c2   : > { %v12274_v32 = vpop.f32.mrb[224].mxu1  ;;  %12524 = vmatprep.subr.bf16.mxu1 %v14382_v26 }
 0x2c3   : > { %v12275_v12 = vpop.f32.mrb[225].mxu1  ;;  %6759 = vmatpush1.bf16.msra.mxu0 %v14333_v0 }
 0x2c4   : > { %v12276_v38 = vadd.f32 %v12275_v12, %v12274_v32  ;;  %v12277_v9 = vpop.f32.mrb[226].mxu1  ;;  %6760 = vmatprep.subr.bf16.mxu0 %v14341_v6  ;;  %v14366_v6 = vld [vmem:[%s19542_s1 + $0x10c8] ss:$12 sps:$4 sm:$0xff]   ;;  %v14374_v12 = vld [vmem:[%s19542_s1 + $0x10e0] ss:$12 sps:$4 sm:$0xff]  }
 0x2c5   : > { %v12278_v36 = vpop.f32.mrb[227].mxu1  ;;  %12525 = vmatpush3.bf16.msra.mxu1 %v14383_v17 }
 0x2c6   : > { %v17661_v52 = vadd.f32 %v12276_v38, %v17399_v21  ;;  %v12279_v1 = vadd.f32 %v12278_v36, %v12277_v9  ;;  %6722 = vmatmul.mubr.bf16.gmra.mrb[28].mxu0 %v17498_v39  ;;  %12526 = vmatprep.subr.bf16.mxu1 %v14390_v42  ;;  %v14350_v21 = vld [vmem:[%s19542_s1 + $0x1084] ss:$12 sps:$4 sm:$0xff]  }
 0x2c7   : > { %8098 = vmatmul.mubr.bf16.gmra.mrb[76].mxu1 %v17646_v16  ;;  %6761 = vmatpush1.bf16.msra.mxu0 %v14339_v4  ;;  %v14396_v39 = vld [vmem:[%s19542_s1 + $0x1130] ss:$12 sps:$4 sm:$0xff]   ;;  %v17745_v42 = vld [vmem:[%s14944_s12 + $0x500] ss:$100 sps:$4 sm:$0xff]  }
 0x2c8   : > { %v17672_v54 = vadd.f32 %v12279_v1, %v17404_v19  ;;  %6762 = vmatprep.subr.bf16.mxu0 %v14344_v24  ;;  %6764 = vmatprep.mubr.bf16.mxu0 %v17507_v63  ;;  %v17685_v19 = vld [vmem:[%s19542_s1 + $0x1208] ss:$12 sps:$4 sm:$0xff]   ;;  %v17754_v9 = vld [vmem:[%s14944_s12 + $0x5cc] ss:$100 sps:$4 sm:$0xff]  }
 0x2c9   : > { %8105 = vmatprep.mubr.bf16.mxu1 %v17655_v15  ;;  %12527 = vmatpush3.bf16.msra.mxu1 %v14391_v11  ;;  %v14379_v11 = vld [vmem:[%s19542_s1 + $0x10f8] ss:$12 sps:$4 sm:$0xff]  }
 0x2ca   : > { %v12280_v7 = vpop.f32.mrb[228].mxu1  ;;  %12528 = vmatprep.subr.bf16.mxu1 %v14395_v44 }
 0x2cb   : > { %v12281_v63 = vpop.f32.mrb[229].mxu1  ;;  %6763 = vmatpush1.bf16.msra.mxu0 %v14342_v56  ;;  %v17773_v56 = vld [vmem:[%s14944_s12 + $0x5c8] ss:$100 sps:$4 sm:$0xff]  }
 0x2cc   : > { %v12282_v13 = vadd.f32 %v12281_v63, %v12280_v7  ;;  %v12283_v30 = vpop.f32.mrb[230].mxu1  ;;  %6845 = vmatprep.subr.bf16.mxu0 %v14350_v21  ;;  %v14387_v21 = vld [vmem:[%s19542_s1 + $0x1110] ss:$12 sps:$4 sm:$0xff]  }
 0x2cd   : > { %v12284_v62 = vpop.f32.mrb[231].mxu1  ;;  %12529 = vmatpush3.bf16.msra.mxu1 %v14396_v39  ;;  %v17782_v63 = vld [vmem:[%s14944_s12 + $0x5c] ss:$100 sps:$4 sm:$0xff]  }
 0x2ce   : > { %v17700_v41 = vadd.f32 %v12282_v13, %v17430_v50  ;;  %v12285_v45 = vadd.f32 %v12284_v62, %v12283_v30  ;;  %6765 = vmatmul.mubr.bf16.vlgmr.msra.gmra.mrb[0].mxu0 %v17526_v5  ;;  %12674 = vmatprep.subr.bf16.mxu1 %v17685_v19  ;;  %v14363_v50 = vld [vmem:[%s19542_s1 + $0x10b4] ss:$12 sps:$4 sm:$0xff]  }
 0x2cf   : > { %8106 = vmatmul.mubr.bf16.gmra.mrb[80].mxu1 %v17688_v28  ;;  %6846 = vmatpush1.bf16.msra.mxu0 %v14348_v23  ;;  %v14392_v30 = vld [vmem:[%s19542_s1 + $0x1128] ss:$12 sps:$4 sm:$0xff]  }
 0x2d0   : > { %v17709_v37 = vadd.f32 %v12285_v45, %v17438_v48  ;;  %6847 = vmatprep.subr.bf16.mxu0 %v14355_v2  ;;  %6774 = vmatprep.mubr.bf16.mxu0 %v17535_v25  ;;  %v14368_v25 = vld [vmem:[%s19542_s1 + $0x10cc] ss:$12 sps:$4 sm:$0xff]  }
 0x2d1   : > { %8113 = vmatprep.mubr.bf16.mxu1 %v17697_v33  ;;  %v17801_v45 = vld [vmem:[%s14944_s12 + $0x58] ss:$100 sps:$4 sm:$0xff]  }
 0x2d2   : > { %v12286_v5 = vpop.f32.mrb[232].mxu1 }
 0x2d3   : > { %v12287_v20 = vpop.f32.mrb[233].mxu1  ;;  %6848 = vmatpush1.bf16.msra.mxu0 %v14353_v55  ;;  %v14400_v55 = vld [vmem:[%s19542_s1 + $0x1140] ss:$12 sps:$4 sm:$0xff]  }
 0x2d4   : > { %v12288_v48 = vadd.f32 %v12287_v20, %v12286_v5  ;;  %v12289_v61 = vpop.f32.mrb[234].mxu1  ;;  %6849 = vmatprep.subr.bf16.mxu0 %v14363_v50  ;;  %v17810_v20 = vld [vmem:[%s14944_s12 + $0x124] ss:$100 sps:$4 sm:$0xff]  }
 0x2d5   : > { %v12290_v51 = vpop.f32.mrb[235].mxu1 }
 0x2d6   : > { %v17729_v26 = vadd.f32 %v12288_v48, %v17458_v14  ;;  %v12291_v0 = vadd.f32 %v12290_v51, %v12289_v61  ;;  %6775 = vmatmul.mubr.bf16.gmra.mrb[4].mxu0 %v17566_v59  ;;  %v14376_v14 = vld [vmem:[%s19542_s1 + $0x10e4] ss:$12 sps:$4 sm:$0xff]   ;;  %v14440_v61 = vld [vmem:[%s19542_s1 + $0x1220] ss:$12 sps:$4 sm:$0xff]  }
 0x2d7   : > { %8114 = vmatmul.mubr.bf16.gmra.mrb[84].mxu1 %v17717_v29  ;;  %6850 = vmatpush1.bf16.msra.mxu0 %v14361_v60 }
 0x2d8   : > { %v17737_v17 = vadd.f32 %v12291_v0, %v17466_v49  ;;  %6851 = vmatprep.subr.bf16.mxu0 %v14368_v25  ;;  %6784 = vmatprep.mubr.bf16.mxu0 %v17575_v34  ;;  %v14381_v34 = vld [vmem:[%s19542_s1 + $0x10fc] ss:$12 sps:$4 sm:$0xff]   ;;  %v14403_v25 = vld [vmem:[%s19542_s1 + $0x1158] ss:$12 sps:$4 sm:$0xff]  }
 0x2d9   : > { %8121 = vmatprep.mubr.bf16.mxu1 %v17726_v10  ;;  %v14447_v0 = vld [vmem:[%s19542_s1 + $0x1238] ss:$12 sps:$4 sm:$0xff]  }
 0x2da   : > { %v12292_v59 = vpop.f32.mrb[236].mxu1 }
 0x2db   : > { %v12293_v32 = vpop.f32.mrb[237].mxu1  ;;  %6852 = vmatpush1.bf16.msra.mxu0 %v14366_v6  ;;  %v17836_v6 = vld [vmem:[%s14944_s12 + $0x120] ss:$100 sps:$4 sm:$0xff]  }
 0x2dc   : > { %v12294_v49 = vadd.f32 %v12293_v32, %v12292_v59  ;;  %v12295_v4 = vpop.f32.mrb[238].mxu1  ;;  %6853 = vmatprep.subr.bf16.mxu0 %v14376_v14 }
 0x2dd   : > { %v12296_v38 = vpop.f32.mrb[239].mxu1 }
 0x2de   : > { %v17757_v24 = vadd.f32 %v12294_v49, %v17483_v35  ;;  %v12297_v36 = vadd.f32 %v12296_v38, %v12295_v4  ;;  %6785 = vmatmul.mubr.bf16.gmra.mrb[8].mxu0 %v17606_v46  ;;  %v14389_v35 = vld [vmem:[%s19542_s1 + $0x1114] ss:$12 sps:$4 sm:$0xff]  }
 0x2df   : > { %8122 = vmatmul.mubr.bf16.gmra.mrb[88].mxu1 %v17745_v42  ;;  %6854 = vmatpush1.bf16.msra.mxu0 %v14374_v12  ;;  %v17845_v12 = vld [vmem:[%s14944_s12 + $0x1ec] ss:$100 sps:$4 sm:$0xff]   ;;  %v14412_v38 = vld [vmem:[%s19542_s1 + $0x1188] ss:$12 sps:$4 sm:$0xff]  }
 0x2e0   : > { %v17765_v1 = vadd.f32 %v12297_v36, %v17494_v57  ;;  %6855 = vmatprep.subr.bf16.mxu0 %v14381_v34  ;;  %6794 = vmatprep.mubr.bf16.mxu0 %v17615_v47  ;;  %v14394_v47 = vld [vmem:[%s19542_s1 + $0x112c] ss:$12 sps:$4 sm:$0xff]   ;;  %v14448_v34 = vld [vmem:[%s19542_s1 + $0x1250] ss:$12 sps:$4 sm:$0xff]  }
 0x2e1   : > { %8129 = vmatprep.mubr.bf16.mxu1 %v17754_v9 }
 0x2e2   : > { %v12298_v46 = vpop.f32.mrb[240].mxu1 }
 0x2e3   : > { %v12299_v44 = vpop.f32.mrb[241].mxu1  ;;  %6856 = vmatpush1.bf16.msra.mxu0 %v14379_v11  ;;  %v14455_v11 = vld [vmem:[%s19542_s1 + $0x1268] ss:$12 sps:$4 sm:$0xff]  }
 0x2e4   : > { %v12300_v57 = vadd.f32 %v12299_v44, %v12298_v46  ;;  %v12301_v39 = vpop.f32.mrb[242].mxu1  ;;  %6857 = vmatprep.subr.bf16.mxu0 %v14389_v35 }
 0x2e5   : > { %v12302_v7 = vpop.f32.mrb[243].mxu1 }
 0x2e6   : > { %v17785_v23 = vadd.f32 %v12300_v57, %v17511_v43  ;;  %v12303_v13 = vadd.f32 %v12302_v7, %v12301_v39  ;;  %6795 = vmatmul.mubr.bf16.gmra.mrb[12].mxu0 %v17646_v16  ;;  %v14402_v43 = vld [vmem:[%s19542_s1 + $0x1144] ss:$12 sps:$4 sm:$0xff]   ;;  %v17879_v39 = vld [vmem:[%s14944_s12 + $0x2b4] ss:$100 sps:$4 sm:$0xff]  }
 0x2e7   : > { %8130 = vmatmul.mubr.bf16.gmra.mrb[92].mxu1 %v17773_v56  ;;  %6858 = vmatpush1.bf16.msra.mxu0 %v14387_v21  ;;  %v14423_v21 = vld [vmem:[%s19542_s1 + $0x11bc] ss:$12 sps:$4 sm:$0xff]  }
 0x2e8   : > { %v17793_v2 = vadd.f32 %v12303_v13, %v17522_v8  ;;  %6859 = vmatprep.subr.bf16.mxu0 %v14394_v47  ;;  %6804 = vmatprep.mubr.bf16.mxu0 %v17655_v15  ;;  %v14405_v15 = vld [vmem:[%s19542_s1 + $0x115c] ss:$12 sps:$4 sm:$0xff]   ;;  %v14456_v13 = vld [vmem:[%s19542_s1 + $0x1280] ss:$12 sps:$4 sm:$0xff]  }
 0x2e9   : > { %8170 = vmatprep.mubr.bf16.mxu1 %v17782_v63 }
 0x2ea   : > { %v12304_v16 = vpop.f32.mrb[244].mxu1 }
 0x2eb   : > { %v12305_v62 = vpop.f32.mrb[245].mxu1  ;;  %6860 = vmatpush1.bf16.msra.mxu0 %v14392_v30  ;;  %v14421_v30 = vld [vmem:[%s19542_s1 + $0x11b8] ss:$12 sps:$4 sm:$0xff]  }
 0x2ec   : > { %v12306_v8 = vadd.f32 %v12305_v62, %v12304_v16  ;;  %v12307_v50 = vpop.f32.mrb[246].mxu1  ;;  %6861 = vmatprep.subr.bf16.mxu0 %v14402_v43  ;;  %v14463_v16 = vld [vmem:[%s19542_s1 + $0x1298] ss:$12 sps:$4 sm:$0xff]  }
 0x2ed   : > { %v12308_v5 = vpop.f32.mrb[247].mxu1 }
 0x2ee   : > { %v17813_v60 = vadd.f32 %v12306_v8, %v17545_v27  ;;  %v12309_v48 = vadd.f32 %v12308_v5, %v12307_v50  ;;  %6805 = vmatmul.mubr.bf16.gmra.mrb[16].mxu0 %v17688_v28  ;;  %v14411_v27 = vld [vmem:[%s19542_s1 + $0x1174] ss:$12 sps:$4 sm:$0xff]   ;;  %v14432_v50 = vld [vmem:[%s19542_s1 + $0x11ec] ss:$12 sps:$4 sm:$0xff]  }
 0x2ef   : > { %8171 = vmatmul.mubr.bf16.vlgmr.msra.gmra.mrb[96].mxu1 %v17801_v45  ;;  %6862 = vmatpush1.bf16.msra.mxu0 %v14400_v55  ;;  %v17913_v5 = vld [vmem:[%s14944_s12 + $0x37c] ss:$100 sps:$4 sm:$0xff]  }
 0x2f0   : > { %v17824_v51 = vadd.f32 %v12309_v48, %v17556_v53  ;;  %6863 = vmatprep.subr.bf16.mxu0 %v14405_v15  ;;  %6814 = vmatprep.mubr.bf16.mxu0 %v17697_v33  ;;  %v14409_v33 = vld [vmem:[%s19542_s1 + $0x1170] ss:$12 sps:$4 sm:$0xff]  }
 0x2f1   : > { %8178 = vmatprep.mubr.bf16.mxu1 %v17810_v20  ;;  %12675 = vmatpush3.bf16.msra.mxu1 %v17685_v19  ;;  %v14414_v19 = vld [vmem:[%s19542_s1 + $0x118c] ss:$12 sps:$4 sm:$0xff]  }
 0x2f2   : > { %v12310_v28 = vpop.f32.mrb[248].mxu1  ;;  %12676 = vmatprep.subr.bf16.mxu1 %v14440_v61 }
 0x2f3   : > { %v12311_v53 = vpop.f32.mrb[249].mxu1  ;;  %6864 = vmatpush1.bf16.msra.mxu0 %v14403_v25  ;;  %v14464_v25 = vld [vmem:[%s19542_s1 + $0x12b0] ss:$12 sps:$4 sm:$0xff]  }
 0x2f4   : > { %v12312_v14 = vadd.f32 %v12311_v53, %v12310_v28  ;;  %v12313_v59 = vpop.f32.mrb[250].mxu1  ;;  %6865 = vmatprep.subr.bf16.mxu0 %v14411_v27  ;;  %v14430_v27 = vld [vmem:[%s19542_s1 + $0x11e8] ss:$12 sps:$4 sm:$0xff]   ;;  %v17935_v53 = vld [vmem:[%s14944_s12 + $0x378] ss:$100 sps:$4 sm:$0xff]  }
 0x2f5   : > { %v12314_v32 = vpop.f32.mrb[251].mxu1  ;;  %12677 = vmatpush3.bf16.msra.mxu1 %v14440_v61 }
 0x2f6   : > { %v17848_v49 = vadd.f32 %v12312_v14, %v17581_v22  ;;  %v12315_v4 = vadd.f32 %v12314_v32, %v12313_v59  ;;  %6815 = vmatmul.mubr.bf16.gmra.mrb[20].mxu0 %v17717_v29  ;;  %12678 = vmatprep.subr.bf16.mxu1 %v14447_v0  ;;  %v14420_v22 = vld [vmem:[%s19542_s1 + $0x11a4] ss:$12 sps:$4 sm:$0xff]  }
 0x2f7   : > { %8179 = vmatmul.mubr.bf16.gmra.mrb[100].mxu1 %v17836_v6  ;;  %6866 = vmatpush1.bf16.msra.mxu0 %v14409_v33 }
 0x2f8   : > { %v17859_v36 = vadd.f32 %v12315_v4, %v17592_v58  ;;  %6867 = vmatprep.subr.bf16.mxu0 %v14414_v19  ;;  %6824 = vmatprep.mubr.bf16.mxu0 %v17726_v10  ;;  %v17870_v58 = vld [vmem:[%s14944_s12 + $0x1e8] ss:$100 sps:$4 sm:$0xff]  }
 0x2f9   : > { %8186 = vmatprep.mubr.bf16.mxu1 %v17845_v12  ;;  %12679 = vmatpush3.bf16.msra.mxu1 %v14447_v0  ;;  %v14418_v10 = vld [vmem:[%s19542_s1 + $0x11a0] ss:$12 sps:$4 sm:$0xff]   ;;  %v14446_v19 = vld [vmem:[%s19542_s1 + $0x121c] ss:$12 sps:$4 sm:$0xff]  }
 0x2fa   : > { %v12316_v29 = vpop.f32.mrb[252].mxu1  ;;  %12680 = vmatprep.subr.bf16.mxu1 %v14448_v34 }
 0x2fb   : > { %v12317_v35 = vpop.f32.mrb[253].mxu1  ;;  %6868 = vmatpush1.bf16.msra.mxu0 %v14412_v38 }
 0x2fc   : > { %v12318_v46 = vadd.f32 %v12317_v35, %v12316_v29  ;;  %v12319_v44 = vpop.f32.mrb[254].mxu1  ;;  %6869 = vmatprep.subr.bf16.mxu0 %v14420_v22  ;;  %v17963_v29 = vld [vmem:[%s14944_s12 + $0x440] ss:$100 sps:$4 sm:$0xff]  }
 0x2fd   : > { %v12320_v57 = vpop.f32.mrb[255].mxu1  ;;  %12681 = vmatpush3.bf16.msra.mxu1 %v14448_v34  ;;  %v14444_v34 = vld [vmem:[%s19542_s1 + $0x1218] ss:$12 sps:$4 sm:$0xff]  }
 0x2fe   : > { %v17882_v47 = vadd.f32 %v12318_v46, %v17621_v3  ;;  %v12321_v7 = vadd.f32 %v12320_v57, %v12319_v44  ;;  %6825 = vmatmul.mubr.bf16.gmra.mrb[24].mxu0 %v17745_v42  ;;  %12682 = vmatprep.subr.bf16.mxu1 %v14455_v11  ;;  %v14429_v3 = vld [vmem:[%s19542_s1 + $0x11d4] ss:$12 sps:$4 sm:$0xff]   ;;  %v14462_v46 = vld [vmem:[%s19542_s1 + $0x124c] ss:$12 sps:$4 sm:$0xff]  }
 0x2ff   : > { %8187 = vmatmul.mubr.bf16.gmra.mrb[104].mxu1 %v17870_v58  ;;  %6870 = vmatpush1.bf16.msra.mxu0 %v14418_v10  ;;  %v17966_v10 = vld [vmem:[%s14944_s12 + $0x50c] ss:$100 sps:$4 sm:$0xff]  }
 0x300   : > { %v17893_v43 = vadd.f32 %v12321_v7, %v17632_v31  ;;  %6871 = vmatprep.subr.bf16.mxu0 %v14423_v21  ;;  %6834 = vmatprep.mubr.bf16.mxu0 %v17754_v9  ;;  %v17904_v31 = vld [vmem:[%s14944_s12 + $0x2b0] ss:$100 sps:$4 sm:$0xff]  }
 0x301   : > { %8194 = vmatprep.mubr.bf16.mxu1 %v17879_v39  ;;  %12683 = vmatpush3.bf16.msra.mxu1 %v14455_v11  ;;  %v14427_v9 = vld [vmem:[%s19542_s1 + $0x11d0] ss:$12 sps:$4 sm:$0xff]   ;;  %v14460_v7 = vld [vmem:[%s19542_s1 + $0x1248] ss:$12 sps:$4 sm:$0xff]  }
 0x302   : > { %v12338_v42 = vpop.f32.mrb[0].mxu1  ;;  %12684 = vmatprep.subr.bf16.mxu1 %v14456_v13 }
 0x303   : > { %v12339_v62 = vpop.f32.mrb[1].mxu1  ;;  %6872 = vmatpush1.bf16.msra.mxu0 %v14421_v30  ;;  %v17991_v30 = vld [vmem:[%s14944_s12 + $0x508] ss:$100 sps:$4 sm:$0xff]  }
 0x304   : > { %v12340_v55 = vadd.f32 %v12339_v62, %v12338_v42  ;;  %v12341_v8 = vpop.f32.mrb[2].mxu1  ;;  %6873 = vmatprep.subr.bf16.mxu0 %v14429_v3  ;;  %v14466_v42 = vld [vmem:[%s19542_s1 + $0x1260] ss:$12 sps:$4 sm:$0xff]   ;;  %v14473_v62 = vld [vmem:[%s19542_s1 + $0x127c] ss:$12 sps:$4 sm:$0xff]  }
 0x305   : > { %v12342_v15 = vpop.f32.mrb[3].mxu1  ;;  %12685 = vmatpush3.bf16.msra.mxu1 %v14456_v13 }
 0x306   : > { %v17916_v48 = vadd.f32 %v12340_v55, %v17661_v52  ;;  %v12343_v61 = vadd.f32 %v12342_v15, %v12341_v8  ;;  %6835 = vmatmul.mubr.bf16.gmra.mrb[28].mxu0 %v17773_v56  ;;  %12686 = vmatprep.subr.bf16.mxu1 %v14463_v16  ;;  %v14438_v56 = vld [vmem:[%s19542_s1 + $0x1204] ss:$12 sps:$4 sm:$0xff]  }
 0x307   : > { %8195 = vmatmul.mubr.bf16.gmra.mrb[108].mxu1 %v17904_v31  ;;  %6874 = vmatpush1.bf16.msra.mxu0 %v14427_v9 }
 0x308   : > { %v17927_v52 = vadd.f32 %v12343_v61, %v17672_v54  ;;  %6875 = vmatprep.subr.bf16.mxu0 %v14432_v50  ;;  %6877 = vmatprep.mubr.bf16.mxu0 %v17782_v63  ;;  %v14436_v54 = vld [vmem:[%s19542_s1 + $0x1200] ss:$12 sps:$4 sm:$0xff]   ;;  %v17941_v63 = vld [vmem:[%s14944_s12 + $0x444] ss:$100 sps:$4 sm:$0xff]   ;;  %v18019_v61 = vld [vmem:[%s14944_s12 + $0x5d0] ss:$100 sps:$4 sm:$0xff]  }
 0x309   : > { %8202 = vmatprep.mubr.bf16.mxu1 %v17913_v5  ;;  %12687 = vmatpush3.bf16.msra.mxu1 %v14463_v16  ;;  %v14471_v50 = vld [vmem:[%s19542_s1 + $0x1278] ss:$12 sps:$4 sm:$0xff]  }
 0x30a   : > { %v12344_v28 = vpop.f32.mrb[4].mxu1  ;;  %12688 = vmatprep.subr.bf16.mxu1 %v14464_v25 }
 0x30b   : > { %v12345_v0 = vpop.f32.mrb[5].mxu1  ;;  %6876 = vmatpush1.bf16.msra.mxu0 %v14430_v27  ;;  %v14476_v27 = vld [vmem:[%s19542_s1 + $0x1290] ss:$12 sps:$4 sm:$0xff]  }
 0x30c   : > { %v12346_v33 = vadd.f32 %v12345_v0, %v12344_v28  ;;  %v12347_v14 = vpop.f32.mrb[6].mxu1  ;;  %6958 = vmatprep.subr.bf16.mxu0 %v14438_v56  ;;  %v14483_v28 = vld [vmem:[%s19542_s1 + $0x12ac] ss:$12 sps:$4 sm:$0xff]  }
 0x30d   : > { %v12348_v59 = vpop.f32.mrb[7].mxu1  ;;  %12689 = vmatpush3.bf16.msra.mxu1 %v14464_v25 }
 0x30e   : > { %v17947_v32 = vadd.f32 %v12346_v33, %v17700_v41  ;;  %v12349_v4 = vadd.f32 %v12348_v59, %v12347_v14  ;;  %6878 = vmatmul.mubr.bf16.vlgmr.msra.gmra.mrb[0].mxu0 %v17801_v45  ;;  %v14454_v41 = vld [vmem:[%s19542_s1 + $0x1234] ss:$12 sps:$4 sm:$0xff]  }
 0x30f   : > { %8203 = vmatmul.mubr.bf16.gmra.mrb[112].mxu1 %v17935_v53  ;;  %6959 = vmatpush1.bf16.msra.mxu0 %v14436_v54  ;;  %v14481_v14 = vld [vmem:[%s19542_s1 + $0x12a8] ss:$12 sps:$4 sm:$0xff]  }
 0x310   : > { %v17955_v38 = vadd.f32 %v12349_v4, %v17709_v37  ;;  %6887 = vmatprep.mubr.bf16.mxu0 %v17810_v20  ;;  %8210 = vmatprep.mubr.bf16.mxu1 %v17941_v63  ;;  %v14452_v37 = vld [vmem:[%s19542_s1 + $0x1230] ss:$12 sps:$4 sm:$0xff]  }
 0x311   : > { %6960 = vmatprep.subr.bf16.mxu0 %v14446_v19  ;;  %v18044_v19 = vld [vmem:[%s14944_s12 + $0x128] ss:$100 sps:$4 sm:$0xff]  }
 0x312   : > { %v12350_v45 = vpop.f32.mrb[8].mxu1 }
 0x313   : > { %v12351_v22 = vpop.f32.mrb[9].mxu1  ;;  %6961 = vmatpush1.bf16.msra.mxu0 %v14444_v34 }
 0x314   : > { %v12352_v11 = vadd.f32 %v12351_v22, %v12350_v45  ;;  %v12353_v35 = vpop.f32.mrb[10].mxu1  ;;  %6962 = vmatprep.subr.bf16.mxu0 %v14454_v41 }
 0x315   : > { %v12354_v20 = vpop.f32.mrb[11].mxu1 }
 0x316   : > { %v17975_v44 = vadd.f32 %v12352_v11, %v17729_v26  ;;  %v12355_v21 = vadd.f32 %v12354_v20, %v12353_v35  ;;  %6888 = vmatmul.mubr.bf16.gmra.mrb[4].mxu0 %v17836_v6  ;;  %v14468_v26 = vld [vmem:[%s19542_s1 + $0x1264] ss:$12 sps:$4 sm:$0xff]   ;;  %v18060_v35 = vld [vmem:[%s14944_s12 + $0x2b8] ss:$100 sps:$4 sm:$0xff]  }
 0x317   : > { %8211 = vmatmul.mubr.bf16.gmra.mrb[116].mxu1 %v17963_v29  ;;  %6897 = vmatprep.mubr.bf16.mxu0 %v17845_v12  ;;  %v18063_v20 = vld [vmem:[%s14944_s12 + $0x380] ss:$100 sps:$4 sm:$0xff]  }
 0x318   : > { %v17981_v57 = vadd.f32 %v12355_v21, %v17737_v17  ;;  %8218 = vmatprep.mubr.bf16.mxu1 %v17966_v10  ;;  %6963 = vmatpush1.bf16.msra.mxu0 %v14452_v37  ;;  %v17994_v17 = vld [vmem:[%s14944_s12 + $0x5d4] ss:$100 sps:$4 sm:$0xff]  }
 0x319   : > { %6964 = vmatprep.subr.bf16.mxu0 %v14462_v46 }
 0x31a   : > { %v12356_v6 = vpop.f32.mrb[12].mxu1 }
 0x31b   : > { %v12357_v13 = vpop.f32.mrb[13].mxu1 }
 0x31c   : > { %v12358_v12 = vadd.f32 %v12357_v13, %v12356_v6  ;;  %v12359_v3 = vpop.f32.mrb[14].mxu1  ;;  %6965 = vmatpush1.bf16.msra.mxu0 %v14460_v7  ;;  %v18079_v13 = vld [vmem:[%s14944_s12 + $0x510] ss:$100 sps:$4 sm:$0xff]  }
 0x31d   : > { %v12360_v16 = vpop.f32.mrb[15].mxu1  ;;  %6966 = vmatprep.subr.bf16.mxu0 %v14468_v26  ;;  %v18076_v26 = vld [vmem:[%s14944_s12 + $0x448] ss:$100 sps:$4 sm:$0xff]  }
 0x31e   : > { %v18003_v9 = vadd.f32 %v12358_v12, %v17757_v24  ;;  %v12361_v55 = vadd.f32 %v12360_v16, %v12359_v3  ;;  %6898 = vmatmul.mubr.bf16.gmra.mrb[8].mxu0 %v17870_v58  ;;  %v14478_v24 = vld [vmem:[%s19542_s1 + $0x1294] ss:$12 sps:$4 sm:$0xff]   ;;  %v18092_v16 = vld [vmem:[%s14944_s12 + $0x5d8] ss:$100 sps:$4 sm:$0xff]  }
 0x31f   : > { %8219 = vmatmul.mubr.bf16.gmra.mrb[120].mxu1 %v17991_v30  ;;  %6907 = vmatprep.mubr.bf16.mxu0 %v17879_v39 }
 0x320   : > { %v18009_v8 = vadd.f32 %v12361_v55, %v17765_v1  ;;  %8226 = vmatprep.mubr.bf16.mxu1 %v17994_v17  ;;  %6967 = vmatpush1.bf16.msra.mxu0 %v14466_v42  ;;  %v18022_v1 = vld [vmem:[%s14944_s12 + $0x60] ss:$100 sps:$4 sm:$0xff]  }
 0x321   : > { %6968 = vmatprep.subr.bf16.mxu0 %v14473_v62 }
 0x322   : > { %v12362_v58 = vpop.f32.mrb[16].mxu1 }
 0x323   : > { %v12363_v15 = vpop.f32.mrb[17].mxu1 }
 0x324   : > { %v12364_v39 = vadd.f32 %v12363_v15, %v12362_v58  ;;  %v12365_v25 = vpop.f32.mrb[18].mxu1  ;;  %6969 = vmatpush1.bf16.msra.mxu0 %v14471_v50 }
 0x325   : > { %v12366_v56 = vpop.f32.mrb[19].mxu1  ;;  %6970 = vmatprep.subr.bf16.mxu0 %v14478_v24 }
 0x326   : > { %v18031_v0 = vadd.f32 %v12364_v39, %v17785_v23  ;;  %v12367_v54 = vadd.f32 %v12366_v56, %v12365_v25  ;;  %6908 = vmatmul.mubr.bf16.gmra.mrb[12].mxu0 %v17904_v31 }
 0x327   : > { %8227 = vmatmul.mubr.bf16.gmra.mrb[124].mxu1 %v18019_v61  ;;  %6917 = vmatprep.mubr.bf16.mxu0 %v17913_v5  ;;  %v18047_v5 = vld [vmem:[%s14944_s12 + $0x1f0] ss:$100 sps:$4 sm:$0xff]   ;;  %s13379_s12 = smul.u32 24, %s19594_s29 }
 0x328   : > { %v18037_v33 = vadd.f32 %v12367_v54, %v17793_v2  ;;  %12690 = vmatprep.mubr.bf16.mxu1 %v18022_v1  ;;  %6971 = vmatpush1.bf16.msra.mxu0 %v14476_v27 }
 0x329   : > { %6972 = vmatprep.subr.bf16.mxu0 %v14483_v28  ;;  %s19123_s28 = scalar_lea.vmem %s19550_s9, %s13379_s12 }
 0x32a   : > { %v12368_v23 = vpop.f32.mrb[20].mxu1 }
 0x32b   : > { %v12369_v59 = vpop.f32.mrb[21].mxu1 }
 0x32c   : > { %v12370_v31 = vadd.f32 %v12369_v59, %v12368_v23  ;;  %v12371_v4 = vpop.f32.mrb[22].mxu1  ;;  %6973 = vmatpush1.bf16.msra.mxu0 %v14481_v14 }
 0x32d   : > { %v12372_v2 = vpop.f32.mrb[23].mxu1 }
 0x32e   : > { %v18050_v34 = vadd.f32 %v12370_v31, %v17813_v60  ;;  %v12373_v41 = vadd.f32 %v12372_v2, %v12371_v4  ;;  %6918 = vmatmul.mubr.bf16.gmra.mrb[16].mxu0 %v17935_v53 }
 0x32f   : > { %12691 = vmatmul.mubr.bf16.vlgmr.msra.gmra.mrb[128].mxu1 %v18044_v19  ;;  %6927 = vmatprep.mubr.bf16.mxu0 %v17941_v63 }
 0x330   : > { %v18056_v45 = vadd.f32 %v12373_v41, %v17824_v51  ;;  %12694 = vmatprep.mubr.bf16.mxu1 %v18047_v5 }
 0x332   : > { %v12374_v22 = vpop.f32.mrb[24].mxu1 }
 0x333   : > { %v12375_v11 = vpop.f32.mrb[25].mxu1 }
 0x334   : > { %v12376_v37 = vadd.f32 %v12375_v11, %v12374_v22  ;;  %v12377_v60 = vpop.f32.mrb[26].mxu1 }
 0x335   : > { %v12378_v53 = vpop.f32.mrb[27].mxu1 }
 0x336   : > { %v18066_v46 = vadd.f32 %v12376_v37, %v17848_v49  ;;  %v12379_v63 = vadd.f32 %v12378_v53, %v12377_v60  ;;  %6928 = vmatmul.mubr.bf16.gmra.mrb[20].mxu0 %v17963_v29 }
 0x337   : > { %12695 = vmatmul.mubr.bf16.gmra.mrb[132].mxu1 %v18060_v35  ;;  %6937 = vmatprep.mubr.bf16.mxu0 %v17966_v10 }
 0x338   : > { %v18072_v51 = vadd.f32 %v12379_v63, %v17859_v36  ;;  %12698 = vmatprep.mubr.bf16.mxu1 %v18063_v20 }
 0x33a   : > { %v12380_v21 = vpop.f32.mrb[28].mxu1 }
 0x33b   : > { %v12381_v7 = vpop.f32.mrb[29].mxu1 }
 0x33c   : > { %v12382_v6 = vadd.f32 %v12381_v7, %v12380_v21  ;;  %v12383_v49 = vpop.f32.mrb[30].mxu1 }
 0x33d   : > { %v12384_v12 = vpop.f32.mrb[31].mxu1 }
 0x33e   : > { %v18082_v29 = vadd.f32 %v12382_v6, %v17882_v47  ;;  %v12385_v3 = vadd.f32 %v12384_v12, %v12383_v49  ;;  %6938 = vmatmul.mubr.bf16.gmra.mrb[24].mxu0 %v17991_v30 }
 0x33f   : > { %12699 = vmatmul.mubr.bf16.gmra.mrb[136].mxu1 %v18076_v26  ;;  %6947 = vmatprep.mubr.bf16.mxu0 %v17994_v17  ;;  %v19551_v17 = vmov 0  }
 0x340   : > { %v18088_v36 = vadd.f32 %v12385_v3, %v17893_v43  ;;  %12702 = vmatprep.mubr.bf16.mxu1 %v18079_v13  ;;  %v14490_v3 = vld [vmem:[%s19544_s3 + $0x1c] ss:$12 sps:$4 sm:$0xff]  }
 0x342   : > { %v12402_v10 = vpop.f32.mrb[32].mxu1 }
 0x343   : > { %v12403_v42 = vpop.f32.mrb[33].mxu1 }
 0x344   : > { %v12404_v62 = vadd.f32 %v12403_v42, %v12402_v10  ;;  %v12405_v55 = vpop.f32.mrb[34].mxu1 }
 0x345   : > { %v12406_v47 = vpop.f32.mrb[35].mxu1 }
 0x346   : > { %v18095_v50 = vadd.f32 %v12404_v62, %v17916_v48  ;;  %v12407_v30 = vadd.f32 %v12406_v47, %v12405_v55  ;;  %6948 = vmatmul.mubr.bf16.gmra.mrb[28].mxu0 %v18019_v61  ;;  %v14491_v47 = vld [vmem:[%s19544_s3 + $0x30] ss:$12 sps:$4 sm:$0xff]  }
 0x347   : > { %12703 = vmatmul.mubr.bf16.gmra.mrb[140].mxu1 %v18092_v16  ;;  %6990 = vmatprep.mubr.bf16.mxu0 %v19551_v17 }
 0x348   : > { %v18101_v43 = vadd.f32 %v12407_v30, %v17927_v52 }
 0x34a   : > { %v12408_v24 = vpop.f32.mrb[36].mxu1 }
 0x34b   : > { %v12409_v58 = vpop.f32.mrb[37].mxu1 }
 0x34c   : > { %v12410_v15 = vadd.f32 %v12409_v58, %v12408_v24  ;;  %v12411_v39 = vpop.f32.mrb[38].mxu1  ;;  %v14494_v58 = vld [vmem:[%s19544_s3 + $0x48] ss:$12 sps:$4 sm:$0xff]  }
 0x34d   : > { %v12412_v25 = vpop.f32.mrb[39].mxu1 }
 0x34e   : > { %v18104_v27 = vadd.f32 %v12410_v15, %v17947_v32  ;;  %v12413_v48 = vadd.f32 %v12412_v25, %v12411_v39  ;;  %6991 = vmatmul.mubr.bf16.vlgmr.msra.gmra.mrb[0].mxu0 %v18022_v1  ;;  %v14496_v15 = vld [vmem:[%s19544_s3 + $0x4c] ss:$12 sps:$4 sm:$0xff]  }
 0x34f   : > { %7000 = vmatprep.mubr.bf16.mxu0 %v19551_v17 }
 0x350   : > { %v18109_v61 = vadd.f32 %v12413_v48, %v17955_v38 }
 0x352   : > { %v12414_v56 = vpop.f32.mrb[40].mxu1 }
 0x353   : > { %v12415_v28 = vpop.f32.mrb[41].mxu1 }
 0x354   : > { %v12416_v52 = vadd.f32 %v12415_v28, %v12414_v56  ;;  %v12417_v54 = vpop.f32.mrb[42].mxu1  ;;  %v14497_v28 = vld [vmem:[%s19544_s3 + $0x60] ss:$12 sps:$4 sm:$0xff]  }
 0x355   : > { %v12418_v14 = vpop.f32.mrb[43].mxu1 }
 0x356   : > { %v18112_v23 = vadd.f32 %v12416_v52, %v17975_v44  ;;  %v12419_v59 = vadd.f32 %v12418_v14, %v12417_v54  ;;  %7001 = vmatmul.mubr.bf16.gmra.mrb[4].mxu0 %v18044_v19  ;;  %v14500_v14 = vld [vmem:[%s19544_s3 + $0x78] ss:$12 sps:$4 sm:$0xff]  }
 0x357   : > { %7010 = vmatprep.mubr.bf16.mxu0 %v19551_v17 }
 0x358   : > { %v18117_v32 = vadd.f32 %v12419_v59, %v17981_v57  ;;  %v14502_v59 = vld [vmem:[%s19544_s3 + $0x7c] ss:$12 sps:$4 sm:$0xff]  }
 0x35a   : > { %v12420_v1 = vpop.f32.mrb[44].mxu1 }
 0x35b   : > { %v12421_v31 = vpop.f32.mrb[45].mxu1 }
 0x35c   : > { %v12422_v38 = vadd.f32 %v12421_v31, %v12420_v1  ;;  %v12423_v4 = vpop.f32.mrb[46].mxu1 }
 0x35d   : > { %v12424_v2 = vpop.f32.mrb[47].mxu1 }
 0x35e   : > { %v18120_v41 = vadd.f32 %v12422_v38, %v18003_v9  ;;  %v12425_v22 = vadd.f32 %v12424_v2, %v12423_v4  ;;  %7011 = vmatmul.mubr.bf16.gmra.mrb[8].mxu0 %v18047_v5  ;;  %v14503_v2 = vld [vmem:[%s19544_s3 + $0x90] ss:$12 sps:$4 sm:$0xff]  }
 0x35f   : > { %7020 = vmatprep.mubr.bf16.mxu0 %v19551_v17 }
 0x360   : > { %v18125_v44 = vadd.f32 %v12425_v22, %v18009_v8  ;;  %v14487_v8 = vld [vmem:[%s19544_s3 + $0x4] ss:$12 sps:$4 sm:$0xff]  }
 0x361   : > { %8901 = vmatprep.subr.bf16.mxu1 %v14487_v8  ;;  %v14513_v8 = vld [vmem:[%s19544_s3 + $0x8] ss:$12 sps:$4 sm:$0xff]  }
 0x362   : > { %v12426_v19 = vpop.f32.mrb[48].mxu1 }
 0x363   : > { %v12427_v11 = vpop.f32.mrb[49].mxu1 }
 0x364   : > { %v12428_v57 = vadd.f32 %v12427_v11, %v12426_v19  ;;  %v12429_v37 = vpop.f32.mrb[50].mxu1  ;;  %v14508_v11 = vld [vmem:[%s19544_s3 + $0xac] ss:$12 sps:$4 sm:$0xff]  }
 0x365   : > { %v12430_v60 = vpop.f32.mrb[51].mxu1 }
 0x366   : > { %v18128_v53 = vadd.f32 %v12428_v57, %v18031_v0  ;;  %v12431_v63 = vadd.f32 %v12430_v60, %v12429_v37  ;;  %7021 = vmatmul.mubr.bf16.gmra.mrb[12].mxu0 %v18060_v35  ;;  %v14485_v0 = vld [vmem:[%s19544_s3] ss:$12 sps:$4 sm:$0xff]   ;;  %v14506_v37 = vld [vmem:[%s19544_s3 + $0xa8] ss:$12 sps:$4 sm:$0xff]  }
 0x367   : > { %7030 = vmatprep.mubr.bf16.mxu0 %v19551_v17  ;;  %8902 = vmatpush1.bf16.msra.mxu1 %v14485_v0 }
 0x368   : > { %v18133_v9 = vadd.f32 %v12431_v63, %v18037_v33  ;;  %v14488_v33 = vld [vmem:[%s19544_s3 + $0x18] ss:$12 sps:$4 sm:$0xff]   ;;  %8903 = vmatprep.subr.bf16.mxu1 %v14490_v3  ;;  %v14512_v63 = vld [vmem:[%s19544_s3 + $0xc8] ss:$12 sps:$4 sm:$0xff]  }
 0x369   : > { %12594 = vmatprep.subr.bf16.mxu0 %v14512_v63  ;;  %v14514_v3 = vld [vmem:[%s19544_s3 + $0xd8] ss:$12 sps:$4 sm:$0xff]   ;;  %v14539_v63 = vld [vmem:[%s19544_s3 + $0x150] ss:$12 sps:$4 sm:$0xff]  }
 0x36a   : > { %v12432_v5 = vpop.f32.mrb[52].mxu1  ;;  %12595 = vmatpush3.bf16.msra.mxu0 %v14513_v8 }
 0x36b   : > { %v12433_v21 = vpop.f32.mrb[53].mxu1  ;;  %8904 = vmatpush1.bf16.msra.mxu1 %v14488_v33 }
 0x36c   : > { %v12434_v7 = vadd.f32 %v12433_v21, %v12432_v5  ;;  %v12435_v6 = vpop.f32.mrb[54].mxu1 }
 0x36d   : > { %v12436_v49 = vpop.f32.mrb[55].mxu1 }
 0x36e   : > { %v18142_v35 = vadd.f32 %v12434_v7, %v18050_v34  ;;  %v12437_v12 = vadd.f32 %v12436_v49, %v12435_v6  ;;  %7031 = vmatmul.mubr.bf16.gmra.mrb[16].mxu0 %v18063_v20  ;;  %v14493_v20 = vld [vmem:[%s19544_s3 + $0x34] ss:$12 sps:$4 sm:$0xff]   ;;  %v14516_v49 = vld [vmem:[%s19544_s3 + $0xdc] ss:$12 sps:$4 sm:$0xff]  }
 0x36f   : > { %7040 = vmatprep.mubr.bf16.mxu0 %v19551_v17  ;;  %8905 = vmatprep.subr.bf16.mxu1 %v14493_v20  ;;  %v14521_v20 = vld [vmem:[%s19544_s3 + $0xf4] ss:$12 sps:$4 sm:$0xff]  }
 0x370   : > { %v18153_v10 = vadd.f32 %v12437_v12, %v18056_v45  ;;  %8906 = vmatpush1.bf16.msra.mxu1 %v14491_v47  ;;  %v14517_v12 = vld [vmem:[%s19544_s3 + $0xe0] ss:$12 sps:$4 sm:$0xff]   ;;  %v14519_v47 = vld [vmem:[%s19544_s3 + $0xf0] ss:$12 sps:$4 sm:$0xff]  }
 0x371   : > { %8907 = vmatprep.subr.bf16.mxu1 %v14496_v15  ;;  %12596 = vmatprep.subr.bf16.mxu0 %v14517_v12  ;;  %v14544_v12 = vld [vmem:[%s19544_s3 + $0x168] ss:$12 sps:$4 sm:$0xff]  }
 0x372   : > { %v12438_v34 = vpop.f32.mrb[56].mxu1 }
 0x373   : > { %v12439_v42 = vpop.f32.mrb[57].mxu1 }
 0x374   : > { %v12440_v62 = vadd.f32 %v12439_v42, %v12438_v34  ;;  %v12441_v55 = vpop.f32.mrb[58].mxu1  ;;  %8908 = vmatpush1.bf16.msra.mxu1 %v14494_v58 }
 0x375   : > { %v12442_v30 = vpop.f32.mrb[59].mxu1 }
 0x376   : > { %v18162_v24 = vadd.f32 %v12440_v62, %v18066_v46  ;;  %v12443_v45 = vadd.f32 %v12442_v30, %v12441_v55  ;;  %7041 = vmatmul.mubr.bf16.gmra.mrb[20].mxu0 %v18076_v26  ;;  %v14499_v26 = vld [vmem:[%s19544_s3 + $0x64] ss:$12 sps:$4 sm:$0xff]  }
 0x377   : > { %7050 = vmatprep.mubr.bf16.mxu0 %v19551_v17  ;;  %8909 = vmatprep.subr.bf16.mxu1 %v14499_v26  ;;  %v14523_v30 = vld [vmem:[%s19544_s3 + $0x38] ss:$12 sps:$4 sm:$0xff]  }
 0x378   : > { %v18173_v39 = vadd.f32 %v12443_v45, %v18072_v51  ;;  %8910 = vmatpush1.bf16.msra.mxu1 %v14497_v28 }
 0x379   : > { %8911 = vmatprep.subr.bf16.mxu1 %v14502_v59  ;;  %v14529_v59 = vld [vmem:[%s19544_s3 + $0x120] ss:$12 sps:$4 sm:$0xff]  }
 0x37a   : > { %v12444_v46 = vpop.f32.mrb[60].mxu1 }
 0x37b   : > { %v12445_v25 = vpop.f32.mrb[61].mxu1 }
 0x37c   : > { %v12446_v48 = vadd.f32 %v12445_v25, %v12444_v46  ;;  %v12447_v56 = vpop.f32.mrb[62].mxu1  ;;  %8912 = vmatpush1.bf16.msra.mxu1 %v14500_v14  ;;  %v14526_v46 = vld [vmem:[%s19544_s3 + $0x10c] ss:$12 sps:$4 sm:$0xff]   ;;  %v14527_v25 = vld [vmem:[%s19544_s3 + $0x110] ss:$12 sps:$4 sm:$0xff]  }
 0x37d   : > { %v12448_v52 = vpop.f32.mrb[63].mxu1 }
 0x37e   : > { %v18182_v54 = vadd.f32 %v12446_v48, %v18082_v29  ;;  %v12449_v51 = vadd.f32 %v12448_v52, %v12447_v56  ;;  %7051 = vmatmul.mubr.bf16.gmra.mrb[24].mxu0 %v18079_v13  ;;  %v14505_v13 = vld [vmem:[%s19544_s3 + $0x94] ss:$12 sps:$4 sm:$0xff]   ;;  %v14531_v52 = vld [vmem:[%s19544_s3 + $0x124] ss:$12 sps:$4 sm:$0xff]  }
 0x37f   : > { %7060 = vmatprep.mubr.bf16.mxu0 %v19551_v17  ;;  %8913 = vmatprep.subr.bf16.mxu1 %v14505_v13  ;;  %v14524_v48 = vld [vmem:[%s19544_s3 + $0x108] ss:$12 sps:$4 sm:$0xff]  }
 0x380   : > { %v18193_v1 = vadd.f32 %v12449_v51, %v18088_v36  ;;  %8914 = vmatpush1.bf16.msra.mxu1 %v14503_v2  ;;  %v14537_v2 = vld [vmem:[%s19544_s3 + $0x140] ss:$12 sps:$4 sm:$0xff]  }
 0x381   : > { %8915 = vmatprep.subr.bf16.mxu1 %v14508_v11 }
 0x382   : > { %v12466_v29 = vpop.f32.mrb[64].mxu1 }
 0x383   : > { %v12467_v31 = vpop.f32.mrb[65].mxu1 }
 0x384   : > { %v12468_v38 = vadd.f32 %v12467_v31, %v12466_v29  ;;  %v12469_v4 = vpop.f32.mrb[66].mxu1  ;;  %8916 = vmatpush1.bf16.msra.mxu1 %v14506_v37  ;;  %v14533_v29 = vld [vmem:[%s19544_s3 + $0x68] ss:$12 sps:$4 sm:$0xff]  }
 0x385   : > { %v12470_v22 = vpop.f32.mrb[67].mxu1 }
 0x386   : > { %v18202_v19 = vadd.f32 %v12468_v38, %v18095_v50  ;;  %v12471_v36 = vadd.f32 %v12470_v22, %v12469_v4  ;;  %7061 = vmatmul.mubr.bf16.gmra.mrb[28].mxu0 %v18092_v16  ;;  %v14511_v16 = vld [vmem:[%s19544_s3 + $0xc4] ss:$12 sps:$4 sm:$0xff]   ;;  %v14536_v4 = vld [vmem:[%s19544_s3 + $0x13c] ss:$12 sps:$4 sm:$0xff]  }
 0x387   : > { %8917 = vmatprep.subr.bf16.mxu1 %v14511_v16 }
 0x388   : > { %v18209_v57 = vadd.f32 %v12471_v36, %v18101_v43  ;;  %v14509_v43 = vld [vmem:[%s19544_s3 + $0xc0] ss:$12 sps:$4 sm:$0xff]   ;;  %v14534_v36 = vld [vmem:[%s19544_s3 + $0x138] ss:$12 sps:$4 sm:$0xff]  }
 0x389   : > { %8918 = vmatpush1.bf16.msra.mxu1 %v14509_v43 }
 0x38a   : > { %v12472_v60 = vpop.f32.mrb[68].mxu1  ;;  %8919 = vmatprep.subr.bf16.mxu1 %v14516_v49 }
 0x38b   : > { %v12473_v50 = vpop.f32.mrb[69].mxu1 }
 0x38c   : > { %v12474_v5 = vadd.f32 %v12473_v50, %v12472_v60  ;;  %v12475_v21 = vpop.f32.mrb[70].mxu1  ;;  %v14541_v60 = vld [vmem:[%s19544_s3 + $0x154] ss:$12 sps:$4 sm:$0xff]  }
 0x38d   : > { %v12476_v7 = vpop.f32.mrb[71].mxu1  ;;  %8920 = vmatpush1.bf16.msra.mxu1 %v14514_v3 }
 0x38e   : > { %v18227_v6 = vadd.f32 %v12474_v5, %v18104_v27  ;;  %v12477_v0 = vadd.f32 %v12476_v7, %v12475_v21  ;;  %v14518_v27 = vld [vmem:[%s19544_s3 + $0x20] ss:$12 sps:$4 sm:$0xff]   ;;  %8921 = vmatprep.subr.bf16.mxu1 %v14521_v20  ;;  %v14543_v5 = vld [vmem:[%s19544_s3 + $0x98] ss:$12 sps:$4 sm:$0xff]  }
 0x38f   : > { %12597 = vmatpush3.bf16.msra.mxu0 %v14518_v27  ;;  %v14546_v7 = vld [vmem:[%s19544_s3 + $0x16c] ss:$12 sps:$4 sm:$0xff]  }
 0x390   : > { %v18236_v33 = vadd.f32 %v12477_v0, %v18109_v61  ;;  %v14522_v61 = vld [vmem:[%s19544_s3 + $0xf8] ss:$12 sps:$4 sm:$0xff]   ;;  %v14547_v0 = vld [vmem:[%s19544_s3 + $0x170] ss:$12 sps:$4 sm:$0xff]  }
 0x391   : > { %12598 = vmatprep.subr.bf16.mxu0 %v14522_v61  ;;  %8922 = vmatpush1.bf16.msra.mxu1 %v14519_v47 }
 0x392   : > { %v12478_v34 = vpop.f32.mrb[72].mxu1  ;;  %8923 = vmatprep.subr.bf16.mxu1 %v14526_v46 }
 0x393   : > { %v12479_v42 = vpop.f32.mrb[73].mxu1  ;;  %12599 = vmatpush3.bf16.msra.mxu0 %v14523_v30 }
 0x394   : > { %v12480_v62 = vadd.f32 %v12479_v42, %v12478_v34  ;;  %v12481_v55 = vpop.f32.mrb[74].mxu1  ;;  %12600 = vmatprep.subr.bf16.mxu0 %v14527_v25 }
 0x395   : > { %v12482_v45 = vpop.f32.mrb[75].mxu1  ;;  %8924 = vmatpush1.bf16.msra.mxu1 %v14524_v48 }
 0x396   : > { %v18257_v58 = vadd.f32 %v12480_v62, %v18112_v23  ;;  %v12483_v15 = vadd.f32 %v12482_v45, %v12481_v55  ;;  %v14528_v23 = vld [vmem:[%s19544_s3 + $0x50] ss:$12 sps:$4 sm:$0xff]   ;;  %8925 = vmatprep.subr.bf16.mxu1 %v14531_v52 }
 0x397   : > { %12601 = vmatpush3.bf16.msra.mxu0 %v14528_v23  ;;  %v14551_v55 = vld [vmem:[%s19544_s3 + $0x184] ss:$12 sps:$4 sm:$0xff]  }
 0x398   : > { %v18266_v26 = vadd.f32 %v12483_v15, %v18117_v32  ;;  %v14532_v32 = vld [vmem:[%s19544_s3 + $0x128] ss:$12 sps:$4 sm:$0xff]  }
 0x399   : > { %12602 = vmatprep.subr.bf16.mxu0 %v14532_v32  ;;  %8926 = vmatpush1.bf16.msra.mxu1 %v14529_v59 }
 0x39a   : > { %v12484_v56 = vpop.f32.mrb[76].mxu1  ;;  %8927 = vmatprep.subr.bf16.mxu1 %v14536_v4 }
 0x39b   : > { %v12485_v28 = vpop.f32.mrb[77].mxu1  ;;  %12603 = vmatpush3.bf16.msra.mxu0 %v14533_v29 }
 0x39c   : > { %v12486_v51 = vadd.f32 %v12485_v28, %v12484_v56  ;;  %v12487_v14 = vpop.f32.mrb[78].mxu1  ;;  %12604 = vmatprep.subr.bf16.mxu0 %v14537_v2 }
 0x39d   : > { %v12488_v31 = vpop.f32.mrb[79].mxu1  ;;  %8928 = vmatpush1.bf16.msra.mxu1 %v14534_v36 }
 0x39e   : > { %v18287_v13 = vadd.f32 %v12486_v51, %v18120_v41  ;;  %v12489_v38 = vadd.f32 %v12488_v31, %v12487_v14  ;;  %v14538_v41 = vld [vmem:[%s19544_s3 + $0x80] ss:$12 sps:$4 sm:$0xff]   ;;  %8929 = vmatprep.subr.bf16.mxu1 %v14541_v60 }
 0x39f   : > { %12605 = vmatpush3.bf16.msra.mxu0 %v14538_v41 }
 0x3a0   : > { %v18296_v22 = vadd.f32 %v12489_v38, %v18125_v44  ;;  %v14542_v44 = vld [vmem:[%s19544_s3 + $0x158] ss:$12 sps:$4 sm:$0xff]  }
 0x3a1   : > { %12606 = vmatprep.subr.bf16.mxu0 %v14542_v44  ;;  %8930 = vmatpush1.bf16.msra.mxu1 %v14539_v63 }
 0x3a2   : > { %v12490_v11 = vpop.f32.mrb[80].mxu1  ;;  %8931 = vmatprep.subr.bf16.mxu1 %v14546_v7 }
 0x3a3   : > { %v12491_v37 = vpop.f32.mrb[81].mxu1  ;;  %12607 = vmatpush3.bf16.msra.mxu0 %v14543_v5 }
 0x3a4   : > { %v12492_v50 = vadd.f32 %v12491_v37, %v12490_v11  ;;  %v12493_v16 = vpop.f32.mrb[82].mxu1  ;;  %12608 = vmatprep.subr.bf16.mxu0 %v14547_v0 }
 0x3a5   : > { %v12494_v21 = vpop.f32.mrb[83].mxu1  ;;  %8932 = vmatpush1.bf16.msra.mxu1 %v14544_v12 }
 0x3a6   : > { %v18317_v43 = vadd.f32 %v12492_v50, %v18128_v53  ;;  %v12495_v8 = vadd.f32 %v12494_v21, %v12493_v16  ;;  %v14548_v53 = vld [vmem:[%s19544_s3 + $0xb0] ss:$12 sps:$4 sm:$0xff]   ;;  %9014 = vmatprep.subr.bf16.mxu1 %v14551_v55 }
 0x3a7   : > { %12609 = vmatpush3.bf16.msra.mxu0 %v14548_v53 }
 0x3a8   : > { %v18326_v49 = vadd.f32 %v12495_v8, %v18133_v9 }
 0x3aa   : > { %v12496_v3 = vpop.f32.mrb[84].mxu1 }
 0x3ab   : > { %v12497_v27 = vpop.f32.mrb[85].mxu1 }
 0x3ac   : > { %v12498_v34 = vadd.f32 %v12497_v27, %v12496_v3  ;;  %v12499_v42 = vpop.f32.mrb[86].mxu1 }
 0x3ad   : > { %v12500_v20 = vpop.f32.mrb[87].mxu1 }
 0x3ae   : > { %v18335_v9 = vadd.f32 %v12498_v34, %v18142_v35  ;;  %v12501_v61 = vadd.f32 %v12500_v20, %v12499_v42 }
 0x3b0   : > { %v18338_v62 = vadd.f32 %v12501_v61, %v18153_v10 }
 0x3b2   : > { %v12502_v47 = vpop.f32.mrb[88].mxu1 }
 0x3b3   : > { %v12503_v30 = vpop.f32.mrb[89].mxu1 }
 0x3b4   : > { %v12504_v45 = vadd.f32 %v12503_v30, %v12502_v47  ;;  %v12505_v15 = vpop.f32.mrb[90].mxu1 }
 0x3b5   : > { %v12506_v46 = vpop.f32.mrb[91].mxu1 }
 0x3b6   : > { %v18344_v25 = vadd.f32 %v12504_v45, %v18162_v24  ;;  %v12507_v48 = vadd.f32 %v12506_v46, %v12505_v15 }
 0x3b8   : > { %v18347_v35 = vadd.f32 %v12507_v48, %v18173_v39 }
 0x3ba   : > { %v12508_v23 = vpop.f32.mrb[92].mxu1 }
 0x3bb   : > { %v12509_v10 = vpop.f32.mrb[93].mxu1 }
 0x3bc   : > { %v12510_v56 = vadd.f32 %v12509_v10, %v12508_v23  ;;  %v12511_v28 = vpop.f32.mrb[94].mxu1 }
 0x3bd   : > { %v12512_v52 = vpop.f32.mrb[95].mxu1 }
 0x3be   : > { %v18350_v32 = vadd.f32 %v12510_v56, %v18182_v54  ;;  %v12513_v51 = vadd.f32 %v12512_v52, %v12511_v28  ;;  %v18364_v54 = vld [vmem:[%s19544_s3 + $0x188] ss:$12 sps:$4 sm:$0xff]  }
 0x3bf   : > { %12706 = vmatprep.subr.bf16.mxu0 %v18364_v54 }
 0x3c0   : > { %v18353_v14 = vadd.f32 %v12513_v51, %v18193_v1 }
 0x3c2   : > { %v12530_v59 = vpop.f32.mrb[96].mxu1 }
 0x3c3   : > { %v12531_v29 = vpop.f32.mrb[97].mxu1 }
 0x3c4   : > { %v12532_v24 = vadd.f32 %v12531_v29, %v12530_v59  ;;  %v12533_v31 = vpop.f32.mrb[98].mxu1 }
 0x3c5   : > { %v12534_v38 = vpop.f32.mrb[99].mxu1 }
 0x3c6   : > { %v12535_v4 = vadd.f32 %v12534_v38, %v12533_v31  ;;  %v18356_v39 = vadd.f32 %v12532_v24, %v18202_v19 }
 0x3c8   : > { %v18359_v2 = vadd.f32 %v12535_v4, %v18209_v57 }
 0x3ca   : > { %v12536_v36 = vpop.f32.mrb[100].mxu1 }
 0x3cb   : > { %v12537_v41 = vpop.f32.mrb[101].mxu1 }
 0x3cc   : > { %v12538_v1 = vadd.f32 %v12537_v41, %v12536_v36  ;;  %v12539_v11 = vpop.f32.mrb[102].mxu1 }
 0x3cd   : > { %v12540_v37 = vpop.f32.mrb[103].mxu1 }
 0x3ce   : > { %v12541_v60 = vadd.f32 %v12540_v37, %v12539_v11  ;;  %v8181_v44 = vadd.f32 %v12538_v1, %v18227_v6 }
 0x3d0   : > { %v8184_v19 = vadd.f32 %v12541_v60, %v18236_v33 }
 0x3d2   : > { %v12542_v50 = vpop.f32.mrb[104].mxu1 }
 0x3d3   : > { %v12543_v57 = vpop.f32.mrb[105].mxu1 }
 0x3d4   : > { %v12544_v16 = vadd.f32 %v12543_v57, %v12542_v50  ;;  %v12545_v63 = vpop.f32.mrb[106].mxu1 }
 0x3d5   : > { %v12546_v5 = vpop.f32.mrb[107].mxu1 }
 0x3d6   : > { %v12547_v21 = vadd.f32 %v12546_v5, %v12545_v63  ;;  %v8189_v8 = vadd.f32 %v12544_v16, %v18257_v58 }
 0x3d8   : > { %v8192_v7 = vadd.f32 %v12547_v21, %v18266_v26 }
 0x3da   : > { %v12548_v0 = vpop.f32.mrb[108].mxu1 }
 0x3db   : > { %v12549_v12 = vpop.f32.mrb[109].mxu1 }
 0x3dc   : > { %v12550_v53 = vadd.f32 %v12549_v12, %v12548_v0  ;;  %v12551_v3 = vpop.f32.mrb[110].mxu1 }
 0x3dd   : > { %v12552_v27 = vpop.f32.mrb[111].mxu1 }
 0x3de   : > { %v12553_v34 = vadd.f32 %v12552_v27, %v12551_v3  ;;  %v8197_v6 = vadd.f32 %v12550_v53, %v18287_v13 }
 0x3e0   : > { %v8200_v33 = vadd.f32 %v12553_v34, %v18296_v22 }
 0x3e2   : > { %v12554_v42 = vpop.f32.mrb[112].mxu1 }
 0x3e3   : > { %v12555_v20 = vpop.f32.mrb[113].mxu1 }
 0x3e4   : > { %v12556_v61 = vadd.f32 %v12555_v20, %v12554_v42  ;;  %v12557_v55 = vpop.f32.mrb[114].mxu1 }
 0x3e5   : > { %v12558_v47 = vpop.f32.mrb[115].mxu1 }
 0x3e6   : > { %v12559_v30 = vadd.f32 %v12558_v47, %v12557_v55  ;;  %v8205_v58 = vadd.f32 %v12556_v61, %v18317_v43 }
 0x3e8   : > { %v8208_v26 = vadd.f32 %v12559_v30, %v18326_v49 }
 0x3ea   : > { %v12560_v45 = vpop.f32.mrb[116].mxu1 }
 0x3eb   : > { %v12561_v15 = vpop.f32.mrb[117].mxu1 }
 0x3ec   : > { %v12562_v46 = vadd.f32 %v12561_v15, %v12560_v45  ;;  %v12563_v48 = vpop.f32.mrb[118].mxu1 }
 0x3ed   : > { %v12564_v23 = vpop.f32.mrb[119].mxu1 }
 0x3ee   : > { %v12565_v10 = vadd.f32 %v12564_v23, %v12563_v48  ;;  %v8213_v13 = vadd.f32 %v12562_v46, %v18335_v9 }
 0x3f0   : > { %v8216_v22 = vadd.f32 %v12565_v10, %v18338_v62 }
 0x3f2   : > { %v12566_v56 = vpop.f32.mrb[120].mxu1 }
 0x3f3   : > { %v12567_v28 = vpop.f32.mrb[121].mxu1 }
 0x3f4   : > { %v12568_v52 = vadd.f32 %v12567_v28, %v12566_v56  ;;  %v12569_v51 = vpop.f32.mrb[122].mxu1 }
 0x3f5   : > { %v12570_v59 = vpop.f32.mrb[123].mxu1 }
 0x3f6   : > { %v12571_v29 = vadd.f32 %v12570_v59, %v12569_v51  ;;  %v8221_v43 = vadd.f32 %v12568_v52, %v18344_v25  ;;  %v18396_v51 = vsub.s32 0, %v15903_v18 }
 0x3f8   : > { %v8224_v49 = vadd.f32 %v12571_v29, %v18347_v35  ;;  %19568 = vst [vmem:[#allocation4_spill] sm:$0xff] %v18396_v51 }
 0x3fa   : > { %v12572_v24 = vpop.f32.mrb[124].mxu1 }
 0x3fb   : > { %v12573_v31 = vpop.f32.mrb[125].mxu1 }
 0x3fc   : > { %v12574_v38 = vadd.f32 %v12573_v31, %v12572_v24  ;;  %v12575_v4 = vpop.f32.mrb[126].mxu1 }
 0x3fd   : > { %v12576_v36 = vpop.f32.mrb[127].mxu1 }
 0x3fe   : > { %v12577_v41 = vadd.f32 %v12576_v36, %v12575_v4  ;;  %v8229_v9 = vadd.f32 %v12574_v38, %v18350_v32  ;;  %v14789_v38 = vld [vmem:[%s19543_s2] sm:$0x7] }
 0x3ff   : > { %v18405_v4 = vrot.slane %v14789_v38, %v18396_v51 }
 0x400   : > { %v8232_v62 = vadd.f32 %v12577_v41, %v18353_v14 }
 0x402   : > { %v12692_v1 = vpop.f32.mrb[128].mxu1 }
 0x403   : > { %v8278_v11 = vadd.f32 %v12692_v1, %v8181_v44  ;;  %v8269_v37 = vpop.f32.mrb[129].mxu1 }
 0x404   : > { %v8270_v60 = vadd.f32 %v8269_v37, %v18356_v39  ;;  %v12693_v50 = vpop.f32.mrb[130].mxu1 }
 0x405   : > { %v8281_v57 = vadd.f32 %v12693_v50, %v8184_v19  ;;  %v8272_v25 = vpop.f32.mrb[131].mxu1  ;;  %v8340_v16 = vmax.f32 %v8278_v11, 0.0 }
 0x406   : > { %v8273_v35 = vadd.f32 %v8272_v25, %v18359_v2  ;;  %v8334_v5 = vmax.f32 %v8270_v60, 0.0 }
 0x407   : > { %v8343_v63 = vmax.f32 %v8281_v57, 0.0 }
 0x408   : > { %v8337_v21 = vmax.f32 %v8273_v35, 0.0 }
 0x409   : > { %v18383_v0 = vpack.c.bf16 %v8343_v63, %v8340_v16 }
 0x40a   : > { %v18385_v12 = vpack.c.bf16 %v8337_v21, %v8334_v5  ;;  %v12696_v32 = vpop.f32.mrb[132].mxu1 }
 0x40b   : > { %v8294_v14 = vadd.f32 %v12696_v32, %v8197_v6  ;;  %v8285_v53 = vpop.f32.mrb[133].mxu1 }
 0x40c   : > { %v8286_v44 = vadd.f32 %v8285_v53, %v8189_v8  ;;  %v12697_v3 = vpop.f32.mrb[134].mxu1 }
 0x40d   : > { %v8297_v27 = vadd.f32 %v12697_v3, %v8200_v33  ;;  %v8288_v39 = vpop.f32.mrb[135].mxu1  ;;  %v8352_v19 = vmax.f32 %v8294_v14, 0.0  ;;  %v14549_v3 = vld [vmem:[%s19544_s3 + $0x180] ss:$12 sps:$4 sm:$0xff]  }
 0x40e   : > { %v8289_v34 = vadd.f32 %v8288_v39, %v8192_v7  ;;  %v8346_v20 = vmax.f32 %v8286_v44, 0.0 }
 0x40f   : > { %v8355_v42 = vmax.f32 %v8297_v27, 0.0 }
 0x410   : > { %v8349_v2 = vmax.f32 %v8289_v34, 0.0  ;;  %v14554_v34 = vld [vmem:[%s19544_s3 + $0x19c] ss:$12 sps:$4 sm:$0xff]  }
 0x411   : > { %v18387_v61 = vpack.c.bf16 %v8355_v42, %v8352_v19  ;;  %v14565_v19 = vld [vmem:[%s19544_s3 + $0x1a0] ss:$12 sps:$4 sm:$0xff]  }
 0x412   : > { %v18389_v55 = vpack.c.bf16 %v8349_v2, %v8346_v20  ;;  %v12700_v47 = vpop.f32.mrb[136].mxu1 }
 0x413   : > { %v8310_v30 = vadd.f32 %v12700_v47, %v8213_v13  ;;  %v8301_v45 = vpop.f32.mrb[137].mxu1 }
 0x414   : > { %v8302_v15 = vadd.f32 %v8301_v45, %v8205_v58  ;;  %v12701_v46 = vpop.f32.mrb[138].mxu1  ;;  %v18399_v58 = vsub.s32 1, %v15903_v18  ;;  %v14552_v45 = vld [vmem:[%s19544_s3 + $0x198] ss:$12 sps:$4 sm:$0xff]  }
 0x415   : > { %v8313_v6 = vadd.f32 %v12701_v46, %v8216_v22  ;;  %v8304_v48 = vpop.f32.mrb[139].mxu1  ;;  %v8364_v23 = vmax.f32 %v8310_v30, 0.0 }
 0x416   : > { %v8305_v8 = vadd.f32 %v8304_v48, %v8208_v26  ;;  %v8358_v10 = vmax.f32 %v8302_v15, 0.0  ;;  %19569 = vst [vmem:[#allocation5_spill] sm:$0xff] %v18399_v58  ;;  %v14569_v48 = vld [vmem:[%s19544_s3 + $0x1b8] ss:$12 sps:$4 sm:$0xff]  }
 0x417   : > { %v8367_v33 = vmax.f32 %v8313_v6, 0.0  ;;  %v14557_v6 = vld [vmem:[%s19544_s3 + $0x1b4] ss:$12 sps:$4 sm:$0xff]  }
 0x418   : > { %v8361_v7 = vmax.f32 %v8305_v8, 0.0 }
 0x419   : > { %v18391_v56 = vpack.c.bf16 %v8367_v33, %v8364_v23 }
 0x41a   : > { %v18393_v28 = vpack.c.bf16 %v8361_v7, %v8358_v10  ;;  %v12704_v52 = vpop.f32.mrb[140].mxu1 }
 0x41b   : > { %v8326_v59 = vadd.f32 %v12704_v52, %v8229_v9  ;;  %v8317_v13 = vpop.f32.mrb[141].mxu1  ;;  %v18408_v9 = vrot.slane %v14789_v38, %v18399_v58 }
 0x41c   : > { %v8318_v22 = vadd.f32 %v8317_v13, %v8221_v43  ;;  %v12705_v29 = vpop.f32.mrb[142].mxu1  ;;  %v14560_v13 = vld [vmem:[%s19544_s3 + $0x1cc] ss:$12 sps:$4 sm:$0xff]  }
 0x41d   : > { %v8329_v26 = vadd.f32 %v12705_v29, %v8232_v62  ;;  %v8320_v24 = vpop.f32.mrb[143].mxu1  ;;  %v8376_v36 = vmax.f32 %v8326_v59, 0.0 }
 0x41e   : > { %v8321_v31 = vadd.f32 %v8320_v24, %v8224_v49  ;;  %v8370_v1 = vmax.f32 %v8318_v22, 0.0  ;;  %v14570_v22 = vld [vmem:[%s19544_s3 + $0x1d0] ss:$12 sps:$4 sm:$0xff]  }
 0x41f   : > { %v8379_v41 = vmax.f32 %v8329_v26, 0.0 }
 0x420   : > { %v8373_v11 = vmax.f32 %v8321_v31, 0.0 }
 0x421   : > { %v18410_v37 = vpack.c.bf16 %v8379_v41, %v8376_v36  ;;  %v6992_v43 = vpop.f32.mrb[0].mxu0  ;;  %v14558_v36 = vld [vmem:[%s19544_s3 + $0x1c8] ss:$12 sps:$4 sm:$0xff]  }
 0x422   : > { %v18412_v62 = vpack.c.bf16 %v8373_v11, %v8370_v1  ;;  %v12770_v49 = vadd.f32 %v6992_v43, %v18405_v4  ;;  %v6994_v60 = vpop.f32.mrb[1].mxu0  ;;  %v14563_v11 = vld [vmem:[%s19544_s3 + $0x1e4] ss:$12 sps:$4 sm:$0xff]   ;;  %v14574_v43 = vld [vmem:[%s19544_s3 + $0x1e8] ss:$12 sps:$4 sm:$0xff]  }
 0x423   : > { %v12771_v50 = vadd.f32 %v6994_v60, %v18408_v9  ;;  %v6996_v57 = vpop.f32.mrb[2].mxu0 }
 0x424   : > { %v12772_v25 = vadd.f32 %v6996_v57, %v18405_v4  ;;  %v6998_v35 = vpop.f32.mrb[3].mxu0  ;;  %v8332_v63 = vmax.f32 %v12770_v49, 0.0 }
 0x425   : > { %v12773_v16 = vadd.f32 %v6998_v35, %v18408_v9  ;;  %v8333_v21 = vmax.f32 %v12771_v50, 0.0  ;;  %v14561_v35 = vld [vmem:[%s19544_s3 + $0x1e0] ss:$12 sps:$4 sm:$0xff]  }
 0x426   : > { %v8335_v5 = vmax.f32 %v12772_v25, 0.0 }
 0x427   : > { %v8336_v32 = vmax.f32 %v12773_v16, 0.0 }
 0x428   : > { %v8380_v14 = vpack.c.bf16 %v8335_v5, %v8332_v63  ;;  %v14568_v5 = vld [vmem:[%s19544_s3 + $0x1fc] ss:$12 sps:$4 sm:$0xff]  }
 0x429   : > { %v8381_v53 = vpack.c.bf16 %v8336_v32, %v8333_v21  ;;  %v7002_v44 = vpop.f32.mrb[4].mxu0  ;;  %v14575_v21 = vld [vmem:[%s19544_s3 + $0x200] ss:$12 sps:$4 sm:$0xff]  }
 0x42a   : > { %v12774_v27 = vadd.f32 %v7002_v44, %v18405_v4  ;;  %v7004_v39 = vpop.f32.mrb[5].mxu0 }
 0x42b   : > { %v12775_v42 = vadd.f32 %v7004_v39, %v18408_v9  ;;  %v7006_v20 = vpop.f32.mrb[6].mxu0  ;;  %8933 = vmatprep.mubr.bf16.mxu1 %v8381_v53  ;;  %9159 = vmatprep.mubr.bf16.mxu0 %v8381_v53 }
 0x42c   : > { %v12776_v2 = vadd.f32 %v7006_v20, %v18405_v4  ;;  %v7008_v47 = vpop.f32.mrb[7].mxu0  ;;  %8934 = vmatmul.mubr.bf16.vlgmr.msra.gmra.mrb[144].mxu1 %v8380_v14  ;;  %9160 = vmatmul.mubr.bf16.vlgmr.msra.gmra.mrb[32].mxu0 %v8380_v14  ;;  %v8338_v15 = vmax.f32 %v12774_v27, 0.0  ;;  %v14566_v27 = vld [vmem:[%s19544_s3 + $0x1f8] ss:$12 sps:$4 sm:$0xff]  }
 0x42d   : > { %v12777_v30 = vadd.f32 %v7008_v47, %v18408_v9  ;;  %9015 = vmatpush1.bf16.msra.mxu1 %v14549_v3  ;;  %12707 = vmatpush3.bf16.msra.mxu0 %v18364_v54  ;;  %v8339_v8 = vmax.f32 %v12775_v42, 0.0  ;;  %v14555_v54 = vld [vmem:[%s19544_s3 + $0x1b0] ss:$12 sps:$4 sm:$0xff]   ;;  %v14579_v42 = vld [vmem:[%s19544_s3 + $0x218] ss:$12 sps:$4 sm:$0xff]  }
 0x42e   : > { %v8341_v46 = vmax.f32 %v12776_v2, 0.0  ;;  %9016 = vmatprep.subr.bf16.mxu1 %v14554_v34  ;;  %12708 = vmatprep.subr.bf16.mxu0 %v14565_v19 }
 0x42f   : > { %v8342_v23 = vmax.f32 %v12777_v30, 0.0 }
 0x430   : > { %v8383_v33 = vpack.c.bf16 %v8341_v46, %v8338_v15  ;;  %v14571_v15 = vld [vmem:[%s19544_s3 + $0x210] ss:$12 sps:$4 sm:$0xff]  }
 0x431   : > { %v8384_v10 = vpack.c.bf16 %v8342_v23, %v8339_v8  ;;  %v7012_v7 = vpop.f32.mrb[8].mxu0  ;;  %9017 = vmatpush1.bf16.msra.mxu1 %v14552_v45  ;;  %12709 = vmatpush3.bf16.msra.mxu0 %v14565_v19  ;;  %v14573_v19 = vld [vmem:[%s19544_s3 + $0x214] ss:$12 sps:$4 sm:$0xff]   ;;  %v14580_v8 = vld [vmem:[%s19544_s3 + $0x230] ss:$12 sps:$4 sm:$0xff]  }
 0x432   : > { %v12778_v52 = vadd.f32 %v7012_v7, %v18405_v4  ;;  %v7014_v59 = vpop.f32.mrb[9].mxu0  ;;  %9018 = vmatprep.subr.bf16.mxu1 %v14557_v6  ;;  %12710 = vmatprep.subr.bf16.mxu0 %v14569_v48 }
 0x433   : > { %v12779_v29 = vadd.f32 %v7014_v59, %v18408_v9  ;;  %v7016_v26 = vpop.f32.mrb[10].mxu0  ;;  %8943 = vmatprep.mubr.bf16.mxu1 %v8384_v10  ;;  %9167 = vmatprep.mubr.bf16.mxu0 %v8384_v10 }
 0x434   : > { %v12780_v24 = vadd.f32 %v7016_v26, %v18405_v4  ;;  %v7018_v31 = vpop.f32.mrb[11].mxu0  ;;  %8944 = vmatmul.mubr.bf16.gmra.mrb[148].mxu1 %v8383_v33  ;;  %9168 = vmatmul.mubr.bf16.gmra.mrb[36].mxu0 %v8383_v33  ;;  %v8344_v41 = vmax.f32 %v12778_v52, 0.0  ;;  %v14576_v52 = vld [vmem:[%s19544_s3 + $0x228] ss:$12 sps:$4 sm:$0xff]  }
 0x435   : > { %v12781_v38 = vadd.f32 %v7018_v31, %v18408_v9  ;;  %9019 = vmatpush1.bf16.msra.mxu1 %v14555_v54  ;;  %12711 = vmatpush3.bf16.msra.mxu0 %v14569_v48  ;;  %v8345_v49 = vmax.f32 %v12779_v29, 0.0  ;;  %v14578_v48 = vld [vmem:[%s19544_s3 + $0x22c] ss:$12 sps:$4 sm:$0xff]  }
 0x436   : > { %v8347_v1 = vmax.f32 %v12780_v24, 0.0  ;;  %9020 = vmatprep.subr.bf16.mxu1 %v14560_v13  ;;  %12712 = vmatprep.subr.bf16.mxu0 %v14570_v22 }
 0x437   : > { %v8348_v60 = vmax.f32 %v12781_v38, 0.0 }
 0x438   : > { %v8386_v50 = vpack.c.bf16 %v8347_v1, %v8344_v41 }
 0x439   : > { %v8387_v57 = vpack.c.bf16 %v8348_v60, %v8345_v49  ;;  %v7022_v25 = vpop.f32.mrb[12].mxu0  ;;  %9021 = vmatpush1.bf16.msra.mxu1 %v14558_v36  ;;  %12713 = vmatpush3.bf16.msra.mxu0 %v14570_v22 }
 0x43a   : > { %v12782_v16 = vadd.f32 %v7022_v25, %v18405_v4  ;;  %v7024_v63 = vpop.f32.mrb[13].mxu0  ;;  %9022 = vmatprep.subr.bf16.mxu1 %v14563_v11  ;;  %12714 = vmatprep.subr.bf16.mxu0 %v14574_v43 }
 0x43b   : > { %v12783_v32 = vadd.f32 %v7024_v63, %v18408_v9  ;;  %v7026_v14 = vpop.f32.mrb[14].mxu0  ;;  %8953 = vmatprep.mubr.bf16.mxu1 %v8387_v57  ;;  %9175 = vmatprep.mubr.bf16.mxu0 %v8387_v57 }
 0x43c   : > { %v12784_v53 = vadd.f32 %v7026_v14, %v18405_v4  ;;  %v7028_v44 = vpop.f32.mrb[15].mxu0  ;;  %8954 = vmatmul.mubr.bf16.gmra.mrb[152].mxu1 %v8386_v50  ;;  %9176 = vmatmul.mubr.bf16.gmra.mrb[40].mxu0 %v8386_v50  ;;  %v8350_v39 = vmax.f32 %v12782_v16, 0.0 }
 0x43d   : > { %v12785_v3 = vadd.f32 %v7028_v44, %v18408_v9  ;;  %9023 = vmatpush1.bf16.msra.mxu1 %v14561_v35  ;;  %12715 = vmatpush3.bf16.msra.mxu0 %v14574_v43  ;;  %v8351_v20 = vmax.f32 %v12783_v32, 0.0 }
 0x43e   : > { %v8353_v34 = vmax.f32 %v12784_v53, 0.0  ;;  %9024 = vmatprep.subr.bf16.mxu1 %v14568_v5  ;;  %12716 = vmatprep.subr.bf16.mxu0 %v14575_v21 }
 0x43f   : > { %v8354_v2 = vmax.f32 %v12785_v3, 0.0 }
 0x440   : > { %v8389_v47 = vpack.c.bf16 %v8353_v34, %v8350_v39 }
 0x441   : > { %v8390_v30 = vpack.c.bf16 %v8354_v2, %v8351_v20  ;;  %v7032_v45 = vpop.f32.mrb[16].mxu0  ;;  %9025 = vmatpush1.bf16.msra.mxu1 %v14566_v27  ;;  %12717 = vmatpush3.bf16.msra.mxu0 %v14575_v21 }
 0x442   : > { %v12786_v46 = vadd.f32 %v7032_v45, %v18405_v4  ;;  %v7034_v6 = vpop.f32.mrb[17].mxu0  ;;  %9026 = vmatprep.subr.bf16.mxu1 %v14573_v19  ;;  %12718 = vmatprep.subr.bf16.mxu0 %v14579_v42 }
 0x443   : > { %v12787_v23 = vadd.f32 %v7034_v6, %v18408_v9  ;;  %v7036_v33 = vpop.f32.mrb[18].mxu0  ;;  %8963 = vmatprep.mubr.bf16.mxu1 %v8390_v30  ;;  %9183 = vmatprep.mubr.bf16.mxu0 %v8390_v30 }
 0x444   : > { %v12788_v10 = vadd.f32 %v7036_v33, %v18405_v4  ;;  %v7038_v7 = vpop.f32.mrb[19].mxu0  ;;  %8964 = vmatmul.mubr.bf16.gmra.mrb[156].mxu1 %v8389_v47  ;;  %9184 = vmatmul.mubr.bf16.gmra.mrb[44].mxu0 %v8389_v47  ;;  %v8356_v59 = vmax.f32 %v12786_v46, 0.0 }
 0x445   : > { %v12789_v54 = vadd.f32 %v7038_v7, %v18408_v9  ;;  %9027 = vmatpush1.bf16.msra.mxu1 %v14571_v15  ;;  %12719 = vmatpush3.bf16.msra.mxu0 %v14579_v42  ;;  %v8357_v22 = vmax.f32 %v12787_v23, 0.0 }
 0x446   : > { %v8359_v13 = vmax.f32 %v12788_v10, 0.0  ;;  %9028 = vmatprep.subr.bf16.mxu1 %v14578_v48  ;;  %12720 = vmatprep.subr.bf16.mxu0 %v14580_v8 }
 0x447   : > { %v8360_v29 = vmax.f32 %v12789_v54, 0.0 }
 0x448   : > { %v8392_v26 = vpack.c.bf16 %v8359_v13, %v8356_v59  ;;  %v14587_v59 = vld [vmem:[%s19546_s5 + $0x20] ss:$16 sps:$4 sm:$0xff]   ;;  %v18574_v13 = vld [vmem:[%s19546_s5 + $0x4c] ss:$16 sps:$4 sm:$0xff]  }
 0x449   : > { %v8393_v24 = vpack.c.bf16 %v8360_v29, %v8357_v22  ;;  %v7042_v31 = vpop.f32.mrb[20].mxu0  ;;  %9029 = vmatpush1.bf16.msra.mxu1 %v14576_v52  ;;  %12721 = vmatpush3.bf16.msra.mxu0 %v14580_v8  ;;  %v18560_v52 = vld [vmem:[%s19546_s5 + $0x2c] ss:$16 sps:$4 sm:$0xff]   ;;  %v14593_v22 = vld [vmem:[%s19546_s5 + $0x40] ss:$16 sps:$4 sm:$0xff]  }
 0x44a   : > { %v12790_v38 = vadd.f32 %v7042_v31, %v18405_v4  ;;  %v7044_v36 = vpop.f32.mrb[21].mxu0  ;;  %v18582_v29 = vld [vmem:[%s19546_s5 + $0x48] ss:$16 sps:$4 sm:$0xff]   ;;  %v18598_v31 = vld [vmem:[%s19546_s5 + $0x6c] ss:$16 sps:$4 sm:$0xff]  }
 0x44b   : > { %v12791_v41 = vadd.f32 %v7044_v36, %v18408_v9  ;;  %v7046_v1 = vpop.f32.mrb[22].mxu0  ;;  %8973 = vmatprep.mubr.bf16.mxu1 %v8393_v24  ;;  %9191 = vmatprep.mubr.bf16.mxu0 %v8393_v24  ;;  %v18593_v24 = vld [vmem:[%s19546_s5 + $0x68] ss:$16 sps:$4 sm:$0xff]   ;;  %v18612_v36 = vld [vmem:[%s19546_s5 + $0x8c] ss:$16 sps:$4 sm:$0xff]  }
 0x44c   : > { %v12792_v11 = vadd.f32 %v7046_v1, %v18405_v4  ;;  %v7048_v43 = vpop.f32.mrb[23].mxu0  ;;  %8974 = vmatmul.mubr.bf16.gmra.mrb[160].mxu1 %v8392_v26  ;;  %9192 = vmatmul.mubr.bf16.gmra.mrb[48].mxu0 %v8392_v26  ;;  %v8362_v60 = vmax.f32 %v12790_v38, 0.0  ;;  %v14601_v26 = vld [vmem:[%s19546_s5 + $0x64] ss:$16 sps:$4 sm:$0xff]   ;;  %v14599_v38 = vld [vmem:[%s19546_s5 + $0x60] ss:$16 sps:$4 sm:$0xff]  }
 0x44d   : > { %v12793_v49 = vadd.f32 %v7048_v43, %v18408_v9  ;;  %v8363_v57 = vmax.f32 %v12791_v41, 0.0  ;;  %v14605_v41 = vld [vmem:[%s19546_s5 + $0x80] ss:$16 sps:$4 sm:$0xff]   ;;  %v18620_v1 = vld [vmem:[%s19546_s5 + $0x88] ss:$16 sps:$4 sm:$0xff]  }
 0x44e   : > { %v8365_v50 = vmax.f32 %v12792_v11, 0.0  ;;  %v14613_v11 = vld [vmem:[%s19546_s5 + $0xa4] ss:$16 sps:$4 sm:$0xff]   ;;  %v18631_v43 = vld [vmem:[%s19546_s5 + $0xa8] ss:$16 sps:$4 sm:$0xff]  }
 0x44f   : > { %v8366_v25 = vmax.f32 %v12793_v49, 0.0  ;;  %v18636_v49 = vld [vmem:[%s19546_s5 + $0xac] ss:$16 sps:$4 sm:$0xff]  }
 0x450   : > { %v8395_v35 = vpack.c.bf16 %v8365_v50, %v8362_v60  ;;  %v14611_v60 = vld [vmem:[%s19546_s5 + $0xa0] ss:$16 sps:$4 sm:$0xff]   ;;  %v18650_v50 = vld [vmem:[%s19546_s5 + $0xcc] ss:$16 sps:$4 sm:$0xff]  }
 0x451   : > { %v8396_v16 = vpack.c.bf16 %v8366_v25, %v8363_v57  ;;  %v7052_v63 = vpop.f32.mrb[24].mxu0  ;;  %v14617_v57 = vld [vmem:[%s19546_s5 + $0xc0] ss:$16 sps:$4 sm:$0xff]   ;;  %v18658_v25 = vld [vmem:[%s19546_s5 + $0xc8] ss:$16 sps:$4 sm:$0xff]  }
 0x452   : > { %v12794_v5 = vadd.f32 %v7052_v63, %v18405_v4  ;;  %v7054_v21 = vpop.f32.mrb[25].mxu0  ;;  %v18674_v63 = vld [vmem:[%s19546_s5 + $0xec] ss:$16 sps:$4 sm:$0xff]  }
 0x453   : > { %v12795_v32 = vadd.f32 %v7054_v21, %v18408_v9  ;;  %v7056_v14 = vpop.f32.mrb[26].mxu0  ;;  %8983 = vmatprep.mubr.bf16.mxu1 %v8396_v16  ;;  %9199 = vmatprep.mubr.bf16.mxu0 %v8396_v16  ;;  %v18669_v16 = vld [vmem:[%s19546_s5 + $0xe8] ss:$16 sps:$4 sm:$0xff]   ;;  %v18687_v21 = vld [vmem:[%s19546_s5 + $0x10c] ss:$16 sps:$4 sm:$0xff]  }
 0x454   : > { %v12796_v53 = vadd.f32 %v7056_v14, %v18405_v4  ;;  %v7058_v44 = vpop.f32.mrb[27].mxu0  ;;  %8984 = vmatmul.mubr.bf16.gmra.mrb[164].mxu1 %v8395_v35  ;;  %9200 = vmatmul.mubr.bf16.gmra.mrb[52].mxu0 %v8395_v35  ;;  %v8368_v27 = vmax.f32 %v12794_v5, 0.0  ;;  %v14625_v35 = vld [vmem:[%s19546_s5 + $0xe4] ss:$16 sps:$4 sm:$0xff]   ;;  %v14623_v5 = vld [vmem:[%s19546_s5 + $0xe0] ss:$16 sps:$4 sm:$0xff]  }
 0x455   : > { %v12797_v3 = vadd.f32 %v7058_v44, %v18408_v9  ;;  %v8369_v34 = vmax.f32 %v12795_v32, 0.0  ;;  %v14629_v32 = vld [vmem:[%s19546_s5 + $0x100] ss:$16 sps:$4 sm:$0xff]   ;;  %v18695_v14 = vld [vmem:[%s19546_s5 + $0x108] ss:$16 sps:$4 sm:$0xff]  }
 0x456   : > { %v8371_v39 = vmax.f32 %v12796_v53, 0.0  ;;  %v14637_v53 = vld [vmem:[%s19546_s5 + $0x124] ss:$16 sps:$4 sm:$0xff]   ;;  %v18705_v44 = vld [vmem:[%s19546_s5 + $0x128] ss:$16 sps:$4 sm:$0xff]  }
 0x457   : > { %v8372_v19 = vmax.f32 %v12797_v3, 0.0  ;;  %v18710_v3 = vld [vmem:[%s19546_s5 + $0x12c] ss:$16 sps:$4 sm:$0xff]  }
 0x458   : > { %v8398_v42 = vpack.c.bf16 %v8371_v39, %v8368_v27  ;;  %v14635_v27 = vld [vmem:[%s19546_s5 + $0x120] ss:$16 sps:$4 sm:$0xff]   ;;  %v14643_v39 = vld [vmem:[%s19546_s5 + $0x144] ss:$16 sps:$4 sm:$0xff]  }
 0x459   : > { %v8399_v20 = vpack.c.bf16 %v8372_v19, %v8369_v34  ;;  %v7062_v2 = vpop.f32.mrb[28].mxu0  ;;  %v18723_v34 = vld [vmem:[%s19546_s5 + $0x14c] ss:$16 sps:$4 sm:$0xff]   ;;  %v14641_v19 = vld [vmem:[%s19546_s5 + $0x140] ss:$16 sps:$4 sm:$0xff]  }
 0x45a   : > { %v12798_v47 = vadd.f32 %v7062_v2, %v18405_v4  ;;  %v7064_v30 = vpop.f32.mrb[29].mxu0  ;;  %v18741_v2 = vld [vmem:[%s19546_s5 + $0x168] ss:$16 sps:$4 sm:$0xff]  }
 0x45b   : > { %v12799_v45 = vadd.f32 %v7064_v30, %v18408_v9  ;;  %v7066_v15 = vpop.f32.mrb[30].mxu0  ;;  %8993 = vmatprep.mubr.bf16.mxu1 %v8399_v20  ;;  %9207 = vmatprep.mubr.bf16.mxu0 %v8399_v20  ;;  %v14649_v20 = vld [vmem:[%s19546_s5 + $0x164] ss:$16 sps:$4 sm:$0xff]   ;;  %19570 = vst [vmem:[#allocation6_spill] sm:$0xff] %v18741_v2  ;;  %v14647_v30 = vld [vmem:[%s19546_s5 + $0x160] ss:$16 sps:$4 sm:$0xff]  }
 0x45c   : > { %v12800_v46 = vadd.f32 %v7066_v15, %v18405_v4  ;;  %v7068_v6 = vpop.f32.mrb[31].mxu0  ;;  %8994 = vmatmul.mubr.bf16.gmra.mrb[168].mxu1 %v8398_v42  ;;  %9208 = vmatmul.mubr.bf16.gmra.mrb[56].mxu0 %v8398_v42  ;;  %v8374_v8 = vmax.f32 %v12798_v47, 0.0  ;;  %v14589_v4 = vld [vmem:[%s19546_s5 + $0x24] ss:$16 sps:$4 sm:$0xff]   ;;  %v18731_v42 = vld [vmem:[%s19546_s5 + $0x148] ss:$16 sps:$4 sm:$0xff]  }
 0x45d   : > { %v12801_v48 = vadd.f32 %v7068_v6, %v18408_v9  ;;  %v8375_v33 = vmax.f32 %v12799_v45, 0.0  ;;  %v18555_v9 = vld [vmem:[%s19546_s5 + $0x28] ss:$16 sps:$4 sm:$0xff]   ;;  %v18746_v47 = vld [vmem:[%s19546_s5 + $0x16c] ss:$16 sps:$4 sm:$0xff]  }
 0x45e   : > { %v8377_v23 = vmax.f32 %v12800_v46, 0.0  ;;  %v14655_v45 = vld [vmem:[%s19546_s5 + $0x184] ss:$16 sps:$4 sm:$0xff]   ;;  %v18759_v15 = vld [vmem:[%s19546_s5 + $0x18c] ss:$16 sps:$4 sm:$0xff]  }
 0x45f   : > { %v8378_v10 = vmax.f32 %v12801_v48, 0.0  ;;  %19571 = vst [vmem:[#allocation7_spill] sm:$0xff] %v18759_v15  ;;  %v14653_v46 = vld [vmem:[%s19546_s5 + $0x180] ss:$16 sps:$4 sm:$0xff]   ;;  %v18767_v6 = vld [vmem:[%s19546_s5 + $0x188] ss:$16 sps:$4 sm:$0xff]  }
 0x460   : > { %v8401_v7 = vpack.c.bf16 %v8377_v23, %v8374_v8  ;;  %19572 = vst [vmem:[#allocation8_spill] sm:$0xff] %v18767_v6  ;;  %v14661_v48 = vld [vmem:[%s19546_s5 + $0x1a4] ss:$16 sps:$4 sm:$0xff]   ;;  %v18777_v8 = vld [vmem:[%s19546_s5 + $0x1a8] ss:$16 sps:$4 sm:$0xff]  }
 0x461   : > { %v8402_v54 = vpack.c.bf16 %v8378_v10, %v8375_v33  ;;  %19573 = vst [vmem:[#allocation9_spill] sm:$0xff] %v18777_v8  ;;  %v18782_v23 = vld [vmem:[%s19546_s5 + $0x1ac] ss:$16 sps:$4 sm:$0xff]   ;;  %v14659_v33 = vld [vmem:[%s19546_s5 + $0x1a0] ss:$16 sps:$4 sm:$0xff]  }
 0x462   : > { %19574 = vst [vmem:[#allocation10_spill] sm:$0xff] %v18782_v23  ;;  %v14667_v10 = vld [vmem:[%s19546_s5 + $0x1c4] ss:$16 sps:$4 sm:$0xff]  }
 0x463   : > { %9003 = vmatprep.mubr.bf16.mxu1 %v8402_v54  ;;  %9215 = vmatprep.mubr.bf16.mxu0 %v8402_v54  ;;  %v14665_v54 = vld [vmem:[%s19546_s5 + $0x1c0] ss:$16 sps:$4 sm:$0xff]  }
 0x464   : > { %9004 = vmatmul.mubr.bf16.gmra.mrb[172].mxu1 %v8401_v7  ;;  %9216 = vmatmul.mubr.bf16.gmra.mrb[60].mxu0 %v8401_v7  ;;  %v18795_v7 = vld [vmem:[%s19546_s5 + $0x1cc] ss:$16 sps:$4 sm:$0xff]  }
 0x465   : > { %12722 = vmatprep.mubr.bf16.mxu0 %v18385_v12  ;;  %9046 = vmatprep.mubr.bf16.mxu1 %v19551_v17  ;;  %19575 = vst [vmem:[#allocation11_spill] sm:$0xff] %v18795_v7 }
 0x46c   : > { %9047 = vmatmul.mubr.bf16.vlgmr.msra.gmra.mrb[144].mxu1 %v18385_v12  ;;  %12723 = vmatmul.mubr.bf16.vlgmr.msra.gmra.mrb[64].mxu0 %v18383_v0  ;;  %v18536_v12 = vld [vmem:[%s19546_s5 + $0xc] ss:$16 sps:$4 sm:$0xff]  }
 0x46d   : > { %12726 = vmatprep.mubr.bf16.mxu0 %v18389_v55  ;;  %9056 = vmatprep.mubr.bf16.mxu1 %v19551_v17 }
 0x46e   : > { %10217 = vmatprep.subr.bf16.mxu0 %v18536_v12 }
 0x474   : > { %9057 = vmatmul.mubr.bf16.gmra.mrb[148].mxu1 %v18383_v0  ;;  %12727 = vmatmul.mubr.bf16.gmra.mrb[68].mxu0 %v18387_v61  ;;  %v14583_v0 = vld [vmem:[%s19546_s5 + $0x4] ss:$16 sps:$4 sm:$0xff]  }
 0x475   : > { %12730 = vmatprep.mubr.bf16.mxu0 %v18393_v28  ;;  %9066 = vmatprep.mubr.bf16.mxu1 %v19551_v17 }
 0x476   : > { %9991 = vmatprep.subr.bf16.mxu1 %v14583_v0  ;;  %v18803_v0 = vld [vmem:[%s19546_s5 + $0x1c8] ss:$16 sps:$4 sm:$0xff]  }
 0x477   : > { %19576 = vst [vmem:[#allocation12_spill] sm:$0xff] %v18803_v0 }
 0x47c   : > { %9067 = vmatmul.mubr.bf16.gmra.mrb[152].mxu1 %v18389_v55  ;;  %12731 = vmatmul.mubr.bf16.gmra.mrb[72].mxu0 %v18391_v56  ;;  %v14581_v55 = vld [vmem:[%s19546_s5] ss:$16 sps:$4 sm:$0xff]  }
 0x47d   : > { %12734 = vmatprep.mubr.bf16.mxu0 %v18412_v62  ;;  %9076 = vmatprep.mubr.bf16.mxu1 %v19551_v17 }
 0x47e   : > { %9992 = vmatpush1.bf16.msra.mxu1 %v14581_v55  ;;  %v14673_v55 = vld [vmem:[%s19546_s5 + $0x1e4] ss:$16 sps:$4 sm:$0xff]  }
 0x47f   : > { %9993 = vmatprep.subr.bf16.mxu1 %v14589_v4  ;;  %v18813_v4 = vld [vmem:[%s19546_s5 + $0x1ec] ss:$16 sps:$4 sm:$0xff]  }
 0x480   : > { %19577 = vst [vmem:[#allocation13_spill] sm:$0xff] %v18813_v4 }
 0x482   : > { %9994 = vmatpush1.bf16.msra.mxu1 %v14587_v59  ;;  %v14671_v59 = vld [vmem:[%s19546_s5 + $0x1e0] ss:$16 sps:$4 sm:$0xff]  }
 0x484   : > { %9077 = vmatmul.mubr.bf16.gmra.mrb[156].mxu1 %v18387_v61  ;;  %12735 = vmatmul.mubr.bf16.gmra.mrb[76].mxu0 %v18410_v37  ;;  %v18544_v61 = vld [vmem:[%s19546_s5 + $0x8] ss:$16 sps:$4 sm:$0xff]  }
 0x485   : > { %9086 = vmatprep.mubr.bf16.mxu1 %v19551_v17  ;;  %10218 = vmatpush1.bf16.msra.mxu0 %v18544_v61 }
 0x486   : > { %10219 = vmatprep.subr.bf16.mxu0 %v18560_v52 }
 0x489   : > { %10220 = vmatpush1.bf16.msra.mxu0 %v18555_v9 }
 0x48a   : > { %10221 = vmatprep.subr.bf16.mxu0 %v18574_v13 }
 0x48c   : > { %9087 = vmatmul.mubr.bf16.gmra.mrb[160].mxu1 %v18393_v28  ;;  %v14595_v28 = vld [vmem:[%s19546_s5 + $0x44] ss:$16 sps:$4 sm:$0xff]  }
 0x48d   : > { %9096 = vmatprep.mubr.bf16.mxu1 %v19551_v17  ;;  %9995 = vmatprep.subr.bf16.mxu1 %v14595_v28  ;;  %v18821_v28 = vld [vmem:[%s19546_s5 + $0x1e8] ss:$16 sps:$4 sm:$0xff]  }
 0x48e   : > { %10222 = vmatpush1.bf16.msra.mxu0 %v18582_v29  ;;  %9996 = vmatpush1.bf16.msra.mxu1 %v14593_v22  ;;  %19578 = vst [vmem:[#allocation14_spill] sm:$0xff] %v18821_v28  ;;  %v14679_v22 = vld [vmem:[%s19546_s5 + $0x204] ss:$16 sps:$4 sm:$0xff]  }
 0x48f   : > { %9997 = vmatprep.subr.bf16.mxu1 %v14601_v26  ;;  %10223 = vmatprep.subr.bf16.mxu0 %v18598_v31  ;;  %v14688_v26 = vld [vmem:[%s19546_s5 + $0x20c] ss:$16 sps:$4 sm:$0xff]  }
 0x492   : > { %10224 = vmatpush1.bf16.msra.mxu0 %v18593_v24  ;;  %9998 = vmatpush1.bf16.msra.mxu1 %v14599_v38 }
 0x493   : > { %10225 = vmatprep.subr.bf16.mxu0 %v18612_v36 }
 0x494   : > { %9097 = vmatmul.mubr.bf16.gmra.mrb[164].mxu1 %v18391_v56  ;;  %v14607_v56 = vld [vmem:[%s19546_s5 + $0x84] ss:$16 sps:$4 sm:$0xff]  }
 0x495   : > { %9106 = vmatprep.mubr.bf16.mxu1 %v19551_v17  ;;  %9999 = vmatprep.subr.bf16.mxu1 %v14607_v56 }
 0x496   : > { %10226 = vmatpush1.bf16.msra.mxu0 %v18620_v1  ;;  %10000 = vmatpush1.bf16.msra.mxu1 %v14605_v41 }
 0x497   : > { %10001 = vmatprep.subr.bf16.mxu1 %v14613_v11  ;;  %10227 = vmatprep.subr.bf16.mxu0 %v18636_v49 }
 0x49a   : > { %10228 = vmatpush1.bf16.msra.mxu0 %v18631_v43  ;;  %10002 = vmatpush1.bf16.msra.mxu1 %v14611_v60 }
 0x49b   : > { %10229 = vmatprep.subr.bf16.mxu0 %v18650_v50 }
 0x49c   : > { %9107 = vmatmul.mubr.bf16.gmra.mrb[168].mxu1 %v18412_v62  ;;  %v14619_v62 = vld [vmem:[%s19546_s5 + $0xc4] ss:$16 sps:$4 sm:$0xff]  }
 0x49d   : > { %9116 = vmatprep.mubr.bf16.mxu1 %v19551_v17  ;;  %10003 = vmatprep.subr.bf16.mxu1 %v14619_v62 }
 0x49e   : > { %10230 = vmatpush1.bf16.msra.mxu0 %v18658_v25  ;;  %10004 = vmatpush1.bf16.msra.mxu1 %v14617_v57 }
 0x49f   : > { %10005 = vmatprep.subr.bf16.mxu1 %v14625_v35  ;;  %10231 = vmatprep.subr.bf16.mxu0 %v18674_v63 }
 0x4a2   : > { %10232 = vmatpush1.bf16.msra.mxu0 %v18669_v16  ;;  %10006 = vmatpush1.bf16.msra.mxu1 %v14623_v5 }
 0x4a3   : > { %10233 = vmatprep.subr.bf16.mxu0 %v18687_v21 }
 0x4a4   : > { %9117 = vmatmul.mubr.bf16.gmra.mrb[172].mxu1 %v18410_v37  ;;  %v14631_v37 = vld [vmem:[%s19546_s5 + $0x104] ss:$16 sps:$4 sm:$0xff]  }
 0x4a5   : > { %10007 = vmatprep.subr.bf16.mxu1 %v14631_v37 }
 0x4a6   : > { %10234 = vmatpush1.bf16.msra.mxu0 %v18695_v14  ;;  %10008 = vmatpush1.bf16.msra.mxu1 %v14629_v32 }
 0x4a7   : > { %10009 = vmatprep.subr.bf16.mxu1 %v14637_v53  ;;  %10235 = vmatprep.subr.bf16.mxu0 %v18710_v3 }
 0x4aa   : > { %10236 = vmatpush1.bf16.msra.mxu0 %v18705_v44  ;;  %10010 = vmatpush1.bf16.msra.mxu1 %v14635_v27 }
 0x4ab   : > { %10011 = vmatprep.subr.bf16.mxu1 %v14643_v39  ;;  %10237 = vmatprep.subr.bf16.mxu0 %v18723_v34 }
 0x4ae   : > { %10238 = vmatpush1.bf16.msra.mxu0 %v18731_v42  ;;  %10012 = vmatpush1.bf16.msra.mxu1 %v14641_v19 }
 0x4af   : > { %10013 = vmatprep.subr.bf16.mxu1 %v14649_v20  ;;  %10239 = vmatprep.subr.bf16.mxu0 %v18746_v47 }
 0x4b2   : > { %10240 = vmatpush1.bf16.msra.mxu0 %v18741_v2  ;;  %10014 = vmatpush1.bf16.msra.mxu1 %v14647_v30 }
 0x4b3   : > { %10015 = vmatprep.subr.bf16.mxu1 %v14655_v45  ;;  %10241 = vmatprep.subr.bf16.mxu0 %v18759_v15 }
 0x4b6   : > { %10242 = vmatpush1.bf16.msra.mxu0 %v18767_v6  ;;  %10016 = vmatpush1.bf16.msra.mxu1 %v14653_v46 }
 0x4b7   : > { %10017 = vmatprep.subr.bf16.mxu1 %v14661_v48  ;;  %10243 = vmatprep.subr.bf16.mxu0 %v18782_v23 }
 0x4ba   : > { %10244 = vmatpush1.bf16.msra.mxu0 %v18777_v8  ;;  %10018 = vmatpush1.bf16.msra.mxu1 %v14659_v33 }
 0x4bb   : > { %10019 = vmatprep.subr.bf16.mxu1 %v14667_v10  ;;  %10245 = vmatprep.subr.bf16.mxu0 %v18795_v7 }
 0x4be   : > { %10246 = vmatpush1.bf16.msra.mxu0 %v18803_v0  ;;  %10020 = vmatpush1.bf16.msra.mxu1 %v14665_v54 }
 0x4bf   : > { %10021 = vmatprep.subr.bf16.mxu1 %v14673_v55  ;;  %10247 = vmatprep.subr.bf16.mxu0 %v18813_v4 }
 0x4c2   : > { %10248 = vmatpush1.bf16.msra.mxu0 %v18821_v28  ;;  %10022 = vmatpush1.bf16.msra.mxu1 %v14671_v59 }
 0x4c3   : > { %10104 = vmatprep.subr.bf16.mxu1 %v14679_v22  ;;  %10330 = vmatprep.subr.bf16.mxu0 %v14688_v26 }
 0x4ff   : > { %v12610_v38 = vpop.f32.mrb[32].mxu0 }
 0x500   : > { %v12611_v56 = vpop.f32.mrb[33].mxu0 }
 0x501   : > { %v12612_v41 = vadd.f32 %v12611_v56, %v12610_v38  ;;  %v12613_v11 = vpop.f32.mrb[34].mxu0 }
 0x502   : > { %v12614_v60 = vpop.f32.mrb[35].mxu0 }
 0x503   : > { %v12615_v62 = vadd.f32 %v12614_v60, %v12613_v11 }
 0x507   : > { %v12616_v57 = vpop.f32.mrb[36].mxu0 }
 0x508   : > { %v12617_v35 = vpop.f32.mrb[37].mxu0 }
 0x509   : > { %v12618_v5 = vadd.f32 %v12617_v35, %v12616_v57  ;;  %v12619_v37 = vpop.f32.mrb[38].mxu0 }
 0x50a   : > { %v12620_v32 = vpop.f32.mrb[39].mxu0 }
 0x50b   : > { %v12621_v53 = vadd.f32 %v12620_v32, %v12619_v37 }
 0x50f   : > { %v12622_v27 = vpop.f32.mrb[40].mxu0 }
 0x510   : > { %v12623_v39 = vpop.f32.mrb[41].mxu0 }
 0x511   : > { %v18831_v19 = vadd.f32 %v12623_v39, %v12622_v27  ;;  %v12625_v20 = vpop.f32.mrb[42].mxu0 }
 0x512   : > { %v12626_v30 = vpop.f32.mrb[43].mxu0 }
 0x513   : > { %v18833_v45 = vadd.f32 %v12626_v30, %v12625_v20 }
 0x517   : > { %v12628_v46 = vpop.f32.mrb[44].mxu0 }
 0x518   : > { %v12629_v48 = vpop.f32.mrb[45].mxu0 }
 0x519   : > { %v12630_v33 = vadd.f32 %v12629_v48, %v12628_v46  ;;  %v12631_v10 = vpop.f32.mrb[46].mxu0 }
 0x51a   : > { %v12632_v54 = vpop.f32.mrb[47].mxu0 }
 0x51b   : > { %v18835_v55 = vadd.f32 %v12632_v54, %v12631_v10 }
 0x51f   : > { %v12634_v59 = vpop.f32.mrb[48].mxu0 }
 0x520   : > { %v12635_v22 = vpop.f32.mrb[49].mxu0 }
 0x521   : > { %v18837_v26 = vadd.f32 %v12635_v22, %v12634_v59  ;;  %v12637_v38 = vpop.f32.mrb[50].mxu0  ;;  %v8500_v22 = vld [vmem:[%s19545_s4] sm:$0x7] }
 0x522   : > { %v12638_v56 = vpop.f32.mrb[51].mxu0 }
 0x523   : > { %v18839_v11 = vadd.f32 %v12638_v56, %v12637_v38 }
 0x527   : > { %v12640_v60 = vpop.f32.mrb[52].mxu0 }
 0x528   : > { %v12641_v57 = vpop.f32.mrb[53].mxu0 }
 0x529   : > { %v18841_v35 = vadd.f32 %v12641_v57, %v12640_v60  ;;  %v12643_v37 = vpop.f32.mrb[54].mxu0 }
 0x52a   : > { %v12644_v32 = vpop.f32.mrb[55].mxu0 }
 0x52b   : > { %v18843_v27 = vadd.f32 %v12644_v32, %v12643_v37  ;;  %v18857_v37 = vrot.slane %v8500_v22, %v15944_v40  ;;  %v18860_v32 = vrot.slane %v8500_v22, %v18396_v51 }
 0x52d   : > { %v9173_v40 = vadd.f32 %v12621_v53, %v18857_v37 }
 0x52f   : > { %v12646_v39 = vpop.f32.mrb[56].mxu0 }
 0x530   : > { %v12647_v20 = vpop.f32.mrb[57].mxu0 }
 0x531   : > { %v18845_v30 = vadd.f32 %v12647_v20, %v12646_v39  ;;  %v12649_v46 = vpop.f32.mrb[58].mxu0  ;;  %v18863_v39 = vrot.slane %v8500_v22, %v18399_v58  ;;  %v9170_v20 = vadd.f32 %v12618_v5, %v18857_v37  ;;  %v9165_v22 = vadd.f32 %v12615_v62, %v18857_v37 }
 0x532   : > { %v12650_v48 = vpop.f32.mrb[59].mxu0  ;;  %v9186_v62 = vadd.f32 %v12630_v33, %v18857_v37 }
 0x533   : > { %v18847_v10 = vadd.f32 %v12650_v48, %v12649_v46 }
 0x537   : > { %v12652_v54 = vpop.f32.mrb[60].mxu0 }
 0x538   : > { %v12653_v59 = vpop.f32.mrb[61].mxu0 }
 0x539   : > { %v18852_v38 = vadd.f32 %v12653_v59, %v12652_v54  ;;  %v12655_v56 = vpop.f32.mrb[62].mxu0  ;;  %v9162_v54 = vadd.f32 %v12612_v41, %v18857_v37 }
 0x53a   : > { %v12656_v60 = vpop.f32.mrb[63].mxu0 }
 0x53b   : > { %v18854_v57 = vadd.f32 %v12656_v60, %v12655_v56 }
 0x53f   : > { %v9048_v46 = vpop.f32.mrb[144].mxu1  ;;  %v12724_v48 = vpop.f32.mrb[64].mxu0 }
 0x540   : > { %v12802_v59 = vadd.f32 %v9048_v46, %v18860_v32  ;;  %v9267_v17 = vadd.f32 %v12724_v48, %v9170_v20  ;;  %v9050_v56 = vpop.f32.mrb[145].mxu1  ;;  %v9258_v60 = vpop.f32.mrb[65].mxu0 }
 0x541   : > { %v12803_v18 = vadd.f32 %v9050_v56, %v18863_v39  ;;  %v9259_v51 = vadd.f32 %v9258_v60, %v9162_v54  ;;  %v9052_v28 = vpop.f32.mrb[146].mxu1  ;;  %v12725_v4 = vpop.f32.mrb[66].mxu0 }
 0x542   : > { %v12804_v5 = vadd.f32 %v9052_v28, %v18860_v32  ;;  %v9270_v58 = vadd.f32 %v12725_v4, %v9173_v40  ;;  %v9054_v0 = vpop.f32.mrb[147].mxu1  ;;  %v9261_v7 = vpop.f32.mrb[67].mxu0  ;;  %v9321_v20 = vmax.f32 %v12802_v59, 0.0  ;;  %v9329_v48 = vmax.f32 %v9267_v17, 0.0  ;;  %v14686_v17 = vld [vmem:[%s19546_s5 + $0x208] ss:$16 sps:$4 sm:$0xff]  }
 0x543   : > { %v12805_v41 = vadd.f32 %v9054_v0, %v18863_v39  ;;  %v9262_v46 = vadd.f32 %v9261_v7, %v9165_v22  ;;  %v9322_v53 = vmax.f32 %v12803_v18, 0.0  ;;  %v9323_v6 = vmax.f32 %v9259_v51, 0.0  ;;  %v14677_v18 = vld [vmem:[%s19546_s5 + $0x200] ss:$16 sps:$4 sm:$0xff]   ;;  %v14682_v0 = vld [vmem:[%s19546_s5 + $0x224] ss:$16 sps:$4 sm:$0xff]  }
 0x544   : > { %v9324_v8 = vmax.f32 %v12804_v5, 0.0  ;;  %v9332_v23 = vmax.f32 %v9270_v58, 0.0  ;;  %v9178_v7 = vadd.f32 %v18831_v19, %v18857_v37  ;;  %v14691_v19 = vld [vmem:[%s19546_s5 + $0x22c] ss:$16 sps:$4 sm:$0xff]  }
 0x545   : > { %v9325_v56 = vmax.f32 %v12805_v41, 0.0  ;;  %v9326_v54 = vmax.f32 %v9262_v46, 0.0 }
 0x546   : > { %v9369_v60 = vpack.c.bf16 %v9324_v8, %v9321_v20  ;;  %v18873_v15 = vpack.c.bf16 %v9332_v23, %v9329_v48 }
 0x547   : > { %v9370_v28 = vpack.c.bf16 %v9325_v56, %v9322_v53  ;;  %v18876_v40 = vpack.c.bf16 %v9326_v54, %v9323_v6  ;;  %v9058_v4 = vpop.f32.mrb[148].mxu1  ;;  %v12728_v2 = vpop.f32.mrb[68].mxu0  ;;  %v9189_v6 = vadd.f32 %v18835_v55, %v18857_v37  ;;  %v14680_v56 = vld [vmem:[%s19546_s5 + $0x220] ss:$16 sps:$4 sm:$0xff]   ;;  %v14685_v54 = vld [vmem:[%s19546_s5 + $0x244] ss:$16 sps:$4 sm:$0xff]  }
 0x548   : > { %v12806_v51 = vadd.f32 %v9058_v4, %v18860_v32  ;;  %v9283_v58 = vadd.f32 %v12728_v2, %v9186_v62  ;;  %v9060_v8 = vpop.f32.mrb[149].mxu1  ;;  %v9274_v23 = vpop.f32.mrb[69].mxu0  ;;  %v9181_v2 = vadd.f32 %v18833_v45, %v18857_v37  ;;  %v14689_v45 = vld [vmem:[%s19546_s5 + $0x228] ss:$16 sps:$4 sm:$0xff]  }
 0x549   : > { %v12807_v33 = vadd.f32 %v9060_v8, %v18863_v39  ;;  %v9275_v59 = vadd.f32 %v9274_v23, %v9178_v7  ;;  %v9062_v22 = vpop.f32.mrb[150].mxu1  ;;  %v12729_v5 = vpop.f32.mrb[70].mxu0  ;;  %10023 = vmatprep.mubr.bf16.mxu1 %v9370_v28  ;;  %10249 = vmatprep.mubr.bf16.mxu0 %v9370_v28  ;;  %v14697_v7 = vld [vmem:[%s19546_s5 + $0x24c] ss:$16 sps:$4 sm:$0xff]  }
 0x54a   : > { %v12808_v55 = vadd.f32 %v9062_v22, %v18860_v32  ;;  %v9286_v41 = vadd.f32 %v12729_v5, %v9189_v6  ;;  %v9064_v46 = vpop.f32.mrb[151].mxu1  ;;  %v9277_v20 = vpop.f32.mrb[71].mxu0  ;;  %10024 = vmatmul.mubr.bf16.vlgmr.msra.gmra.mrb[176].mxu1 %v9369_v60  ;;  %10250 = vmatmul.mubr.bf16.vlgmr.msra.gmra.mrb[80].mxu0 %v9369_v60  ;;  %v9327_v62 = vmax.f32 %v12806_v51, 0.0  ;;  %v9341_v28 = vmax.f32 %v9283_v58, 0.0 }
 0x54b   : > { %v12809_v48 = vadd.f32 %v9064_v46, %v18863_v39  ;;  %v9278_v53 = vadd.f32 %v9277_v20, %v9181_v2  ;;  %10105 = vmatpush1.bf16.msra.mxu1 %v14677_v18  ;;  %10331 = vmatpush1.bf16.msra.mxu0 %v14686_v17  ;;  %v9328_v18 = vmax.f32 %v12807_v33, 0.0  ;;  %v9335_v8 = vmax.f32 %v9275_v59, 0.0  ;;  %v14683_v33 = vld [vmem:[%s19546_s5 + $0x240] ss:$16 sps:$4 sm:$0xff]   ;;  %v14695_v59 = vld [vmem:[%s19546_s5 + $0x248] ss:$16 sps:$4 sm:$0xff]  }
 0x54c   : > { %v9330_v60 = vmax.f32 %v12808_v55, 0.0  ;;  %v9344_v4 = vmax.f32 %v9286_v41, 0.0  ;;  %10106 = vmatprep.subr.bf16.mxu1 %v14682_v0  ;;  %10332 = vmatprep.subr.bf16.mxu0 %v14691_v19  ;;  %v9202_v5 = vadd.f32 %v18841_v35, %v18857_v37  ;;  %v9194_v19 = vadd.f32 %v18837_v26, %v18857_v37  ;;  %v14694_v26 = vld [vmem:[%s19546_s5 + $0x264] ss:$16 sps:$4 sm:$0xff]  }
 0x54d   : > { %v9331_v23 = vmax.f32 %v12809_v48, 0.0  ;;  %v9338_v6 = vmax.f32 %v9278_v53, 0.0  ;;  %v9205_v20 = vadd.f32 %v18843_v27, %v18857_v37  ;;  %v14700_v48 = vld [vmem:[%s19546_s5 + $0x26c] ss:$16 sps:$4 sm:$0xff]   ;;  %v9197_v27 = vadd.f32 %v18839_v11, %v18857_v37  ;;  %v14698_v11 = vld [vmem:[%s19546_s5 + $0x268] ss:$16 sps:$4 sm:$0xff]  }
 0x54e   : > { %v9372_v22 = vpack.c.bf16 %v9330_v60, %v9327_v62  ;;  %v18912_v17 = vpack.c.bf16 %v9344_v4, %v9341_v28 }
 0x54f   : > { %v9373_v51 = vpack.c.bf16 %v9331_v23, %v9328_v18  ;;  %v18916_v58 = vpack.c.bf16 %v9338_v6, %v9335_v8  ;;  %v9068_v2 = vpop.f32.mrb[152].mxu1  ;;  %v12732_v0 = vpop.f32.mrb[72].mxu0  ;;  %10107 = vmatpush1.bf16.msra.mxu1 %v14680_v56  ;;  %10333 = vmatpush1.bf16.msra.mxu0 %v14689_v45  ;;  %v14692_v8 = vld [vmem:[%s19546_s5 + $0x260] ss:$16 sps:$4 sm:$0xff]   ;;  %v14706_v23 = vld [vmem:[%s19546_s5 + $0x28c] ss:$16 sps:$4 sm:$0xff]  }
 0x550   : > { %v12810_v35 = vadd.f32 %v9068_v2, %v18860_v32  ;;  %v9299_v55 = vadd.f32 %v12732_v0, %v9202_v5  ;;  %v9070_v41 = vpop.f32.mrb[153].mxu1  ;;  %v9290_v46 = vpop.f32.mrb[73].mxu0  ;;  %10108 = vmatprep.subr.bf16.mxu1 %v14685_v54  ;;  %10334 = vmatprep.subr.bf16.mxu0 %v14697_v7  ;;  %v14703_v2 = vld [vmem:[%s19546_s5 + $0x284] ss:$16 sps:$4 sm:$0xff]  }
 0x551   : > { %v12811_v53 = vadd.f32 %v9070_v41, %v18863_v39  ;;  %v9291_v56 = vadd.f32 %v9290_v46, %v9194_v19  ;;  %v9072_v45 = vpop.f32.mrb[154].mxu1  ;;  %v12733_v62 = vpop.f32.mrb[74].mxu0  ;;  %10033 = vmatprep.mubr.bf16.mxu1 %v9373_v51  ;;  %10259 = vmatprep.mubr.bf16.mxu0 %v9373_v51 }
 0x552   : > { %v12812_v54 = vadd.f32 %v9072_v45, %v18860_v32  ;;  %v9302_v28 = vadd.f32 %v12733_v62, %v9205_v20  ;;  %v9074_v60 = vpop.f32.mrb[155].mxu1  ;;  %v9293_v4 = vpop.f32.mrb[75].mxu0  ;;  %10034 = vmatmul.mubr.bf16.gmra.mrb[180].mxu1 %v9372_v22  ;;  %10260 = vmatmul.mubr.bf16.gmra.mrb[84].mxu0 %v9372_v22  ;;  %v9333_v6 = vmax.f32 %v12810_v35, 0.0  ;;  %v9353_v5 = vmax.f32 %v9299_v55, 0.0 }
 0x553   : > { %v12813_v7 = vadd.f32 %v9074_v60, %v18863_v39  ;;  %v9294_v18 = vadd.f32 %v9293_v4, %v9197_v27  ;;  %10109 = vmatpush1.bf16.msra.mxu1 %v14683_v33  ;;  %10335 = vmatpush1.bf16.msra.mxu0 %v14695_v59  ;;  %v9334_v0 = vmax.f32 %v12811_v53, 0.0  ;;  %v9347_v19 = vmax.f32 %v9291_v56, 0.0  ;;  %v14701_v53 = vld [vmem:[%s19546_s5 + $0x280] ss:$16 sps:$4 sm:$0xff]   ;;  %v14704_v56 = vld [vmem:[%s19546_s5 + $0x288] ss:$16 sps:$4 sm:$0xff]  }
 0x554   : > { %v9336_v22 = vmax.f32 %v12812_v54, 0.0  ;;  %v9356_v51 = vmax.f32 %v9302_v28, 0.0  ;;  %10110 = vmatprep.subr.bf16.mxu1 %v14694_v26  ;;  %10336 = vmatprep.subr.bf16.mxu0 %v14700_v48  ;;  %v9218_v20 = vadd.f32 %v18852_v38, %v18857_v37  ;;  %v9210_v48 = vadd.f32 %v18845_v30, %v18857_v37  ;;  %v14709_v30 = vld [vmem:[%s19546_s5 + $0x2ac] ss:$16 sps:$4 sm:$0xff]   ;;  %v14712_v60 = vld [vmem:[%s19546_s5 + $0x2a4] ss:$16 sps:$4 sm:$0xff]  }
 0x555   : > { %v9337_v33 = vmax.f32 %v12813_v7, 0.0  ;;  %v9350_v59 = vmax.f32 %v9294_v18, 0.0  ;;  %v9221_v28 = vadd.f32 %v18854_v57, %v18857_v37  ;;  %v9213_v57 = vadd.f32 %v18847_v10, %v18857_v37  ;;  %v14710_v10 = vld [vmem:[%s19546_s5 + $0x2a0] ss:$16 sps:$4 sm:$0xff]   ;;  %v14715_v37 = vld [vmem:[%s19546_s5 + $0x2cc] ss:$16 sps:$4 sm:$0xff]  }
 0x556   : > { %v9375_v41 = vpack.c.bf16 %v9336_v22, %v9333_v6  ;;  %v18952_v46 = vpack.c.bf16 %v9356_v51, %v9353_v5 }
 0x557   : > { %v9376_v35 = vpack.c.bf16 %v9337_v33, %v9334_v0  ;;  %v18956_v55 = vpack.c.bf16 %v9350_v59, %v9347_v19  ;;  %v9078_v45 = vpop.f32.mrb[156].mxu1  ;;  %v12736_v26 = vpop.f32.mrb[76].mxu0  ;;  %10111 = vmatpush1.bf16.msra.mxu1 %v14692_v8  ;;  %10337 = vmatpush1.bf16.msra.mxu0 %v14698_v11 }
 0x558   : > { %v12814_v38 = vadd.f32 %v9078_v45, %v18860_v32  ;;  %v9315_v62 = vadd.f32 %v12736_v26, %v9218_v20  ;;  %v9080_v27 = vpop.f32.mrb[157].mxu1  ;;  %v9306_v54 = vpop.f32.mrb[77].mxu0  ;;  %10112 = vmatprep.subr.bf16.mxu1 %v14703_v2  ;;  %10338 = vmatprep.subr.bf16.mxu0 %v14706_v23  ;;  %v14707_v2 = vld [vmem:[%s19546_s5 + $0x2a8] ss:$16 sps:$4 sm:$0xff]  }
 0x559   : > { %v12815_v4 = vadd.f32 %v9080_v27, %v18863_v39  ;;  %v9307_v7 = vadd.f32 %v9306_v54, %v9210_v48  ;;  %v9082_v18 = vpop.f32.mrb[158].mxu1  ;;  %v12737_v8 = vpop.f32.mrb[78].mxu0  ;;  %10043 = vmatprep.mubr.bf16.mxu1 %v9376_v35  ;;  %10269 = vmatprep.mubr.bf16.mxu0 %v9376_v35  ;;  %v14719_v54 = vld [vmem:[%s19546_s5 + $0x2c0] ss:$16 sps:$4 sm:$0xff]  }
 0x55a   : > { %v12816_v11 = vadd.f32 %v9082_v18, %v18860_v32  ;;  %v9318_v23 = vadd.f32 %v12737_v8, %v9221_v28  ;;  %v9084_v6 = vpop.f32.mrb[159].mxu1  ;;  %v9309_v5 = vpop.f32.mrb[79].mxu0  ;;  %10044 = vmatmul.mubr.bf16.gmra.mrb[184].mxu1 %v9375_v41  ;;  %10270 = vmatmul.mubr.bf16.gmra.mrb[88].mxu0 %v9375_v41  ;;  %v9339_v0 = vmax.f32 %v12814_v38, 0.0  ;;  %v9365_v19 = vmax.f32 %v9315_v62, 0.0  ;;  %v14721_v41 = vld [vmem:[%s19546_s5 + $0x2c4] ss:$16 sps:$4 sm:$0xff]  }
 0x55b   : > { %v12817_v22 = vadd.f32 %v9084_v6, %v18863_v39  ;;  %v9310_v51 = vadd.f32 %v9309_v5, %v9213_v57  ;;  %10113 = vmatpush1.bf16.msra.mxu1 %v14701_v53  ;;  %10339 = vmatpush1.bf16.msra.mxu0 %v14704_v56  ;;  %v9340_v20 = vmax.f32 %v12815_v4, 0.0  ;;  %v9359_v35 = vmax.f32 %v9307_v7, 0.0  ;;  %v14713_v62 = vld [vmem:[%s19546_s5 + $0x2c8] ss:$16 sps:$4 sm:$0xff]   ;;  %v14724_v4 = vld [vmem:[%s19546_s5 + $0x2e4] ss:$16 sps:$4 sm:$0xff]  }
 0x55c   : > { %v9342_v33 = vmax.f32 %v12816_v11, 0.0  ;;  %v9368_v59 = vmax.f32 %v9318_v23, 0.0  ;;  %10340 = vmatprep.subr.bf16.mxu0 %v14709_v30  ;;  %10114 = vmatprep.subr.bf16.mxu1 %v14712_v60  ;;  %v14718_v60 = vld [vmem:[%s19546_s5 + $0x2ec] ss:$16 sps:$4 sm:$0xff]   ;;  %v14716_v23 = vld [vmem:[%s19546_s5 + $0x2e8] ss:$16 sps:$4 sm:$0xff]  }
 0x55d   : > { %v9343_v45 = vmax.f32 %v12817_v22, 0.0  ;;  %v9362_v26 = vmax.f32 %v9310_v51, 0.0  ;;  %v14722_v6 = vld [vmem:[%s19546_s5 + $0x2e0] ss:$16 sps:$4 sm:$0xff]  }
 0x55e   : > { %v9378_v48 = vpack.c.bf16 %v9342_v33, %v9339_v0  ;;  %v18992_v53 = vpack.c.bf16 %v9368_v59, %v9365_v19 }
 0x55f   : > { %v9379_v56 = vpack.c.bf16 %v9343_v45, %v9340_v20  ;;  %v18994_v27 = vpack.c.bf16 %v9362_v26, %v9359_v35  ;;  %v9088_v38 = vpop.f32.mrb[160].mxu1  ;;  %10341 = vmatpush1.bf16.msra.mxu0 %v14707_v2  ;;  %10115 = vmatpush1.bf16.msra.mxu1 %v14710_v10 }
 0x560   : > { %v12818_v28 = vadd.f32 %v9088_v38, %v18860_v32  ;;  %v9090_v30 = vpop.f32.mrb[161].mxu1  ;;  %10342 = vmatprep.subr.bf16.mxu0 %v14715_v37  ;;  %10116 = vmatprep.subr.bf16.mxu1 %v14721_v41 }
 0x561   : > { %v12819_v7 = vadd.f32 %v9090_v30, %v18863_v39  ;;  %v9092_v18 = vpop.f32.mrb[162].mxu1  ;;  %10053 = vmatprep.mubr.bf16.mxu1 %v9379_v56  ;;  %10279 = vmatprep.mubr.bf16.mxu0 %v9379_v56 }
 0x562   : > { %v12820_v8 = vadd.f32 %v9092_v18, %v18860_v32  ;;  %v9094_v57 = vpop.f32.mrb[163].mxu1  ;;  %10054 = vmatmul.mubr.bf16.gmra.mrb[188].mxu1 %v9378_v48  ;;  %10280 = vmatmul.mubr.bf16.gmra.mrb[92].mxu0 %v9378_v48  ;;  %v9345_v5 = vmax.f32 %v12818_v28, 0.0 }
 0x563   : > { %v12821_v11 = vadd.f32 %v9094_v57, %v18863_v39  ;;  %10343 = vmatpush1.bf16.msra.mxu0 %v14713_v62  ;;  %10117 = vmatpush1.bf16.msra.mxu1 %v14719_v54  ;;  %v9346_v51 = vmax.f32 %v12819_v7, 0.0  ;;  %v19579_v57 = vmov 0  }
 0x564   : > { %v9348_v22 = vmax.f32 %v12820_v8, 0.0  ;;  %10344 = vmatprep.subr.bf16.mxu0 %v14718_v60  ;;  %10118 = vmatprep.subr.bf16.mxu1 %v14724_v4 }
 0x565   : > { %v9349_v2 = vmax.f32 %v12821_v11, 0.0 }
 0x566   : > { %v9381_v10 = vpack.c.bf16 %v9348_v22, %v9345_v5 }
 0x567   : > { %v9382_v37 = vpack.c.bf16 %v9349_v2, %v9346_v51  ;;  %v9098_v0 = vpop.f32.mrb[164].mxu1  ;;  %10345 = vmatpush1.bf16.msra.mxu0 %v14716_v23  ;;  %10119 = vmatpush1.bf16.msra.mxu1 %v14722_v6 }
 0x568   : > { %v12822_v19 = vadd.f32 %v9098_v0, %v18860_v32  ;;  %v9100_v33 = vpop.f32.mrb[165].mxu1  ;;  %12738 = vmatprep.subr.bf16.mxu1 %v18536_v12 }
 0x569   : > { %v12823_v59 = vadd.f32 %v9100_v33, %v18863_v39  ;;  %v9102_v41 = vpop.f32.mrb[166].mxu1  ;;  %10063 = vmatprep.mubr.bf16.mxu1 %v9382_v37  ;;  %10289 = vmatprep.mubr.bf16.mxu0 %v9382_v37 }
 0x56a   : > { %v12824_v20 = vadd.f32 %v9102_v41, %v18860_v32  ;;  %v9104_v35 = vpop.f32.mrb[167].mxu1  ;;  %10064 = vmatmul.mubr.bf16.gmra.mrb[192].mxu1 %v9381_v10  ;;  %10290 = vmatmul.mubr.bf16.gmra.mrb[96].mxu0 %v9381_v10  ;;  %v9351_v26 = vmax.f32 %v12822_v19, 0.0 }
 0x56b   : > { %v12825_v45 = vadd.f32 %v9104_v35, %v18863_v39  ;;  %v9352_v56 = vmax.f32 %v12823_v59, 0.0 }
 0x56c   : > { %v9354_v48 = vmax.f32 %v12824_v20, 0.0 }
 0x56d   : > { %v9355_v38 = vmax.f32 %v12825_v45, 0.0 }
 0x56e   : > { %v9384_v62 = vpack.c.bf16 %v9354_v48, %v9351_v26 }
 0x56f   : > { %v9385_v54 = vpack.c.bf16 %v9355_v38, %v9352_v56  ;;  %v9108_v28 = vpop.f32.mrb[168].mxu1 }
 0x570   : > { %v12826_v12 = vadd.f32 %v9108_v28, %v18860_v32  ;;  %v9110_v30 = vpop.f32.mrb[169].mxu1 }
 0x571   : > { %v12827_v60 = vadd.f32 %v9110_v30, %v18863_v39  ;;  %v9112_v4 = vpop.f32.mrb[170].mxu1  ;;  %10073 = vmatprep.mubr.bf16.mxu1 %v9385_v54  ;;  %10299 = vmatprep.mubr.bf16.mxu0 %v9385_v54 }
 0x572   : > { %v12828_v7 = vadd.f32 %v9112_v4, %v18860_v32  ;;  %v9114_v18 = vpop.f32.mrb[171].mxu1  ;;  %10074 = vmatmul.mubr.bf16.gmra.mrb[196].mxu1 %v9384_v62  ;;  %10300 = vmatmul.mubr.bf16.gmra.mrb[100].mxu0 %v9384_v62  ;;  %v9357_v11 = vmax.f32 %v12826_v12, 0.0  ;;  %v19592_v62 = vld [vmem:[#allocation5_spill] sm:$0xff] }
 0x573   : > { %v12829_v8 = vadd.f32 %v9114_v18, %v18863_v39  ;;  %10362 = vmatprep.mubr.bf16.mxu0 %v19579_v57  ;;  %v9358_v6 = vmax.f32 %v12827_v60, 0.0 }
 0x574   : > { %v9360_v23 = vmax.f32 %v12828_v7, 0.0 }
 0x575   : > { %v9361_v5 = vmax.f32 %v12829_v8, 0.0 }
 0x576   : > { %v19028_v22 = vpack.c.bf16 %v9360_v23, %v9357_v11 }
 0x577   : > { %v19030_v51 = vpack.c.bf16 %v9361_v5, %v9358_v6  ;;  %v9118_v2 = vpop.f32.mrb[172].mxu1 }
 0x578   : > { %v12830_v10 = vadd.f32 %v9118_v2, %v18860_v32  ;;  %v9120_v37 = vpop.f32.mrb[173].mxu1 }
 0x579   : > { %v12831_v0 = vadd.f32 %v9120_v37, %v18863_v39  ;;  %v9122_v19 = vpop.f32.mrb[174].mxu1  ;;  %10083 = vmatprep.mubr.bf16.mxu1 %v19030_v51 }
 0x57a   : > { %v12832_v33 = vadd.f32 %v9122_v19, %v18860_v32  ;;  %v9124_v59 = vpop.f32.mrb[175].mxu1  ;;  %10084 = vmatmul.mubr.bf16.gmra.mrb[200].mxu1 %v19028_v22  ;;  %10363 = vmatmul.mubr.bf16.vlgmr.msra.gmra.mrb[80].mxu0 %v18876_v40  ;;  %v9363_v20 = vmax.f32 %v12830_v10, 0.0 }
 0x57b   : > { %v12833_v41 = vadd.f32 %v9124_v59, %v18863_v39  ;;  %10372 = vmatprep.mubr.bf16.mxu0 %v19579_v57  ;;  %v9364_v45 = vmax.f32 %v12831_v0, 0.0 }
 0x57c   : > { %v9366_v35 = vmax.f32 %v12832_v33, 0.0 }
 0x57d   : > { %v9367_v26 = vmax.f32 %v12833_v41, 0.0 }
 0x57e   : > { %v19040_v48 = vpack.c.bf16 %v9366_v35, %v9363_v20 }
 0x57f   : > { %v19042_v56 = vpack.c.bf16 %v9367_v26, %v9364_v45 }
 0x581   : > { %10093 = vmatprep.mubr.bf16.mxu1 %v19042_v56 }
 0x582   : > { %10094 = vmatmul.mubr.bf16.gmra.mrb[204].mxu1 %v19040_v48  ;;  %10373 = vmatmul.mubr.bf16.gmra.mrb[84].mxu0 %v18873_v15 }
 0x583   : > { %10136 = vmatprep.mubr.bf16.mxu1 %v19579_v57  ;;  %10382 = vmatprep.mubr.bf16.mxu0 %v19579_v57 }
 0x58a   : > { %10137 = vmatmul.mubr.bf16.vlgmr.msra.gmra.mrb[176].mxu1 %v18876_v40  ;;  %10383 = vmatmul.mubr.bf16.gmra.mrb[88].mxu0 %v18916_v58 }
 0x58b   : > { %12754 = vmatpush1.bf16.msra.mxu1 %v18544_v61  ;;  %10146 = vmatprep.mubr.bf16.mxu1 %v19579_v57  ;;  %v19580_v61 = vld [vmem:[#allocation6_spill] sm:$0xff] }
 0x58c   : > { %12739 = vmatprep.subr.bf16.mxu1 %v18560_v52  ;;  %10392 = vmatprep.mubr.bf16.mxu0 %v19579_v57  ;;  %v19582_v52 = vld [vmem:[#allocation8_spill] sm:$0xff] }
 0x58f   : > { %12755 = vmatpush1.bf16.msra.mxu1 %v18555_v9  ;;  %v19581_v9 = vld [vmem:[#allocation7_spill] sm:$0xff] }
 0x590   : > { %12740 = vmatprep.subr.bf16.mxu1 %v18574_v13  ;;  %v19583_v13 = vld [vmem:[#allocation10_spill] sm:$0xff] }
 0x592   : > { %10147 = vmatmul.mubr.bf16.gmra.mrb[180].mxu1 %v18873_v15  ;;  %10393 = vmatmul.mubr.bf16.gmra.mrb[92].mxu0 %v18912_v17 }
 0x593   : > { %12756 = vmatpush1.bf16.msra.mxu1 %v18582_v29  ;;  %10156 = vmatprep.mubr.bf16.mxu1 %v19579_v57  ;;  %v19584_v29 = vld [vmem:[#allocation9_spill] sm:$0xff] }
 0x594   : > { %12741 = vmatprep.subr.bf16.mxu1 %v18598_v31  ;;  %10402 = vmatprep.mubr.bf16.mxu0 %v19579_v57  ;;  %v19586_v31 = vld [vmem:[#allocation12_spill] sm:$0xff] }
 0x597   : > { %12757 = vmatpush1.bf16.msra.mxu1 %v18593_v24  ;;  %v19585_v24 = vld [vmem:[#allocation11_spill] sm:$0xff] }
 0x598   : > { %12742 = vmatprep.subr.bf16.mxu1 %v18612_v36  ;;  %v19587_v36 = vld [vmem:[#allocation13_spill] sm:$0xff] }
 0x59a   : > { %10157 = vmatmul.mubr.bf16.gmra.mrb[184].mxu1 %v18916_v58  ;;  %10403 = vmatmul.mubr.bf16.gmra.mrb[96].mxu0 %v18956_v55 }
 0x59b   : > { %12758 = vmatpush1.bf16.msra.mxu1 %v18620_v1  ;;  %10166 = vmatprep.mubr.bf16.mxu1 %v19579_v57  ;;  %v19588_v1 = vld [vmem:[#allocation14_spill] sm:$0xff] }
 0x59c   : > { %12743 = vmatprep.subr.bf16.mxu1 %v18636_v49  ;;  %10412 = vmatprep.mubr.bf16.mxu0 %v19579_v57  ;;  %v19589_v49 = vld [vmem:[#allocation2_spill] sm:$0xff] }
 0x59f   : > { %12759 = vmatpush1.bf16.msra.mxu1 %v18631_v43  ;;  %v9489_v43 = vld [vmem:[%s19547_s6] sm:$0xf] }
 0x5a0   : > { %12744 = vmatprep.subr.bf16.mxu1 %v18650_v50  ;;  %v9505_v50 = vsub.s32 3, %v19589_v49  ;;  %v19150_v54 = vrot.slane %v9489_v43, %v19592_v62 }
 0x5a2   : > { %10167 = vmatmul.mubr.bf16.gmra.mrb[188].mxu1 %v18912_v17  ;;  %10413 = vmatmul.mubr.bf16.gmra.mrb[100].mxu0 %v18952_v46 }
 0x5a3   : > { %12760 = vmatpush1.bf16.msra.mxu1 %v18658_v25  ;;  %10176 = vmatprep.mubr.bf16.mxu1 %v19579_v57  ;;  %v19590_v25 = vld [vmem:[#allocation3_spill] sm:$0xff] }
 0x5a4   : > { %12745 = vmatprep.subr.bf16.mxu1 %v18674_v63  ;;  %10422 = vmatprep.mubr.bf16.mxu0 %v19579_v57  ;;  %v19118_v63 = vrot.slane %v9489_v43, %v9505_v50 }
 0x5a7   : > { %12761 = vmatpush1.bf16.msra.mxu1 %v18669_v16  ;;  %v19116_v16 = vrot.slane %v9489_v43, %v19590_v25 }
 0x5a8   : > { %12746 = vmatprep.subr.bf16.mxu1 %v18687_v21 }
 0x5aa   : > { %10177 = vmatmul.mubr.bf16.gmra.mrb[192].mxu1 %v18956_v55  ;;  %10423 = vmatmul.mubr.bf16.gmra.mrb[104].mxu0 %v18994_v27 }
 0x5ab   : > { %12762 = vmatpush1.bf16.msra.mxu1 %v18695_v14  ;;  %10186 = vmatprep.mubr.bf16.mxu1 %v19579_v57 }
 0x5ac   : > { %12747 = vmatprep.subr.bf16.mxu1 %v18710_v3  ;;  %10432 = vmatprep.mubr.bf16.mxu0 %v19579_v57 }
 0x5af   : > { %12763 = vmatpush1.bf16.msra.mxu1 %v18705_v44 }
 0x5b0   : > { %12748 = vmatprep.subr.bf16.mxu1 %v18723_v34 }
 0x5b2   : > { %10187 = vmatmul.mubr.bf16.gmra.mrb[196].mxu1 %v18952_v46  ;;  %10433 = vmatmul.mubr.bf16.gmra.mrb[108].mxu0 %v18992_v53 }
 0x5b3   : > { %12764 = vmatpush1.bf16.msra.mxu1 %v18731_v42  ;;  %10196 = vmatprep.mubr.bf16.mxu1 %v19579_v57 }
 0x5b4   : > { %12749 = vmatprep.subr.bf16.mxu1 %v18746_v47 }
 0x5b7   : > { %12765 = vmatpush1.bf16.msra.mxu1 %v19580_v61 }
 0x5b8   : > { %12750 = vmatprep.subr.bf16.mxu1 %v19581_v9 }
 0x5ba   : > { %10197 = vmatmul.mubr.bf16.gmra.mrb[200].mxu1 %v18994_v27  ;;  %v19591_v27 = vld [vmem:[#allocation4_spill] sm:$0xff] }
 0x5bb   : > { %12766 = vmatpush1.bf16.msra.mxu1 %v19582_v52  ;;  %10206 = vmatprep.mubr.bf16.mxu1 %v19579_v57  ;;  %v19145_v38 = vrot.slane %v9489_v43, %v19591_v27 }
 0x5bc   : > { %12751 = vmatprep.subr.bf16.mxu1 %v19583_v13 }
 0x5bf   : > { %12767 = vmatpush1.bf16.msra.mxu1 %v19584_v29 }
 0x5c0   : > { %12752 = vmatprep.subr.bf16.mxu1 %v19585_v24 }
 0x5c2   : > { %10207 = vmatmul.mubr.bf16.gmra.mrb[204].mxu1 %v18992_v53 }
 0x5c3   : > { %12768 = vmatpush1.bf16.msra.mxu1 %v19586_v31  ;;  %10309 = vmatprep.mubr.bf16.mxu1 %v19030_v51 }
 0x5c4   : > { %12753 = vmatprep.subr.bf16.mxu1 %v19587_v36 }
 0x5c7   : > { %12769 = vmatpush1.bf16.msra.mxu1 %v19588_v1 }
 0x5ca   : > { %10310 = vmatmul.mubr.bf16.vlgmr.msra.gmra.mrb[208].mxu1 %v19028_v22 }
 0x5cb   : > { %10319 = vmatprep.mubr.bf16.mxu1 %v19042_v56 }
 0x5d2   : > { %10320 = vmatmul.mubr.bf16.gmra.mrb[212].mxu1 %v19040_v48 }
 0x64d   : > { %v10364_v21 = vpop.f32.mrb[80].mxu0 }
 0x64e   : > { %v12866_v14 = vadd.f32 %v10364_v21, %v19116_v16  ;;  %v10366_v44 = vpop.f32.mrb[81].mxu0 }
 0x64f   : > { %v12867_v3 = vadd.f32 %v10366_v44, %v19118_v63  ;;  %v10368_v34 = vpop.f32.mrb[82].mxu0 }
 0x650   : > { %10653 = vst [vmem:[%s19123_s28 + $0x8] sm:$0xff] %v12866_v14  ;;  %v12868_v42 = vadd.f32 %v10368_v34, %v19116_v16  ;;  %v10370_v47 = vpop.f32.mrb[83].mxu0 }
 0x651   : > { %10655 = vst.msk [vmem:[%s19123_s28 + $0x10] sm:$0xff] %vm10654_vm0, %v12867_v3  ;;  %v12869_v15 = vadd.f32 %v10370_v47, %v19118_v63 }
 0x652   : > { %10657 = vst [vmem:[%s19123_s28 + $0x20] sm:$0xff] %v12868_v42 }
 0x653   : > { %10658 = vst.msk [vmem:[%s19123_s28 + $0x28] sm:$0xff] %vm10654_vm0, %v12869_v15 }
 0x655   : > { %v10374_v32 = vpop.f32.mrb[84].mxu0 }
 0x656   : > { %v12870_v39 = vadd.f32 %v10374_v32, %v19116_v16  ;;  %v10376_v40 = vpop.f32.mrb[85].mxu0 }
 0x657   : > { %v12871_v17 = vadd.f32 %v10376_v40, %v19118_v63  ;;  %v10378_v58 = vpop.f32.mrb[86].mxu0 }
 0x658   : > { %10660 = vst [vmem:[%s19123_s28 + $0x38] sm:$0xff] %v12870_v39  ;;  %v12872_v46 = vadd.f32 %v10378_v58, %v19116_v16  ;;  %v10380_v55 = vpop.f32.mrb[87].mxu0 }
 0x659   : > { %10661 = vst.msk [vmem:[%s19123_s28 + $0x40] sm:$0xff] %vm10654_vm0, %v12871_v17  ;;  %v12873_v53 = vadd.f32 %v10380_v55, %v19118_v63 }
 0x65a   : > { %10663 = vst [vmem:[%s19123_s28 + $0x50] sm:$0xff] %v12872_v46 }
 0x65b   : > { %10664 = vst.msk [vmem:[%s19123_s28 + $0x58] sm:$0xff] %vm10654_vm0, %v12873_v53 }
 0x65d   : > { %v10138_v28 = vpop.f32.mrb[176].mxu1  ;;  %v10384_v12 = vpop.f32.mrb[88].mxu0 }
 0x65e   : > { %v19160_v30 = vadd.f32 %v10138_v28, %v19145_v38  ;;  %v12874_v60 = vadd.f32 %v10384_v12, %v19116_v16  ;;  %v10140_v4 = vpop.f32.mrb[177].mxu1  ;;  %v10386_v7 = vpop.f32.mrb[89].mxu0 }
 0x65f   : > { %v12835_v18 = vadd.f32 %v10140_v4, %v19150_v54  ;;  %v12875_v8 = vadd.f32 %v10386_v7, %v19118_v63  ;;  %v10142_v57 = vpop.f32.mrb[178].mxu1  ;;  %v10388_v11 = vpop.f32.mrb[90].mxu0 }
 0x660   : > { %10444 = vst.msk [vmem:[%s19157_s15] sm:$0xff] %vm10443_vm1, %v19160_v30  ;;  %10666 = vst [vmem:[%s19123_s28 + $0x68] sm:$0xff] %v12874_v60  ;;  %v19170_v23 = vadd.f32 %v10142_v57, %v19145_v38  ;;  %v12876_v6 = vadd.f32 %v10388_v11, %v19116_v16  ;;  %v10144_v5 = vpop.f32.mrb[179].mxu1  ;;  %v10390_v22 = vpop.f32.mrb[91].mxu0  ;;  %v10460_v51 = vsel %vm10443_vm1, %v19160_v30, -inf }
 0x661   : > { %10652 = vst [vmem:[%s19123_s28] sm:$0xff] %v12835_v18  ;;  %10667 = vst.msk [vmem:[%s19123_s28 + $0x70] sm:$0xff] %vm10654_vm0, %v12875_v8  ;;  %v12837_v2 = vadd.f32 %v10144_v5, %v19150_v54  ;;  %v12877_v10 = vadd.f32 %v10390_v22, %v19118_v63  ;;  %10461 = vmax.xlane.f32.xlu0 %v10460_v51 }
 0x662   : > { %10445 = vst.msk [vmem:[%s19157_s15 + $0x8] sm:$0xff] %vm10443_vm1, %v19170_v23  ;;  %10669 = vst [vmem:[%s19123_s28 + $0x80] sm:$0xff] %v12876_v6  ;;  %v10463_v37 = vsel %vm10443_vm1, %v19170_v23, -inf }
 0x663   : > { %10656 = vst [vmem:[%s19123_s28 + $0x18] sm:$0xff] %v12837_v2  ;;  %10670 = vst.msk [vmem:[%s19123_s28 + $0x88] sm:$0xff] %vm10654_vm0, %v12877_v10 }
 0x665   : > { %v10148_v0 = vpop.f32.mrb[180].mxu1  ;;  %v10394_v19 = vpop.f32.mrb[92].mxu0  ;;  %10464 = vmax.xlane.f32.xlu0 %v10463_v37 }
 0x666   : > { %v19190_v33 = vadd.f32 %v10148_v0, %v19145_v38  ;;  %v12878_v59 = vadd.f32 %v10394_v19, %v19116_v16  ;;  %v10150_v41 = vpop.f32.mrb[181].mxu1  ;;  %v10396_v20 = vpop.f32.mrb[93].mxu0 }
 0x667   : > { %v12839_v35 = vadd.f32 %v10150_v41, %v19150_v54  ;;  %v12879_v45 = vadd.f32 %v10396_v20, %v19118_v63  ;;  %v10152_v26 = vpop.f32.mrb[182].mxu1  ;;  %v10398_v48 = vpop.f32.mrb[94].mxu0 }
 0x668   : > { %10446 = vst.msk [vmem:[%s19157_s15 + $0x10] sm:$0xff] %vm10443_vm1, %v19190_v33  ;;  %10672 = vst [vmem:[%s19123_s28 + $0x98] sm:$0xff] %v12878_v59  ;;  %v19200_v56 = vadd.f32 %v10152_v26, %v19145_v38  ;;  %v12880_v61 = vadd.f32 %v10398_v48, %v19116_v16  ;;  %v10154_v9 = vpop.f32.mrb[183].mxu1  ;;  %v10400_v52 = vpop.f32.mrb[95].mxu0  ;;  %v10466_v13 = vsel %vm10443_vm1, %v19190_v33, -inf }
 0x669   : > { %10659 = vst [vmem:[%s19123_s28 + $0x30] sm:$0xff] %v12839_v35  ;;  %10673 = vst.msk [vmem:[%s19123_s28 + $0xa0] sm:$0xff] %vm10654_vm0, %v12879_v45  ;;  %v12841_v29 = vadd.f32 %v10154_v9, %v19150_v54  ;;  %v12881_v24 = vadd.f32 %v10400_v52, %v19118_v63  ;;  %10467 = vmax.xlane.f32.xlu1 %v10466_v13 }
 0x66a   : > { %10447 = vst.msk [vmem:[%s19157_s15 + $0x18] sm:$0xff] %vm10443_vm1, %v19200_v56  ;;  %10675 = vst [vmem:[%s19123_s28 + $0xb0] sm:$0xff] %v12880_v61  ;;  %v10469_v31 = vsel %vm10443_vm1, %v19200_v56, -inf }
 0x66b   : > { %10662 = vst [vmem:[%s19123_s28 + $0x48] sm:$0xff] %v12841_v29  ;;  %10676 = vst.msk [vmem:[%s19123_s28 + $0xb8] sm:$0xff] %vm10654_vm0, %v12881_v24 }
 0x66d   : > { %v10158_v36 = vpop.f32.mrb[184].mxu1  ;;  %v10404_v1 = vpop.f32.mrb[96].mxu0  ;;  %10470 = vmax.xlane.f32.xlu1 %v10469_v31 }
 0x66e   : > { %v19220_v43 = vadd.f32 %v10158_v36, %v19145_v38  ;;  %v12882_v49 = vadd.f32 %v10404_v1, %v19116_v16  ;;  %v10160_v50 = vpop.f32.mrb[185].mxu1  ;;  %v10406_v25 = vpop.f32.mrb[97].mxu0 }
 0x66f   : > { %v12843_v21 = vadd.f32 %v10160_v50, %v19150_v54  ;;  %v12883_v14 = vadd.f32 %v10406_v25, %v19118_v63  ;;  %v10162_v44 = vpop.f32.mrb[186].mxu1  ;;  %v10408_v3 = vpop.f32.mrb[98].mxu0 }
 0x670   : > { %10448 = vst.msk [vmem:[%s19157_s15 + $0x20] sm:$0xff] %vm10443_vm1, %v19220_v43  ;;  %10678 = vst [vmem:[%s19123_s28 + $0xc8] sm:$0xff] %v12882_v49  ;;  %v19230_v34 = vadd.f32 %v10162_v44, %v19145_v38  ;;  %v12884_v42 = vadd.f32 %v10408_v3, %v19116_v16  ;;  %v10164_v47 = vpop.f32.mrb[187].mxu1  ;;  %v10410_v15 = vpop.f32.mrb[99].mxu0  ;;  %v10472_v32 = vsel %vm10443_vm1, %v19220_v43, -inf }
 0x671   : > { %10665 = vst [vmem:[%s19123_s28 + $0x60] sm:$0xff] %v12843_v21  ;;  %10679 = vst.msk [vmem:[%s19123_s28 + $0xd0] sm:$0xff] %vm10654_vm0, %v12883_v14  ;;  %v12845_v39 = vadd.f32 %v10164_v47, %v19150_v54  ;;  %v12885_v40 = vadd.f32 %v10410_v15, %v19118_v63  ;;  %10473 = vmax.xlane.f32.xlu0 %v10472_v32 }
 0x672   : > { %10449 = vst.msk [vmem:[%s19157_s15 + $0x28] sm:$0xff] %vm10443_vm1, %v19230_v34  ;;  %10681 = vst [vmem:[%s19123_s28 + $0xe0] sm:$0xff] %v12884_v42  ;;  %v10475_v17 = vsel %vm10443_vm1, %v19230_v34, -inf }
 0x673   : > { %10668 = vst [vmem:[%s19123_s28 + $0x78] sm:$0xff] %v12845_v39  ;;  %10682 = vst.msk [vmem:[%s19123_s28 + $0xe8] sm:$0xff] %vm10654_vm0, %v12885_v40  ;;  %10476 = vmax.xlane.f32.xlu1 %v10475_v17 }
 0x675   : > { %v10168_v58 = vpop.f32.mrb[188].mxu1  ;;  %v10414_v46 = vpop.f32.mrb[100].mxu0 }
 0x676   : > { %v19250_v55 = vadd.f32 %v10168_v58, %v19145_v38  ;;  %v12886_v53 = vadd.f32 %v10414_v46, %v19116_v16  ;;  %v10170_v27 = vpop.f32.mrb[189].mxu1  ;;  %v10416_v62 = vpop.f32.mrb[101].mxu0 }
 0x677   : > { %v12847_v28 = vadd.f32 %v10170_v27, %v19150_v54  ;;  %v12887_v12 = vadd.f32 %v10416_v62, %v19118_v63  ;;  %v10172_v60 = vpop.f32.mrb[190].mxu1  ;;  %v10418_v4 = vpop.f32.mrb[102].mxu0 }
 0x678   : > { %10450 = vst.msk [vmem:[%s19157_s15 + $0x30] sm:$0xff] %vm10443_vm1, %v19250_v55  ;;  %10684 = vst [vmem:[%s19123_s28 + $0xf8] sm:$0xff] %v12886_v53  ;;  %v19260_v7 = vadd.f32 %v10172_v60, %v19145_v38  ;;  %v12888_v18 = vadd.f32 %v10418_v4, %v19116_v16  ;;  %v10174_v8 = vpop.f32.mrb[191].mxu1  ;;  %v10420_v57 = vpop.f32.mrb[103].mxu0  ;;  %v10478_v11 = vsel %vm10443_vm1, %v19250_v55, -inf }
 0x679   : > { %10671 = vst [vmem:[%s19123_s28 + $0x90] sm:$0xff] %v12847_v28  ;;  %10685 = vst.msk [vmem:[%s19123_s28 + $0x100] sm:$0xff] %vm10654_vm0, %v12887_v12  ;;  %v12849_v6 = vadd.f32 %v10174_v8, %v19150_v54  ;;  %v12889_v5 = vadd.f32 %v10420_v57, %v19118_v63  ;;  %10479 = vmax.xlane.f32.xlu0 %v10478_v11 }
 0x67a   : > { %10451 = vst.msk [vmem:[%s19157_s15 + $0x38] sm:$0xff] %vm10443_vm1, %v19260_v7  ;;  %10687 = vst [vmem:[%s19123_s28 + $0x110] sm:$0xff] %v12888_v18  ;;  %v10481_v22 = vsel %vm10443_vm1, %v19260_v7, -inf }
 0x67b   : > { %10674 = vst [vmem:[%s19123_s28 + $0xa8] sm:$0xff] %v12849_v6  ;;  %10688 = vst.msk [vmem:[%s19123_s28 + $0x118] sm:$0xff] %vm10654_vm0, %v12889_v5  ;;  %10482 = vmax.xlane.f32.xlu1 %v10481_v22 }
 0x67d   : > { %v10178_v51 = vpop.f32.mrb[192].mxu1  ;;  %v19279_v2 = vpop.f32.mrb[104].mxu0 }
 0x67e   : > { %v19282_v10 = vadd.f32 %v10178_v51, %v19145_v38  ;;  %v10180_v37 = vpop.f32.mrb[193].mxu1  ;;  %v19284_v0 = vpop.f32.mrb[105].mxu0 }
 0x67f   : > { %v12851_v19 = vadd.f32 %v10180_v37, %v19150_v54  ;;  %v10182_v59 = vpop.f32.mrb[194].mxu1  ;;  %v19287_v41 = vpop.f32.mrb[106].mxu0 }
 0x680   : > { %10452 = vst.msk [vmem:[%s19157_s15 + $0x40] sm:$0xff] %vm10443_vm1, %v19282_v10  ;;  %v19293_v20 = vadd.f32 %v10182_v59, %v19145_v38  ;;  %v10184_v35 = vpop.f32.mrb[195].mxu1  ;;  %v19295_v45 = vpop.f32.mrb[107].mxu0  ;;  %v10484_v26 = vsel %vm10443_vm1, %v19282_v10, -inf }
 0x681   : > { %10677 = vst [vmem:[%s19123_s28 + $0xc0] sm:$0xff] %v12851_v19  ;;  %v12853_v48 = vadd.f32 %v10184_v35, %v19150_v54  ;;  %10485 = vmax.xlane.f32.xlu0 %v10484_v26 }
 0x682   : > { %10453 = vst.msk [vmem:[%s19157_s15 + $0x48] sm:$0xff] %vm10443_vm1, %v19293_v20  ;;  %v10487_v61 = vsel %vm10443_vm1, %v19293_v20, -inf }
 0x683   : > { %10680 = vst [vmem:[%s19123_s28 + $0xd8] sm:$0xff] %v12853_v48  ;;  %10488 = vmax.xlane.f32.xlu1 %v10487_v61 }
 0x685   : > { %v10188_v9 = vpop.f32.mrb[196].mxu1  ;;  %v19307_v52 = vpop.f32.mrb[108].mxu0 }
 0x686   : > { %v19310_v13 = vadd.f32 %v10188_v9, %v19145_v38  ;;  %v10190_v29 = vpop.f32.mrb[197].mxu1  ;;  %v19312_v24 = vpop.f32.mrb[109].mxu0 }
 0x687   : > { %v12855_v31 = vadd.f32 %v10190_v29, %v19150_v54  ;;  %v10192_v36 = vpop.f32.mrb[198].mxu1  ;;  %v19315_v1 = vpop.f32.mrb[110].mxu0 }
 0x688   : > { %10454 = vst.msk [vmem:[%s19157_s15 + $0x50] sm:$0xff] %vm10443_vm1, %v19310_v13  ;;  %v19321_v49 = vadd.f32 %v10192_v36, %v19145_v38  ;;  %v10194_v50 = vpop.f32.mrb[199].mxu1  ;;  %v19323_v25 = vpop.f32.mrb[111].mxu0  ;;  %v10490_v21 = vsel %vm10443_vm1, %v19310_v13, -inf }
 0x689   : > { %10683 = vst [vmem:[%s19123_s28 + $0xf0] sm:$0xff] %v12855_v31  ;;  %v12857_v14 = vadd.f32 %v10194_v50, %v19150_v54  ;;  %10491 = vmax.xlane.f32.xlu0 %v10490_v21 }
 0x68a   : > { %10455 = vst.msk [vmem:[%s19157_s15 + $0x58] sm:$0xff] %vm10443_vm1, %v19321_v49  ;;  %v10493_v44 = vsel %vm10443_vm1, %v19321_v49, -inf }
 0x68b   : > { %10686 = vst [vmem:[%s19123_s28 + $0x108] sm:$0xff] %v12857_v14  ;;  %10494 = vmax.xlane.f32.xlu1 %v10493_v44 }
 0x68d   : > { %v10198_v3 = vpop.f32.mrb[200].mxu1 }
 0x68e   : > { %v19336_v42 = vadd.f32 %v10198_v3, %v19145_v38  ;;  %v10200_v47 = vpop.f32.mrb[201].mxu1 }
 0x68f   : > { %v12859_v15 = vadd.f32 %v10200_v47, %v19150_v54  ;;  %v10202_v32 = vpop.f32.mrb[202].mxu1 }
 0x690   : > { %10456 = vst.msk [vmem:[%s19157_s15 + $0x60] sm:$0xff] %vm10443_vm1, %v19336_v42  ;;  %v19343_v39 = vadd.f32 %v10202_v32, %v19145_v38  ;;  %v10204_v40 = vpop.f32.mrb[203].mxu1  ;;  %v10496_v17 = vsel %vm10443_vm1, %v19336_v42, -inf }
 0x691   : > { %10689 = vst [vmem:[%s19123_s28 + $0x120] sm:$0xff] %v12859_v15  ;;  %v12861_v58 = vadd.f32 %v10204_v40, %v19150_v54  ;;  %10497 = vmax.xlane.f32.xlu0 %v10496_v17 }
 0x692   : > { %10457 = vst.msk [vmem:[%s19157_s15 + $0x68] sm:$0xff] %vm10443_vm1, %v19343_v39  ;;  %v10499_v46 = vsel %vm10443_vm1, %v19343_v39, -inf }
 0x693   : > { %10692 = vst [vmem:[%s19123_s28 + $0x138] sm:$0xff] %v12861_v58  ;;  %10500 = vmax.xlane.f32.xlu1 %v10499_v46 }
 0x695   : > { %v10208_v53 = vpop.f32.mrb[204].mxu1 }
 0x696   : > { %v19356_v27 = vadd.f32 %v10208_v53, %v19145_v38  ;;  %v10210_v62 = vpop.f32.mrb[205].mxu1 }
 0x697   : > { %v12863_v28 = vadd.f32 %v10210_v62, %v19150_v54  ;;  %v10212_v12 = vpop.f32.mrb[206].mxu1 }
 0x698   : > { %10458 = vst.msk [vmem:[%s19157_s15 + $0x70] sm:$0xff] %vm10443_vm1, %v19356_v27  ;;  %v19363_v60 = vadd.f32 %v10212_v12, %v19145_v38  ;;  %v10214_v4 = vpop.f32.mrb[207].mxu1  ;;  %v10502_v18 = vsel %vm10443_vm1, %v19356_v27, -inf }
 0x699   : > { %10695 = vst [vmem:[%s19123_s28 + $0x150] sm:$0xff] %v12863_v28  ;;  %v12865_v8 = vadd.f32 %v10214_v4, %v19150_v54  ;;  %10503 = vmax.xlane.f32.xlu0 %v10502_v18 }
 0x69a   : > { %10459 = vst.msk [vmem:[%s19157_s15 + $0x78] sm:$0xff] %vm10443_vm1, %v19363_v60  ;;  %v10505_v57 = vsel %vm10443_vm1, %v19363_v60, -inf }
 0x69b   : > { %10698 = vst [vmem:[%s19123_s28 + $0x168] sm:$0xff] %v12865_v8  ;;  %10506 = vmax.xlane.f32.xlu1 %v10505_v57 }
 0x69d   : > { %v10311_v38 = vpop.f32.mrb[208].mxu1 }
 0x69e   : > { %v10312_v11 = vadd.f32 %v10311_v38, %v19116_v16  ;;  %v10313_v6 = vpop.f32.mrb[209].mxu1 }
 0x69f   : > { %v10314_v5 = vadd.f32 %v10313_v6, %v19118_v63  ;;  %v10315_v54 = vpop.f32.mrb[210].mxu1 }
 0x6a0   : > { %v10425_v22 = vadd.f32 %v19279_v2, %v10312_v11  ;;  %v10316_v51 = vadd.f32 %v10315_v54, %v19116_v16  ;;  %v10317_v37 = vpop.f32.mrb[211].mxu1 }
 0x6a1   : > { %v10427_v19 = vadd.f32 %v19284_v0, %v10314_v5  ;;  %v10318_v59 = vadd.f32 %v10317_v37, %v19118_v63 }
 0x6a2   : > { %10690 = vst [vmem:[%s19123_s28 + $0x128] sm:$0xff] %v10425_v22  ;;  %v10429_v35 = vadd.f32 %v19287_v41, %v10316_v51 }
 0x6a3   : > { %10691 = vst.msk [vmem:[%s19123_s28 + $0x130] sm:$0xff] %vm10654_vm0, %v10427_v19  ;;  %v10431_v26 = vadd.f32 %v19295_v45, %v10318_v59 }
 0x6a4   : > { %10693 = vst [vmem:[%s19123_s28 + $0x140] sm:$0xff] %v10429_v35 }
 0x6a5   : > { %10694 = vst.msk [vmem:[%s19123_s28 + $0x148] sm:$0xff] %vm10654_vm0, %v10431_v26  ;;  %v10321_v2 = vpop.f32.mrb[212].mxu1 }
 0x6a6   : > { %v10322_v48 = vadd.f32 %v10321_v2, %v19116_v16  ;;  %v10323_v0 = vpop.f32.mrb[213].mxu1 }
 0x6a7   : > { %v10324_v61 = vadd.f32 %v10323_v0, %v19118_v63  ;;  %v10325_v9 = vpop.f32.mrb[214].mxu1 }
 0x6a8   : > { %v10435_v29 = vadd.f32 %v19307_v52, %v10322_v48  ;;  %v10326_v41 = vadd.f32 %v10325_v9, %v19116_v16  ;;  %v10327_v31 = vpop.f32.mrb[215].mxu1 }
 0x6a9   : > { %v10437_v36 = vadd.f32 %v19312_v24, %v10324_v61  ;;  %v10328_v45 = vadd.f32 %v10327_v31, %v19118_v63 }
 0x6aa   : > { %10696 = vst [vmem:[%s19123_s28 + $0x158] sm:$0xff] %v10435_v29  ;;  %v10439_v50 = vadd.f32 %v19315_v1, %v10326_v41 }
 0x6ab   : > { %10697 = vst.msk [vmem:[%s19123_s28 + $0x160] sm:$0xff] %vm10654_vm0, %v10437_v36  ;;  %v10441_v21 = vadd.f32 %v19323_v25, %v10328_v45 }
 0x6ac   : > { %10699 = vst [vmem:[%s19123_s28 + $0x170] sm:$0xff] %v10439_v50 }
 0x6ad   : > { %10700 = vst.msk [vmem:[%s19123_s28 + $0x178] sm:$0xff] %vm10654_vm0, %v10441_v21 }
 0x6ee   : > { %v10462_v14 = vpop.xlane.xlu0 %10461 }
 0x6ef   : > { %v10508_v52 = vsub.f32 %v19160_v30, %v10462_v14 }
 0x6f1   : > { %v10524_v44 = vmul.f32 1.442695, %v10508_v52 }
 0x6f2   : > { %v10465_v16 = vpop.xlane.xlu0 %10464 }
 0x6f3   : > { %14725 = vpow2.f32 %v10524_v44  ;;  %v10509_v24 = vsub.f32 %v19170_v23, %v10465_v16 }
 0x6f5   : > { %v10526_v3 = vmul.f32 1.442695, %v10509_v24 }
 0x6f6   : > { %v10468_v63 = vpop.xlane.xlu1 %10467 }
 0x6f7   : > { %14727 = vpow2.f32 %v10526_v3  ;;  %v10510_v1 = vsub.f32 %v19190_v33, %v10468_v63 }
 0x6f9   : > { %v10528_v47 = vmul.f32 1.442695, %v10510_v1 }
 0x6fa   : > { %v10471_v15 = vpop.xlane.xlu1 %10470 }
 0x6fb   : > { %14729 = vpow2.f32 %v10528_v47  ;;  %v10511_v25 = vsub.f32 %v19200_v56, %v10471_v15 }
 0x6fd   : > { %v19407_v32 = vpop.eup %14725  ;;  %v10530_v40 = vmul.f32 1.442695, %v10511_v25 }
 0x6fe   : > { %v10474_v17 = vpop.xlane.xlu0 %10473  ;;  %v10556_v30 = vsel %vm10443_vm1, %v19407_v32, 0.0 }
 0x6ff   : > { %14731 = vpow2.f32 %v10530_v40  ;;  %v10512_v23 = vsub.f32 %v19220_v43, %v10474_v17  ;;  %10557 = vadd.xlane.f32.xlu0 %v10556_v30 }
 0x700   : > { %v10477_v58 = vpop.xlane.xlu1 %10476 }
 0x701   : > { %v19412_v46 = vpop.eup %14727  ;;  %v10532_v33 = vmul.f32 1.442695, %v10512_v23  ;;  %v10513_v53 = vsub.f32 %v19230_v34, %v10477_v58 }
 0x702   : > { %v10559_v56 = vsel %vm10443_vm1, %v19412_v46, 0.0 }
 0x703   : > { %14733 = vpow2.f32 %v10532_v33  ;;  %v10534_v62 = vmul.f32 1.442695, %v10513_v53  ;;  %10560 = vadd.xlane.f32.xlu1 %v10559_v56 }
 0x705   : > { %v19417_v28 = vpop.eup %14729  ;;  %14735 = vpow2.f32 %v10534_v62 }
 0x706   : > { %v10480_v12 = vpop.xlane.xlu0 %10479  ;;  %v10562_v43 = vsel %vm10443_vm1, %v19417_v28, 0.0 }
 0x707   : > { %v10514_v4 = vsub.f32 %v19250_v55, %v10480_v12  ;;  %10563 = vadd.xlane.f32.xlu0 %v10562_v43 }
 0x708   : > { %v10483_v18 = vpop.xlane.xlu1 %10482 }
 0x709   : > { %v19422_v8 = vpop.eup %14731  ;;  %v10536_v34 = vmul.f32 1.442695, %v10514_v4  ;;  %v10515_v57 = vsub.f32 %v19260_v7, %v10483_v18 }
 0x70a   : > { %v10565_v38 = vsel %vm10443_vm1, %v19422_v8, 0.0 }
 0x70b   : > { %14737 = vpow2.f32 %v10536_v34  ;;  %v10538_v11 = vmul.f32 1.442695, %v10515_v57  ;;  %10566 = vadd.xlane.f32.xlu1 %v10565_v38 }
 0x70d   : > { %v19427_v6 = vpop.eup %14733  ;;  %14739 = vpow2.f32 %v10538_v11 }
 0x70e   : > { %v10486_v5 = vpop.xlane.xlu0 %10485  ;;  %v10568_v55 = vsel %vm10443_vm1, %v19427_v6, 0.0 }
 0x70f   : > { %v19431_v54 = vpop.eup %14735  ;;  %v10516_v22 = vsub.f32 %v19282_v10, %v10486_v5  ;;  %10569 = vadd.xlane.f32.xlu0 %v10568_v55 }
 0x710   : > { %v10489_v51 = vpop.xlane.xlu1 %10488  ;;  %v10571_v7 = vsel %vm10443_vm1, %v19431_v54, 0.0 }
 0x711   : > { %v10540_v37 = vmul.f32 1.442695, %v10516_v22  ;;  %v10517_v19 = vsub.f32 %v19293_v20, %v10489_v51  ;;  %10572 = vadd.xlane.f32.xlu1 %v10571_v7 }
 0x713   : > { %14741 = vpow2.f32 %v10540_v37  ;;  %v10542_v59 = vmul.f32 1.442695, %v10517_v19 }
 0x715   : > { %v19437_v35 = vpop.eup %14737  ;;  %14743 = vpow2.f32 %v10542_v59 }
 0x716   : > { %v10492_v26 = vpop.xlane.xlu0 %10491  ;;  %v10574_v2 = vsel %vm10443_vm1, %v19437_v35, 0.0 }
 0x717   : > { %v19441_v48 = vpop.eup %14739  ;;  %v10518_v10 = vsub.f32 %v19310_v13, %v10492_v26  ;;  %10575 = vadd.xlane.f32.xlu0 %v10574_v2 }
 0x718   : > { %v10495_v0 = vpop.xlane.xlu1 %10494  ;;  %v10577_v61 = vsel %vm10443_vm1, %v19441_v48, 0.0 }
 0x719   : > { %v10544_v20 = vmul.f32 1.442695, %v10518_v10  ;;  %v10519_v9 = vsub.f32 %v19321_v49, %v10495_v0  ;;  %10578 = vadd.xlane.f32.xlu1 %v10577_v61 }
 0x71b   : > { %14745 = vpow2.f32 %v10544_v20  ;;  %v10546_v29 = vmul.f32 1.442695, %v10519_v9 }
 0x71d   : > { %v19447_v41 = vpop.eup %14741  ;;  %14747 = vpow2.f32 %v10546_v29 }
 0x71e   : > { %v10498_v31 = vpop.xlane.xlu0 %10497  ;;  %v10580_v36 = vsel %vm10443_vm1, %v19447_v41, 0.0 }
 0x71f   : > { %v19451_v45 = vpop.eup %14743  ;;  %v10520_v13 = vsub.f32 %v19336_v42, %v10498_v31  ;;  %10581 = vadd.xlane.f32.xlu0 %v10580_v36 }
 0x720   : > { %v10501_v50 = vpop.xlane.xlu1 %10500  ;;  %v10583_v21 = vsel %vm10443_vm1, %v19451_v45, 0.0 }
 0x721   : > { %v10548_v49 = vmul.f32 1.442695, %v10520_v13  ;;  %v10521_v14 = vsub.f32 %v19343_v39, %v10501_v50  ;;  %10584 = vadd.xlane.f32.xlu1 %v10583_v21 }
 0x723   : > { %14749 = vpow2.f32 %v10548_v49  ;;  %v10550_v52 = vmul.f32 1.442695, %v10521_v14 }
 0x725   : > { %v19457_v44 = vpop.eup %14745  ;;  %14751 = vpow2.f32 %v10550_v52 }
 0x726   : > { %v10504_v16 = vpop.xlane.xlu0 %10503  ;;  %v10586_v24 = vsel %vm10443_vm1, %v19457_v44, 0.0 }
 0x727   : > { %v19461_v3 = vpop.eup %14747  ;;  %v10522_v42 = vsub.f32 %v19356_v27, %v10504_v16  ;;  %10587 = vadd.xlane.f32.xlu0 %v10586_v24 }
 0x728   : > { %v10507_v63 = vpop.xlane.xlu1 %10506  ;;  %v10589_v1 = vsel %vm10443_vm1, %v19461_v3, 0.0 }
 0x729   : > { %v10552_v39 = vmul.f32 1.442695, %v10522_v42  ;;  %v10523_v47 = vsub.f32 %v19363_v60, %v10507_v63  ;;  %10590 = vadd.xlane.f32.xlu1 %v10589_v1 }
 0x72b   : > { %14753 = vpow2.f32 %v10552_v39  ;;  %v10554_v15 = vmul.f32 1.442695, %v10523_v47 }
 0x72d   : > { %v19467_v25 = vpop.eup %14749  ;;  %14755 = vpow2.f32 %v10554_v15 }
 0x72e   : > { %v10592_v40 = vsel %vm10443_vm1, %v19467_v25, 0.0 }
 0x72f   : > { %v19471_v17 = vpop.eup %14751  ;;  %10593 = vadd.xlane.f32.xlu0 %v10592_v40 }
 0x730   : > { %v10595_v27 = vsel %vm10443_vm1, %v19471_v17, 0.0 }
 0x731   : > { %10596 = vadd.xlane.f32.xlu1 %v10595_v27 }
 0x735   : > { %v19475_v30 = vpop.eup %14753 }
 0x736   : > { %v10598_v60 = vsel %vm10443_vm1, %v19475_v30, 0.0 }
 0x737   : > { %v19479_v23 = vpop.eup %14755  ;;  %10599 = vadd.xlane.f32.xlu0 %v10598_v60 }
 0x738   : > { %v10601_v58 = vsel %vm10443_vm1, %v19479_v23, 0.0 }
 0x739   : > { %10602 = vadd.xlane.f32.xlu1 %v10601_v58 }
 0x78c   : > { %v10558_v33 = vpop.xlane.xlu0 %10557 }
 0x78d   : > { %14757 = vrcp.f32 %v10558_v33 }
 0x790   : > { %v10561_v53 = vpop.xlane.xlu1 %10560 }
 0x791   : > { %14759 = vrcp.f32 %v10561_v53 }
 0x794   : > { %v10564_v56 = vpop.xlane.xlu0 %10563 }
 0x795   : > { %14761 = vrcp.f32 %v10564_v56 }
 0x797   : > { %v14758_v62 = vpop.eup %14757 }
 0x798   : > { %v10620_v12 = vmul.f32 %v14758_v62, %v19407_v32  ;;  %v10567_v43 = vpop.xlane.xlu1 %10566 }
 0x799   : > { %14763 = vrcp.f32 %v10567_v43 }
 0x79a   : > { %10636 = vst.msk [vmem:[%s19488_s18] sm:$0xff] %vm10443_vm1, %v10620_v12 }
 0x79b   : > { %v14760_v4 = vpop.eup %14759 }
 0x79c   : > { %v10621_v18 = vmul.f32 %v14760_v4, %v19412_v46  ;;  %v10570_v34 = vpop.xlane.xlu0 %10569 }
 0x79d   : > { %14765 = vrcp.f32 %v10570_v34 }
 0x79e   : > { %10637 = vst.msk [vmem:[%s19488_s18 + $0x8] sm:$0xff] %vm10443_vm1, %v10621_v18  ;;  %v10573_v57 = vpop.xlane.xlu1 %10572 }
 0x79f   : > { %v14762_v38 = vpop.eup %14761  ;;  %14767 = vrcp.f32 %v10573_v57 }
 0x7a0   : > { %v10622_v11 = vmul.f32 %v14762_v38, %v19417_v28 }
 0x7a2   : > { %10638 = vst.msk [vmem:[%s19488_s18 + $0x10] sm:$0xff] %vm10443_vm1, %v10622_v11 }
 0x7a3   : > { %v14764_v32 = vpop.eup %14763 }
 0x7a4   : > { %v10623_v5 = vmul.f32 %v14764_v32, %v19422_v8  ;;  %v10576_v55 = vpop.xlane.xlu0 %10575 }
 0x7a5   : > { %14769 = vrcp.f32 %v10576_v55 }
 0x7a6   : > { %10639 = vst.msk [vmem:[%s19488_s18 + $0x18] sm:$0xff] %vm10443_vm1, %v10623_v5  ;;  %v10579_v46 = vpop.xlane.xlu1 %10578 }
 0x7a7   : > { %v14766_v22 = vpop.eup %14765  ;;  %14771 = vrcp.f32 %v10579_v46 }
 0x7a8   : > { %v10624_v51 = vmul.f32 %v14766_v22, %v19427_v6 }
 0x7a9   : > { %v14768_v7 = vpop.eup %14767 }
 0x7aa   : > { %10640 = vst.msk [vmem:[%s19488_s18 + $0x20] sm:$0xff] %vm10443_vm1, %v10624_v51  ;;  %v10625_v28 = vmul.f32 %v14768_v7, %v19431_v54 }
 0x7ac   : > { %10641 = vst.msk [vmem:[%s19488_s18 + $0x28] sm:$0xff] %vm10443_vm1, %v10625_v28  ;;  %v10582_v37 = vpop.xlane.xlu0 %10581 }
 0x7ad   : > { %14773 = vrcp.f32 %v10582_v37 }
 0x7ae   : > { %v10585_v8 = vpop.xlane.xlu1 %10584 }
 0x7af   : > { %v14770_v19 = vpop.eup %14769  ;;  %14775 = vrcp.f32 %v10585_v8 }
 0x7b0   : > { %v10626_v59 = vmul.f32 %v14770_v19, %v19437_v35 }
 0x7b1   : > { %v14772_v26 = vpop.eup %14771 }
 0x7b2   : > { %10642 = vst.msk [vmem:[%s19488_s18 + $0x30] sm:$0xff] %vm10443_vm1, %v10626_v59  ;;  %v10627_v6 = vmul.f32 %v14772_v26, %v19441_v48 }
 0x7b4   : > { %10643 = vst.msk [vmem:[%s19488_s18 + $0x38] sm:$0xff] %vm10443_vm1, %v10627_v6  ;;  %v10588_v2 = vpop.xlane.xlu0 %10587 }
 0x7b5   : > { %14777 = vrcp.f32 %v10588_v2 }
 0x7b6   : > { %v10591_v54 = vpop.xlane.xlu1 %10590 }
 0x7b7   : > { %v14774_v10 = vpop.eup %14773  ;;  %14779 = vrcp.f32 %v10591_v54 }
 0x7b8   : > { %v10628_v0 = vmul.f32 %v14774_v10, %v19447_v41 }
 0x7b9   : > { %v14776_v61 = vpop.eup %14775 }
 0x7ba   : > { %10644 = vst.msk [vmem:[%s19488_s18 + $0x40] sm:$0xff] %vm10443_vm1, %v10628_v0  ;;  %v10629_v35 = vmul.f32 %v14776_v61, %v19451_v45 }
 0x7bc   : > { %10645 = vst.msk [vmem:[%s19488_s18 + $0x48] sm:$0xff] %vm10443_vm1, %v10629_v35  ;;  %v10594_v20 = vpop.xlane.xlu0 %10593 }
 0x7bd   : > { %14781 = vrcp.f32 %v10594_v20 }
 0x7be   : > { %v10597_v48 = vpop.xlane.xlu1 %10596 }
 0x7bf   : > { %v14778_v9 = vpop.eup %14777  ;;  %14783 = vrcp.f32 %v10597_v48 }
 0x7c0   : > { %v10630_v29 = vmul.f32 %v14778_v9, %v19457_v44 }
 0x7c1   : > { %v14780_v31 = vpop.eup %14779 }
 0x7c2   : > { %10646 = vst.msk [vmem:[%s19488_s18 + $0x50] sm:$0xff] %vm10443_vm1, %v10630_v29  ;;  %v10631_v41 = vmul.f32 %v14780_v31, %v19461_v3 }
 0x7c4   : > { %10647 = vst.msk [vmem:[%s19488_s18 + $0x58] sm:$0xff] %vm10443_vm1, %v10631_v41  ;;  %v10600_v36 = vpop.xlane.xlu0 %10599 }
 0x7c5   : > { %14785 = vrcp.f32 %v10600_v36 }
 0x7c6   : > { %v10603_v45 = vpop.xlane.xlu1 %10602 }
 0x7c7   : > { %v14782_v13 = vpop.eup %14781  ;;  %14787 = vrcp.f32 %v10603_v45 }
 0x7c8   : > { %v10632_v50 = vmul.f32 %v14782_v13, %v19467_v25 }
 0x7c9   : > { %v14784_v21 = vpop.eup %14783 }
 0x7ca   : > { %10648 = vst.msk [vmem:[%s19488_s18 + $0x60] sm:$0xff] %vm10443_vm1, %v10632_v50  ;;  %v10633_v49 = vmul.f32 %v14784_v21, %v19471_v17 }
 0x7cc   : > { %10649 = vst.msk [vmem:[%s19488_s18 + $0x68] sm:$0xff] %vm10443_vm1, %v10633_v49 }
 0x7cf   : > { %v14786_v14 = vpop.eup %14785 }
 0x7d0   : > { %v10634_v52 = vmul.f32 %v14786_v14, %v19475_v30 }
 0x7d1   : > { %v14788_v44 = vpop.eup %14787 }
 0x7d2   : > { %10650 = vst.msk [vmem:[%s19488_s18 + $0x70] sm:$0xff] %vm10443_vm1, %v10634_v52  ;;  %v10635_v16 = vmul.f32 %v14788_v44, %v19479_v23 }
 0x7d4   : > { %10651 = vst.msk [vmem:[%s19488_s18 + $0x78] sm:$0xff] %vm10443_vm1, %v10635_v16 }
 0x7d5 PF: > { %s20_s30 = sadd.s32 1, %s14796_s30  }
 0x7d6   : > { %p17_p4 = scmp.ge.s32.totalorder %s20_s30, 4  }
 0x7d8   :  { %19 = sbr.rel (!%p17_p4) target bundleno = 1 (0x1), region = 102 }

</bundles_post_ra>
